<compile_context>
chip_gen: v5e
topology: v5e:2x2
jax: 0.10.0
libtpu: 0.0.40
codegen_flags: <defaults>
</compile_context>

<pallas_src>
import functools

import jax
import jax.numpy as jnp
from jax import lax
from jax.experimental import pallas as pl
from jax.experimental.pallas import tpu as pltpu

EPS = 1e-5
LEAKY_SLOPE = 0.01  # torch.nn.LeakyReLU default


def _round_up(x, m):
    return (x + m - 1) // m * m


def _layernorm(x, gamma, beta):
    mu = jnp.mean(x, axis=-1, keepdims=True)
    d = x - mu
    var = jnp.mean(d * d, axis=-1, keepdims=True)
    return d * lax.rsqrt(var + EPS) * gamma + beta


def _mm(a, b, cast_bf16):
    if cast_bf16:
        a = a.astype(jnp.bfloat16)
        b = b.astype(jnp.bfloat16)
    return jnp.dot(a, b, preferred_element_type=jnp.float32)


# vec-slab row layout ([16, 256] f32, each row zero-padded):
#  0 ln1_g(100)  1 ln1_b(100)  2 ln2_g(4)   3 ln2_b(4)
#  4 b1a(200)    5 b1b(50)     6 b2a(10)    7 b2b(20)
#  8 ln3_g[:50]  9 ln3_g[50:] 10 ln3_b[:50] 11 ln3_b[50:]
# 12 bl1(70)    13 bl2[:50]   14 bl2[50:]   15 bc(2)
#
# smallw-slab row layout ([104, 128] f32, zero-padded):
#  rows  0:4   lanes 0:10 -> w2a   (4,10)
#  rows  8:18  lanes 0:20 -> w2b   (10,20)
#  rows 24:74  lanes 0:2  -> wc[:50]  (50,2)
#  rows 80:100 lanes 0:2  -> wc[50:]  (20,2)


def pair_mlp_kernel(xin_ref, vec_ref, sw_ref,
                    w1a_ref, w1b_ref, wl1a_ref, wl1b_ref, wl2a_ref, wl2b_ref,
                    out_ref, *, cast_bf16=False):
    f32 = jnp.float32

    xin = xin_ref[...].astype(f32)            # [tb, 104] fused input
    x = xin[:, 0:100]                         # embedding lanes
    p = xin[:, 100:104]                       # pair_feats lanes

    # ---- packed small parameters ----
    ln1g = vec_ref[0:1, 0:100]
    ln1b = vec_ref[1:2, 0:100]
    ln2g = vec_ref[2:3, 0:4]
    ln2b = vec_ref[3:4, 0:4]
    b1a = vec_ref[4:5, 0:200]
    b1b = vec_ref[5:6, 0:50]
    b2a = vec_ref[6:7, 0:10]
    b2b = vec_ref[7:8, 0:20]
    ln3ga = vec_ref[8:9, 0:50]
    ln3gb = vec_ref[9:10, 0:20]
    ln3ba = vec_ref[10:11, 0:50]
    ln3bb = vec_ref[11:12, 0:20]
    bl1 = vec_ref[12:13, 0:70]
    bl2a = vec_ref[13:14, 0:50]
    bl2b = vec_ref[14:15, 0:20]
    bc = vec_ref[15:16, 0:128]                # zero-padded to 128 lanes

    w2a = sw_ref[0:4, 0:10]                   # [4, 10]
    w2b = sw_ref[8:18, 0:20]                  # [10, 20]
    wc1 = sw_ref[24:74, :]                    # [50, 128] (lanes >= 2 are zero)
    wc2 = sw_ref[80:100, :]                   # [20, 128]

    # ---- branch 1: ln1 -> Linear(100,200) -> ReLU -> Linear(200,50) ----
    xn = _layernorm(x, ln1g, ln1b)
    h = jnp.maximum(_mm(xn, w1a_ref[...], cast_bf16) + b1a, 0.0)
    h1 = _mm(h, w1b_ref[...], cast_bf16) + b1b                 # [tb, 50]

    # ---- branch 2: ln2 -> Linear(4,10) -> LeakyReLU -> Linear(10,20) (MXU) ----
    pn = _layernorm(p, ln2g, ln2b)
    g = jnp.dot(pn, w2a, preferred_element_type=f32) + b2a
    g = jnp.where(g > 0.0, g, LEAKY_SLOPE * g)
    h2 = jnp.dot(g, w2b, preferred_element_type=f32) + b2b     # [tb, 20]

    # ---- LayerNorm-3 over the virtual concat [h1 | h2] (width 70) via
    # partial sums (no lane-misaligned concat is materialized).
    inv_n = 1.0 / 70.0
    mu = (jnp.sum(h1, -1, keepdims=True) + jnp.sum(h2, -1, keepdims=True)) * inv_n
    d1 = h1 - mu
    d2 = h2 - mu
    var = (jnp.sum(d1 * d1, -1, keepdims=True)
           + jnp.sum(d2 * d2, -1, keepdims=True)) * inv_n
    rstd = lax.rsqrt(var + EPS)
    hn1 = d1 * rstd * ln3ga + ln3ba                            # [tb, 50]
    hn2 = d2 * rstd * ln3gb + ln3bb                            # [tb, 20]

    # ---- residual MLP: Linear(70,70) -> ReLU -> Linear(70,70), + hn ----
    t = jnp.maximum(_mm(hn1, wl1a_ref[...], cast_bf16)
                    + _mm(hn2, wl1b_ref[...], cast_bf16) + bl1, 0.0)
    r1 = jnp.maximum(_mm(t, wl2a_ref[...], cast_bf16) + bl2a + hn1, 0.0)
    r2 = jnp.maximum(_mm(t, wl2b_ref[...], cast_bf16) + bl2b + hn2, 0.0)

    # ---- classifier (70 -> 2), padded to 128 output lanes so the transpose
    # below is the fully (8,128)-aligned case; then a lane-dense [2, tb] store.
    y = (jnp.dot(r1, wc1, preferred_element_type=f32)
         + jnp.dot(r2, wc2, preferred_element_type=f32) + bc)  # [tb, 128]
    yt = jnp.transpose(y)                                      # [128, tb]
    out_ref[...] = yt[0:2, :].astype(out_ref.dtype)            # [2, tb]


def _choose_tb(B, tb_target):
    """Pick a batch tile: multiple of 128, <= target, >=2 grid steps if possible."""
    tb_target = max(128, _round_up(tb_target, 128))
    B128 = _round_up(B, 128)
    if B128 < 256:
        return 128                     # single step; block spans the whole batch
    half = max(128, (B128 // 2) // 128 * 128)
    return min(tb_target, half)


def pair_mlp_forward(embedding, pair_feats, params, *, tb=1024, cast_bf16=False):
    B = embedding.shape[0]
    tb = _choose_tb(B, tb)
    Bp = _round_up(B, tb)

    # Fuse pair_feats into the embedding rows: one [Bp, 104] DMA stream.
    xin = jnp.concatenate(
        [embedding.astype(jnp.float32), pair_feats.astype(jnp.float32)], axis=-1)
    if Bp != B:
        xin = jnp.pad(xin, ((0, Bp - B), (0, 0)))

    # Pack the 16 [1,N] LayerNorm / bias vectors into one [16, 256] slab.
    vec_entries = [
        params["ln1_g"], params["ln1_b"], params["ln2_g"], params["ln2_b"],
        params["b1a"], params["b1b"], params["b2a"], params["b2b"],
        params["ln3_g"][:, :50], params["ln3_g"][:, 50:],
        params["ln3_b"][:, :50], params["ln3_b"][:, 50:],
        params["bl1"], params["bl2"][:, :50], params["bl2"][:, 50:],
        params["bc"],
    ]
    vec = jnp.zeros((16, 256), jnp.float32)
    for r, v in enumerate(vec_entries):
        v = v.reshape(1, -1)
        vec = vec.at[r, :v.shape[1]].set(v[0])

    # Pack the tiny weights (branch-2 + classifier) into one [104, 128] slab.
    sw = jnp.zeros((104, 128), jnp.float32)
    sw = sw.at[0:4, 0:10].set(params["w2a"])
    sw = sw.at[8:18, 0:20].set(params["w2b"])
    sw = sw.at[24:74, 0:2].set(params["wc"][:50, :])
    sw = sw.at[80:100, 0:2].set(params["wc"][50:, :])

    # Pre-split the 70-wide residual weights at the 50/20 lane boundary.
    wl1a = params["wl1"][:50, :]          # [50, 70]
    wl1b = params["wl1"][50:, :]          # [20, 70]
    wl2a = params["wl2"][:, :50]          # [70, 50]
    wl2b = params["wl2"][:, 50:]          # [70, 20]
    big_params = [params["w1a"], params["w1b"], wl1a, wl1b, wl2a, wl2b]

    grid = (Bp // tb,)
    in_specs = [
        pl.BlockSpec((tb, 104), lambda i: (i, 0)),     # fused input tile
        pl.BlockSpec((16, 256), lambda i: (0, 0)),     # packed vectors (grid-invariant)
        pl.BlockSpec((104, 128), lambda i: (0, 0)),    # packed tiny weights
    ]
    for par in big_params:                             # grid-invariant big weights
        in_specs.append(pl.BlockSpec(par.shape, lambda i: (0, 0)))

    # Lane-dense, transposed output: [2, Bp] with block (2, tb), tb % 128 == 0.
    out_spec = pl.BlockSpec((2, tb), lambda i: (0, i))

    kernel = functools.partial(pair_mlp_kernel, cast_bf16=cast_bf16)
    out_t = pl.pallas_call(
        kernel,
        out_shape=jax.ShapeDtypeStruct((2, Bp), jnp.float32),
        grid_spec=pltpu.PrefetchScalarGridSpec(
            num_scalar_prefetch=0,
            grid=grid,
            in_specs=in_specs,
            out_specs=out_spec,
        ),
        compiler_params=pltpu.CompilerParams(
            dimension_semantics=("parallel",),          # shards grid across v7x's 2 TCs
            vmem_limit_bytes=32 * 1024 * 1024,          # raises v5e's 16 MiB default
        ),
    )(xin, vec, sw, *big_params)
    return out_t[:, :B].T


def init_params(key):
    """Deterministic synthetic parameters (PyTorch-default-ish uniform init).

    Linear weights are stored pre-transposed as [in, out]; all 1-D params
    (LayerNorm gains/biases, Linear biases) are stored as [1, N].
    """
    def lin(key, fan_in, fan_out):
        kw, kb = jax.random.split(key)
        bound = 1.0 / jnp.sqrt(fan_in)
        w = jax.random.uniform(kw, (fan_in, fan_out), jnp.float32, -bound, bound)
        b = jax.random.uniform(kb, (1, fan_out), jnp.float32, -bound, bound)
        return w, b

    keys = jax.random.split(key, 7)
    p = {}
    p["ln1_g"] = jnp.ones((1, 100), jnp.float32)
    p["ln1_b"] = jnp.zeros((1, 100), jnp.float32)
    p["ln2_g"] = jnp.ones((1, 4), jnp.float32)
    p["ln2_b"] = jnp.zeros((1, 4), jnp.float32)
    p["ln3_g"] = jnp.ones((1, 70), jnp.float32)
    p["ln3_b"] = jnp.zeros((1, 70), jnp.float32)
    p["w1a"], p["b1a"] = lin(keys[0], 100, 200)
    p["w1b"], p["b1b"] = lin(keys[1], 200, 50)
    p["w2a"], p["b2a"] = lin(keys[2], 4, 10)
    p["w2b"], p["b2b"] = lin(keys[3], 10, 20)
    p["wl1"], p["bl1"] = lin(keys[4], 70, 70)
    p["wl2"], p["bl2"] = lin(keys[5], 70, 70)
    p["wc"], p["bc"] = lin(keys[6], 70, 2)
    return p


def reference_forward(embedding, pair_feats, p):
    """Plain-JAX reference of the PyTorch forward, for verification."""
    def ln(x, g, b):
        mu = jnp.mean(x, -1, keepdims=True)
        var = jnp.mean((x - mu) ** 2, -1, keepdims=True)
        return (x - mu) / jnp.sqrt(var + EPS) * g + b

    x = ln(embedding, p["ln1_g"], p["ln1_b"])
    h1 = jnp.maximum(x @ p["w1a"] + p["b1a"], 0.0) @ p["w1b"] + p["b1b"]
    q = ln(pair_feats, p["ln2_g"], p["ln2_b"])
    g2 = q @ p["w2a"] + p["b2a"]
    g2 = jnp.where(g2 > 0, g2, LEAKY_SLOPE * g2)
    h2 = g2 @ p["w2b"] + p["b2b"]
    h = ln(jnp.concatenate([h1, h2], axis=-1), p["ln3_g"], p["ln3_b"])
    last = jnp.maximum(h @ p["wl1"] + p["bl1"], 0.0) @ p["wl2"] + p["bl2"] + h
    return jnp.maximum(last, 0.0) @ p["wc"] + p["bc"]


if __name__ == "__main__":
    key = jax.random.PRNGKey(0)
    k_emb, k_pf, k_par = jax.random.split(key, 3)

    B = 512  # small demo batch; tb=256 -> grid of 2 steps
    embedding = jax.random.normal(k_emb, (B, 100), jnp.float32)
    pair_feats = jax.random.normal(k_pf, (B, 4), jnp.float32)
    params = init_params(k_par)

    out = pair_mlp_forward(embedding, pair_feats, params, tb=1024)
    out = jax.block_until_ready(out)

    ref = reference_forward(embedding, pair_feats, params)
    assert out.shape == (B, 2)
    assert jnp.allclose(out, ref, atol=1e-4, rtol=1e-4), "mismatch vs reference"

    print("KERNEL_OK")
</pallas_src>

<mosaic_0001>
module attributes {stable_mosaic.version = 11 : i64} {
  func.func @pair_mlp_kernel(%arg0: i32, %arg1: memref<256x104xf32, #tpu.memory_space<vmem>>, %arg2: memref<16x256xf32, #tpu.memory_space<vmem>>, %arg3: memref<104x128xf32, #tpu.memory_space<vmem>>, %arg4: memref<100x200xf32, #tpu.memory_space<vmem>>, %arg5: memref<200x50xf32, #tpu.memory_space<vmem>>, %arg6: memref<50x70xf32, #tpu.memory_space<vmem>>, %arg7: memref<20x70xf32, #tpu.memory_space<vmem>>, %arg8: memref<70x50xf32, #tpu.memory_space<vmem>>, %arg9: memref<70x20xf32, #tpu.memory_space<vmem>>, %arg10: memref<2x256xf32, #tpu.memory_space<vmem>>) attributes {dimension_semantics = [#tpu.dimension_semantics<parallel>], iteration_bounds = array<i64: 2>, scalar_prefetch = 0 : i64, scratch_operands = 0 : i64, tpu.core_type = #tpu.core_type<tc>, window_params = [{transform_indices = @transform_0, window_bounds = array<i64: 256, 104>}, {pipeline_mode = #tpu.pipeline_mode<synchronous>, transform_indices = @transform_1, window_bounds = array<i64: 16, 256>}, {pipeline_mode = #tpu.pipeline_mode<synchronous>, transform_indices = @transform_2, window_bounds = array<i64: 104, 128>}, {pipeline_mode = #tpu.pipeline_mode<synchronous>, transform_indices = @transform_3, window_bounds = array<i64: 100, 200>}, {pipeline_mode = #tpu.pipeline_mode<synchronous>, transform_indices = @transform_4, window_bounds = array<i64: 200, 50>}, {pipeline_mode = #tpu.pipeline_mode<synchronous>, transform_indices = @transform_5, window_bounds = array<i64: 50, 70>}, {pipeline_mode = #tpu.pipeline_mode<synchronous>, transform_indices = @transform_6, window_bounds = array<i64: 20, 70>}, {pipeline_mode = #tpu.pipeline_mode<synchronous>, transform_indices = @transform_7, window_bounds = array<i64: 70, 50>}, {pipeline_mode = #tpu.pipeline_mode<synchronous>, transform_indices = @transform_8, window_bounds = array<i64: 70, 20>}, {transform_indices = @transform_9, window_bounds = array<i64: 2, 256>}]} {
    %c0 = arith.constant 0 : index
    %c0_0 = arith.constant 0 : index
    %0 = vector.load %arg1[%c0, %c0_0] : memref<256x104xf32, #tpu.memory_space<vmem>>, vector<256x104xf32>
    %1 = vector.extract_strided_slice %0 {offsets = [0, 0], sizes = [256, 100], strides = [1, 1]} : vector<256x104xf32> to vector<256x100xf32>
    %2 = vector.extract_strided_slice %0 {offsets = [0, 100], sizes = [256, 4], strides = [1, 1]} : vector<256x104xf32> to vector<256x4xf32>
    %c0_1 = arith.constant 0 : index
    %c0_2 = arith.constant 0 : index
    %3 = vector.load %arg2[%c0_1, %c0_2] : memref<16x256xf32, #tpu.memory_space<vmem>>, vector<1x100xf32>
    %c1 = arith.constant 1 : index
    %c0_3 = arith.constant 0 : index
    %4 = vector.load %arg2[%c1, %c0_3] : memref<16x256xf32, #tpu.memory_space<vmem>>, vector<1x100xf32>
    %c2 = arith.constant 2 : index
    %c0_4 = arith.constant 0 : index
    %5 = vector.load %arg2[%c2, %c0_4] : memref<16x256xf32, #tpu.memory_space<vmem>>, vector<1x4xf32>
    %c3 = arith.constant 3 : index
    %c0_5 = arith.constant 0 : index
    %6 = vector.load %arg2[%c3, %c0_5] : memref<16x256xf32, #tpu.memory_space<vmem>>, vector<1x4xf32>
    %c4 = arith.constant 4 : index
    %c0_6 = arith.constant 0 : index
    %7 = vector.load %arg2[%c4, %c0_6] : memref<16x256xf32, #tpu.memory_space<vmem>>, vector<1x200xf32>
    %c5 = arith.constant 5 : index
    %c0_7 = arith.constant 0 : index
    %8 = vector.load %arg2[%c5, %c0_7] : memref<16x256xf32, #tpu.memory_space<vmem>>, vector<1x50xf32>
    %c6 = arith.constant 6 : index
    %c0_8 = arith.constant 0 : index
    %9 = vector.load %arg2[%c6, %c0_8] : memref<16x256xf32, #tpu.memory_space<vmem>>, vector<1x10xf32>
    %c7 = arith.constant 7 : index
    %c0_9 = arith.constant 0 : index
    %10 = vector.load %arg2[%c7, %c0_9] : memref<16x256xf32, #tpu.memory_space<vmem>>, vector<1x20xf32>
    %c8 = arith.constant 8 : index
    %c0_10 = arith.constant 0 : index
    %11 = vector.load %arg2[%c8, %c0_10] : memref<16x256xf32, #tpu.memory_space<vmem>>, vector<1x50xf32>
    %c9 = arith.constant 9 : index
    %c0_11 = arith.constant 0 : index
    %12 = vector.load %arg2[%c9, %c0_11] : memref<16x256xf32, #tpu.memory_space<vmem>>, vector<1x20xf32>
    %c10 = arith.constant 10 : index
    %c0_12 = arith.constant 0 : index
    %13 = vector.load %arg2[%c10, %c0_12] : memref<16x256xf32, #tpu.memory_space<vmem>>, vector<1x50xf32>
    %c11 = arith.constant 11 : index
    %c0_13 = arith.constant 0 : index
    %14 = vector.load %arg2[%c11, %c0_13] : memref<16x256xf32, #tpu.memory_space<vmem>>, vector<1x20xf32>
    %c12 = arith.constant 12 : index
    %c0_14 = arith.constant 0 : index
    %15 = vector.load %arg2[%c12, %c0_14] : memref<16x256xf32, #tpu.memory_space<vmem>>, vector<1x70xf32>
    %c13 = arith.constant 13 : index
    %c0_15 = arith.constant 0 : index
    %16 = vector.load %arg2[%c13, %c0_15] : memref<16x256xf32, #tpu.memory_space<vmem>>, vector<1x50xf32>
    %c14 = arith.constant 14 : index
    %c0_16 = arith.constant 0 : index
    %17 = vector.load %arg2[%c14, %c0_16] : memref<16x256xf32, #tpu.memory_space<vmem>>, vector<1x20xf32>
    %c15 = arith.constant 15 : index
    %c0_17 = arith.constant 0 : index
    %18 = vector.load %arg2[%c15, %c0_17] : memref<16x256xf32, #tpu.memory_space<vmem>>, vector<1x128xf32>
    %c0_18 = arith.constant 0 : index
    %c0_19 = arith.constant 0 : index
    %19 = vector.load %arg3[%c0_18, %c0_19] : memref<104x128xf32, #tpu.memory_space<vmem>>, vector<4x10xf32>
    %c8_20 = arith.constant 8 : index
    %c0_21 = arith.constant 0 : index
    %20 = vector.load %arg3[%c8_20, %c0_21] : memref<104x128xf32, #tpu.memory_space<vmem>>, vector<10x20xf32>
    %c24 = arith.constant 24 : index
    %c0_22 = arith.constant 0 : index
    %21 = vector.load %arg3[%c24, %c0_22] : memref<104x128xf32, #tpu.memory_space<vmem>>, vector<50x128xf32>
    %c80 = arith.constant 80 : index
    %c0_23 = arith.constant 0 : index
    %22 = vector.load %arg3[%c80, %c0_23] : memref<104x128xf32, #tpu.memory_space<vmem>>, vector<20x128xf32>
    %cst = arith.constant dense<0.000000e+00> : vector<256xf32>
    %23 = vector.multi_reduction <add>, %1, %cst [1] : vector<256x100xf32> to vector<256xf32>
    %24 = vector.shape_cast %23 : vector<256xf32> to vector<256x1xf32>
    %cst_24 = arith.constant 1.000000e+02 : f32
    %25 = vector.broadcast %cst_24 : f32 to vector<256x1xf32>
    %26 = arith.divf %24, %25 : vector<256x1xf32>
    %27 = vector.broadcast %26 : vector<256x1xf32> to vector<256x100xf32>
    %28 = arith.subf %1, %27 : vector<256x100xf32>
    %29 = arith.mulf %28, %28 : vector<256x100xf32>
    %cst_25 = arith.constant dense<0.000000e+00> : vector<256xf32>
    %30 = vector.multi_reduction <add>, %29, %cst_25 [1] : vector<256x100xf32> to vector<256xf32>
    %31 = vector.shape_cast %30 : vector<256xf32> to vector<256x1xf32>
    %cst_26 = arith.constant 1.000000e+02 : f32
    %32 = vector.broadcast %cst_26 : f32 to vector<256x1xf32>
    %33 = arith.divf %31, %32 : vector<256x1xf32>
    %cst_27 = arith.constant 9.99999974E-6 : f32
    %34 = vector.broadcast %cst_27 : f32 to vector<256x1xf32>
    %35 = arith.addf %33, %34 : vector<256x1xf32>
    %36 = math.rsqrt %35 : vector<256x1xf32>
    %37 = vector.broadcast %36 : vector<256x1xf32> to vector<256x100xf32>
    %38 = arith.mulf %28, %37 : vector<256x100xf32>
    %39 = vector.broadcast %3 : vector<1x100xf32> to vector<256x100xf32>
    %40 = arith.mulf %38, %39 : vector<256x100xf32>
    %41 = vector.broadcast %4 : vector<1x100xf32> to vector<256x100xf32>
    %42 = arith.addf %40, %41 : vector<256x100xf32>
    %c0_28 = arith.constant 0 : index
    %c0_29 = arith.constant 0 : index
    %43 = vector.load %arg4[%c0_28, %c0_29] : memref<100x200xf32, #tpu.memory_space<vmem>>, vector<100x200xf32>
    %cst_30 = arith.constant dense<0.000000e+00> : vector<256x200xf32>
    %44 = tpu.matmul %42, %43, %cst_30 {dimension_numbers = #tpu.dot_dimension_numbers<[1], [0], [0], [1], [0, 0, 1, 1], [], []>} : vector<256x100xf32>, vector<100x200xf32>, vector<256x200xf32> -> vector<256x200xf32>
    %45 = vector.broadcast %7 : vector<1x200xf32> to vector<256x200xf32>
    %46 = arith.addf %44, %45 : vector<256x200xf32>
    %cst_31 = arith.constant 0.000000e+00 : f32
    %47 = vector.broadcast %cst_31 : f32 to vector<256x200xf32>
    %48 = arith.maximumf %46, %47 : vector<256x200xf32>
    %c0_32 = arith.constant 0 : index
    %c0_33 = arith.constant 0 : index
    %49 = vector.load %arg5[%c0_32, %c0_33] : memref<200x50xf32, #tpu.memory_space<vmem>>, vector<200x50xf32>
    %cst_34 = arith.constant dense<0.000000e+00> : vector<256x50xf32>
    %50 = tpu.matmul %48, %49, %cst_34 {dimension_numbers = #tpu.dot_dimension_numbers<[1], [0], [0], [1], [0, 0, 1, 1], [], []>} : vector<256x200xf32>, vector<200x50xf32>, vector<256x50xf32> -> vector<256x50xf32>
    %51 = vector.broadcast %8 : vector<1x50xf32> to vector<256x50xf32>
    %52 = arith.addf %50, %51 : vector<256x50xf32>
    %cst_35 = arith.constant dense<0.000000e+00> : vector<256xf32>
    %53 = vector.multi_reduction <add>, %2, %cst_35 [1] : vector<256x4xf32> to vector<256xf32>
    %54 = vector.shape_cast %53 : vector<256xf32> to vector<256x1xf32>
    %cst_36 = arith.constant 4.000000e+00 : f32
    %55 = vector.broadcast %cst_36 : f32 to vector<256x1xf32>
    %56 = arith.divf %54, %55 : vector<256x1xf32>
    %57 = vector.broadcast %56 : vector<256x1xf32> to vector<256x4xf32>
    %58 = arith.subf %2, %57 : vector<256x4xf32>
    %59 = arith.mulf %58, %58 : vector<256x4xf32>
    %cst_37 = arith.constant dense<0.000000e+00> : vector<256xf32>
    %60 = vector.multi_reduction <add>, %59, %cst_37 [1] : vector<256x4xf32> to vector<256xf32>
    %61 = vector.shape_cast %60 : vector<256xf32> to vector<256x1xf32>
    %cst_38 = arith.constant 4.000000e+00 : f32
    %62 = vector.broadcast %cst_38 : f32 to vector<256x1xf32>
    %63 = arith.divf %61, %62 : vector<256x1xf32>
    %cst_39 = arith.constant 9.99999974E-6 : f32
    %64 = vector.broadcast %cst_39 : f32 to vector<256x1xf32>
    %65 = arith.addf %63, %64 : vector<256x1xf32>
    %66 = math.rsqrt %65 : vector<256x1xf32>
    %67 = vector.broadcast %66 : vector<256x1xf32> to vector<256x4xf32>
    %68 = arith.mulf %58, %67 : vector<256x4xf32>
    %69 = vector.broadcast %5 : vector<1x4xf32> to vector<256x4xf32>
    %70 = arith.mulf %68, %69 : vector<256x4xf32>
    %71 = vector.broadcast %6 : vector<1x4xf32> to vector<256x4xf32>
    %72 = arith.addf %70, %71 : vector<256x4xf32>
    %cst_40 = arith.constant dense<0.000000e+00> : vector<256x10xf32>
    %73 = tpu.matmul %72, %19, %cst_40 {dimension_numbers = #tpu.dot_dimension_numbers<[1], [0], [0], [1], [0, 0, 1, 1], [], []>} : vector<256x4xf32>, vector<4x10xf32>, vector<256x10xf32> -> vector<256x10xf32>
    %74 = vector.broadcast %9 : vector<1x10xf32> to vector<256x10xf32>
    %75 = arith.addf %73, %74 : vector<256x10xf32>
    %cst_41 = arith.constant 0.000000e+00 : f32
    %76 = vector.broadcast %cst_41 : f32 to vector<256x10xf32>
    %77 = arith.cmpf ogt, %75, %76 : vector<256x10xf32>
    %cst_42 = arith.constant 0.00999999977 : f32
    %78 = vector.broadcast %cst_42 : f32 to vector<256x10xf32>
    %79 = arith.mulf %78, %75 : vector<256x10xf32>
    %80 = arith.select %77, %75, %79 : vector<256x10xi1>, vector<256x10xf32>
    %cst_43 = arith.constant dense<0.000000e+00> : vector<256x20xf32>
    %81 = tpu.matmul %80, %20, %cst_43 {dimension_numbers = #tpu.dot_dimension_numbers<[1], [0], [0], [1], [0, 0, 1, 1], [], []>} : vector<256x10xf32>, vector<10x20xf32>, vector<256x20xf32> -> vector<256x20xf32>
    %82 = vector.broadcast %10 : vector<1x20xf32> to vector<256x20xf32>
    %83 = arith.addf %81, %82 : vector<256x20xf32>
    %cst_44 = arith.constant dense<0.000000e+00> : vector<256xf32>
    %84 = vector.multi_reduction <add>, %52, %cst_44 [1] : vector<256x50xf32> to vector<256xf32>
    %85 = vector.shape_cast %84 : vector<256xf32> to vector<256x1xf32>
    %cst_45 = arith.constant dense<0.000000e+00> : vector<256xf32>
    %86 = vector.multi_reduction <add>, %83, %cst_45 [1] : vector<256x20xf32> to vector<256xf32>
    %87 = vector.shape_cast %86 : vector<256xf32> to vector<256x1xf32>
    %88 = arith.addf %85, %87 : vector<256x1xf32>
    %cst_46 = arith.constant 0.0142857144 : f32
    %89 = vector.broadcast %cst_46 : f32 to vector<256x1xf32>
    %90 = arith.mulf %88, %89 : vector<256x1xf32>
    %91 = vector.broadcast %90 : vector<256x1xf32> to vector<256x50xf32>
    %92 = arith.subf %52, %91 : vector<256x50xf32>
    %93 = vector.broadcast %90 : vector<256x1xf32> to vector<256x20xf32>
    %94 = arith.subf %83, %93 : vector<256x20xf32>
    %95 = arith.mulf %92, %92 : vector<256x50xf32>
    %cst_47 = arith.constant dense<0.000000e+00> : vector<256xf32>
    %96 = vector.multi_reduction <add>, %95, %cst_47 [1] : vector<256x50xf32> to vector<256xf32>
    %97 = vector.shape_cast %96 : vector<256xf32> to vector<256x1xf32>
    %98 = arith.mulf %94, %94 : vector<256x20xf32>
    %cst_48 = arith.constant dense<0.000000e+00> : vector<256xf32>
    %99 = vector.multi_reduction <add>, %98, %cst_48 [1] : vector<256x20xf32> to vector<256xf32>
    %100 = vector.shape_cast %99 : vector<256xf32> to vector<256x1xf32>
    %101 = arith.addf %97, %100 : vector<256x1xf32>
    %cst_49 = arith.constant 0.0142857144 : f32
    %102 = vector.broadcast %cst_49 : f32 to vector<256x1xf32>
    %103 = arith.mulf %101, %102 : vector<256x1xf32>
    %cst_50 = arith.constant 9.99999974E-6 : f32
    %104 = vector.broadcast %cst_50 : f32 to vector<256x1xf32>
    %105 = arith.addf %103, %104 : vector<256x1xf32>
    %106 = math.rsqrt %105 : vector<256x1xf32>
    %107 = vector.broadcast %106 : vector<256x1xf32> to vector<256x50xf32>
    %108 = arith.mulf %92, %107 : vector<256x50xf32>
    %109 = vector.broadcast %11 : vector<1x50xf32> to vector<256x50xf32>
    %110 = arith.mulf %108, %109 : vector<256x50xf32>
    %111 = vector.broadcast %13 : vector<1x50xf32> to vector<256x50xf32>
    %112 = arith.addf %110, %111 : vector<256x50xf32>
    %113 = vector.broadcast %106 : vector<256x1xf32> to vector<256x20xf32>
    %114 = arith.mulf %94, %113 : vector<256x20xf32>
    %115 = vector.broadcast %12 : vector<1x20xf32> to vector<256x20xf32>
    %116 = arith.mulf %114, %115 : vector<256x20xf32>
    %117 = vector.broadcast %14 : vector<1x20xf32> to vector<256x20xf32>
    %118 = arith.addf %116, %117 : vector<256x20xf32>
    %c0_51 = arith.constant 0 : index
    %c0_52 = arith.constant 0 : index
    %119 = vector.load %arg6[%c0_51, %c0_52] : memref<50x70xf32, #tpu.memory_space<vmem>>, vector<50x70xf32>
    %cst_53 = arith.constant dense<0.000000e+00> : vector<256x70xf32>
    %120 = tpu.matmul %112, %119, %cst_53 {dimension_numbers = #tpu.dot_dimension_numbers<[1], [0], [0], [1], [0, 0, 1, 1], [], []>} : vector<256x50xf32>, vector<50x70xf32>, vector<256x70xf32> -> vector<256x70xf32>
    %c0_54 = arith.constant 0 : index
    %c0_55 = arith.constant 0 : index
    %121 = vector.load %arg7[%c0_54, %c0_55] : memref<20x70xf32, #tpu.memory_space<vmem>>, vector<20x70xf32>
    %cst_56 = arith.constant dense<0.000000e+00> : vector<256x70xf32>
    %122 = tpu.matmul %118, %121, %cst_56 {dimension_numbers = #tpu.dot_dimension_numbers<[1], [0], [0], [1], [0, 0, 1, 1], [], []>} : vector<256x20xf32>, vector<20x70xf32>, vector<256x70xf32> -> vector<256x70xf32>
    %123 = arith.addf %120, %122 : vector<256x70xf32>
    %124 = vector.broadcast %15 : vector<1x70xf32> to vector<256x70xf32>
    %125 = arith.addf %123, %124 : vector<256x70xf32>
    %cst_57 = arith.constant 0.000000e+00 : f32
    %126 = vector.broadcast %cst_57 : f32 to vector<256x70xf32>
    %127 = arith.maximumf %125, %126 : vector<256x70xf32>
    %c0_58 = arith.constant 0 : index
    %c0_59 = arith.constant 0 : index
    %128 = vector.load %arg8[%c0_58, %c0_59] : memref<70x50xf32, #tpu.memory_space<vmem>>, vector<70x50xf32>
    %cst_60 = arith.constant dense<0.000000e+00> : vector<256x50xf32>
    %129 = tpu.matmul %127, %128, %cst_60 {dimension_numbers = #tpu.dot_dimension_numbers<[1], [0], [0], [1], [0, 0, 1, 1], [], []>} : vector<256x70xf32>, vector<70x50xf32>, vector<256x50xf32> -> vector<256x50xf32>
    %130 = vector.broadcast %16 : vector<1x50xf32> to vector<256x50xf32>
    %131 = arith.addf %129, %130 : vector<256x50xf32>
    %132 = arith.addf %131, %112 : vector<256x50xf32>
    %cst_61 = arith.constant 0.000000e+00 : f32
    %133 = vector.broadcast %cst_61 : f32 to vector<256x50xf32>
    %134 = arith.maximumf %132, %133 : vector<256x50xf32>
    %c0_62 = arith.constant 0 : index
    %c0_63 = arith.constant 0 : index
    %135 = vector.load %arg9[%c0_62, %c0_63] : memref<70x20xf32, #tpu.memory_space<vmem>>, vector<70x20xf32>
    %cst_64 = arith.constant dense<0.000000e+00> : vector<256x20xf32>
    %136 = tpu.matmul %127, %135, %cst_64 {dimension_numbers = #tpu.dot_dimension_numbers<[1], [0], [0], [1], [0, 0, 1, 1], [], []>} : vector<256x70xf32>, vector<70x20xf32>, vector<256x20xf32> -> vector<256x20xf32>
    %137 = vector.broadcast %17 : vector<1x20xf32> to vector<256x20xf32>
    %138 = arith.addf %136, %137 : vector<256x20xf32>
    %139 = arith.addf %138, %118 : vector<256x20xf32>
    %cst_65 = arith.constant 0.000000e+00 : f32
    %140 = vector.broadcast %cst_65 : f32 to vector<256x20xf32>
    %141 = arith.maximumf %139, %140 : vector<256x20xf32>
    %cst_66 = arith.constant dense<0.000000e+00> : vector<256x128xf32>
    %142 = tpu.matmul %134, %21, %cst_66 {dimension_numbers = #tpu.dot_dimension_numbers<[1], [0], [0], [1], [0, 0, 1, 1], [], []>} : vector<256x50xf32>, vector<50x128xf32>, vector<256x128xf32> -> vector<256x128xf32>
    %cst_67 = arith.constant dense<0.000000e+00> : vector<256x128xf32>
    %143 = tpu.matmul %141, %22, %cst_67 {dimension_numbers = #tpu.dot_dimension_numbers<[1], [0], [0], [1], [0, 0, 1, 1], [], []>} : vector<256x20xf32>, vector<20x128xf32>, vector<256x128xf32> -> vector<256x128xf32>
    %144 = arith.addf %142, %143 : vector<256x128xf32>
    %145 = vector.broadcast %18 : vector<1x128xf32> to vector<256x128xf32>
    %146 = arith.addf %144, %145 : vector<256x128xf32>
    %147 = tpu.transpose %146, [1, 0] : vector<256x128xf32> -> vector<128x256xf32>
    %148 = vector.extract_strided_slice %147 {offsets = [0, 0], sizes = [2, 256], strides = [1, 1]} : vector<128x256xf32> to vector<2x256xf32>
    %c0_68 = arith.constant 0 : index
    %c0_69 = arith.constant 0 : index
    %149 = vector.load %arg10[%c0_68, %c0_69] : memref<2x256xf32, #tpu.memory_space<vmem>>, vector<2x256xf32>
    tpu.vector_store %arg10[%c0_68, %c0_69], %148 {strides = array<i32>} : memref<2x256xf32, #tpu.memory_space<vmem>>, vector<2x256xf32>,
    return
  }
  func.func @transform_0(%arg0: i32) -> (i32, i32) {
    %c0_i32 = arith.constant 0 : i32
    %c0_i32_0 = arith.constant 0 : i32
    return %arg0, %c0_i32 : i32, i32
  }
  func.func @transform_1(%arg0: i32) -> (i32, i32) {
    %c0_i32 = arith.constant 0 : i32
    %c0_i32_0 = arith.constant 0 : i32
    %c0_i32_1 = arith.constant 0 : i32
    return %c0_i32, %c0_i32_0 : i32, i32
  }
  func.func @transform_2(%arg0: i32) -> (i32, i32) {
    %c0_i32 = arith.constant 0 : i32
    %c0_i32_0 = arith.constant 0 : i32
    %c0_i32_1 = arith.constant 0 : i32
    return %c0_i32, %c0_i32_0 : i32, i32
  }
  func.func @transform_3(%arg0: i32) -> (i32, i32) {
    %c0_i32 = arith.constant 0 : i32
    %c0_i32_0 = arith.constant 0 : i32
    %c0_i32_1 = arith.constant 0 : i32
    return %c0_i32, %c0_i32_0 : i32, i32
  }
  func.func @transform_4(%arg0: i32) -> (i32, i32) {
    %c0_i32 = arith.constant 0 : i32
    %c0_i32_0 = arith.constant 0 : i32
    %c0_i32_1 = arith.constant 0 : i32
    return %c0_i32, %c0_i32_0 : i32, i32
  }
  func.func @transform_5(%arg0: i32) -> (i32, i32) {
    %c0_i32 = arith.constant 0 : i32
    %c0_i32_0 = arith.constant 0 : i32
    %c0_i32_1 = arith.constant 0 : i32
    return %c0_i32, %c0_i32_0 : i32, i32
  }
  func.func @transform_6(%arg0: i32) -> (i32, i32) {
    %c0_i32 = arith.constant 0 : i32
    %c0_i32_0 = arith.constant 0 : i32
    %c0_i32_1 = arith.constant 0 : i32
    return %c0_i32, %c0_i32_0 : i32, i32
  }
  func.func @transform_7(%arg0: i32) -> (i32, i32) {
    %c0_i32 = arith.constant 0 : i32
    %c0_i32_0 = arith.constant 0 : i32
    %c0_i32_1 = arith.constant 0 : i32
    return %c0_i32, %c0_i32_0 : i32, i32
  }
  func.func @transform_8(%arg0: i32) -> (i32, i32) {
    %c0_i32 = arith.constant 0 : i32
    %c0_i32_0 = arith.constant 0 : i32
    %c0_i32_1 = arith.constant 0 : i32
    return %c0_i32, %c0_i32_0 : i32, i32
  }
  func.func @transform_9(%arg0: i32) -> (i32, i32) {
    %c0_i32 = arith.constant 0 : i32
    %c0_i32_0 = arith.constant 0 : i32
    return %c0_i32, %arg0 : i32, i32
  }
}

</mosaic_0001>

<bundles_post_ra>
// kernel: tpu_custom_call.1
= control target key start
LH: loop header
LB: loop body
LE: loop exit
PB: predicated region body
PF: predicated region fallthrough
CT: control target
= control target key end

     0   :  { %14 = vsyncpa [#allocation3], 0  ;;  %s11300_s0 = inlined_call_operand.vmem [shape: f32[512,104], index: 0, kind: input, shape index: {}]   ;;  %s11301_s1 = inlined_call_operand.vmem [shape: f32[16,256], index: 1, kind: input, shape index: {}]   ;;  %s11302_s2 = inlined_call_operand.vmem [shape: f32[104,128], index: 2, kind: input, shape index: {}]   ;;  %s11303_s3 = inlined_call_operand.vmem [shape: f32[100,200], index: 3, kind: input, shape index: {}]   ;;  %s11304_s4 = inlined_call_operand.vmem [shape: f32[200,50], index: 4, kind: input, shape index: {}]   ;;  %s11305_s5 = inlined_call_operand.vmem [shape: f32[50,70], index: 5, kind: input, shape index: {}]   ;;  %s11306_s6 = inlined_call_operand.vmem [shape: f32[20,70], index: 6, kind: input, shape index: {}]   ;;  %s11307_s7 = inlined_call_operand.vmem [shape: f32[70,50], index: 7, kind: input, shape index: {}]   ;;  %s11308_s8 = inlined_call_operand.vmem [shape: f32[70,20], index: 8, kind: input, shape index: {}]   ;;  %s11309_s9 = inlined_call_operand.hbm [shape: f32[2,512], index: 9, kind: output, shape index: {}]  }
   0x1   :  { %16 = vsyncpa [#allocation3 + $0x1], 0  ;;  %s7121_s30 = smov 0   ;;  %s7123_s10 = smov 0  }
   0x2   :  { %s7125_s11 = smov 0   ;;  %s7127_s12 = smov 0  }
   0x3 LB: > { %s7142_s13 = sadd.s32 4294967295, %s7065_s12   ;;  %s6332_s14 = sadd.s32 4294967294, %s7065_s12   ;;  %s7065_s12 = sphi %s7127_s12, %s11509_s12   ;;  %s7061_s11 = sphi %s7125_s11, %s11508_s11   ;;  %s7057_s10 = sphi %s7123_s10, %s11507_s10   ;;  %s7053_s30 = sphi %s7121_s30, %s11506_s30  }
   0x4   : > { %s7146_s15 = sadd.s32 1, %s7065_s12   ;;  %s223_s16 = sadd.s32 1, %s7061_s11 }
   0x5   : > { %s220_s17 = ssub.s32 %s7065_s12, %s7146_s15  ;;  %p233_p0 = scmp.ne.s32.totalorder %s7061_s11, %s7057_s10 }
   0x6   : > { %p221_p1 = scmp.eq.s32.totalorder %s220_s17, 0  ;;  %p234_p2 = scmp.eq.s32.totalorder %s7142_s13, 1 }
   0x7   : > { %p239_p3 = scmp.ne.s32.totalorder %s7057_s10, %s7053_s30  ;;  %p240_p4 = scmp.eq.s32.totalorder %s6332_s14, 1 }
   0x8   : > { %s7157_s18 = scalar_select %p221_p1, %s7061_s11, %s223_s16  }
   0x9   : > { %p7159_p5 = por %p234_p2, %p233_p0  ;;  %p7163_p6 = por %p240_p4, %p239_p3 }
   0xa   : > { %p6335_p7 = scmp.ge.s32.totalorder %s7065_s12, 1  ;;  %p291_p8 = scmp.lt.s32.totalorder %s7065_s12, 3 }
   0xc   : > { %p292_p9 = pnand %p6335_p7, %p291_p8 }
   0xe   : > { %295 = sbr.rel (%p292_p9) target bundleno = 3076 (0xc04), region = 56 }
  0x13   : > { %s6337_s21 = sshll.u32 %s7142_s13, 5  ;;  %vm396_vm0 = vcmask 818176   ;;  %v7067_v56 = vmov 100.0   ;;  %vm1299_vm2 = vcmask 1043456   ;;  %s7068_s17 = smov 28  }
  0x14   : > { %p328_p10 = scmp.lt.s32.totalorder %s6337_s21, 63  ;;  %6751 = vrcp.f32 %v7067_v56  ;;  %s7070_s14 = smov 100  }
  0x15   : > { %s6707_s27 = sshll.u32 %s7142_s13, 2 }
  0x16   : > { %s11511_s21 = smov (!%p328_p10, %s6337_s21), 63 }
  0x17   : > { %s6338_s22 = sshll.u32 %s11511_s21, 3 }
  0x18   : > { %s7173_s25 = scalar_lea.vmem %s11300_s0, %s6338_s22 }
  0x19   : > { %v7176_v0 = vld [vmem:[%s7173_s25 + $0x20] sm:$0xff]  ;;  %v7179_v1 = vld [vmem:[%s7173_s25 + $0x10] sm:$0xff]  ;;  %v7191_v6 = vld [vmem:[%s7173_s25 + $0x28] sm:$0xff] }
  0x1a   : > { %v7182_v2 = vld [vmem:[%s7173_s25] sm:$0xff]  ;;  %v409_v3 = vsel %vm396_vm0, %v7176_v0, 0.0  ;;  %v403_v4 = vsel %vm396_vm0, %v7179_v1, 0.0  ;;  %v7194_v7 = vld [vmem:[%s7173_s25 + $0x18] sm:$0xff]  ;;  %v7197_v8 = vld [vmem:[%s7173_s25 + $0x8] sm:$0xff]  ;;  %v412_v9 = vsel %vm396_vm0, %v7191_v6, 0.0  ;;  %v6752_v57 = vpop.eup %6751 }
  0x1b   : > { %v397_v5 = vsel %vm396_vm0, %v7182_v2, 0.0  ;;  %410 = vadd.xlane.f32.xlu2 %v409_v3  ;;  %404 = vadd.xlane.f32.xlu1 %v403_v4  ;;  %v406_v10 = vsel %vm396_vm0, %v7194_v7, 0.0  ;;  %v400_v11 = vsel %vm396_vm0, %v7197_v8, 0.0  ;;  %v7206_v12 = vld [vmem:[%s7173_s25 + $0x40] sm:$0xff]  ;;  %v7209_v13 = vld [vmem:[%s7173_s25 + $0x30] sm:$0xff]  ;;  %v7212_v14 = vld [vmem:[%s7173_s25 + $0x38] sm:$0xff]  ;;  %vm498_vm1 = vweird.f32 %v6752_v57 }
  0x1c   : > { %398 = vadd.xlane.f32.xlu0 %v397_v5  ;;  %v421_v15 = vsel %vm396_vm0, %v7206_v12, 0.0  ;;  %v415_v16 = vsel %vm396_vm0, %v7209_v13, 0.0  ;;  %v418_v17 = vsel %vm396_vm0, %v7212_v14, 0.0  ;;  %v7221_v18 = vld [vmem:[%s7173_s25 + $0x58] sm:$0xff]  ;;  %v7224_v19 = vld [vmem:[%s7173_s25 + $0x48] sm:$0xff]  ;;  %v7227_v20 = vld [vmem:[%s7173_s25 + $0x50] sm:$0xff] }
  0x1d   : > { %v430_v21 = vsel %vm396_vm0, %v7221_v18, 0.0  ;;  %v424_v22 = vsel %vm396_vm0, %v7224_v19, 0.0  ;;  %v427_v23 = vsel %vm396_vm0, %v7227_v20, 0.0  ;;  %v7236_v24 = vld [vmem:[%s7173_s25 + $0x70] sm:$0xff]  ;;  %v7239_v25 = vld [vmem:[%s7173_s25 + $0x60] sm:$0xff]  ;;  %v7242_v26 = vld [vmem:[%s7173_s25 + $0x68] sm:$0xff] }
  0x1e   : > { %v439_v27 = vsel %vm396_vm0, %v7236_v24, 0.0  ;;  %v433_v28 = vsel %vm396_vm0, %v7239_v25, 0.0  ;;  %v436_v29 = vsel %vm396_vm0, %v7242_v26, 0.0  ;;  %v7251_v30 = vld [vmem:[%s7173_s25 + $0x88] sm:$0xff]  ;;  %v7254_v31 = vld [vmem:[%s7173_s25 + $0x78] sm:$0xff]  ;;  %v7257_v32 = vld [vmem:[%s7173_s25 + $0x80] sm:$0xff] }
  0x1f   : > { %v448_v33 = vsel %vm396_vm0, %v7251_v30, 0.0  ;;  %v442_v34 = vsel %vm396_vm0, %v7254_v31, 0.0  ;;  %v445_v35 = vsel %vm396_vm0, %v7257_v32, 0.0  ;;  %v7266_v36 = vld [vmem:[%s7173_s25 + $0xa0] sm:$0xff]  ;;  %v7269_v37 = vld [vmem:[%s7173_s25 + $0x90] sm:$0xff]  ;;  %v7272_v38 = vld [vmem:[%s7173_s25 + $0x98] sm:$0xff] }
  0x20   : > { %v457_v39 = vsel %vm396_vm0, %v7266_v36, 0.0  ;;  %v451_v40 = vsel %vm396_vm0, %v7269_v37, 0.0  ;;  %v454_v41 = vsel %vm396_vm0, %v7272_v38, 0.0  ;;  %v7281_v42 = vld [vmem:[%s7173_s25 + $0xb8] sm:$0xff]  ;;  %v7284_v43 = vld [vmem:[%s7173_s25 + $0xa8] sm:$0xff]  ;;  %v7287_v44 = vld [vmem:[%s7173_s25 + $0xb0] sm:$0xff] }
  0x21   : > { %v466_v45 = vsel %vm396_vm0, %v7281_v42, 0.0  ;;  %v460_v46 = vsel %vm396_vm0, %v7284_v43, 0.0  ;;  %v463_v47 = vsel %vm396_vm0, %v7287_v44, 0.0  ;;  %v7296_v48 = vld [vmem:[%s7173_s25 + $0xd0] sm:$0xff]  ;;  %v7299_v49 = vld [vmem:[%s7173_s25 + $0xc0] sm:$0xff]  ;;  %v7302_v50 = vld [vmem:[%s7173_s25 + $0xc8] sm:$0xff] }
  0x22   : > { %v475_v51 = vsel %vm396_vm0, %v7296_v48, 0.0  ;;  %v469_v52 = vsel %vm396_vm0, %v7299_v49, 0.0  ;;  %v472_v53 = vsel %vm396_vm0, %v7302_v50, 0.0  ;;  %v7311_v54 = vld [vmem:[%s7173_s25 + $0xd8] sm:$0xff]  ;;  %v494_v58 = vmul.f32 100.0, %v6752_v57 }
  0x23   : > { %413 = vadd.xlane.f32.xlu2 %v412_v9  ;;  %407 = vadd.xlane.f32.xlu1 %v406_v10  ;;  %v478_v55 = vsel %vm396_vm0, %v7311_v54, 0.0 }
  0x24   : > { %401 = vadd.xlane.f32.xlu0 %v400_v11  ;;  %v495_v59 = vsub.f32 1.0, %v494_v58 }
  0x26   : > { %v496_v60 = vmul.f32 %v6752_v57, %v495_v59 }
  0x28   : > { %v497_v61 = vadd.f32 %v6752_v57, %v496_v60 }
  0x2a   : > { %v7315_v62 = vsel %vm498_vm1, %v6752_v57, %v497_v61 }
  0x2b   : > { %422 = vadd.xlane.f32.xlu2 %v421_v15  ;;  %416 = vadd.xlane.f32.xlu1 %v415_v16 }
  0x2c   : > { %419 = vadd.xlane.f32.xlu0 %v418_v17 }
  0x33   : > { %431 = vadd.xlane.f32.xlu2 %v430_v21  ;;  %425 = vadd.xlane.f32.xlu1 %v424_v22 }
  0x34   : > { %428 = vadd.xlane.f32.xlu0 %v427_v23 }
  0x3b   : > { %440 = vadd.xlane.f32.xlu2 %v439_v27  ;;  %434 = vadd.xlane.f32.xlu1 %v433_v28 }
  0x3c   : > { %437 = vadd.xlane.f32.xlu0 %v436_v29 }
  0x43   : > { %449 = vadd.xlane.f32.xlu2 %v448_v33  ;;  %443 = vadd.xlane.f32.xlu1 %v442_v34 }
  0x44   : > { %446 = vadd.xlane.f32.xlu0 %v445_v35 }
  0x4b   : > { %458 = vadd.xlane.f32.xlu2 %v457_v39  ;;  %452 = vadd.xlane.f32.xlu1 %v451_v40 }
  0x4c   : > { %455 = vadd.xlane.f32.xlu0 %v454_v41 }
  0x53   : > { %467 = vadd.xlane.f32.xlu2 %v466_v45  ;;  %461 = vadd.xlane.f32.xlu1 %v460_v46 }
  0x54   : > { %464 = vadd.xlane.f32.xlu0 %v463_v47 }
  0x5b   : > { %476 = vadd.xlane.f32.xlu2 %v475_v51  ;;  %470 = vadd.xlane.f32.xlu1 %v469_v52 }
  0x5c   : > { %473 = vadd.xlane.f32.xlu0 %v472_v53 }
  0x63   : > { %479 = vadd.xlane.f32.xlu1 %v478_v55 }
  0x8e   : > { %v411_v63 = vpop.xlane.xlu2 %410  ;;  %v405_v3 = vpop.xlane.xlu1 %404 }
  0x8f   : > { %v502_v4 = vmul.f32 %v7315_v62, %v405_v3  ;;  %v399_v5 = vpop.xlane.xlu0 %398  ;;  %v504_v29 = vmul.f32 %v7315_v62, %v411_v63 }
  0x90   : > { %v500_v9 = vmul.f32 %v7315_v62, %v399_v5 }
  0x91   : > { %v7320_v10 = vsub.f32 %v7179_v1, %v502_v4  ;;  %v7349_v45 = vsub.f32 %v7176_v0, %v504_v29 }
  0x92   : > { %v7323_v11 = vsub.f32 %v7182_v2, %v500_v9 }
  0x93   : > { %v566_v15 = vmul.f32 %v7320_v10, %v7320_v10  ;;  %v568_v57 = vmul.f32 %v7349_v45, %v7349_v45 }
  0x94   : > { %v564_v16 = vmul.f32 %v7323_v11, %v7323_v11 }
  0x95   : > { %v602_v17 = vsel %vm396_vm0, %v566_v15, 0.0  ;;  %v608_v3 = vsel %vm396_vm0, %v568_v57, 0.0 }
  0x96   : > { %v414_v21 = vpop.xlane.xlu2 %413  ;;  %603 = vadd.xlane.f32.xlu1 %v602_v17  ;;  %v408_v22 = vpop.xlane.xlu1 %407  ;;  %v596_v23 = vsel %vm396_vm0, %v564_v16, 0.0 }
  0x97   : > { %v505_v27 = vmul.f32 %v7315_v62, %v414_v21  ;;  %v503_v1 = vmul.f32 %v7315_v62, %v408_v22  ;;  %597 = vadd.xlane.f32.xlu0 %v596_v23  ;;  %v402_v28 = vpop.xlane.xlu0 %401 }
  0x98   : > { %v501_v33 = vmul.f32 %v7315_v62, %v402_v28 }
  0x99   : > { %v7336_v34 = vsub.f32 %v7191_v6, %v505_v27  ;;  %v7339_v35 = vsub.f32 %v7194_v7, %v503_v1 }
  0x9a   : > { %v7342_v39 = vsub.f32 %v7197_v8, %v501_v33 }
  0x9b   : > { %v569_v40 = vmul.f32 %v7336_v34, %v7336_v34  ;;  %v567_v41 = vmul.f32 %v7339_v35, %v7339_v35 }
  0x9c   : > { %v565_v46 = vmul.f32 %v7342_v39, %v7342_v39 }
  0x9d   : > { %v611_v6 = vsel %vm396_vm0, %v569_v40, 0.0  ;;  %v605_v47 = vsel %vm396_vm0, %v567_v41, 0.0 }
  0x9e   : > { %v423_v51 = vpop.xlane.xlu2 %422  ;;  %612 = vadd.xlane.f32.xlu1 %v611_v6  ;;  %v417_v52 = vpop.xlane.xlu1 %416  ;;  %v599_v53 = vsel %vm396_vm0, %v565_v46, 0.0 }
  0x9f   : > { %v508_v55 = vmul.f32 %v7315_v62, %v423_v51  ;;  %v506_v56 = vmul.f32 %v7315_v62, %v417_v52  ;;  %606 = vadd.xlane.f32.xlu0 %v605_v47  ;;  %600 = vadd.xlane.f32.xlu2 %v599_v53  ;;  %v420_v0 = vpop.xlane.xlu0 %419 }
  0xa0   : > { %v507_v58 = vmul.f32 %v7315_v62, %v420_v0 }
  0xa1   : > { %v7362_v59 = vsub.f32 %v7206_v12, %v508_v55  ;;  %v7365_v60 = vsub.f32 %v7209_v13, %v506_v56 }
  0xa2   : > { %v7373_v4 = vsub.f32 %v7212_v14, %v507_v58 }
  0xa3   : > { %v572_v61 = vmul.f32 %v7362_v59, %v7362_v59  ;;  %v570_v63 = vmul.f32 %v7365_v60, %v7365_v60 }
  0xa4   : > { %v571_v21 = vmul.f32 %v7373_v4, %v7373_v4 }
  0xa5   : > { %v620_v5 = vsel %vm396_vm0, %v572_v61, 0.0  ;;  %v614_v9 = vsel %vm396_vm0, %v570_v63, 0.0 }
  0xa6   : > { %v432_v12 = vpop.xlane.xlu2 %431  ;;  %621 = vadd.xlane.f32.xlu1 %v620_v5  ;;  %v426_v15 = vpop.xlane.xlu1 %425  ;;  %v617_v28 = vsel %vm396_vm0, %v571_v21, 0.0 }
  0xa7   : > { %v511_v13 = vmul.f32 %v7315_v62, %v432_v12  ;;  %v509_v16 = vmul.f32 %v7315_v62, %v426_v15  ;;  %615 = vadd.xlane.f32.xlu0 %v614_v9  ;;  %609 = vadd.xlane.f32.xlu2 %v608_v3  ;;  %v429_v17 = vpop.xlane.xlu0 %428 }
  0xa8   : > { %v510_v14 = vmul.f32 %v7315_v62, %v429_v17 }
  0xa9   : > { %v7383_v22 = vsub.f32 %v7221_v18, %v511_v13  ;;  %v7386_v23 = vsub.f32 %v7224_v19, %v509_v16 }
  0xaa   : > { %v7394_v29 = vsub.f32 %v7227_v20, %v510_v14 }
  0xab   : > { %v575_v27 = vmul.f32 %v7383_v22, %v7383_v22  ;;  %v573_v1 = vmul.f32 %v7386_v23, %v7386_v23 }
  0xac   : > { %v574_v47 = vmul.f32 %v7394_v29, %v7394_v29 }
  0xad   : > { %v629_v33 = vsel %vm396_vm0, %v575_v27, 0.0  ;;  %v623_v40 = vsel %vm396_vm0, %v573_v1, 0.0 }
  0xae   : > { %v441_v18 = vpop.xlane.xlu2 %440  ;;  %630 = vadd.xlane.f32.xlu1 %v629_v33  ;;  %v435_v41 = vpop.xlane.xlu1 %434  ;;  %v626_v56 = vsel %vm396_vm0, %v574_v47, 0.0 }
  0xaf   : > { %v514_v19 = vmul.f32 %v7315_v62, %v441_v18  ;;  %v512_v46 = vmul.f32 %v7315_v62, %v435_v41  ;;  %624 = vadd.xlane.f32.xlu0 %v623_v40  ;;  %618 = vadd.xlane.f32.xlu2 %v617_v28  ;;  %v438_v6 = vpop.xlane.xlu0 %437 }
  0xb0   : > { %v513_v20 = vmul.f32 %v7315_v62, %v438_v6 }
  0xb1   : > { %v7404_v51 = vsub.f32 %v7236_v24, %v514_v19  ;;  %v7407_v52 = vsub.f32 %v7239_v25, %v512_v46 }
  0xb2   : > { %v7415_v0 = vsub.f32 %v7242_v26, %v513_v20 }
  0xb3   : > { %v578_v53 = vmul.f32 %v7404_v51, %v7404_v51  ;;  %v576_v55 = vmul.f32 %v7407_v52, %v7407_v52 }
  0xb4   : > { %v577_v5 = vmul.f32 %v7415_v0, %v7415_v0 }
  0xb5   : > { %v638_v57 = vsel %vm396_vm0, %v578_v53, 0.0  ;;  %v632_v58 = vsel %vm396_vm0, %v576_v55, 0.0 }
  0xb6   : > { %v450_v24 = vpop.xlane.xlu2 %449  ;;  %639 = vadd.xlane.f32.xlu1 %v638_v57  ;;  %v444_v61 = vpop.xlane.xlu1 %443  ;;  %v635_v16 = vsel %vm396_vm0, %v577_v5, 0.0 }
  0xb7   : > { %v517_v25 = vmul.f32 %v7315_v62, %v450_v24  ;;  %v515_v63 = vmul.f32 %v7315_v62, %v444_v61  ;;  %633 = vadd.xlane.f32.xlu0 %v632_v58  ;;  %627 = vadd.xlane.f32.xlu2 %v626_v56  ;;  %v447_v3 = vpop.xlane.xlu0 %446 }
  0xb8   : > { %v516_v26 = vmul.f32 %v7315_v62, %v447_v3 }
  0xb9   : > { %v7425_v9 = vsub.f32 %v7251_v30, %v517_v25  ;;  %v7428_v12 = vsub.f32 %v7254_v31, %v515_v63 }
  0xba   : > { %v7436_v17 = vsub.f32 %v7257_v32, %v516_v26 }
  0xbb   : > { %v581_v15 = vmul.f32 %v7425_v9, %v7425_v9  ;;  %v579_v13 = vmul.f32 %v7428_v12, %v7428_v12 }
  0xbc   : > { %v580_v33 = vmul.f32 %v7436_v17, %v7436_v17 }
  0xbd   : > { %v647_v21 = vsel %vm396_vm0, %v581_v15, 0.0  ;;  %v641_v14 = vsel %vm396_vm0, %v579_v13, 0.0  ;;  %v7484_v13 = vld [vmem:[%s7173_s25 + $0xf0] sm:$0xff] }
  0xbe   : > { %v459_v30 = vpop.xlane.xlu2 %458  ;;  %648 = vadd.xlane.f32.xlu1 %v647_v21  ;;  %v453_v27 = vpop.xlane.xlu1 %452  ;;  %v644_v46 = vsel %vm396_vm0, %v580_v33, 0.0  ;;  %v7490_v21 = vld [vmem:[%s7173_s25 + $0xe0] sm:$0xff] }
  0xbf   : > { %v520_v31 = vmul.f32 %v7315_v62, %v459_v30  ;;  %v518_v1 = vmul.f32 %v7315_v62, %v453_v27  ;;  %642 = vadd.xlane.f32.xlu0 %v641_v14  ;;  %636 = vadd.xlane.f32.xlu2 %v635_v16  ;;  %v456_v28 = vpop.xlane.xlu0 %455  ;;  %v487_v30 = vsel %vm396_vm0, %v7484_v13, 0.0 }
  0xc0   : > { %v519_v32 = vmul.f32 %v7315_v62, %v456_v28 }
  0xc1   : > { %v7446_v40 = vsub.f32 %v7266_v36, %v520_v31  ;;  %v7449_v18 = vsub.f32 %v7269_v37, %v518_v1  ;;  %v481_v31 = vsel %vm396_vm0, %v7490_v21, 0.0 }
  0xc2   : > { %v7457_v6 = vsub.f32 %v7272_v38, %v519_v32 }
  0xc3   : > { %v584_v41 = vmul.f32 %v7446_v40, %v7446_v40  ;;  %v582_v19 = vmul.f32 %v7449_v18, %v7449_v18 }
  0xc4   : > { %v583_v57 = vmul.f32 %v7457_v6, %v7457_v6 }
  0xc5   : > { %v656_v47 = vsel %vm396_vm0, %v584_v41, 0.0  ;;  %v650_v20 = vsel %vm396_vm0, %v582_v19, 0.0 }
  0xc6   : > { %v468_v36 = vpop.xlane.xlu2 %467  ;;  %657 = vadd.xlane.f32.xlu1 %v656_v47  ;;  %v462_v53 = vpop.xlane.xlu1 %461  ;;  %v653_v63 = vsel %vm396_vm0, %v583_v57, 0.0 }
  0xc7   : > { %v523_v37 = vmul.f32 %v7315_v62, %v468_v36  ;;  %v521_v55 = vmul.f32 %v7315_v62, %v462_v53  ;;  %651 = vadd.xlane.f32.xlu0 %v650_v20  ;;  %645 = vadd.xlane.f32.xlu2 %v644_v46  ;;  %v465_v56 = vpop.xlane.xlu0 %464 }
  0xc8   : > { %v522_v38 = vmul.f32 %v7315_v62, %v465_v56 }
  0xc9   : > { %v7467_v58 = vsub.f32 %v7281_v42, %v523_v37  ;;  %v7470_v24 = vsub.f32 %v7284_v43, %v521_v55  ;;  %v7522_v37 = vld [vmem:[%s7173_s25 + $0xf8] sm:$0xff] }
  0xca   : > { %v7478_v3 = vsub.f32 %v7287_v44, %v522_v38  ;;  %v490_v56 = vsel %vm396_vm0, %v7522_v37, 0.0 }
  0xcb   : > { %v587_v61 = vmul.f32 %v7467_v58, %v7467_v58  ;;  %v585_v25 = vmul.f32 %v7470_v24, %v7470_v24 }
  0xcc   : > { %v586_v44 = vmul.f32 %v7478_v3, %v7478_v3 }
  0xcd   : > { %v665_v5 = vsel %vm396_vm0, %v587_v61, 0.0  ;;  %v659_v42 = vsel %vm396_vm0, %v585_v25, 0.0  ;;  %v1196_v61 = vld [vmem:[%s11303_s3 + $0xc0] sm:$0xf]  ;;  %v1194_v25 = vld [vmem:[%s11303_s3 + $0xb0] sm:$0xff] }
  0xce   : > { %666 = vadd.xlane.f32.xlu1 %v665_v5  ;;  %v477_v26 = vpop.xlane.xlu2 %476  ;;  %v471_v43 = vpop.xlane.xlu1 %470  ;;  %v662_v1 = vsel %vm396_vm0, %v586_v44, 0.0  ;;  %6340 = vmatpush.msk.msra.mxu0 %vm1299_vm2, %v1196_v61  ;;  %v1192_v5 = vld [vmem:[%s11303_s3 + $0xa0] sm:$0xff]  ;;  %v1186_v44 = vld [vmem:[%s11303_s3 + $0x70] sm:$0xff] }
  0xcf   : > { %660 = vadd.xlane.f32.xlu0 %v659_v42  ;;  %654 = vadd.xlane.f32.xlu2 %v653_v63  ;;  %v526_v15 = vmul.f32 %v7315_v62, %v477_v26  ;;  %v524_v16 = vmul.f32 %v7315_v62, %v471_v43  ;;  %v474_v28 = vpop.xlane.xlu0 %473  ;;  %v1195_v63 = vld [vmem:[%s11303_s3 + $0xb8] sm:$0xff]  ;;  %v1193_v42 = vld [vmem:[%s11303_s3 + $0xa8] sm:$0xff]  ;;  %v1190_v26 = vld [vmem:[%s11303_s3 + $0x90] sm:$0xff] }
  0xd0   : > { %v525_v32 = vmul.f32 %v7315_v62, %v474_v28  ;;  %1310 = vmatpush.msra.mxu0 %v1194_v25  ;;  %v1191_v43 = vld [vmem:[%s11303_s3 + $0x98] sm:$0xff]  ;;  %v1182_v28 = vld [vmem:[%s11303_s3 + $0x50] sm:$0xff] }
  0xd1   : > { %v7493_v14 = vsub.f32 %v7296_v48, %v526_v15  ;;  %v7498_v27 = vsub.f32 %v7299_v49, %v524_v16  ;;  %v7509_v49 = vld [vmem:[%s7173_s25 + $0xe8] sm:$0xff]  ;;  %v1188_v15 = vld [vmem:[%s11303_s3 + $0x80] sm:$0xff] }
  0xd2   : > { %v484_v46 = vsel %vm396_vm0, %v7509_v49, 0.0  ;;  %v7516_v47 = vsub.f32 %v7302_v50, %v525_v32  ;;  %1311 = vmatpush.msra.mxu0 %v1192_v5  ;;  %v1189_v16 = vld [vmem:[%s11303_s3 + $0x88] sm:$0xff] }
  0xd3   : > { %11350 = vst [vmem:[#allocation5_spill] sm:$0xff] %v7493_v14  ;;  %v590_v48 = vmul.f32 %v7493_v14, %v7493_v14  ;;  %v588_v33 = vmul.f32 %v7498_v27, %v7498_v27  ;;  %v1181_v32 = vld [vmem:[%s11303_s3 + $0x48] sm:$0xff] }
  0xd4   : > { %11351 = vst [vmem:[#allocation6_spill] sm:$0xff] %v7498_v27  ;;  %v589_v53 = vmul.f32 %v7516_v47, %v7516_v47  ;;  %1312 = vmatpush.msra.mxu0 %v1190_v26 }
  0xd5   : > { %v674_v41 = vsel %vm396_vm0, %v590_v48, 0.0  ;;  %v668_v19 = vsel %vm396_vm0, %v588_v33, 0.0  ;;  %11352 = vst [vmem:[#allocation7_spill] sm:$0xff] %v7516_v47  ;;  %v1183_v48 = vld [vmem:[%s11303_s3 + $0x58] sm:$0xff]  ;;  %v1180_v33 = vld [vmem:[%s11303_s3 + $0x40] sm:$0xff] }
  0xd6   : > { %488 = vadd.xlane.f32.xlu1 %v487_v30  ;;  %v480_v20 = vpop.xlane.xlu1 %479  ;;  %v671_v50 = vsel %vm396_vm0, %v589_v53, 0.0  ;;  %1313 = vmatpush.msra.mxu0 %v1188_v15  ;;  %v1187_v30 = vld [vmem:[%s11303_s3 + $0x78] sm:$0xff] }
  0xd7   : > { %482 = vadd.xlane.f32.xlu0 %v481_v31  ;;  %663 = vadd.xlane.f32.xlu2 %v662_v1  ;;  %v527_v36 = vmul.f32 %v7315_v62, %v480_v20  ;;  %v1184_v31 = vld [vmem:[%s11303_s3 + $0x60] sm:$0xff]  ;;  %v1185_v1 = vld [vmem:[%s11303_s3 + $0x68] sm:$0xff]  ;;  %v1174_v20 = vld [vmem:[%s11303_s3 + $0x10] sm:$0xff] }
  0xd8   : > { %1314 = vmatpush.msra.mxu0 %v1186_v44 }
  0xd9   : > { %v7525_v55 = vsub.f32 %v7311_v54, %v527_v36  ;;  %v1197_v54 = vld [vmem:[%s11303_s3 + $0xc8] sm:$0xf]  ;;  %v1175_v36 = vld [vmem:[%s11303_s3 + $0x18] sm:$0xff] }
  0xda   : > { %6373 = vmatpush.msk.msra.mxu1 %vm1299_vm2, %v1197_v54  ;;  %1315 = vmatpush.msra.mxu0 %v1184_v31 }
  0xdb   : > { %11353 = vst [vmem:[#allocation8_spill] sm:$0xff] %v7525_v55  ;;  %v591_v57 = vmul.f32 %v7525_v55, %v7525_v55 }
  0xdc   : > { %1423 = vmatpush.msra.mxu1 %v1195_v63  ;;  %1316 = vmatpush.msra.mxu0 %v1182_v28 }
  0xdd   : > { %v677_v38 = vsel %vm396_vm0, %v591_v57, 0.0 }
  0xde   : > { %675 = vadd.xlane.f32.xlu1 %v674_v41  ;;  %1424 = vmatpush.msra.mxu1 %v1193_v42  ;;  %v1179_v41 = vld [vmem:[%s11303_s3 + $0x38] sm:$0xff] }
  0xdf   : > { %669 = vadd.xlane.f32.xlu0 %v668_v19  ;;  %485 = vadd.xlane.f32.xlu2 %v484_v46  ;;  %v1176_v19 = vld [vmem:[%s11303_s3 + $0x20] sm:$0xff]  ;;  %v1177_v46 = vld [vmem:[%s11303_s3 + $0x28] sm:$0xff] }
  0xe0   : > { %1425 = vmatpush.msra.mxu1 %v1191_v43  ;;  %1317 = vmatpush.msra.mxu0 %v1180_v33 }
  0xe2   : > { %1426 = vmatpush.msra.mxu1 %v1189_v16 }
  0xe4   : > { %1427 = vmatpush.msra.mxu1 %v1187_v30 }
  0xe6   : > { %1428 = vmatpush.msra.mxu1 %v1185_v1 }
  0xe7   : > { %491 = vadd.xlane.f32.xlu0 %v490_v56  ;;  %672 = vadd.xlane.f32.xlu2 %v671_v50  ;;  %v1172_v56 = vld [vmem:[%s11303_s3] sm:$0xff]  ;;  %v1173_v50 = vld [vmem:[%s11303_s3 + $0x8] sm:$0xff] }
  0xe8   : > { %1429 = vmatpush.msra.mxu1 %v1183_v48 }
  0xea   : > { %1430 = vmatpush.msra.mxu1 %v1181_v32 }
  0xec   : > { %1431 = vmatpush.msra.mxu1 %v1179_v41 }
  0xee   : > { %1432 = vmatpush.msra.mxu1 %v1177_v46 }
  0xef   : > { %678 = vadd.xlane.f32.xlu2 %v677_v38 }
  0xf0   : > { %1433 = vmatpush.msra.mxu1 %v1175_v36 }
  0xf2   : > { %1434 = vmatpush.msra.mxu1 %v1173_v50 }
  0xfb   : > { %1976 = vrot.lane.b32.xlu0 %v7182_v2, %s7068_s17  ;;  %v1178_v2 = vld [vmem:[%s11303_s3 + $0x30] sm:$0xff] }
  0xfc   : > { %1318 = vmatpush.msra.mxu0 %v1178_v2 }
  0xfe   : > { %1319 = vmatpush.msra.mxu0 %v1176_v19 }
 0x100   : > { %1320 = vmatpush.msra.mxu0 %v1174_v20 }
 0x102   : > { %1321 = vmatpush.msra.mxu0 %v1172_v56 }
 0x107   : > { %1978 = vrot.lane.b32.xlu2 %v7197_v8, %s7068_s17 }
 0x109   : > { %v604_v53 = vpop.xlane.xlu1 %603 }
 0x10a   : > { %v598_v57 = vpop.xlane.xlu0 %597  ;;  %v694_v54 = vmul.f32 %v604_v53, %v7315_v62 }
 0x10b   : > { %v692_v38 = vmul.f32 %v598_v57, %v7315_v62 }
 0x10c   : > { %v7621_v25 = vadd.f32 1e-05, %v694_v54 }
 0x10d   : > { %v724_v61 = vadd.f32 1e-05, %v692_v38 }
 0x10e   : > { %vm782_vm10 = vweird.f32 %v7621_v25 }
 0x10f   : > { %6753 = vrsqrt.f32 %v724_v61  ;;  %1982 = vrot.lane.b32.xlu2 %v7194_v7, %s7068_s17  ;;  %vm762_vm4 = vweird.f32 %v724_v61 }
 0x110   : > { %6755 = vrsqrt.f32 %v7621_v25 }
 0x111   : > { %v613_v8 = vpop.xlane.xlu1 %612 }
 0x112   : > { %v601_v63 = vpop.xlane.xlu2 %600  ;;  %v607_v5 = vpop.xlane.xlu0 %606 }
 0x113   : > { %v693_v42 = vmul.f32 %v601_v63, %v7315_v62  ;;  %v695_v44 = vmul.f32 %v607_v5, %v7315_v62 }
 0x115   : > { %v6754_v26 = vpop.eup %6753  ;;  %v725_v43 = vadd.f32 1e-05, %v693_v42  ;;  %v7630_v32 = vadd.f32 1e-05, %v695_v44 }
 0x116   : > { %v757_v15 = vmul.f32 %v6754_v26, %v724_v61  ;;  %v7628_v28 = vpop.eup %6755  ;;  %vm763_vm3 = vweird.f32 %v6754_v26  ;;  %v7645_v61 = vld [vmem:[%s11301_s1] ss:$0 sm:$0xff] }
 0x117   : > { %6757 = vrsqrt.f32 %v725_v43  ;;  %v777_v19 = vmul.f32 %v7628_v28, %v7621_v25  ;;  %vm764_vm5 = vmor %vm762_vm4, %vm763_vm3  ;;  %vm772_vm7 = vweird.f32 %v725_v43  ;;  %vm783_vm9 = vweird.f32 %v7628_v28 }
 0x118   : > { %v758_v16 = vmul.f32 %v6754_v26, %v757_v15  ;;  %6759 = vrsqrt.f32 %v7630_v32  ;;  %v7654_v15 = vld [vmem:[%s11301_s1 + $0x1] ss:$0 sm:$0xff]  ;;  %vm784_vm11 = vmor %vm782_vm10, %vm783_vm9  ;;  %vm792_vm13 = vweird.f32 %v7630_v32 }
 0x119   : > { %v7626_v30 = vpop.xlane.xlu1 %621  ;;  %v778_v57 = vmul.f32 %v7628_v28, %v777_v19 }
 0x11a   : > { %v759_v31 = vmul.f32 0.5, %v758_v16  ;;  %v610_v7 = vpop.xlane.xlu2 %609  ;;  %v616_v1 = vpop.xlane.xlu0 %615 }
 0x11b   : > { %v696_v53 = vmul.f32 %v610_v7, %v7315_v62  ;;  %v779_v42 = vmul.f32 0.5, %v778_v57 }
 0x11c   : > { %v760_v48 = vsub.f32 1.5, %v759_v31 }
 0x11d   : > { %v6758_v33 = vpop.eup %6757  ;;  %v7647_v63 = vadd.f32 1e-05, %v696_v53 }
 0x11e   : > { %v761_v2 = vmul.f32 %v6754_v26, %v760_v48  ;;  %v767_v41 = vmul.f32 %v6758_v33, %v725_v43  ;;  %v7649_v5 = vpop.eup %6759  ;;  %vm773_vm6 = vweird.f32 %v6758_v33 }
 0x11f   : > { %6761 = vrsqrt.f32 %v7647_v63  ;;  %vm774_vm8 = vmor %vm772_vm7, %vm773_vm6  ;;  %vm793_vm12 = vweird.f32 %v7649_v5  ;;  %vm802_vm1 = vweird.f32 %v7647_v63 }
 0x120   : > { %v768_v46 = vmul.f32 %v6758_v33, %v767_v41  ;;  %v765_v36 = vsel %vm764_vm5, %v6754_v26, %v761_v2  ;;  %v780_v2 = vsub.f32 1.5, %v779_v42  ;;  %v697_v41 = vmul.f32 %v613_v8, %v7315_v62  ;;  %vm794_vm14 = vmor %vm792_vm13, %vm793_vm12 }
 0x121   : > { %v7635_v20 = vpop.xlane.xlu1 %630  ;;  %v1076_v54 = vmul.f32 %v765_v36, %v7323_v11  ;;  %v787_v11 = vmul.f32 %v7649_v5, %v7630_v32 }
 0x122   : > { %v619_v56 = vpop.xlane.xlu2 %618  ;;  %v7638_v50 = vpop.xlane.xlu0 %624  ;;  %v769_v38 = vmul.f32 0.5, %v768_v46  ;;  %v781_v36 = vmul.f32 %v7628_v28, %v780_v2  ;;  %v7673_v53 = vadd.f32 1e-05, %v697_v41 }
 0x123   : > { %v1108_v16 = vmul.f32 %v1076_v54, %v7645_v61  ;;  %v788_v46 = vmul.f32 %v7649_v5, %v787_v11  ;;  %v699_v2 = vmul.f32 %v619_v56, %v7315_v62 }
 0x124   : > { %v770_v26 = vsub.f32 1.5, %v769_v38  ;;  %6763 = vrsqrt.f32 %v7673_v53  ;;  %v785_v11 = vsel %vm784_vm11, %v7628_v28, %v781_v36  ;;  %vm812_vm4 = vweird.f32 %v7673_v53 }
 0x125   : > { %v1140_v31 = vadd.f32 %v1108_v16, %v7654_v15  ;;  %v7675_v38 = vpop.eup %6761  ;;  %v789_v54 = vmul.f32 0.5, %v788_v46  ;;  %v1078_v41 = vmul.f32 %v785_v11, %v7320_v10  ;;  %v7705_v56 = vadd.f32 1e-05, %v699_v2 }
 0x126   : > { %v771_v19 = vmul.f32 %v6758_v33, %v770_v26  ;;  %v797_v16 = vmul.f32 %v7675_v38, %v7647_v63  ;;  %vm803_vm15 = vweird.f32 %v7675_v38 }
 0x127   : > { %6341 = vmatmul.msk.f32.vlgmr.msra.gmra.mxu0 %vm396_vm0, %v1140_v31  ;;  %6374 = vmatmul.msk.f32.vlgmr.msra.gmra.mxu1 %vm396_vm0, %v1140_v31  ;;  %v790_v31 = vsub.f32 1.5, %v789_v54  ;;  %v1110_v10 = vmul.f32 %v1078_v41, %v7645_v61  ;;  %vm804_vm3 = vmor %vm802_vm1, %vm803_vm15  ;;  %vm832_vm11 = vweird.f32 %v7705_v56 }
 0x128   : > { %v775_v57 = vsel %vm774_vm8, %v6758_v33, %v771_v19  ;;  %v698_v33 = vmul.f32 %v616_v1, %v7315_v62  ;;  %v798_v19 = vmul.f32 %v7675_v38, %v797_v16 }
 0x129   : > { %v7657_v44 = vpop.xlane.xlu1 %639  ;;  %v1077_v43 = vmul.f32 %v775_v57, %v7342_v39  ;;  %v791_v36 = vmul.f32 %v7649_v5, %v790_v31  ;;  %v1142_v11 = vadd.f32 %v1110_v10, %v7654_v15 }
 0x12a   : > { %v7663_v7 = vpop.xlane.xlu2 %627  ;;  %v7665_v48 = vpop.xlane.xlu0 %633  ;;  %v7695_v46 = vadd.f32 1e-05, %v698_v33  ;;  %v700_v33 = vmul.f32 %v7626_v30, %v7315_v62 }
 0x12b   : > { %v1109_v25 = vmul.f32 %v1077_v43, %v7645_v61  ;;  %v7699_v1 = vpop.eup %6763  ;;  %v799_v43 = vmul.f32 0.5, %v798_v19 }
 0x12c   : > { %6765 = vrsqrt.f32 %v7695_v46  ;;  %v807_v16 = vmul.f32 %v7699_v1, %v7673_v53  ;;  %vm813_vm5 = vweird.f32 %v7699_v1  ;;  %vm822_vm8 = vweird.f32 %v7695_v46 }
 0x12d   : > { %v1141_v39 = vadd.f32 %v1109_v25, %v7654_v15  ;;  %6767 = vrsqrt.f32 %v7705_v56  ;;  %v795_v25 = vsel %vm794_vm14, %v7649_v5, %v791_v36  ;;  %v800_v31 = vsub.f32 1.5, %v799_v43  ;;  %vm814_vm6 = vmor %vm812_vm4, %vm813_vm5 }
 0x12e   : > { %v808_v2 = vmul.f32 %v7699_v1, %v807_v16  ;;  %v1079_v32 = vmul.f32 %v795_v25, %v7339_v35 }
 0x12f   : > { %6342 = vmatmul.msk.f32.gmra.mxu0 %vm396_vm0, %v1141_v39  ;;  %6375 = vmatmul.msk.f32.gmra.mxu1 %vm396_vm0, %v1141_v39  ;;  %v7722_v39 = vadd.f32 1e-05, %v700_v33  ;;  %v801_v36 = vmul.f32 %v7675_v38, %v800_v31  ;;  %v701_v33 = vmul.f32 %v7638_v50, %v7315_v62 }
 0x130   : > { %v1111_v19 = vmul.f32 %v1079_v32, %v7645_v61  ;;  %v809_v16 = vmul.f32 0.5, %v808_v2 }
 0x131   : > { %v7678_v8 = vpop.xlane.xlu1 %648  ;;  %6769 = vrsqrt.f32 %v7722_v39  ;;  %v805_v31 = vsel %vm804_vm3, %v7675_v38, %v801_v36  ;;  %v7757_v50 = vadd.f32 1e-05, %v701_v33  ;;  %vm842_vm13 = vweird.f32 %v7722_v39 }
 0x132   : > { %v7681_v42 = vpop.xlane.xlu2 %636  ;;  %v7683_v26 = vpop.xlane.xlu0 %642  ;;  %v810_v32 = vsub.f32 1.5, %v809_v16 }
 0x133   : > { %v7727_v41 = vpop.eup %6765  ;;  %6771 = vrsqrt.f32 %v7757_v50  ;;  %vm852_vm3 = vweird.f32 %v7757_v50 }
 0x134   : > { %v7738_v43 = vpop.eup %6767  ;;  %v817_v35 = vmul.f32 %v7727_v41, %v7695_v46  ;;  %v811_v16 = vmul.f32 %v7699_v1, %v810_v32  ;;  %vm823_vm7 = vweird.f32 %v7727_v41 }
 0x135   : > { %v827_v25 = vmul.f32 %v7738_v43, %v7705_v56  ;;  %vm833_vm9 = vweird.f32 %v7738_v43  ;;  %vm824_vm10 = vmor %vm822_vm8, %vm823_vm7 }
 0x136   : > { %v818_v2 = vmul.f32 %v7727_v41, %v817_v35  ;;  %vm7823_vm12 = vmor %vm832_vm11, %vm833_vm9 }
 0x137   : > { %6343 = vmatmul.msk.f32.gmra.mxu0 %vm396_vm0, %v1142_v11  ;;  %6376 = vmatmul.msk.f32.gmra.mxu1 %vm396_vm0, %v1142_v11  ;;  %v1143_v11 = vadd.f32 %v1111_v19, %v7654_v15  ;;  %v7753_v63 = vpop.eup %6769  ;;  %v1080_v19 = vmul.f32 %v805_v31, %v7349_v45  ;;  %v828_v36 = vmul.f32 %v7738_v43, %v827_v25 }
 0x138   : > { %v819_v35 = vmul.f32 0.5, %v818_v2  ;;  %v837_v53 = vmul.f32 %v7753_v63, %v7722_v39  ;;  %v702_v45 = vmul.f32 %v7663_v7, %v7315_v62  ;;  %v815_v2 = vsel %vm814_vm6, %v7699_v1, %v811_v16 }
 0x139   : > { %v7701_v28 = vpop.xlane.xlu1 %657  ;;  %v829_v31 = vmul.f32 0.5, %v828_v36  ;;  %v1081_v27 = vmul.f32 %v815_v2, %v7336_v34  ;;  %vm843_vm14 = vweird.f32 %v7753_v63 }
 0x13a   : > { %v7708_v57 = vpop.xlane.xlu2 %645  ;;  %v7710_v54 = vpop.xlane.xlu0 %651  ;;  %v820_v25 = vsub.f32 1.5, %v819_v35  ;;  %v7781_v7 = vadd.f32 1e-05, %v702_v45  ;;  %vm7851_vm15 = vmor %vm842_vm13, %vm843_vm14 }
 0x13b   : > { %v1113_v1 = vmul.f32 %v1081_v27, %v7645_v61 }
 0x13c   : > { %6773 = vrsqrt.f32 %v7781_v7  ;;  %vm862_vm6 = vweird.f32 %v7781_v7 }
 0x13d   : > { %v1145_v27 = vadd.f32 %v1113_v1, %v7654_v15 }
 0x13f   : > { %6344 = vmatmul.msk.f32.gmra.mxu0 %vm396_vm0, %v1143_v11  ;;  %6377 = vmatmul.msk.f32.gmra.mxu1 %vm396_vm0, %v1143_v11  ;;  %v1112_v11 = vmul.f32 %v1080_v19, %v7645_v61  ;;  %v838_v19 = vmul.f32 %v7753_v63, %v837_v53 }
 0x141   : > { %v7729_v30 = vpop.xlane.xlu1 %666  ;;  %v1144_v33 = vadd.f32 %v1112_v11, %v7654_v15  ;;  %v839_v53 = vmul.f32 0.5, %v838_v19 }
 0x142   : > { %v7732_v10 = vpop.xlane.xlu2 %654  ;;  %v7734_v5 = vpop.xlane.xlu0 %660 }
 0x143   : > { %v840_v1 = vsub.f32 1.5, %v839_v53 }
 0x147   : > { %6345 = vmatmul.msk.f32.gmra.mxu0 %vm396_vm0, %v1144_v33  ;;  %6378 = vmatmul.msk.f32.gmra.mxu1 %vm396_vm0, %v1144_v33 }
 0x149   : > { %v489_v55 = vpop.xlane.xlu1 %488 }
 0x14a   : > { %v7760_v14 = vpop.xlane.xlu2 %663  ;;  %v483_v38 = vpop.xlane.xlu0 %482  ;;  %v530_v47 = vmul.f32 %v7315_v62, %v489_v55 }
 0x14b   : > { %v528_v55 = vmul.f32 %v7315_v62, %v483_v38  ;;  %v821_v38 = vmul.f32 %v7727_v41, %v820_v25 }
 0x14c   : > { %v7775_v32 = vsub.f32 %v7484_v13, %v530_v47  ;;  %v830_v13 = vsub.f32 1.5, %v829_v31  ;;  %v7789_v47 = vpop.eup %6771 }
 0x14d   : > { %v7784_v36 = vsub.f32 %v7490_v21, %v528_v55  ;;  %v703_v21 = vmul.f32 %v7635_v20, %v7315_v62  ;;  %v847_v46 = vmul.f32 %v7789_v47, %v7757_v50  ;;  %v825_v55 = vsel %vm824_vm10, %v7727_v41, %v821_v38 }
 0x14e   : > { %v594_v34 = vmul.f32 %v7775_v32, %v7775_v32  ;;  %v831_v31 = vmul.f32 %v7738_v43, %v830_v13  ;;  %v1082_v19 = vmul.f32 %v825_v55, %v7365_v60  ;;  %v7834_v60 = vpop.eup %6773  ;;  %vm853_vm1 = vweird.f32 %v7789_v47 }
 0x14f   : > { %v592_v45 = vmul.f32 %v7784_v36, %v7784_v36  ;;  %6346 = vmatmul.msk.f32.gmra.mxu0 %vm396_vm0, %v1145_v27  ;;  %6379 = vmatmul.msk.f32.gmra.mxu1 %vm396_vm0, %v1145_v27  ;;  %v7817_v2 = vadd.f32 1e-05, %v703_v21  ;;  %v848_v41 = vmul.f32 %v7789_v47, %v847_v46  ;;  %v841_v27 = vmul.f32 %v7753_v63, %v840_v1  ;;  %vm854_vm4 = vmor %vm852_vm3, %vm853_vm1 }
 0x150   : > { %v686_v33 = vsel %vm396_vm0, %v594_v34, 0.0  ;;  %v1114_v38 = vmul.f32 %v1082_v19, %v7645_v61  ;;  %v835_v56 = vsel %vm7823_vm12, %v7738_v43, %v831_v31  ;;  %v857_v39 = vmul.f32 %v7834_v60, %v7781_v7 }
 0x151   : > { %687 = vadd.xlane.f32.xlu0 %v686_v33  ;;  %v680_v25 = vsel %vm396_vm0, %v592_v45, 0.0  ;;  %6775 = vrsqrt.f32 %v7817_v2  ;;  %v1083_v43 = vmul.f32 %v835_v56, %v7373_v4  ;;  %v849_v33 = vmul.f32 0.5, %v848_v41 }
 0x152   : > { %v486_v35 = vpop.xlane.xlu2 %485  ;;  %v7786_v11 = vpop.xlane.xlu0 %669  ;;  %681 = vadd.xlane.f32.xlu1 %v680_v25  ;;  %v1146_v53 = vadd.f32 %v1114_v38, %v7654_v15  ;;  %v858_v19 = vmul.f32 %v7834_v60, %v857_v39  ;;  %vm863_vm5 = vweird.f32 %v7834_v60  ;;  %vm872_vm8 = vweird.f32 %v7817_v2 }
 0x153   : > { %v529_v16 = vmul.f32 %v7315_v62, %v486_v35  ;;  %v1115_v4 = vmul.f32 %v1083_v43, %v7645_v61  ;;  %v850_v55 = vsub.f32 1.5, %v849_v33  ;;  %v706_v43 = vmul.f32 %v7657_v44, %v7315_v62  ;;  %v1611_v44 = vld [vmem:[%s11304_s4 + $0x78] sm:$0xff]  ;;  %vm864_vm7 = vmor %vm862_vm6, %vm863_vm5 }
 0x154   : > { %v859_v56 = vmul.f32 0.5, %v858_v19  ;;  %1718 = vmatpush.msra.mxu2 %v1611_v44  ;;  %v707_v7 = vmul.f32 %v7683_v26, %v7315_v62  ;;  %v1608_v26 = vld [vmem:[%s11304_s4 + $0x60] sm:$0xff] }
 0x155   : > { %v7811_v20 = vsub.f32 %v7509_v49, %v529_v16  ;;  %v704_v16 = vmul.f32 %v7665_v48, %v7315_v62  ;;  %v845_v49 = vsel %vm7851_vm15, %v7753_v63, %v841_v27  ;;  %v851_v38 = vmul.f32 %v7789_v47, %v850_v55 }
 0x156   : > { %v1084_v1 = vmul.f32 %v845_v49, %v7362_v59  ;;  %v7908_v31 = vadd.f32 1e-05, %v706_v43 }
 0x157   : > { %v593_v35 = vmul.f32 %v7811_v20, %v7811_v20  ;;  %6347 = vmatmul.msk.f32.gmra.mxu0 %vm396_vm0, %v1146_v53  ;;  %6380 = vmatmul.msk.f32.gmra.mxu1 %vm396_vm0, %v1146_v53  ;;  %v7859_v48 = vadd.f32 1e-05, %v704_v16  ;;  %v7863_v25 = vpop.eup %6775  ;;  %v855_v16 = vsel %vm854_vm4, %v7789_v47, %v851_v38  ;;  %v6947_v53 = vld [vmem:[%s7173_s25 + $0x30] sm:$0xff]  ;;  %v7940_v38 = vadd.f32 1e-05, %v707_v7 }
 0x158   : > { %v867_v41 = vmul.f32 %v7863_v25, %v7817_v2  ;;  %v1116_v63 = vmul.f32 %v1084_v1, %v7645_v61  ;;  %v1085_v27 = vmul.f32 %v855_v16, %v7386_v23  ;;  %v1610_v23 = vld [vmem:[%s11304_s4 + $0x70] sm:$0xff]  ;;  %vm873_vm9 = vweird.f32 %v7863_v25  ;;  %v1601_v2 = vld [vmem:[%s11304_s4 + $0x28] sm:$0xff] }
 0x159   : > { %v683_v21 = vsel %vm396_vm0, %v593_v35, 0.0  ;;  %6777 = vrsqrt.f32 %v7859_v48  ;;  %v705_v35 = vmul.f32 %v7681_v42, %v7315_v62  ;;  %1719 = vmatpush.msra.mxu2 %v1610_v23  ;;  %vm7928_vm10 = vmor %vm872_vm8, %vm873_vm9  ;;  %v1603_v23 = vld [vmem:[%s11304_s4 + $0x38] sm:$0xff]  ;;  %vm882_vm12 = vweird.f32 %v7859_v48  ;;  %v1618_v7 = vld [vmem:[%s11304_s4 + $0xb0] sm:$0xff] }
 0x15a   : > { %v492_v13 = vpop.xlane.xlu0 %491  ;;  %684 = vadd.xlane.f32.xlu1 %v683_v21  ;;  %v868_v59 = vmul.f32 %v7863_v25, %v867_v41  ;;  %v1148_v50 = vadd.f32 %v1116_v63, %v7654_v15  ;;  %vm902_vm3 = vweird.f32 %v7908_v31  ;;  %vm912_vm8 = vweird.f32 %v7940_v38 }
 0x15b   : > { %v531_v34 = vmul.f32 %v7315_v62, %v492_v13  ;;  %v1147_v13 = vadd.f32 %v1115_v4, %v7654_v15  ;;  %v7881_v42 = vadd.f32 1e-05, %v705_v35  ;;  %v1609_v4 = vld [vmem:[%s11304_s4 + $0x68] sm:$0xff] }
 0x15c   : > { %v869_v33 = vmul.f32 0.5, %v868_v59  ;;  %1720 = vmatpush.msra.mxu2 %v1609_v4  ;;  %v1606_v59 = vld [vmem:[%s11304_s4 + $0x50] sm:$0xff] }
 0x15d   : > { %v7845_v45 = vsub.f32 %v7522_v37, %v531_v34  ;;  %v860_v34 = vsub.f32 1.5, %v859_v56  ;;  %6779 = vrsqrt.f32 %v7881_v42  ;;  %v6948_v56 = vld [vmem:[%s7173_s25 + $0x10] sm:$0xff]  ;;  %vm892_vm15 = vweird.f32 %v7881_v42 }
 0x15e   : > { %6781 = vrsqrt.f32 %v7908_v31  ;;  %1721 = vmatpush.msra.mxu2 %v1608_v26  ;;  %v1617_v26 = vld [vmem:[%s11304_s4 + $0xa8] sm:$0xff] }
 0x15f   : > { %v595_v37 = vmul.f32 %v7845_v45, %v7845_v45  ;;  %6348 = vmatmul.msk.f32.gmra.mxu0 %vm396_vm0, %v1147_v13  ;;  %6381 = vmatmul.msk.f32.gmra.mxu1 %vm396_vm0, %v1147_v13  ;;  %v7888_v21 = vpop.eup %6777  ;;  %v861_v39 = vmul.f32 %v7834_v60, %v860_v34  ;;  %6783 = vrsqrt.f32 %v7940_v38 }
 0x160   : > { %v877_v47 = vmul.f32 %v7888_v21, %v7859_v48  ;;  %vm883_vm11 = vweird.f32 %v7888_v21  ;;  %v1602_v48 = vld [vmem:[%s11304_s4 + $0x30] sm:$0xff] }
 0x161   : > { %v689_v46 = vsel %vm396_vm0, %v595_v37, 0.0  ;;  %v1117_v37 = vmul.f32 %v1085_v27, %v7645_v61  ;;  %v865_v19 = vsel %vm864_vm7, %v7834_v60, %v861_v39  ;;  %v708_v27 = vmul.f32 %v7708_v57, %v7315_v62  ;;  %v1604_v57 = vld [vmem:[%s11304_s4 + $0x40] sm:$0xff]  ;;  %vm7981_vm13 = vmor %vm882_vm12, %vm883_vm11 }
 0x162   : > { %690 = vadd.xlane.f32.xlu2 %v689_v46  ;;  %v870_v46 = vsub.f32 1.5, %v869_v33  ;;  %v878_v55 = vmul.f32 %v7888_v21, %v877_v47  ;;  %v1086_v13 = vmul.f32 %v865_v19, %v7394_v29  ;;  %v1607_v29 = vld [vmem:[%s11304_s4 + $0x58] sm:$0xff]  ;;  %vm2072_vm7 = vcmask 31744  }
 0x163   : > { %v7916_v49 = vpop.eup %6779  ;;  %v1149_v35 = vadd.f32 %v1117_v37, %v7654_v15  ;;  %1722 = vmatpush.msra.mxu2 %v1607_v29  ;;  %v1619_v37 = vld [vmem:[%s11304_s4 + $0xb8] sm:$0xff]  ;;  %v709_v29 = vmul.f32 %v7678_v8, %v7315_v62  ;;  %v1600_v8 = vld [vmem:[%s11304_s4 + $0x20] sm:$0xff] }
 0x164   : > { %v871_v60 = vmul.f32 %v7863_v25, %v870_v46  ;;  %v879_v1 = vmul.f32 0.5, %v878_v55  ;;  %v887_v41 = vmul.f32 %v7916_v49, %v7881_v42  ;;  %v1118_v63 = vmul.f32 %v1086_v13, %v7645_v61  ;;  %v7952_v43 = vpop.eup %6781  ;;  %v6949_v55 = vld [vmem:[%s7173_s25 + $0x20] sm:$0xff] }
 0x165   : > { %1988 = vrot.lane.b32.xlu0 %v6947_v53, %s7068_s17  ;;  %1723 = vmatpush.msra.mxu2 %v1606_v59  ;;  %v7985_v46 = vadd.f32 1e-05, %v708_v27  ;;  %vm893_vm14 = vweird.f32 %v7916_v49  ;;  %vm903_vm4 = vweird.f32 %v7952_v43 }
 0x166   : > { %v880_v34 = vsub.f32 1.5, %v879_v1  ;;  %v888_v16 = vmul.f32 %v7916_v49, %v887_v41  ;;  %v875_v53 = vsel %vm7928_vm10, %v7863_v25, %v871_v60  ;;  %v1150_v33 = vadd.f32 %v1118_v63, %v7654_v15  ;;  %v8000_v1 = vpop.eup %6783  ;;  %v8002_v41 = vpop.xlane.xlu2 %672  ;;  %vm8036_vm1 = vmor %vm892_vm15, %vm893_vm14 }
 0x167   : > { %6349 = vmatmul.msk.f32.gmra.mxu0 %vm396_vm0, %v1148_v50  ;;  %6382 = vmatmul.msk.f32.gmra.mxu1 %vm396_vm0, %v1148_v50  ;;  %v1605_v50 = vld [vmem:[%s11304_s4 + $0x48] sm:$0xff]  ;;  %v1087_v39 = vmul.f32 %v875_v53, %v7383_v22  ;;  %v897_v25 = vmul.f32 %v7952_v43, %v7908_v31  ;;  %v1620_v22 = vld [vmem:[%s11304_s4 + $0xc0] sm:$0xff]  ;;  %6785 = vrsqrt.f32 %v7985_v46  ;;  %v1615_v53 = vld [vmem:[%s11304_s4 + $0x98] sm:$0xff]  ;;  %vm913_vm6 = vweird.f32 %v8000_v1 }
 0x168   : > { %v881_v47 = vmul.f32 %v7888_v21, %v880_v34  ;;  %v889_v44 = vmul.f32 0.5, %v888_v16  ;;  %1724 = vmatpush.msra.mxu2 %v1605_v50  ;;  %1838 = vmatpush.msra.mxu3 %v1620_v22  ;;  %v907_v34 = vmul.f32 %v8000_v1, %v7940_v38  ;;  %v1599_v16 = vld [vmem:[%s11304_s4 + $0x18] sm:$0xff]  ;;  %v8034_v50 = vadd.f32 1e-05, %v709_v29  ;;  %v1614_v22 = vld [vmem:[%s11304_s4 + $0x90] sm:$0xff]  ;;  %vm8075_vm5 = vmor %vm902_vm3, %vm903_vm4 }
 0x169   : > { %v1119_v19 = vmul.f32 %v1087_v39, %v7645_v61  ;;  %vm914_vm9 = vmor %vm912_vm8, %vm913_vm6  ;;  %vm922_vm11 = vweird.f32 %v7985_v46 }
 0x16a   : > { %1725 = vmatpush.msra.mxu2 %v1604_v57  ;;  %v890_v13 = vsub.f32 1.5, %v889_v44  ;;  %v885_v60 = vsel %vm7981_vm13, %v7888_v21, %v881_v47  ;;  %1839 = vmatpush.msra.mxu3 %v1619_v37  ;;  %v908_v42 = vmul.f32 %v8000_v1, %v907_v34  ;;  %v1598_v57 = vld [vmem:[%s11304_s4 + $0x10] sm:$0xff]  ;;  %6787 = vrsqrt.f32 %v8034_v50 }
 0x16b   : > { %v1151_v21 = vadd.f32 %v1119_v19, %v7654_v15  ;;  %v710_v37 = vmul.f32 %v7710_v54, %v7315_v62  ;;  %v1612_v54 = vld [vmem:[%s11304_s4 + $0x80] sm:$0xff]  ;;  %vm932_vm13 = vweird.f32 %v8034_v50 }
 0x16c   : > { %1726 = vmatpush.msra.mxu2 %v1603_v23  ;;  %1840 = vmatpush.msra.mxu3 %v1618_v7  ;;  %v891_v59 = vmul.f32 %v7916_v49, %v890_v13  ;;  %v1597_v23 = vld [vmem:[%s11304_s4 + $0x8] sm:$0xff]  ;;  %v909_v7 = vmul.f32 0.5, %v908_v42 }
 0x16d   : > { %v8047_v44 = vpop.eup %6785 }
 0x16e   : > { %1727 = vmatpush.msra.mxu2 %v1602_v48  ;;  %1841 = vmatpush.msra.mxu3 %v1617_v26  ;;  %v895_v47 = vsel %vm8036_vm1, %v7916_v49, %v891_v59  ;;  %v1613_v49 = vld [vmem:[%s11304_s4 + $0x88] sm:$0xff]  ;;  %v8066_v4 = vpop.xlane.xlu2 %678  ;;  %vm923_vm10 = vweird.f32 %v8047_v44  ;;  %vm1621_vm1 = vcmask 588800  }
 0x16f   : > { %6350 = vmatmul.msk.f32.gmra.mxu0 %vm396_vm0, %v1149_v35  ;;  %6383 = vmatmul.msk.f32.gmra.mxu1 %vm396_vm0, %v1149_v35  ;;  %v898_v35 = vmul.f32 %v7952_v43, %v897_v25  ;;  %v1089_v19 = vmul.f32 %v895_v47, %v7415_v0  ;;  %v1596_v0 = vld [vmem:[%s11304_s4] sm:$0xff]  ;;  %vm924_vm12 = vmor %vm922_vm11, %vm923_vm10 }
 0x170   : > { %1728 = vmatpush.msra.mxu2 %v1601_v2  ;;  %v910_v2 = vsub.f32 1.5, %v909_v7 }
 0x171   : > { %v899_v63 = vmul.f32 0.5, %v898_v35  ;;  %v917_v35 = vmul.f32 %v8047_v44, %v7985_v46  ;;  %v1121_v31 = vmul.f32 %v1089_v19, %v7645_v61  ;;  %v713_v46 = vmul.f32 %v7734_v5, %v7315_v62 }
 0x172   : > { %1729 = vmatpush.msra.mxu2 %v1600_v8 }
 0x173   : > { %1980 = vrot.lane.b32.xlu1 %v6948_v56, %s7068_s17  ;;  %v1088_v56 = vmul.f32 %v885_v60, %v7407_v52  ;;  %v1616_v52 = vld [vmem:[%s11304_s4 + $0xa0] sm:$0xff]  ;;  %v900_v25 = vsub.f32 1.5, %v899_v63  ;;  %v8087_v60 = vadd.f32 1e-05, %v710_v37  ;;  %v918_v26 = vmul.f32 %v8047_v44, %v917_v35 }
 0x174   : > { %1842 = vmatpush.msra.mxu3 %v1616_v52  ;;  %1730 = vmatpush.msra.mxu2 %v1599_v16  ;;  %v1153_v63 = vadd.f32 %v1121_v31, %v7654_v15  ;;  %v911_v52 = vmul.f32 %v8000_v1, %v910_v2  ;;  %v8158_v31 = vadd.f32 1e-05, %v713_v46 }
 0x175   : > { %v1120_v39 = vmul.f32 %v1088_v56, %v7645_v61  ;;  %v901_v48 = vmul.f32 %v7952_v43, %v900_v25  ;;  %6789 = vrsqrt.f32 %v8087_v60  ;;  %v711_v56 = vmul.f32 %v7732_v10, %v7315_v62 }
 0x176   : > { %1843 = vmatpush.msra.mxu3 %v1615_v53  ;;  %1731 = vmatpush.msra.mxu2 %v1598_v57  ;;  %v1979_v34 = vpop.permute.xlu2 %1978  ;;  %v712_v25 = vmul.f32 %v7701_v28, %v7315_v62  ;;  %vm942_vm4 = vweird.f32 %v8087_v60 }
 0x177   : > { %6351 = vmatmul.msk.f32.gmra.mxu0 %vm396_vm0, %v1150_v33  ;;  %6384 = vmatmul.msk.f32.gmra.mxu1 %vm396_vm0, %v1150_v33  ;;  %v6950_v33 = vld [vmem:[%s7173_s25 + $0x28] sm:$0xff]  ;;  %v905_v29 = vsel %vm8075_vm5, %v7952_v43, %v901_v48  ;;  %v919_v43 = vmul.f32 0.5, %v918_v26  ;;  %v2076_v10 = vsel %vm2072_vm7, %v1979_v34, 0.0 }
 0x178   : > { %1844 = vmatpush.msra.mxu3 %v1614_v22  ;;  %1732 = vmatpush.msra.mxu2 %v1597_v23  ;;  %v1090_v59 = vmul.f32 %v905_v29, %v7404_v51  ;;  %v8109_v51 = vadd.f32 1e-05, %v711_v56 }
 0x179   : > { %2077 = vadd.xlane.f32.xlu2 %v2076_v10  ;;  %v920_v27 = vsub.f32 1.5, %v919_v43  ;;  %v1977_v10 = vpop.permute.xlu0 %1976 }
 0x17a   : > { %1845 = vmatpush.msra.mxu3 %v1613_v49  ;;  %1733 = vmatpush.msra.mxu2 %v1596_v0  ;;  %v1122_v16 = vmul.f32 %v1090_v59, %v7645_v61  ;;  %6791 = vrsqrt.f32 %v8109_v51  ;;  %v6339_v49 = vld [vmem:[%s11301_s1 + $0x4] ss:$8 sm:$0x3]  ;;  %vm952_vm8 = vweird.f32 %v8109_v51 }
 0x17b   : > { %1984 = vrot.lane.b32.xlu1 %v6949_v55, %s7068_s17  ;;  %v1152_v55 = vadd.f32 %v1120_v39, %v7654_v15  ;;  %v921_v57 = vmul.f32 %v8047_v44, %v920_v27  ;;  %v8144_v48 = vperm.slane %v6339_v49, 0  ;;  %v8146_v7 = vperm.slane %v6339_v49, 1 }
 0x17c   : > { %1846 = vmatpush.msra.mxu3 %v1612_v54  ;;  %v1154_v38 = vadd.f32 %v1122_v16, %v7654_v15 }
 0x17d   : > { %v925_v37 = vsel %vm924_vm12, %v8047_v44, %v921_v57 }
 0x17e   : > { %v1092_v35 = vmul.f32 %v925_v37, %v7436_v17 }
 0x17f   : > { %6352 = vmatmul.msk.f32.gmra.mxu0 %vm396_vm0, %v1151_v21  ;;  %6385 = vmatmul.msk.f32.gmra.mxu1 %vm396_vm0, %v1151_v21  ;;  %v8094_v21 = vpop.eup %6787 }
 0x180   : > { %v927_v8 = vmul.f32 %v8094_v21, %v8034_v50  ;;  %v8114_v39 = vpop.eup %6789  ;;  %vm933_vm14 = vweird.f32 %v8094_v21  ;;  %v1124_v26 = vmul.f32 %v1092_v35, %v7645_v61 }
 0x181   : > { %v937_v22 = vmul.f32 %v8114_v39, %v8087_v60  ;;  %vm8152_vm15 = vmor %vm932_vm13, %vm933_vm14  ;;  %vm943_vm3 = vweird.f32 %v8114_v39  ;;  %vm972_vm14 = vweird.f32 %v8158_v31 }
 0x182   : > { %v928_v53 = vmul.f32 %v8094_v21, %v927_v8  ;;  %v1156_v43 = vadd.f32 %v1124_v26, %v7654_v15  ;;  %vm8185_vm5 = vmor %vm942_vm4, %vm943_vm3 }
 0x183   : > { %1986 = vrot.lane.b32.xlu1 %v6950_v33, %s7068_s17  ;;  %v915_v33 = vsel %vm914_vm9, %v8000_v1, %v911_v52  ;;  %v8127_v1 = vadd.f32 1e-05, %v712_v25  ;;  %v938_v23 = vmul.f32 %v8114_v39, %v937_v22  ;;  %v714_v52 = vmul.f32 %v7760_v14, %v7315_v62 }
 0x184   : > { %v1091_v42 = vmul.f32 %v915_v33, %v7428_v12  ;;  %v929_v47 = vmul.f32 0.5, %v928_v53  ;;  %v2073_v33 = vsel %vm2072_vm7, %v1977_v10, 0.0  ;;  %v715_v22 = vmul.f32 %v7729_v30, %v7315_v62 }
 0x185   : > { %6793 = vrsqrt.f32 %v8127_v1  ;;  %v939_v13 = vmul.f32 0.5, %v938_v23  ;;  %v8182_v14 = vadd.f32 1e-05, %v714_v52  ;;  %vm962_vm10 = vweird.f32 %v8127_v1 }
 0x186   : > { %v1123_v28 = vmul.f32 %v1091_v42, %v7645_v61  ;;  %v930_v12 = vsub.f32 1.5, %v929_v47  ;;  %6795 = vrsqrt.f32 %v8158_v31  ;;  %v8209_v35 = vadd.f32 1e-05, %v715_v22 }
 0x187   : > { %6353 = vmatmul.msk.f32.gmra.mxu0 %vm396_vm0, %v1152_v55  ;;  %6386 = vmatmul.msk.f32.gmra.mxu1 %vm396_vm0, %v1152_v55  ;;  %v8136_v55 = vpop.eup %6791  ;;  %v940_v56 = vsub.f32 1.5, %v939_v13  ;;  %6797 = vrsqrt.f32 %v8182_v14  ;;  %vm982_vm4 = vweird.f32 %v8182_v14 }
 0x188   : > { %v1155_v19 = vadd.f32 %v1123_v28, %v7654_v15  ;;  %v931_v44 = vmul.f32 %v8094_v21, %v930_v12  ;;  %v947_v50 = vmul.f32 %v8136_v55, %v8109_v51  ;;  %vm953_vm6 = vweird.f32 %v8136_v55 }
 0x189   : > { %vm8214_vm9 = vmor %vm952_vm8, %vm953_vm6  ;;  %6799 = vrsqrt.f32 %v8209_v35  ;;  %v716_v51 = vmul.f32 %v7786_v11, %v7315_v62  ;;  %vm992_vm6 = vweird.f32 %v8209_v35 }
 0x18a   : > { %v935_v59 = vsel %vm8152_vm15, %v8094_v21, %v931_v44  ;;  %v941_v21 = vmul.f32 %v8114_v39, %v940_v56 }
 0x18b   : > { %v8163_v29 = vpop.eup %6793  ;;  %v1093_v16 = vmul.f32 %v935_v59, %v7425_v9  ;;  %v8242_v52 = vadd.f32 1e-05, %v716_v51 }
 0x18c   : > { %v957_v53 = vmul.f32 %v8163_v29, %v8127_v1  ;;  %v945_v60 = vsel %vm8185_vm5, %v8114_v39, %v941_v21  ;;  %v8196_v57 = vpop.eup %6795  ;;  %vm963_vm11 = vweird.f32 %v8163_v29 }
 0x18d   : > { %v1125_v25 = vmul.f32 %v1093_v16, %v7645_v61  ;;  %v1094_v46 = vmul.f32 %v945_v60, %v7449_v18  ;;  %v967_v30 = vmul.f32 %v8196_v57, %v8158_v31  ;;  %v8220_v0 = vpop.eup %6797  ;;  %vm8238_vm12 = vmor %vm962_vm10, %vm963_vm11  ;;  %6801 = vrsqrt.f32 %v8242_v52 }
 0x18e   : > { %v958_v42 = vmul.f32 %v8163_v29, %v957_v53  ;;  %v977_v11 = vmul.f32 %v8220_v0, %v8182_v14  ;;  %vm973_vm13 = vweird.f32 %v8196_v57  ;;  %vm983_vm3 = vweird.f32 %v8220_v0 }
 0x18f   : > { %6354 = vmatmul.msk.f32.gmra.mxu0 %vm396_vm0, %v1153_v63  ;;  %6387 = vmatmul.msk.f32.gmra.mxu1 %vm396_vm0, %v1153_v63  ;;  %v948_v63 = vmul.f32 %v8136_v55, %v947_v50  ;;  %v1157_v37 = vadd.f32 %v1125_v25, %v7654_v15  ;;  %v1126_v50 = vmul.f32 %v1094_v46, %v7645_v61  ;;  %v8246_v16 = vpop.eup %6799  ;;  %vm8273_vm15 = vmor %vm972_vm14, %vm973_vm13  ;;  %vm1002_vm10 = vweird.f32 %v8242_v52 }
 0x190   : > { %v978_v21 = vmul.f32 %v8220_v0, %v977_v11  ;;  %v987_v9 = vmul.f32 %v8246_v16, %v8209_v35  ;;  %vm8312_vm5 = vmor %vm982_vm4, %vm983_vm3  ;;  %vm993_vm8 = vweird.f32 %v8246_v16  ;;  %v719_v14 = vmul.f32 %v8066_v4, %v7315_v62 }
 0x191   : > { %v949_v27 = vmul.f32 0.5, %v948_v63  ;;  %v1158_v59 = vadd.f32 %v1126_v50, %v7654_v15  ;;  %v6953_v50 = vld [vmem:[%s7173_s25 + $0x40] sm:$0xff] }
 0x192   : > { %v979_v22 = vmul.f32 0.5, %v978_v21  ;;  %v8337_v4 = vadd.f32 1e-05, %v719_v14 }
 0x193   : > { %v950_v47 = vsub.f32 1.5, %v949_v27 }
 0x195   : > { %v951_v39 = vmul.f32 %v8136_v55, %v950_v47 }
 0x197   : > { %6355 = vmatmul.msk.f32.gmra.mxu0 %vm396_vm0, %v1154_v38  ;;  %6388 = vmatmul.msk.f32.gmra.mxu1 %vm396_vm0, %v1154_v38  ;;  %v6951_v38 = vld [vmem:[%s7173_s25 + $0x38] sm:$0xff] }
 0x198   : > { %1990 = vrot.lane.b32.xlu2 %v6951_v38, %s7068_s17 }
 0x19f   : > { %6356 = vmatmul.msk.f32.gmra.mxu0 %vm396_vm0, %v1155_v19  ;;  %6389 = vmatmul.msk.f32.gmra.mxu1 %vm396_vm0, %v1155_v19  ;;  %v959_v19 = vmul.f32 0.5, %v958_v42 }
 0x1a4   : > { %v1323_v5 = vpop.f32.mrf.mxu0  ;;  %v1436_v54 = vpop.f32.mrf.mxu1 }
 0x1a5   : > { %v1324_v17 = vadd.f32 %v1323_v5, %v8144_v48  ;;  %v1437_v2 = vadd.f32 %v1436_v54, %v8146_v7  ;;  %v960_v5 = vsub.f32 1.5, %v959_v19  ;;  %v968_v54 = vmul.f32 %v8196_v57, %v967_v30 }
 0x1a6   : > { %v980_v19 = vsub.f32 1.5, %v979_v22 }
 0x1a7   : > { %v1533_v34 = vmax.f32 %v1437_v2, 0.0  ;;  %v1532_v8 = vmax.f32 %v1324_v17, 0.0  ;;  %6357 = vmatmul.msk.f32.gmra.mxu0 %vm396_vm0, %v1156_v43  ;;  %6390 = vmatmul.msk.f32.gmra.mxu1 %vm396_vm0, %v1156_v43  ;;  %v955_v17 = vsel %vm8214_vm9, %v8136_v55, %v951_v39  ;;  %v961_v55 = vmul.f32 %v8163_v29, %v960_v5  ;;  %vm8333_vm9 = vmor %vm992_vm6, %vm993_vm8 }
 0x1a8   : > { %vm1032_vm6 = vweird.f32 %v8337_v4 }
 0x1a9   : > { %1734 = vmatmul.f32.vlgmr.msra.gmra.mxu2 %v1532_v8  ;;  %6406 = vmatmul.msk.f32.vlgmr.msra.gmra.mxu3 %vm1621_vm1, %v1533_v34  ;;  %v1095_v34 = vmul.f32 %v955_v17, %v7457_v6  ;;  %v969_v8 = vmul.f32 0.5, %v968_v54  ;;  %v965_v27 = vsel %vm8238_vm12, %v8163_v29, %v961_v55  ;;  %v8298_v17 = vld [vmem:[%s11301_s1 + $0x1] ss:$0 sm:$0xff] }
 0x1aa   : > { %v1096_v60 = vmul.f32 %v965_v27, %v7446_v40  ;;  %v8271_v40 = vpop.eup %6801 }
 0x1ab   : > { %v1127_v6 = vmul.f32 %v1095_v34, %v7645_v61  ;;  %v970_v53 = vsub.f32 1.5, %v969_v8  ;;  %vm1003_vm11 = vweird.f32 %v8271_v40 }
 0x1ac   : > { %v1326_v28 = vpop.f32.mrf.mxu0  ;;  %v1439_v12 = vpop.f32.mrf.mxu1  ;;  %vm8361_vm12 = vmor %vm1002_vm10, %vm1003_vm11 }
 0x1ad   : > { %2074 = vadd.xlane.f32.xlu1 %v2073_v33  ;;  %v1327_v23 = vadd.f32 %v1326_v28, %v8144_v48  ;;  %v1440_v49 = vadd.f32 %v1439_v12, %v8146_v7  ;;  %v717_v33 = vmul.f32 %v8002_v41, %v7315_v62  ;;  %v1159_v47 = vadd.f32 %v1127_v6, %v7654_v15  ;;  %v676_v28 = vpop.xlane.xlu1 %675 }
 0x1ae   : > { %v971_v29 = vmul.f32 %v8196_v57, %v970_v53  ;;  %v718_v39 = vmul.f32 %v676_v28, %v7315_v62 }
 0x1af   : > { %v1535_v44 = vmax.f32 %v1440_v49, 0.0  ;;  %6358 = vmatmul.msk.f32.gmra.mxu0 %vm396_vm0, %v1157_v37  ;;  %6391 = vmatmul.msk.f32.gmra.mxu1 %vm396_vm0, %v1157_v37  ;;  %v1534_v13 = vmax.f32 %v1327_v23, 0.0  ;;  %v8265_v41 = vadd.f32 1e-05, %v717_v33  ;;  %v988_v49 = vmul.f32 %v8246_v16, %v987_v9  ;;  %v8281_v37 = vld [vmem:[%s11301_s1] ss:$0 sm:$0xff] }
 0x1b0   : > { %v1128_v46 = vmul.f32 %v8281_v37, %v1096_v60  ;;  %v975_v31 = vsel %vm8273_vm15, %v8196_v57, %v971_v29 }
 0x1b1   : > { %1737 = vmatmul.f32.gmra.mxu2 %v1534_v13  ;;  %6407 = vmatmul.msk.f32.gmra.mxu3 %vm1621_vm1, %v1535_v44  ;;  %6803 = vrsqrt.f32 %v8265_v41  ;;  %v989_v30 = vmul.f32 0.5, %v988_v49  ;;  %v997_v44 = vmul.f32 %v8271_v40, %v8242_v52  ;;  %v1097_v51 = vmul.f32 %v975_v31, %v7470_v24 }
 0x1b2   : > { %v1160_v57 = vadd.f32 %v8298_v17, %v1128_v46  ;;  %vm1012_vm13 = vweird.f32 %v8265_v41 }
 0x1b3   : > { %v998_v34 = vmul.f32 %v8271_v40, %v997_v44  ;;  %v1129_v8 = vmul.f32 %v8281_v37, %v1097_v51 }
 0x1b4   : > { %v1329_v2 = vpop.f32.mrf.mxu0  ;;  %v1442_v26 = vpop.f32.mrf.mxu1 }
 0x1b5   : > { %v1330_v56 = vadd.f32 %v1329_v2, %v8144_v48  ;;  %v1443_v63 = vadd.f32 %v1442_v26, %v8146_v7  ;;  %v981_v2 = vmul.f32 %v8220_v0, %v980_v19  ;;  %v8304_v26 = vadd.f32 1e-05, %v718_v39 }
 0x1b7   : > { %v1537_v43 = vmax.f32 %v1443_v63, 0.0  ;;  %6359 = vmatmul.msk.f32.gmra.mxu0 %vm396_vm0, %v1158_v59  ;;  %6392 = vmatmul.msk.f32.gmra.mxu1 %vm396_vm0, %v1158_v59  ;;  %v1536_v10 = vmax.f32 %v1330_v56, 0.0  ;;  %v990_v59 = vsub.f32 1.5, %v989_v30  ;;  %v8310_v55 = vpop.eup %6803  ;;  %6805 = vrsqrt.f32 %v8304_v26 }
 0x1b8   : > { %v985_v11 = vsel %vm8312_vm5, %v8220_v0, %v981_v2  ;;  %v1161_v0 = vadd.f32 %v8298_v17, %v1129_v8  ;;  %6807 = vrsqrt.f32 %v8337_v4  ;;  %vm1013_vm14 = vweird.f32 %v8310_v55  ;;  %v11382_v2 = vld [vmem:[#allocation6_spill] sm:$0xff] }
 0x1b9   : > { %1740 = vmatmul.f32.gmra.mxu2 %v1536_v10  ;;  %6408 = vmatmul.msk.f32.gmra.mxu3 %vm1621_vm1, %v1537_v43  ;;  %v991_v1 = vmul.f32 %v8246_v16, %v990_v59  ;;  %v999_v43 = vmul.f32 0.5, %v998_v34  ;;  %v1007_v10 = vmul.f32 %v8310_v55, %v8265_v41  ;;  %v1098_v35 = vmul.f32 %v985_v11, %v7478_v3  ;;  %vm8388_vm15 = vmor %vm1012_vm13, %vm1013_vm14 }
 0x1ba   : > { %vm1022_vm3 = vweird.f32 %v8304_v26 }
 0x1bb   : > { %v1130_v3 = vmul.f32 %v8281_v37, %v1098_v35  ;;  %v995_v29 = vsel %vm8333_vm9, %v8246_v16, %v991_v1 }
 0x1bc   : > { %v1332_v25 = vpop.f32.mrf.mxu0  ;;  %v1445_v38 = vpop.f32.mrf.mxu1  ;;  %v1099_v16 = vmul.f32 %v995_v29, %v7467_v58 }
 0x1bd   : > { %v1333_v42 = vadd.f32 %v1332_v25, %v8144_v48  ;;  %v1446_v61 = vadd.f32 %v1445_v38, %v8146_v7  ;;  %v8341_v25 = vpop.eup %6805  ;;  %v1000_v38 = vsub.f32 1.5, %v999_v43  ;;  %v1162_v31 = vadd.f32 %v8298_v17, %v1130_v3 }
 0x1be   : > { %v1017_v28 = vmul.f32 %v8341_v25, %v8304_v26  ;;  %vm1023_vm4 = vweird.f32 %v8341_v25 }
 0x1bf   : > { %v1539_v12 = vmax.f32 %v1446_v61, 0.0  ;;  %6360 = vmatmul.msk.f32.gmra.mxu0 %vm396_vm0, %v1159_v47  ;;  %6393 = vmatmul.msk.f32.gmra.mxu1 %vm396_vm0, %v1159_v47  ;;  %v1538_v23 = vmax.f32 %v1333_v42, 0.0  ;;  %v1008_v42 = vmul.f32 %v8310_v55, %v1007_v10  ;;  %v1983_v47 = vpop.permute.xlu2 %1982  ;;  %vm8414_vm5 = vmor %vm1022_vm3, %vm1023_vm4 }
 0x1c0   : > { %v2082_v22 = vsel %vm2072_vm7, %v1983_v47, 0.0  ;;  %v1018_v30 = vmul.f32 %v8341_v25, %v1017_v28 }
 0x1c1   : > { %1743 = vmatmul.f32.gmra.mxu2 %v1538_v23  ;;  %6409 = vmatmul.msk.f32.gmra.mxu3 %vm1621_vm1, %v1539_v12  ;;  %v1001_v12 = vmul.f32 %v8271_v40, %v1000_v38  ;;  %v1009_v23 = vmul.f32 0.5, %v1008_v42  ;;  %v11385_v38 = vld [vmem:[#allocation7_spill] sm:$0xff] }
 0x1c2   : > { %2083 = vadd.xlane.f32.xlu2 %v2082_v22  ;;  %v1019_v51 = vmul.f32 0.5, %v1018_v30 }
 0x1c3   : > { %v1010_v44 = vsub.f32 1.5, %v1009_v23 }
 0x1c4   : > { %v1335_v13 = vpop.f32.mrf.mxu0  ;;  %v1448_v18 = vpop.f32.mrf.mxu1  ;;  %v1020_v1 = vsub.f32 1.5, %v1019_v51 }
 0x1c5   : > { %v1336_v5 = vadd.f32 %v1335_v13, %v8144_v48  ;;  %v1449_v54 = vadd.f32 %v1448_v18, %v8146_v7  ;;  %v682_v61 = vpop.xlane.xlu1 %681  ;;  %v1131_v18 = vmul.f32 %v8281_v37, %v1099_v16 }
 0x1c6   : > { %1992 = vrot.lane.b32.xlu1 %v6953_v50, %s7068_s17  ;;  %v720_v46 = vmul.f32 %v682_v61, %v7315_v62  ;;  %v8369_v50 = vpop.eup %6807  ;;  %v1021_v33 = vmul.f32 %v8341_v25, %v1020_v1 }
 0x1c7   : > { %v1541_v56 = vmax.f32 %v1449_v54, 0.0  ;;  %6361 = vmatmul.msk.f32.gmra.mxu0 %vm396_vm0, %v1160_v57  ;;  %6394 = vmatmul.msk.f32.gmra.mxu1 %vm396_vm0, %v1160_v57  ;;  %v1540_v63 = vmax.f32 %v1336_v5, 0.0  ;;  %v1005_v5 = vsel %vm8361_vm12, %v8271_v40, %v1001_v12  ;;  %v1027_v59 = vmul.f32 %v8369_v50, %v8337_v4 }
 0x1c8   : > { %v8374_v54 = vadd.f32 1e-05, %v720_v46  ;;  %v1163_v24 = vadd.f32 %v8298_v17, %v1131_v18  ;;  %v1025_v46 = vsel %vm8414_vm5, %v8341_v25, %v1021_v33  ;;  %vm1033_vm8 = vweird.f32 %v8369_v50 }
 0x1c9   : > { %1746 = vmatmul.f32.gmra.mxu2 %v1540_v63  ;;  %6410 = vmatmul.msk.f32.gmra.mxu3 %vm1621_vm1, %v1541_v56  ;;  %v1100_v56 = vmul.f32 %v1005_v5, %v11382_v2  ;;  %v1011_v63 = vmul.f32 %v8310_v55, %v1010_v44  ;;  %v11388_v44 = vld [vmem:[#allocation5_spill] sm:$0xff]  ;;  %vm8442_vm9 = vmor %vm1032_vm6, %vm1033_vm8 }
 0x1ca   : > { %6809 = vrsqrt.f32 %v8374_v54  ;;  %vm1042_vm11 = vweird.f32 %v8374_v54 }
 0x1cc   : > { %v1338_v6 = vpop.f32.mrf.mxu0  ;;  %v1451_v53 = vpop.f32.mrf.mxu1 }
 0x1cd   : > { %v1339_v21 = vadd.f32 %v1338_v6, %v8144_v48  ;;  %v1452_v27 = vadd.f32 %v1451_v53, %v8146_v7  ;;  %v685_v57 = vpop.xlane.xlu1 %684  ;;  %v1028_v6 = vmul.f32 %v8369_v50, %v1027_v59  ;;  %v1132_v53 = vmul.f32 %v8281_v37, %v1100_v56 }
 0x1ce   : > { %v721_v8 = vmul.f32 %v685_v57, %v7315_v62 }
 0x1cf   : > { %v1543_v9 = vmax.f32 %v1452_v27, 0.0  ;;  %6362 = vmatmul.msk.f32.gmra.mxu0 %vm396_vm0, %v1161_v0  ;;  %6395 = vmatmul.msk.f32.gmra.mxu1 %vm396_vm0, %v1161_v0  ;;  %v1542_v60 = vmax.f32 %v1339_v21, 0.0  ;;  %v1015_v21 = vsel %vm8388_vm15, %v8310_v55, %v1011_v63  ;;  %v688_v0 = vpop.xlane.xlu0 %687  ;;  %v1029_v61 = vmul.f32 0.5, %v1028_v6 }
 0x1d0   : > { %v8399_v27 = vadd.f32 1e-05, %v721_v8  ;;  %v8402_v35 = vpop.eup %6809  ;;  %v1101_v42 = vmul.f32 %v1015_v21, %v11385_v38  ;;  %v1164_v3 = vadd.f32 %v8298_v17, %v1132_v53  ;;  %v722_v29 = vmul.f32 %v688_v0, %v7315_v62 }
 0x1d1   : > { %6411 = vmatmul.msk.f32.gmra.mxu3 %vm1621_vm1, %v1543_v9  ;;  %1749 = vmatmul.f32.gmra.mxu2 %v1542_v60  ;;  %v1037_v12 = vmul.f32 %v8402_v35, %v8374_v54  ;;  %vm1043_vm10 = vweird.f32 %v8402_v35 }
 0x1d2   : > { %6811 = vrsqrt.f32 %v8399_v27  ;;  %v1133_v16 = vmul.f32 %v8281_v37, %v1101_v42  ;;  %vm1044_vm12 = vmor %vm1042_vm11, %vm1043_vm10  ;;  %vm1052_vm14 = vweird.f32 %v8399_v27 }
 0x1d4   : > { %v1341_v49 = vpop.f32.mrf.mxu0  ;;  %v1454_v15 = vpop.f32.mrf.mxu1  ;;  %v1165_v5 = vadd.f32 %v8298_v17, %v1133_v16 }
 0x1d5   : > { %v1342_v19 = vadd.f32 %v1341_v49, %v8144_v48  ;;  %v1455_v39 = vadd.f32 %v1454_v15, %v8146_v7  ;;  %v1030_v15 = vsub.f32 1.5, %v1029_v61 }
 0x1d7   : > { %6363 = vmatmul.msk.f32.gmra.mxu0 %vm396_vm0, %v1162_v31  ;;  %6396 = vmatmul.msk.f32.gmra.mxu1 %vm396_vm0, %v1162_v31  ;;  %v1545_v58 = vmax.f32 %v1455_v39, 0.0  ;;  %v1544_v13 = vmax.f32 %v1342_v19, 0.0  ;;  %v8426_v19 = vadd.f32 1e-05, %v722_v29  ;;  %v1038_v39 = vmul.f32 %v8402_v35, %v1037_v12  ;;  %v691_v31 = vpop.xlane.xlu2 %690 }
 0x1d8   : > { %v8430_v52 = vpop.eup %6811  ;;  %v723_v51 = vmul.f32 %v691_v31, %v7315_v62  ;;  %v7069_v31 = vmov 4.0  }
 0x1d9   : > { %1752 = vmatmul.f32.gmra.mxu2 %v1544_v13  ;;  %6412 = vmatmul.msk.f32.gmra.mxu3 %vm1621_vm1, %v1545_v58  ;;  %v1102_v58 = vmul.f32 %v1025_v46, %v11388_v44  ;;  %v1031_v13 = vmul.f32 %v8369_v50, %v1030_v15  ;;  %6813 = vrsqrt.f32 %v8426_v19  ;;  %v1039_v63 = vmul.f32 0.5, %v1038_v39  ;;  %v8497_v44 = vld [vmem:[%s7173_s25 + $0x50] sm:$0xff] }
 0x1da   : > { %v1047_v59 = vmul.f32 %v8430_v52, %v8399_v27  ;;  %vm1053_vm13 = vweird.f32 %v8430_v52  ;;  %vm1062_vm3 = vweird.f32 %v8426_v19 }
 0x1db   : > { %v1035_v62 = vsel %vm8442_vm9, %v8369_v50, %v1031_v13  ;;  %v1134_v8 = vmul.f32 %v8281_v37, %v1102_v58  ;;  %vm1054_vm15 = vmor %vm1052_vm14, %vm1053_vm13 }
 0x1dc   : > { %v1344_v34 = vpop.f32.mrf.mxu0  ;;  %v1457_v40 = vpop.f32.mrf.mxu1 }
 0x1dd   : > { %v1345_v11 = vadd.f32 %v1344_v34, %v8144_v48  ;;  %v1458_v41 = vadd.f32 %v1457_v40, %v8146_v7  ;;  %v1166_v33 = vadd.f32 %v8298_v17, %v1134_v8 }
 0x1df   : > { %v1547_v43 = vmax.f32 %v1458_v41, 0.0  ;;  %6364 = vmatmul.msk.f32.gmra.mxu0 %vm396_vm0, %v1163_v24  ;;  %6397 = vmatmul.msk.f32.gmra.mxu1 %vm396_vm0, %v1163_v24  ;;  %v1546_v10 = vmax.f32 %v1345_v11, 0.0  ;;  %v8453_v24 = vadd.f32 1e-05, %v723_v51  ;;  %v1040_v11 = vsub.f32 1.5, %v1039_v63  ;;  %v8458_v14 = vpop.eup %6813 }
 0x1e0   : > { %v1048_v41 = vmul.f32 %v8430_v52, %v1047_v59  ;;  %v1057_v38 = vmul.f32 %v8458_v14, %v8426_v19  ;;  %vm1063_vm4 = vweird.f32 %v8458_v14 }
 0x1e1   : > { %1755 = vmatmul.f32.gmra.mxu2 %v1546_v10  ;;  %6413 = vmatmul.msk.f32.gmra.mxu3 %vm1621_vm1, %v1547_v43  ;;  %v11391_v43 = vld [vmem:[#allocation8_spill] sm:$0xff]  ;;  %6815 = vrsqrt.f32 %v8453_v24  ;;  %vm8511_vm5 = vmor %vm1062_vm3, %vm1063_vm4  ;;  %vm1072_vm6 = vweird.f32 %v8453_v24 }
 0x1e2   : > { %v1103_v10 = vmul.f32 %v1035_v62, %v11391_v43  ;;  %v1049_v42 = vmul.f32 0.5, %v1048_v41  ;;  %v1058_v29 = vmul.f32 %v8458_v14, %v1057_v38  ;;  %6817 = vrcp.f32 %v7069_v31 }
 0x1e4   : > { %v1347_v47 = vpop.f32.mrf.mxu0  ;;  %v1460_v55 = vpop.f32.mrf.mxu1 }
 0x1e5   : > { %v1981_v9 = vpop.permute.xlu1 %1980  ;;  %v1348_v22 = vadd.f32 %v1347_v47, %v8144_v48  ;;  %v1461_v26 = vadd.f32 %v1460_v55, %v8146_v7  ;;  %v1135_v55 = vmul.f32 %v8281_v37, %v1103_v10 }
 0x1e6   : > { %v2079_v60 = vsel %vm2072_vm7, %v1981_v9, 0.0  ;;  %v1041_v9 = vmul.f32 %v8402_v35, %v1040_v11 }
 0x1e7   : > { %2080 = vadd.xlane.f32.xlu0 %v2079_v60  ;;  %v1549_v23 = vmax.f32 %v1461_v26, 0.0  ;;  %6365 = vmatmul.msk.f32.gmra.mxu0 %vm396_vm0, %v1164_v3  ;;  %v1548_v49 = vmax.f32 %v1348_v22, 0.0  ;;  %v8475_v60 = vld [vmem:[%s7173_s25 + $0x48] sm:$0xff]  ;;  %v1050_v22 = vsub.f32 1.5, %v1049_v42  ;;  %v8482_v26 = vpop.eup %6815  ;;  %v1167_v15 = vadd.f32 %v8298_v17, %v1135_v55  ;;  %v8543_v55 = vld [vmem:[%s7173_s25 + $0x60] sm:$0xff] }
 0x1e8   : > { %6398 = vmatmul.msk.f32.gmra.mxu1 %vm396_vm0, %v1164_v3  ;;  %v1045_v3 = vsel %vm1044_vm12, %v8402_v35, %v1041_v9  ;;  %v1059_v35 = vmul.f32 0.5, %v1058_v29  ;;  %v1067_v46 = vmul.f32 %v8482_v26, %v8453_v24  ;;  %vm1073_vm8 = vweird.f32 %v8482_v26 }
 0x1e9   : > { %1758 = vmatmul.f32.gmra.mxu2 %v1548_v49  ;;  %6414 = vmatmul.msk.f32.gmra.mxu3 %vm1621_vm1, %v1549_v23  ;;  %v1104_v12 = vmul.f32 %v1045_v3, %v7784_v36  ;;  %v1051_v16 = vmul.f32 %v8430_v52, %v1050_v22  ;;  %vm1074_vm9 = vmor %vm1072_vm6, %vm1073_vm8 }
 0x1ea   : > { %v1060_v58 = vsub.f32 1.5, %v1059_v35 }
 0x1eb   : > { %v1055_v13 = vsel %vm1054_vm15, %v8430_v52, %v1051_v16  ;;  %v6818_v52 = vpop.eup %6817 }
 0x1ec   : > { %v1350_v25 = vpop.f32.mrf.mxu0  ;;  %v1463_v18 = vpop.f32.mrf.mxu1  ;;  %v2170_v59 = vmul.f32 4.0, %v6818_v52  ;;  %vm2174_vm10 = vweird.f32 %v6818_v52 }
 0x1ed   : > { %v1985_v30 = vpop.permute.xlu1 %1984  ;;  %v1351_v2 = vadd.f32 %v1350_v25, %v8144_v48  ;;  %v1464_v4 = vadd.f32 %v1463_v18, %v8146_v7  ;;  %v1068_v25 = vmul.f32 %v8482_v26, %v1067_v46 }
 0x1ee   : > { %v2085_v57 = vsel %vm2072_vm7, %v1985_v30, 0.0  ;;  %v1136_v30 = vmul.f32 %v8281_v37, %v1104_v12  ;;  %v2171_v8 = vsub.f32 1.0, %v2170_v59 }
 0x1ef   : > { %v1551_v34 = vmax.f32 %v1464_v4, 0.0  ;;  %6366 = vmatmul.msk.f32.gmra.mxu0 %vm396_vm0, %v1165_v5  ;;  %v1550_v40 = vmax.f32 %v1351_v2, 0.0  ;;  %v1061_v4 = vmul.f32 %v8458_v14, %v1060_v58  ;;  %v1069_v56 = vmul.f32 0.5, %v1068_v25  ;;  %v6960_v58 = vld [vmem:[%s7173_s25] sm:$0xff] }
 0x1f0   : > { %2086 = vadd.xlane.f32.xlu1 %v2085_v57  ;;  %6399 = vmatmul.msk.f32.gmra.mxu1 %vm396_vm0, %v1165_v5  ;;  %v1105_v5 = vmul.f32 %v1055_v13, %v7811_v20  ;;  %v1168_v2 = vadd.f32 %v8298_v17, %v1136_v30 }
 0x1f1   : > { %1761 = vmatmul.f32.gmra.mxu2 %v1550_v40  ;;  %6415 = vmatmul.msk.f32.gmra.mxu3 %vm1621_vm1, %v1551_v34  ;;  %v1065_v40 = vsel %vm8511_vm5, %v8458_v14, %v1061_v4  ;;  %v1070_v62 = vsub.f32 1.5, %v1069_v56  ;;  %v8529_v14 = vld [vmem:[%s7173_s25 + $0x58] sm:$0xff] }
 0x1f2   : > { %v1137_v34 = vmul.f32 %v8281_v37, %v1105_v5 }
 0x1f4   : > { %v1353_v6 = vpop.f32.mrf.mxu0  ;;  %v1466_v53 = vpop.f32.mrf.mxu1 }
 0x1f5   : > { %v1987_v1 = vpop.permute.xlu1 %1986  ;;  %v1354_v50 = vadd.f32 %v1353_v6, %v8144_v48  ;;  %v1467_v0 = vadd.f32 %v1466_v53, %v8146_v7  ;;  %v1169_v6 = vadd.f32 %v8298_v17, %v1137_v34  ;;  %v1071_v53 = vmul.f32 %v8482_v26, %v1070_v62  ;;  %v8587_v62 = vld [vmem:[%s11301_s1 + $0x5] ss:$0 sm:$0xff] }
 0x1f6   : > { %v2088_v21 = vsel %vm2072_vm7, %v1987_v1, 0.0  ;;  %v1106_v1 = vmul.f32 %v1065_v40, %v7775_v32 }
 0x1f7   : > { %2089 = vadd.xlane.f32.xlu2 %v2088_v21  ;;  %v1553_v61 = vmax.f32 %v1467_v0, 0.0  ;;  %6367 = vmatmul.msk.f32.gmra.mxu0 %vm396_vm0, %v1166_v33  ;;  %v1552_v47 = vmax.f32 %v1354_v50, 0.0  ;;  %v2172_v21 = vmul.f32 %v6818_v52, %v2171_v8  ;;  %v1075_v0 = vsel %vm1074_vm9, %v8482_v26, %v1071_v53 }
 0x1f8   : > { %6400 = vmatmul.msk.f32.gmra.mxu1 %vm396_vm0, %v1166_v33  ;;  %v1138_v50 = vmul.f32 %v8281_v37, %v1106_v1  ;;  %v1107_v42 = vmul.f32 %v1075_v0, %v7845_v45  ;;  %v2078_v45 = vpop.xlane.xlu2 %2077 }
 0x1f9   : > { %1764 = vmatmul.f32.gmra.mxu2 %v1552_v47  ;;  %6416 = vmatmul.msk.f32.gmra.mxu3 %vm1621_vm1, %v1553_v61  ;;  %v2173_v33 = vadd.f32 %v6818_v52, %v2172_v21 }
 0x1fa   : > { %v1170_v3 = vadd.f32 %v8298_v17, %v1138_v50 }
 0x1fb   : > { %1994 = vrot.lane.b32.xlu0 %v8475_v60, %s7068_s17  ;;  %v8550_v26 = vsel %vm2174_vm10, %v6818_v52, %v2173_v33 }
 0x1fc   : > { %v1356_v28 = vpop.f32.mrf.mxu0  ;;  %v1469_v54 = vpop.f32.mrf.mxu1 }
 0x1fd   : > { %v1357_v23 = vadd.f32 %v1356_v28, %v8144_v48  ;;  %v1470_v49 = vadd.f32 %v1469_v54, %v8146_v7  ;;  %v2177_v28 = vmul.f32 %v8550_v26, %v2078_v45  ;;  %v1139_v54 = vmul.f32 %v8281_v37, %v1107_v42 }
 0x1ff   : > { %v1555_v39 = vmax.f32 %v1470_v49, 0.0  ;;  %6368 = vmatmul.msk.f32.gmra.mxu0 %vm396_vm0, %v1167_v15  ;;  %v1554_v36 = vmax.f32 %v1357_v23, 0.0  ;;  %v6959_v49 = vld [vmem:[%s7173_s25 + $0x8] sm:$0xff]  ;;  %v1171_v46 = vadd.f32 %v8298_v17, %v1139_v54 }
 0x200   : > { %6401 = vmatmul.msk.f32.gmra.mxu1 %vm396_vm0, %v1167_v15  ;;  %v8556_v15 = vsub.f32 %v6959_v49, %v2177_v28 }
 0x201   : > { %1767 = vmatmul.f32.gmra.mxu2 %v1554_v36  ;;  %6417 = vmatmul.msk.f32.gmra.mxu3 %vm1621_vm1, %v1555_v39 }
 0x202   : > { %v2241_v30 = vmul.f32 %v8556_v15, %v8556_v15 }
 0x203   : > { %1996 = vrot.lane.b32.xlu0 %v8497_v44, %s7068_s17 }
 0x204   : > { %v1359_v27 = vpop.f32.mrf.mxu0  ;;  %v1472_v18 = vpop.f32.mrf.mxu1 }
 0x205   : > { %v1360_v57 = vadd.f32 %v1359_v27, %v8144_v48  ;;  %v1473_v51 = vadd.f32 %v1472_v18, %v8146_v7 }
 0x207   : > { %v1557_v19 = vmax.f32 %v1473_v51, 0.0  ;;  %6369 = vmatmul.msk.f32.gmra.mxu0 %vm396_vm0, %v1168_v2  ;;  %v1556_v20 = vmax.f32 %v1360_v57, 0.0 }
 0x208   : > { %6402 = vmatmul.msk.f32.gmra.mxu1 %vm396_vm0, %v1168_v2 }
 0x209   : > { %1770 = vmatmul.f32.gmra.mxu2 %v1556_v20  ;;  %6418 = vmatmul.msk.f32.gmra.mxu3 %vm1621_vm1, %v1557_v19 }
 0x20a   : > { %2306 = vrot.lane.b32.xlu1 %v2241_v30, %s7068_s17 }
 0x20c   : > { %v1362_v11 = vpop.f32.mrf.mxu0  ;;  %v1475_v41 = vpop.f32.mrf.mxu1 }
 0x20d   : > { %v1363_v43 = vadd.f32 %v1362_v11, %v8144_v48  ;;  %v1476_v10 = vadd.f32 %v1475_v41, %v8146_v7 }
 0x20f   : > { %1998 = vrot.lane.b32.xlu2 %v8529_v14, %s7068_s17  ;;  %v1559_v24 = vmax.f32 %v1476_v10, 0.0  ;;  %6370 = vmatmul.msk.f32.gmra.mxu0 %vm396_vm0, %v1169_v6  ;;  %v1558_v32 = vmax.f32 %v1363_v43, 0.0 }
 0x210   : > { %6403 = vmatmul.msk.f32.gmra.mxu1 %vm396_vm0, %v1169_v6 }
 0x211   : > { %1773 = vmatmul.f32.gmra.mxu2 %v1558_v32  ;;  %6419 = vmatmul.msk.f32.gmra.mxu3 %vm1621_vm1, %v1559_v24  ;;  %v1991_v24 = vpop.permute.xlu2 %1990 }
 0x214   : > { %v1365_v9 = vpop.f32.mrf.mxu0  ;;  %v1478_v38 = vpop.f32.mrf.mxu1 }
 0x215   : > { %v1366_v61 = vadd.f32 %v1365_v9, %v8144_v48  ;;  %v1479_v47 = vadd.f32 %v1478_v38, %v8146_v7  ;;  %v2094_v38 = vsel %vm2072_vm7, %v1991_v24, 0.0 }
 0x217   : > { %2000 = vrot.lane.b32.xlu2 %v8543_v55, %s7068_s17  ;;  %v1561_v29 = vmax.f32 %v1479_v47, 0.0  ;;  %6371 = vmatmul.msk.f32.gmra.mxu0 %vm396_vm0, %v1170_v3  ;;  %v1560_v22 = vmax.f32 %v1366_v61, 0.0 }
 0x218   : > { %6404 = vmatmul.msk.f32.gmra.mxu1 %vm396_vm0, %v1170_v3 }
 0x219   : > { %1776 = vmatmul.f32.gmra.mxu2 %v1560_v22  ;;  %6420 = vmatmul.msk.f32.gmra.mxu3 %vm1621_vm1, %v1561_v29 }
 0x21c   : > { %v1368_v12 = vpop.f32.mrf.mxu0  ;;  %v1481_v23 = vpop.f32.mrf.mxu1 }
 0x21d   : > { %v1369_v35 = vadd.f32 %v1368_v12, %v8144_v48  ;;  %v1482_v16 = vadd.f32 %v1481_v23, %v8146_v7 }
 0x21f   : > { %v1563_v36 = vmax.f32 %v1482_v16, 0.0  ;;  %6372 = vmatmul.msk.f32.gmra.mxu0 %vm396_vm0, %v1171_v46  ;;  %v1562_v31 = vmax.f32 %v1369_v35, 0.0 }
 0x220   : > { %v2075_v39 = vpop.xlane.xlu1 %2074  ;;  %6405 = vmatmul.msk.f32.gmra.mxu1 %vm396_vm0, %v1171_v46  ;;  %v1989_v46 = vpop.permute.xlu0 %1988 }
 0x221   : > { %v2176_v37 = vmul.f32 %v8550_v26, %v2075_v39  ;;  %1779 = vmatmul.f32.gmra.mxu2 %v1562_v31  ;;  %6421 = vmatmul.msk.f32.gmra.mxu3 %vm1621_vm1, %v1563_v36 }
 0x223   : > { %v8567_v13 = vsub.f32 %v6960_v58, %v2176_v37 }
 0x224   : > { %v1371_v25 = vpop.f32.mrf.mxu0  ;;  %v1484_v27 = vpop.f32.mrf.mxu1 }
 0x225   : > { %v2240_v17 = vmul.f32 %v8567_v13, %v8567_v13  ;;  %v1372_v18 = vadd.f32 %v1371_v25, %v8144_v48  ;;  %v1485_v5 = vadd.f32 %v1484_v27, %v8146_v7  ;;  %v2091_v25 = vsel %vm2072_vm7, %v1989_v46, 0.0 }
 0x227   : > { %2304 = vrot.lane.b32.xlu0 %v2240_v17, %s7068_s17  ;;  %v1565_v57 = vmax.f32 %v1485_v5, 0.0  ;;  %v1564_v51 = vmax.f32 %v1372_v18, 0.0 }
 0x229   : > { %1782 = vmatmul.f32.gmra.mxu2 %v1564_v51  ;;  %6422 = vmatmul.msk.f32.gmra.mxu3 %vm1621_vm1, %v1565_v57 }
 0x22c   : > { %v8577_v2 = vpop.f32.mrf.mxu2  ;;  %v8579_v52 = vpop.f32.mrf.mxu3 }
 0x22d   : > { %v1374_v4 = vpop.f32.mrf.mxu0  ;;  %v1487_v56 = vpop.f32.mrf.mxu1 }
 0x22e   : > { %v1375_v63 = vadd.f32 %v1374_v4, %v8144_v48  ;;  %v1488_v19 = vadd.f32 %v1487_v56, %v8146_v7 }
 0x230   : > { %v1567_v20 = vmax.f32 %v1488_v19, 0.0  ;;  %v1566_v59 = vmax.f32 %v1375_v63, 0.0 }
 0x232   : > { %1785 = vmatmul.f32.gmra.mxu2 %v1566_v59  ;;  %6423 = vmatmul.msk.f32.gmra.mxu3 %vm1621_vm1, %v1567_v20 }
 0x234   : > { %v1738_v41 = vpop.f32.mrf.mxu2  ;;  %v1851_v1 = vpop.f32.mrf.mxu3 }
 0x235   : > { %v1377_v34 = vpop.f32.mrf.mxu0  ;;  %v1490_v40 = vpop.f32.mrf.mxu1  ;;  %v1739_v43 = vadd.f32 %v1738_v41, %v8587_v62 }
 0x236   : > { %v1378_v8 = vadd.f32 %v1377_v34, %v8144_v48  ;;  %v1491_v11 = vadd.f32 %v1490_v40, %v8146_v7 }
 0x237   : > { %v8592_v53 = vadd.f32 %v1851_v1, %v1739_v43  ;;  %v6961_v43 = vld [vmem:[%s7173_s25 + $0x10] sm:$0xff] }
 0x238   : > { %v1569_v10 = vmax.f32 %v1491_v11, 0.0  ;;  %v1568_v6 = vmax.f32 %v1378_v8, 0.0  ;;  %v1993_v57 = vpop.permute.xlu1 %1992 }
 0x239   : > { %v2097_v56 = vsel %vm2072_vm7, %v1993_v57, 0.0  ;;  %v6965_v57 = vld [vmem:[%s7173_s25 + $0x28] sm:$0xff] }
 0x23a   : > { %1788 = vmatmul.f32.gmra.mxu2 %v1568_v6  ;;  %6424 = vmatmul.msk.f32.gmra.mxu3 %vm1621_vm1, %v1569_v10 }
 0x23c   : > { %v1741_v33 = vpop.f32.mrf.mxu2  ;;  %v1854_v9 = vpop.f32.mrf.mxu3 }
 0x23d   : > { %v1380_v32 = vpop.f32.mrf.mxu0  ;;  %v1493_v21 = vpop.f32.mrf.mxu1  ;;  %v1742_v42 = vadd.f32 %v1741_v33, %v8587_v62 }
 0x23e   : > { %v1381_v50 = vadd.f32 %v1380_v32, %v8144_v48  ;;  %v1494_v0 = vadd.f32 %v1493_v21, %v8146_v7 }
 0x23f   : > { %v8599_v3 = vadd.f32 %v1854_v9, %v1742_v42 }
 0x240   : > { %2095 = vadd.xlane.f32.xlu2 %v2094_v38  ;;  %v1571_v61 = vmax.f32 %v1494_v0, 0.0  ;;  %v1570_v47 = vmax.f32 %v1381_v50, 0.0  ;;  %v2084_v38 = vpop.xlane.xlu2 %2083 }
 0x242   : > { %1791 = vmatmul.f32.gmra.mxu2 %v1570_v47  ;;  %6425 = vmatmul.msk.f32.gmra.mxu3 %vm1621_vm1, %v1571_v61 }
 0x244   : > { %v1744_v54 = vpop.f32.mrf.mxu2  ;;  %v1857_v12 = vpop.f32.mrf.mxu3 }
 0x245   : > { %v1383_v29 = vpop.f32.mrf.mxu0  ;;  %v1496_v22 = vpop.f32.mrf.mxu1  ;;  %v1745_v23 = vadd.f32 %v1744_v54, %v8587_v62 }
 0x246   : > { %v1384_v45 = vadd.f32 %v1383_v29, %v8144_v48  ;;  %v1497_v28 = vadd.f32 %v1496_v22, %v8146_v7 }
 0x247   : > { %v8605_v16 = vadd.f32 %v1857_v12, %v1745_v23  ;;  %v2179_v23 = vmul.f32 %v8550_v26, %v2084_v38 }
 0x248   : > { %v1573_v49 = vmax.f32 %v1497_v28, 0.0  ;;  %v1572_v35 = vmax.f32 %v1384_v45, 0.0  ;;  %v6962_v45 = vld [vmem:[%s7173_s25 + $0x20] sm:$0xff] }
 0x24a   : > { %1794 = vmatmul.f32.gmra.mxu2 %v1572_v35  ;;  %6426 = vmatmul.msk.f32.gmra.mxu3 %vm1621_vm1, %v1573_v49 }
 0x24c   : > { %v1747_v30 = vpop.f32.mrf.mxu2  ;;  %v1860_v58 = vpop.f32.mrf.mxu3 }
 0x24d   : > { %v1386_v39 = vpop.f32.mrf.mxu0  ;;  %v1499_v36 = vpop.f32.mrf.mxu1  ;;  %v1748_v17 = vadd.f32 %v1747_v30, %v8587_v62 }
 0x24e   : > { %v1387_v37 = vadd.f32 %v1386_v39, %v8144_v48  ;;  %v1500_v31 = vadd.f32 %v1499_v36, %v8146_v7 }
 0x24f   : > { %v8612_v5 = vadd.f32 %v1860_v58, %v1748_v17  ;;  %v8646_v58 = vld [vmem:[%s7173_s25 + $0x68] sm:$0xff] }
 0x250   : > { %v1575_v27 = vmax.f32 %v1500_v31, 0.0  ;;  %v1574_v18 = vmax.f32 %v1387_v37, 0.0 }
 0x251   : > { %2092 = vadd.xlane.f32.xlu0 %v2091_v25 }
 0x252   : > { %1797 = vmatmul.f32.gmra.mxu2 %v1574_v18  ;;  %6427 = vmatmul.msk.f32.gmra.mxu3 %vm1621_vm1, %v1575_v27  ;;  %v6964_v27 = vld [vmem:[%s7173_s25 + $0x18] sm:$0xff] }
 0x253   : > { %v8654_v18 = vsub.f32 %v6964_v27, %v2179_v23 }
 0x254   : > { %v1750_v20 = vpop.f32.mrf.mxu2  ;;  %v1863_v59 = vpop.f32.mrf.mxu3 }
 0x255   : > { %v1389_v51 = vpop.f32.mrf.mxu0  ;;  %v1502_v4 = vpop.f32.mrf.mxu1  ;;  %v1751_v34 = vadd.f32 %v1750_v20, %v8587_v62 }
 0x256   : > { %v1390_v63 = vadd.f32 %v1389_v51, %v8144_v48  ;;  %v1503_v19 = vadd.f32 %v1502_v4, %v8146_v7  ;;  %v8662_v4 = vld [vmem:[%s7173_s25 + $0x70] sm:$0xff] }
 0x257   : > { %v8619_v11 = vadd.f32 %v1863_v59, %v1751_v34  ;;  %v2243_v59 = vmul.f32 %v8654_v18, %v8654_v18 }
 0x258   : > { %v1577_v40 = vmax.f32 %v1503_v19, 0.0  ;;  %v1576_v8 = vmax.f32 %v1390_v63, 0.0 }
 0x259   : > { %2098 = vadd.xlane.f32.xlu0 %v2097_v56 }
 0x25a   : > { %v2081_v41 = vpop.xlane.xlu0 %2080  ;;  %1800 = vmatmul.f32.gmra.mxu2 %v1576_v8  ;;  %6428 = vmatmul.msk.f32.gmra.mxu3 %vm1621_vm1, %v1577_v40 }
 0x25b   : > { %v2178_v1 = vmul.f32 %v8550_v26, %v2081_v41  ;;  %v8676_v41 = vld [vmem:[%s7173_s25 + $0x78] sm:$0xff] }
 0x25c   : > { %v1753_v50 = vpop.f32.mrf.mxu2  ;;  %v1866_v0 = vpop.f32.mrf.mxu3 }
 0x25d   : > { %v8624_v10 = vsub.f32 %v6961_v43, %v2178_v1  ;;  %v1392_v6 = vpop.f32.mrf.mxu0  ;;  %v1505_v24 = vpop.f32.mrf.mxu1  ;;  %v1754_v9 = vadd.f32 %v1753_v50, %v8587_v62  ;;  %v8683_v50 = vld [vmem:[%s7173_s25 + $0x80] sm:$0xff] }
 0x25e   : > { %v1393_v32 = vadd.f32 %v1392_v6, %v8144_v48  ;;  %v1506_v21 = vadd.f32 %v1505_v24, %v8146_v7 }
 0x25f   : > { %v2242_v33 = vmul.f32 %v8624_v10, %v8624_v10  ;;  %v8632_v47 = vadd.f32 %v1866_v0, %v1754_v9 }
 0x260   : > { %v1579_v42 = vmax.f32 %v1506_v21, 0.0  ;;  %v1578_v61 = vmax.f32 %v1393_v32, 0.0 }
 0x261   : > { %2308 = vrot.lane.b32.xlu1 %v2242_v33, %s7068_s17 }
 0x262   : > { %1803 = vmatmul.f32.gmra.mxu2 %v1578_v61  ;;  %6429 = vmatmul.msk.f32.gmra.mxu3 %vm1621_vm1, %v1579_v42 }
 0x263   : > { %v2087_v29 = vpop.xlane.xlu1 %2086 }
 0x264   : > { %v2180_v22 = vmul.f32 %v8550_v26, %v2087_v29  ;;  %v1756_v46 = vpop.f32.mrf.mxu2  ;;  %v1869_v30 = vpop.f32.mrf.mxu3 }
 0x265   : > { %v1395_v54 = vpop.f32.mrf.mxu0  ;;  %v1508_v12 = vpop.f32.mrf.mxu1  ;;  %v1757_v39 = vadd.f32 %v1756_v46, %v8587_v62 }
 0x266   : > { %v8637_v28 = vsub.f32 %v6962_v45, %v2180_v22  ;;  %v1396_v49 = vadd.f32 %v1395_v54, %v8144_v48  ;;  %v1509_v35 = vadd.f32 %v1508_v12, %v8146_v7 }
 0x267   : > { %v8650_v17 = vadd.f32 %v1869_v30, %v1757_v39 }
 0x268   : > { %v2244_v36 = vmul.f32 %v8637_v28, %v8637_v28  ;;  %v1580_v37 = vmax.f32 %v1396_v49, 0.0  ;;  %v1581_v31 = vmax.f32 %v1509_v35, 0.0 }
 0x269   : > { %2002 = vrot.lane.b32.xlu1 %v8646_v58, %s7068_s17 }
 0x26a   : > { %v2090_v25 = vpop.xlane.xlu2 %2089  ;;  %2312 = vrot.lane.b32.xlu2 %v2244_v36, %s7068_s17  ;;  %1806 = vmatmul.f32.gmra.mxu2 %v1580_v37 }
 0x26b   : > { %v2181_v62 = vmul.f32 %v8550_v26, %v2090_v25  ;;  %6430 = vmatmul.msk.f32.gmra.mxu3 %vm1621_vm1, %v1581_v31 }
 0x26d   : > { %v8659_v51 = vsub.f32 %v6965_v57, %v2181_v62  ;;  %2004 = vrot.lane.b32.xlu0 %v8662_v4, %s7068_s17  ;;  %v1398_v56 = vpop.f32.mrf.mxu0  ;;  %v1511_v63 = vpop.f32.mrf.mxu1 }
 0x26e   : > { %v1399_v19 = vadd.f32 %v1398_v56, %v8144_v48  ;;  %v1512_v20 = vadd.f32 %v1511_v63, %v8146_v7  ;;  %v1995_v49 = vpop.permute.xlu0 %1994 }
 0x26f   : > { %v2245_v34 = vmul.f32 %v8659_v51, %v8659_v51 }
 0x270   : > { %v1582_v40 = vmax.f32 %v1399_v19, 0.0  ;;  %v1583_v8 = vmax.f32 %v1512_v20, 0.0  ;;  %v2100_v20 = vsel %vm2072_vm7, %v1995_v49, 0.0 }
 0x271   : > { %2310 = vrot.lane.b32.xlu1 %v2243_v59, %s7068_s17 }
 0x272   : > { %2314 = vrot.lane.b32.xlu2 %v2245_v34, %s7068_s17  ;;  %1809 = vmatmul.f32.gmra.mxu2 %v1582_v40  ;;  %v1999_v56 = vpop.permute.xlu2 %1998 }
 0x273   : > { %6431 = vmatmul.msk.f32.gmra.mxu3 %vm1621_vm1, %v1583_v8 }
 0x275   : > { %2006 = vrot.lane.b32.xlu0 %v8676_v41, %s7068_s17  ;;  %v1401_v1 = vpop.f32.mrf.mxu0  ;;  %v1514_v43 = vpop.f32.mrf.mxu1 }
 0x276   : > { %v1402_v6 = vadd.f32 %v1401_v1, %v8144_v48  ;;  %v1515_v24 = vadd.f32 %v1514_v43, %v8146_v7  ;;  %v1997_v30 = vpop.permute.xlu0 %1996 }
 0x277   : > { %v2103_v40 = vsel %vm2072_vm7, %v1997_v30, 0.0 }
 0x278   : > { %v1584_v32 = vmax.f32 %v1402_v6, 0.0  ;;  %v1585_v21 = vmax.f32 %v1515_v24, 0.0 }
 0x27a   : > { %2008 = vrot.lane.b32.xlu2 %v8683_v50, %s7068_s17  ;;  %1812 = vmatmul.f32.gmra.mxu2 %v1584_v32 }
 0x27b   : > { %6432 = vmatmul.msk.f32.gmra.mxu3 %vm1621_vm1, %v1585_v21  ;;  %v2001_v21 = vpop.permute.xlu2 %2000 }
 0x27d   : > { %v1404_v0 = vpop.f32.mrf.mxu0  ;;  %v1517_v33 = vpop.f32.mrf.mxu1 }
 0x27e   : > { %v1405_v9 = vadd.f32 %v1404_v0, %v8144_v48  ;;  %v1518_v38 = vadd.f32 %v1517_v33, %v8146_v7  ;;  %v2109_v0 = vsel %vm2072_vm7, %v2001_v21, 0.0 }
 0x280   : > { %v1586_v42 = vmax.f32 %v1405_v9, 0.0  ;;  %v1587_v61 = vmax.f32 %v1518_v38, 0.0  ;;  %v8710_v9 = vld [vmem:[%s7173_s25 + $0x90] sm:$0xff] }
 0x282   : > { %1815 = vmatmul.f32.gmra.mxu2 %v1586_v42 }
 0x283   : > { %6433 = vmatmul.msk.f32.gmra.mxu3 %vm1621_vm1, %v1587_v61 }
 0x285   : > { %v1407_v29 = vpop.f32.mrf.mxu0  ;;  %v1520_v22 = vpop.f32.mrf.mxu1 }
 0x286   : > { %v1408_v45 = vadd.f32 %v1407_v29, %v8144_v48  ;;  %v1521_v54 = vadd.f32 %v1520_v22, %v8146_v7  ;;  %v6970_v22 = vld [vmem:[%s7173_s25 + $0x38] sm:$0xff] }
 0x288   : > { %v1588_v12 = vmax.f32 %v1408_v45, 0.0  ;;  %v1589_v23 = vmax.f32 %v1521_v54, 0.0  ;;  %v6971_v54 = vld [vmem:[%s7173_s25 + $0x30] sm:$0xff] }
 0x28a   : > { %1818 = vmatmul.f32.gmra.mxu2 %v1588_v12 }
 0x28b   : > { %6434 = vmatmul.msk.f32.gmra.mxu3 %vm1621_vm1, %v1589_v23 }
 0x28d   : > { %v1410_v35 = vpop.f32.mrf.mxu0  ;;  %v1523_v46 = vpop.f32.mrf.mxu1 }
 0x28e   : > { %v1411_v39 = vadd.f32 %v1410_v35, %v8144_v48  ;;  %v1524_v36 = vadd.f32 %v1523_v46, %v8146_v7 }
 0x290   : > { %v1590_v37 = vmax.f32 %v1411_v39, 0.0  ;;  %v1591_v31 = vmax.f32 %v1524_v36, 0.0  ;;  %v6972_v39 = vld [vmem:[%s7173_s25 + $0x40] sm:$0xff] }
 0x292   : > { %1821 = vmatmul.f32.gmra.mxu2 %v1590_v37 }
 0x293   : > { %6435 = vmatmul.msk.f32.gmra.mxu3 %vm1621_vm1, %v1591_v31  ;;  %v8735_v31 = vld [vmem:[%s7173_s25 + $0x88] sm:$0xff] }
 0x295   : > { %v1413_v25 = vpop.f32.mrf.mxu0  ;;  %v1526_v27 = vpop.f32.mrf.mxu1 }
 0x296   : > { %v1414_v62 = vadd.f32 %v1413_v25, %v8144_v48  ;;  %v1527_v57 = vadd.f32 %v1526_v27, %v8146_v7 }
 0x298   : > { %v1592_v63 = vmax.f32 %v1414_v62, 0.0  ;;  %v1593_v19 = vmax.f32 %v1527_v57, 0.0 }
 0x299   : > { %v2305_v8 = vpop.permute.xlu0 %2304 }
 0x29a   : > { %1824 = vmatmul.f32.gmra.mxu2 %v1592_v63  ;;  %v2400_v32 = vsel %vm2072_vm7, %v2305_v8, 0.0 }
 0x29b   : > { %2101 = vadd.xlane.f32.xlu1 %v2100_v20  ;;  %6436 = vmatmul.msk.f32.gmra.mxu3 %vm1621_vm1, %v1593_v19  ;;  %v369_v19 = vld [vmem:[%s11301_s1 + $0x3] ss:$0 sm:$0xff] }
 0x29d   : > { %v1416_v59 = vpop.f32.mrf.mxu0  ;;  %v1529_v34 = vpop.f32.mrf.mxu1 }
 0x29e   : > { %v1417_v1 = vadd.f32 %v1416_v59, %v8144_v48  ;;  %v1530_v43 = vadd.f32 %v1529_v34, %v8146_v7  ;;  %v2106_v48 = vsel %vm2072_vm7, %v1999_v56, 0.0  ;;  %v2307_v7 = vpop.permute.xlu1 %2306  ;;  %v8748_v59 = vld [vmem:[%s7173_s25 + $0x98] sm:$0xff] }
 0x29f   : > { %2104 = vadd.xlane.f32.xlu0 %v2103_v40  ;;  %v2403_v33 = vsel %vm2072_vm7, %v2307_v7, 0.0  ;;  %v368_v40 = vld [vmem:[%s11301_s1 + $0x2] ss:$0 sm:$0xff] }
 0x2a0   : > { %v1594_v6 = vmax.f32 %v1417_v1, 0.0  ;;  %v1595_v24 = vmax.f32 %v1530_v43, 0.0  ;;  %v8762_v1 = vld [vmem:[%s7173_s25 + $0xa0] sm:$0xff] }
 0x2a2   : > { %1827 = vmatmul.f32.gmra.mxu2 %v1594_v6 }
 0x2a3   : > { %2401 = vadd.xlane.f32.xlu1 %v2400_v32  ;;  %6437 = vmatmul.msk.f32.gmra.mxu3 %vm1621_vm1, %v1595_v24 }
 0x2a7   : > { %2110 = vadd.xlane.f32.xlu0 %v2109_v0 }
 0x2ab   : > { %2107 = vadd.xlane.f32.xlu1 %v2106_v48 }
 0x2b3   : > { %2404 = vadd.xlane.f32.xlu1 %v2403_v33  ;;  %v2096_v38 = vpop.xlane.xlu2 %2095 }
 0x2b4   : > { %v2183_v42 = vmul.f32 %v8550_v26, %v2096_v38 }
 0x2b6   : > { %v8717_v45 = vsub.f32 %v6970_v22, %v2183_v42  ;;  %v8774_v42 = vld [vmem:[%s7173_s25 + $0xa8] sm:$0xff] }
 0x2b8   : > { %v2247_v49 = vmul.f32 %v8717_v45, %v8717_v45 }
 0x2bb   : > { %2012 = vrot.lane.b32.xlu0 %v8710_v9, %s7068_s17 }
 0x2c4   : > { %v2093_v61 = vpop.xlane.xlu0 %2092  ;;  %v2313_v43 = vpop.permute.xlu2 %2312 }
 0x2c5   : > { %v2182_v29 = vmul.f32 %v8550_v26, %v2093_v61  ;;  %v2412_v6 = vsel %vm2072_vm7, %v2313_v43, 0.0 }
 0x2c7   : > { %v8720_v12 = vsub.f32 %v6971_v54, %v2182_v29 }
 0x2c9   : > { %v2246_v23 = vmul.f32 %v8720_v12, %v8720_v12 }
 0x2cb   : > { %2316 = vrot.lane.b32.xlu2 %v2246_v23, %s7068_s17 }
 0x2cc   : > { %2318 = vrot.lane.b32.xlu1 %v2247_v49, %s7068_s17  ;;  %v2099_v35 = vpop.xlane.xlu0 %2098  ;;  %v2315_v21 = vpop.permute.xlu2 %2314 }
 0x2cd   : > { %v2184_v46 = vmul.f32 %v8550_v26, %v2099_v35 }
 0x2cf   : > { %v8730_v36 = vsub.f32 %v6972_v39, %v2184_v46 }
 0x2d1   : > { %v2248_v37 = vmul.f32 %v8730_v36, %v8730_v36 }
 0x2d3   : > { %2010 = vrot.lane.b32.xlu2 %v8735_v31, %s7068_s17  ;;  %2320 = vrot.lane.b32.xlu0 %v2248_v37, %s7068_s17  ;;  %v2309_v30 = vpop.permute.xlu1 %2308 }
 0x2d4   : > { %v2406_v57 = vsel %vm2072_vm7, %v2309_v30, 0.0  ;;  %v2009_v33 = vpop.permute.xlu2 %2008 }
 0x2d5   : > { %v2121_v61 = vsel %vm2072_vm7, %v2009_v33, 0.0 }
 0x2db   : > { %v2003_v25 = vpop.permute.xlu1 %2002 }
 0x2dc   : > { %v2112_v27 = vsel %vm2072_vm7, %v2003_v25, 0.0  ;;  %v2415_v25 = vsel %vm2072_vm7, %v2315_v21, 0.0 }
 0x2e3   : > { %v2311_v62 = vpop.permute.xlu1 %2310 }
 0x2e4   : > { %v2409_v56 = vsel %vm2072_vm7, %v2311_v62, 0.0 }
 0x2f6   : > { %2113 = vadd.xlane.f32.xlu1 %v2112_v27 }
 0x2fc   : > { %2407 = vadd.xlane.f32.xlu2 %v2406_v57 }
 0x2fd   : > { %2410 = vadd.xlane.f32.xlu0 %v2409_v56 }
 0x30e   : > { %v2102_v63 = vpop.xlane.xlu1 %2101 }
 0x30f   : > { %v2185_v20 = vmul.f32 %v8550_v26, %v2102_v63  ;;  %2014 = vrot.lane.b32.xlu1 %v8748_v59, %s7068_s17 }
 0x311   : > { %v8753_v34 = vsub.f32 %v8475_v60, %v2185_v20  ;;  %2949 = vrot.lane.b32.xlu0 %v369_v19, %s7070_s14  ;;  %v2005_v60 = vpop.permute.xlu0 %2004 }
 0x312   : > { %v2115_v24 = vsel %vm2072_vm7, %v2005_v60, 0.0 }
 0x313   : > { %v2249_v8 = vmul.f32 %v8753_v34, %v8753_v34 }
 0x314   : > { %2913 = vrot.lane.b32.xlu2 %v368_v40, %s7070_s14  ;;  %s6268_s14 = scalar_lea.hbm %s11309_s9, %s6707_s27  ;;  %s7023_s27 = scalar_lea.hbm %s11309_s9, 8 }
 0x315   : > { %s6272_s21 = sshll.u32 %s6268_s14, 4  ;;  %s6273_s21 = int_to_ptr.hbm [resolvable:$true] %s6272_s21 }
 0x316   : > { %v2402_v29 = vpop.xlane.xlu1 %2401  ;;  %s7017_s23 = sshra.s32 %s6273_s21, 4  ;;  %s7018_s23 = int_to_ptr.hbm [resolvable:$true] %s7017_s23 }
 0x317   : > { %2322 = vrot.lane.b32.xlu1 %v2249_v8, %s7068_s17  ;;  %v2496_v27 = vmul.f32 %v2402_v29, %v8550_v26  ;;  %s7019_s13 = scalar_lea.hbm %s7018_s23, 4  ;;  %p7024_p0 = scmp.lt.s32.totalorder %s7018_s23, %s11309_s9 }
 0x318   : > { %p7020_p11 = scmp.ne.s32.totalorder %s7018_s23, %s7019_s13  ;;  %p7025_p1 = scmp.lt.s32.totalorder %s7023_s27, %s7019_s13 }
 0x319   : > { %v2007_v32 = vpop.permute.xlu0 %2006  ;;  %v2528_v62 = vadd.f32 1e-05, %v2496_v27 }
 0x31a   : > { %v2118_v48 = vsel %vm2072_vm7, %v2007_v32, 0.0  ;;  %p7021_p12 = pnand %p7020_p11, %p7159_p5  ;;  %p7026_p2 = por %p7025_p1, %p7024_p0 }
 0x31b   : > { %6819 = vrsqrt.f32 %v2528_v62  ;;  %vm2566_vm1 = vweird.f32 %v2528_v62 }
 0x31c   : > { %p7022_p13 = pneg %p7021_p12 }
 0x31e   : > { %v2108_v54 = vpop.xlane.xlu1 %2107  ;;  %p7027_p3 = pnand %p7026_p2, %p7022_p13 }
 0x31f   : > { %2016 = vrot.lane.b32.xlu1 %v8762_v1, %s7068_s17  ;;  %v2187_v23 = vmul.f32 %v8550_v26, %v2108_v54 }
 0x321   : > { %v2105_v0 = vpop.xlane.xlu0 %2104  ;;  %v6820_v19 = vpop.eup %6819 }
 0x322   : > { %v2186_v7 = vmul.f32 %v8550_v26, %v2105_v0  ;;  %v2561_v8 = vmul.f32 %v6820_v19, %v2528_v62  ;;  %v8798_v0 = vld [vmem:[%s7173_s25 + $0xb0] sm:$0xff]  ;;  %vm2567_vm0 = vweird.f32 %v6820_v19 }
 0x323   : > { %vm2568_vm11 = vmor %vm2566_vm1, %vm2567_vm0 }
 0x324   : > { %v8771_v38 = vsub.f32 %v8497_v44, %v2186_v7  ;;  %v8784_v44 = vsub.f32 %v8529_v14, %v2187_v23 }
 0x325   : > { %v2317_v35 = vpop.permute.xlu2 %2316 }
 0x326   : > { %v2250_v22 = vmul.f32 %v8771_v38, %v8771_v38  ;;  %v2251_v49 = vmul.f32 %v8784_v44, %v8784_v44  ;;  %v2405_v46 = vpop.xlane.xlu1 %2404  ;;  %v2418_v39 = vsel %vm2072_vm7, %v2317_v35, 0.0 }
 0x327   : > { %v2497_v35 = vmul.f32 %v2405_v46, %v8550_v26 }
 0x329   : > { %v2111_v37 = vpop.xlane.xlu0 %2110 }
 0x32a   : > { %v2188_v32 = vmul.f32 %v8550_v26, %v2111_v37  ;;  %v2529_v37 = vadd.f32 1e-05, %v2497_v35 }
 0x32c   : > { %v8803_v7 = vsub.f32 %v8543_v55, %v2188_v32  ;;  %v8835_v32 = vpop.f32.mrf.mxu3  ;;  %vm2576_vm3 = vweird.f32 %v2529_v37 }
 0x32d   : > { %v2011_v20 = vpop.permute.xlu2 %2010 }
 0x331   : > { %v2013_v57 = vpop.permute.xlu0 %2012 }
 0x332   : > { %v2127_v56 = vsel %vm2072_vm7, %v2013_v57, 0.0  ;;  %v8818_v57 = vld [vmem:[%s7173_s25 + $0xb8] sm:$0xff] }
 0x33b   : > { %2413 = vadd.xlane.f32.xlu0 %v2412_v6  ;;  %v2124_v6 = vsel %vm2072_vm7, %v2011_v20, 0.0 }
 0x33d   : > { %2116 = vadd.xlane.f32.xlu2 %v2115_v24  ;;  %v2562_v24 = vmul.f32 %v6820_v19, %v2561_v8 }
 0x33e   : > { %v2319_v30 = vpop.permute.xlu1 %2318 }
 0x33f   : > { %v2421_v14 = vsel %vm2072_vm7, %v2319_v30, 0.0 }
 0x345   : > { %v2321_v40 = vpop.permute.xlu0 %2320 }
 0x346   : > { %v2424_v60 = vsel %vm2072_vm7, %v2321_v40, 0.0 }
 0x349   : > { %2119 = vadd.xlane.f32.xlu1 %v2118_v48  ;;  %v2563_v48 = vmul.f32 0.5, %v2562_v24 }
 0x34b   : > { %v2564_v29 = vsub.f32 1.5, %v2563_v48 }
 0x34f   : > { %2018 = vrot.lane.b32.xlu0 %v8774_v42, %s7068_s17 }
 0x351   : > { %2122 = vadd.xlane.f32.xlu1 %v2121_v61 }
 0x355   : > { %2324 = vrot.lane.b32.xlu2 %v2250_v22, %s7068_s17  ;;  %v2252_v22 = vmul.f32 %v8803_v7, %v8803_v7 }
 0x369   : > { %v2114_v63 = vpop.xlane.xlu1 %2113 }
 0x36a   : > { %2326 = vrot.lane.b32.xlu1 %v2251_v49, %s7068_s17  ;;  %v2565_v49 = vmul.f32 %v6820_v19, %v2564_v29  ;;  %v2189_v30 = vmul.f32 %v8550_v26, %v2114_v63 }
 0x36c   : > { %v8824_v20 = vsub.f32 %v8646_v58, %v2189_v30 }
 0x36f   : > { %v2408_v21 = vpop.xlane.xlu2 %2407 }
 0x370   : > { %v2498_v61 = vmul.f32 %v2408_v21, %v8550_v26  ;;  %v8811_v55 = vpop.xlane.xlu0 %2410 }
 0x372   : > { %v2530_v54 = vadd.f32 1e-05, %v2498_v61  ;;  %v8839_v61 = vld [vmem:[%s7173_s25 + $0xc0] sm:$0xff] }
 0x374   : > { %6821 = vrsqrt.f32 %v2530_v54  ;;  %vm2586_vm13 = vweird.f32 %v2530_v54 }
 0x375   : > { %6823 = vrsqrt.f32 %v2529_v37 }
 0x379   : > { %2419 = vadd.xlane.f32.xlu0 %v2418_v39 }
 0x37a   : > { %v6822_v46 = vpop.eup %6821 }
 0x37b   : > { %v2581_v40 = vmul.f32 %v6822_v46, %v2530_v54  ;;  %vm2587_vm12 = vweird.f32 %v6822_v46 }
 0x37c   : > { %vm2588_vm14 = vmor %vm2586_vm13, %vm2587_vm12 }
 0x37e   : > { %2416 = vadd.xlane.f32.xlu2 %v2415_v25  ;;  %v2569_v25 = vsel %vm2568_vm11, %v6820_v19, %v2565_v49 }
 0x381   : > { %2422 = vadd.xlane.f32.xlu0 %v2421_v14  ;;  %v2015_v43 = vpop.permute.xlu1 %2014  ;;  %v8815_v14 = vpop.permute.xlu2 %2913 }
 0x382   : > { %v2130_v33 = vsel %vm2072_vm7, %v2015_v43, 0.0  ;;  %v2582_v43 = vmul.f32 %v6822_v46, %v2581_v40 }
 0x383   : > { %v8826_v62 = vpop.permute.xlu0 %2949 }
 0x384   : > { %v2583_v24 = vmul.f32 0.5, %v2582_v43 }
 0x389   : > { %2128 = vadd.xlane.f32.xlu0 %v2127_v56  ;;  %v2323_v23 = vpop.permute.xlu1 %2322  ;;  %v2880_v56 = vmul.f32 %v2569_v25, %v8567_v13  ;;  %v6824_v13 = vpop.eup %6823 }
 0x38a   : > { %v2427_v39 = vsel %vm2072_vm7, %v2323_v23, 0.0  ;;  %v2571_v58 = vmul.f32 %v6824_v13, %v2529_v37  ;;  %v8849_v25 = vpop.f32.mrf.mxu3  ;;  %vm2577_vm15 = vweird.f32 %v6824_v13 }
 0x38b   : > { %v2916_v19 = vmul.f32 %v8815_v14, %v2880_v56  ;;  %11394 = vst [vmem:[#allocation6_spill] sm:$0xff] %v8849_v25  ;;  %vm2578_vm4 = vmor %vm2576_vm3, %vm2577_vm15  ;;  %v8983_v25 = vld [vmem:[%s7173_s25 + $0xe8] sm:$0xff]  ;;  %vm3453_vm3 = vcmask 1041408  }
 0x38c   : > { %v2572_v48 = vmul.f32 %v6824_v13, %v2571_v58 }
 0x38d   : > { %v2952_v8 = vadd.f32 %v8826_v62, %v2916_v19 }
 0x391   : > { %2425 = vadd.xlane.f32.xlu0 %v2424_v60  ;;  %v2017_v27 = vpop.permute.xlu1 %2016  ;;  %v2253_v60 = vmul.f32 %v8824_v20, %v8824_v20 }
 0x392   : > { %v2133_v63 = vsel %vm2072_vm7, %v2017_v27, 0.0 }
 0x394   : > { %2125 = vadd.xlane.f32.xlu1 %v2124_v6 }
 0x396   : > { %2020 = vrot.lane.b32.xlu2 %v8798_v0, %s7068_s17 }
 0x399   : > { %2131 = vadd.xlane.f32.xlu0 %v2130_v33  ;;  %v2584_v33 = vsub.f32 1.5, %v2583_v24 }
 0x39b   : > { %v2585_v23 = vmul.f32 %v6822_v46, %v2584_v33 }
 0x39d   : > { %v2589_v27 = vsel %vm2588_vm14, %v6822_v46, %v2585_v23  ;;  %v8861_v46 = vld [vmem:[%s7173_s25 + $0xc8] sm:$0xff] }
 0x39e   : > { %2328 = vrot.lane.b32.xlu2 %v2252_v22, %s7068_s17  ;;  %v2573_v22 = vmul.f32 0.5, %v2572_v48 }
 0x3a1   : > { %2428 = vadd.xlane.f32.xlu0 %v2427_v39  ;;  %v2574_v39 = vsub.f32 1.5, %v2573_v22 }
 0x3a3   : > { %v2575_v56 = vmul.f32 %v6824_v13, %v2574_v39  ;;  %v2499_v39 = vmul.f32 %v8811_v55, %v8550_v26 }
 0x3a5   : > { %v2579_v40 = vsel %vm2578_vm4, %v6824_v13, %v2575_v56  ;;  %v2531_v56 = vadd.f32 1e-05, %v2499_v39 }
 0x3a6   : > { %2022 = vrot.lane.b32.xlu2 %v8818_v57, %s7068_s17 }
 0x3a7   : > { %vm2596_vm10 = vweird.f32 %v2531_v56 }
 0x3a9   : > { %2134 = vadd.xlane.f32.xlu0 %v2133_v63  ;;  %v2882_v63 = vmul.f32 %v2589_v27, %v8624_v10  ;;  %v8898_v27 = vld [vmem:[%s7173_s25 + $0xd8] sm:$0xff] }
 0x3ab   : > { %v2918_v19 = vmul.f32 %v8815_v14, %v2882_v63 }
 0x3ad   : > { %3016 = vrot.lane.b32.xlu1 %v2952_v8, %s7068_s17  ;;  %v2954_v37 = vadd.f32 %v8826_v62, %v2918_v19 }
 0x3ae   : > { %2330 = vrot.lane.b32.xlu2 %v2253_v60, %s7068_s17  ;;  %v2881_v60 = vmul.f32 %v2579_v40, %v8556_v15  ;;  %v2414_v33 = vpop.xlane.xlu0 %2413 }
 0x3af   : > { %v2500_v23 = vmul.f32 %v2414_v33, %v8550_v26 }
 0x3b0   : > { %v2117_v6 = vpop.xlane.xlu2 %2116  ;;  %v2917_v43 = vmul.f32 %v8815_v14, %v2881_v60 }
 0x3b1   : > { %v2190_v21 = vmul.f32 %v8550_v26, %v2117_v6 }
 0x3b2   : > { %v2953_v13 = vadd.f32 %v8826_v62, %v2917_v43 }
 0x3b3   : > { %v8844_v29 = vsub.f32 %v8662_v4, %v2190_v21  ;;  %v8883_v21 = vld [vmem:[%s7173_s25 + $0xd0] sm:$0xff] }
 0x3b5   : > { %v2254_v35 = vmul.f32 %v8844_v29, %v8844_v29 }
 0x3b6   : > { %2024 = vrot.lane.b32.xlu2 %v8839_v61, %s7068_s17 }
 0x3b8   : > { %v2325_v15 = vpop.permute.xlu2 %2324 }
 0x3b9   : > { %v2430_v48 = vsel %vm2072_vm7, %v2325_v15, 0.0 }
 0x3bc   : > { %v2120_v49 = vpop.xlane.xlu1 %2119 }
 0x3bd   : > { %v2191_v30 = vmul.f32 %v8550_v26, %v2120_v49 }
 0x3be   : > { %2332 = vrot.lane.b32.xlu2 %v2254_v35, %s7068_s17  ;;  %v2532_v35 = vadd.f32 1e-05, %v2500_v23 }
 0x3bf   : > { %v8853_v4 = vsub.f32 %v8676_v41, %v2191_v30  ;;  %v8865_v41 = vpop.f32.mrf.mxu3 }
 0x3c0   : > { %11395 = vst [vmem:[#allocation7_spill] sm:$0xff] %v8865_v41  ;;  %6825 = vrsqrt.f32 %v2532_v35  ;;  %vm2606_vm6 = vweird.f32 %v2532_v35 }
 0x3c1   : > { %v2255_v54 = vmul.f32 %v8853_v4, %v8853_v4  ;;  %v2019_v49 = vpop.permute.xlu0 %2018  ;;  %6827 = vrsqrt.f32 %v2531_v56 }
 0x3c3   : > { %2334 = vrot.lane.b32.xlu0 %v2255_v54, %s7068_s17 }
 0x3c4   : > { %v2123_v8 = vpop.xlane.xlu1 %2122 }
 0x3c5   : > { %v2192_v10 = vmul.f32 %v8550_v26, %v2123_v8 }
 0x3c6   : > { %2026 = vrot.lane.b32.xlu2 %v8861_v46, %s7068_s17  ;;  %v6826_v19 = vpop.eup %6825 }
 0x3c7   : > { %v8874_v58 = vsub.f32 %v8683_v50, %v2192_v10  ;;  %v8879_v24 = vpop.f32.mrf.mxu3  ;;  %v2601_v40 = vmul.f32 %v6826_v19, %v2532_v35  ;;  %v6828_v55 = vpop.eup %6827  ;;  %vm2607_vm5 = vweird.f32 %v6826_v19 }
 0x3c8   : > { %11396 = vst [vmem:[#allocation5_spill] sm:$0xff] %v8879_v24  ;;  %v2591_v15 = vmul.f32 %v6828_v55, %v2531_v56  ;;  %vm2608_vm8 = vmor %vm2606_vm6, %vm2607_vm5  ;;  %vm2597_vm9 = vweird.f32 %v6828_v55 }
 0x3c9   : > { %v2256_v6 = vmul.f32 %v8874_v58, %v8874_v58  ;;  %v2602_v43 = vmul.f32 %v6826_v19, %v2601_v40  ;;  %vm2598_vm0 = vmor %vm2596_vm10, %vm2597_vm9 }
 0x3ca   : > { %v2592_v23 = vmul.f32 %v6828_v55, %v2591_v15 }
 0x3cb   : > { %3020 = vrot.lane.b32.xlu0 %v2954_v37, %s7068_s17 }
 0x3ce   : > { %3018 = vrot.lane.b32.xlu2 %v2953_v13, %s7068_s17 }
 0x3cf   : > { %v8888_v50 = vpop.f32.mrf.mxu3 }
 0x3d0   : > { %11397 = vst [vmem:[#allocation8_spill] sm:$0xff] %v8888_v50  ;;  %v2593_v50 = vmul.f32 0.5, %v2592_v23 }
 0x3d3   : > { %2336 = vrot.lane.b32.xlu0 %v2256_v6, %s7068_s17  ;;  %v2136_v6 = vsel %vm2072_vm7, %v2019_v49, 0.0 }
 0x3d6   : > { %2028 = vrot.lane.b32.xlu2 %v8883_v21, %s7068_s17 }
 0x3d7   : > { %2431 = vadd.xlane.f32.xlu1 %v2430_v48  ;;  %v8890_v22 = vpop.f32.mrf.mxu3  ;;  %v2603_v48 = vmul.f32 0.5, %v2602_v43 }
 0x3d8   : > { %11398 = vst [vmem:[#allocation9_spill] sm:$0xff] %v8890_v22 }
 0x3dc   : > { %v2327_v8 = vpop.permute.xlu1 %2326 }
 0x3dd   : > { %v2433_v13 = vsel %vm2072_vm7, %v2327_v8, 0.0 }
 0x3df   : > { %v8895_v30 = vpop.f32.mrf.mxu3 }
 0x3e0   : > { %11399 = vst [vmem:[#allocation10_spill] sm:$0xff] %v8895_v30  ;;  %v2604_v30 = vsub.f32 1.5, %v2603_v48 }
 0x3e2   : > { %v2605_v40 = vmul.f32 %v6826_v19, %v2604_v30 }
 0x3e4   : > { %v2609_v15 = vsel %vm2608_vm8, %v6826_v19, %v2605_v40 }
 0x3e7   : > { %v8906_v10 = vpop.f32.mrf.mxu3 }
 0x3e8   : > { %11400 = vst [vmem:[#allocation11_spill] sm:$0xff] %v8906_v10 }
 0x3ec   : > { %v8902_v54 = vpop.xlane.xlu0 %2419 }
 0x3ef   : > { %v8912_v39 = vpop.f32.mrf.mxu3 }
 0x3f0   : > { %2030 = vrot.lane.b32.xlu1 %v8898_v27, %s7068_s17  ;;  %11401 = vst [vmem:[#allocation12_spill] sm:$0xff] %v8912_v39 }
 0x3f1   : > { %v8904_v63 = vpop.xlane.xlu2 %2416 }
 0x3f4   : > { %v8908_v37 = vpop.xlane.xlu0 %2422 }
 0x3f7   : > { %v8925_v30 = vpop.f32.mrf.mxu3 }
 0x3f8   : > { %11402 = vst [vmem:[#allocation13_spill] sm:$0xff] %v8925_v30 }
 0x3f9   : > { %v2021_v60 = vpop.permute.xlu2 %2020 }
 0x3fa   : > { %v2139_v10 = vsel %vm2072_vm7, %v2021_v60, 0.0 }
 0x3fc   : > { %v2129_v22 = vpop.xlane.xlu0 %2128 }
 0x3fd   : > { %2434 = vadd.xlane.f32.xlu0 %v2433_v13  ;;  %v2594_v13 = vsub.f32 1.5, %v2593_v50  ;;  %v2194_v40 = vmul.f32 %v8550_v26, %v2129_v22 }
 0x3ff   : > { %2137 = vadd.xlane.f32.xlu2 %v2136_v6  ;;  %v383_v6 = vld [vmem:[%s11302_s2] sm:$0xf] }
 0x400   : > { %6438 = vmatpush.msk.msrb.mxu3 %vm1299_vm2, %v383_v6 }
 0x401   : > { %v2329_v33 = vpop.permute.xlu2 %2328 }
 0x404   : > { %v8929_v50 = vpop.xlane.xlu0 %2425 }
 0x407   : > { %v2126_v24 = vpop.xlane.xlu1 %2125  ;;  %2140 = vadd.xlane.f32.xlu2 %v2139_v10  ;;  %v8932_v10 = vld [vmem:[%s7173_s25 + $0xe0] sm:$0xff] }
 0x408   : > { %v2193_v8 = vmul.f32 %v8550_v26, %v2126_v24  ;;  %v2595_v24 = vmul.f32 %v6828_v55, %v2594_v13 }
 0x409   : > { %v2023_v49 = vpop.permute.xlu2 %2022 }
 0x40a   : > { %v8917_v43 = vsub.f32 %v8735_v31, %v2193_v8  ;;  %v2884_v31 = vmul.f32 %v2609_v15, %v8637_v28  ;;  %v2599_v19 = vsel %vm2598_vm0, %v6828_v55, %v2595_v24  ;;  %v8940_v28 = vpop.f32.mrf.mxu3  ;;  %v8945_v15 = vsub.f32 %v8710_v9, %v2194_v40 }
 0x40b   : > { %v2883_v23 = vmul.f32 %v2599_v19, %v8654_v18  ;;  %11403 = vst [vmem:[#allocation14_spill] sm:$0xff] %v8940_v28  ;;  %v2502_v40 = vmul.f32 %v8902_v54, %v8550_v26 }
 0x40c   : > { %v2257_v60 = vmul.f32 %v8917_v43, %v8917_v43  ;;  %v2920_v48 = vmul.f32 %v8815_v14, %v2884_v31  ;;  %v2132_v13 = vpop.xlane.xlu0 %2131  ;;  %v2258_v18 = vmul.f32 %v8945_v15, %v8945_v15 }
 0x40d   : > { %v2919_v6 = vmul.f32 %v8815_v14, %v2883_v23 }
 0x40e   : > { %2338 = vrot.lane.b32.xlu1 %v2257_v60, %s7068_s17  ;;  %v2956_v8 = vadd.f32 %v8826_v62, %v2920_v48 }
 0x40f   : > { %v2955_v55 = vadd.f32 %v8826_v62, %v2919_v6  ;;  %v2501_v6 = vmul.f32 %v8904_v63, %v8550_v26  ;;  %v2142_v63 = vsel %vm2072_vm7, %v2023_v49, 0.0 }
 0x411   : > { %v2331_v35 = vpop.permute.xlu2 %2330  ;;  %2032 = vrot.lane.b32.xlu0 %v8932_v10, %s7068_s17 }
 0x412   : > { %v8955_v24 = vpop.f32.mrf.mxu3 }
 0x413   : > { %11404 = vst [vmem:[#allocation15_spill] sm:$0xff] %v8955_v24  ;;  %v2533_v24 = vadd.f32 1e-05, %v2501_v6 }
 0x414   : > { %v8957_v31 = vpop.xlane.xlu0 %2428 }
 0x415   : > { %vm2616_vm14 = vweird.f32 %v2533_v24 }
 0x419   : > { %v2025_v56 = vpop.permute.xlu2 %2024  ;;  %3024 = vrot.lane.b32.xlu0 %v2956_v8, %s7068_s17 }
 0x41a   : > { %v8961_v19 = vpop.f32.mrf.mxu3 }
 0x41b   : > { %11405 = vst [vmem:[#allocation16_spill] sm:$0xff] %v8961_v19 }
 0x41c   : > { %v2135_v48 = vpop.xlane.xlu0 %2134 }
 0x41f   : > { %v3017_v60 = vpop.permute.xlu1 %3016  ;;  %3022 = vrot.lane.b32.xlu2 %v2955_v55, %s7068_s17 }
 0x420   : > { %6439 = vmatmul.msk.f32.vlgmr.msrb.gmra.mxu3 %vm2072_vm7, %v3017_v60  ;;  %v2534_v60 = vadd.f32 1e-05, %v2502_v40 }
 0x421   : > { %v8952_v22 = vpop.permute.xlu2 %2332  ;;  %2340 = vrot.lane.b32.xlu0 %v2258_v18, %s7068_s17  ;;  %v2436_v18 = vsel %vm2072_vm7, %v2329_v33, 0.0  ;;  %v2439_v33 = vsel %vm2072_vm7, %v2331_v35, 0.0 }
 0x422   : > { %v8970_v55 = vpop.f32.mrf.mxu3  ;;  %6829 = vrsqrt.f32 %v2534_v60  ;;  %vm2626_vm12 = vweird.f32 %v2534_v60 }
 0x423   : > { %11406 = vst [vmem:[#allocation17_spill] sm:$0xff] %v8970_v55  ;;  %6831 = vrsqrt.f32 %v2533_v24 }
 0x428   : > { %v6830_v54 = vpop.eup %6829 }
 0x429   : > { %v8959_v9 = vpop.permute.xlu2 %2026  ;;  %v6832_v28 = vpop.eup %6831  ;;  %v2621_v30 = vmul.f32 %v6830_v54, %v2534_v60  ;;  %vm2627_vm1 = vweird.f32 %v6830_v54 }
 0x42a   : > { %v2611_v39 = vmul.f32 %v6832_v28, %v2533_v24  ;;  %vm2617_vm11 = vweird.f32 %v6832_v28  ;;  %vm2628_vm13 = vmor %vm2626_vm12, %vm2627_vm1  ;;  %vm3356_vm1 = vcmask 80896  }
 0x42b   : > { %v2622_v55 = vmul.f32 %v6830_v54, %v2621_v30  ;;  %vm2618_vm15 = vmor %vm2616_vm14, %vm2617_vm11 }
 0x42c   : > { %v2612_v6 = vmul.f32 %v6832_v28, %v2611_v39 }
 0x42e   : > { %v2613_v41 = vmul.f32 0.5, %v2612_v6  ;;  %v9000_v6 = vld [vmem:[%s7173_s25 + $0xf0] sm:$0xff] }
 0x430   : > { %v2614_v30 = vsub.f32 1.5, %v2613_v41 }
 0x431   : > { %v3019_v23 = vpop.permute.xlu2 %3018 }
 0x432   : > { %6440 = vmatmul.msk.f32.gmra.mxu3 %vm2072_vm7, %v3019_v23  ;;  %v8974_v23 = vpop.f32.mrf.mxu3 }
 0x433   : > { %11407 = vst [vmem:[#allocation18_spill] sm:$0xff] %v8974_v23  ;;  %v2145_v23 = vsel %vm2072_vm7, %v2025_v56, 0.0 }
 0x435   : > { %v8966_v8 = vpop.permute.xlu0 %2334 }
 0x438   : > { %2437 = vadd.xlane.f32.xlu1 %v2436_v18  ;;  %v2623_v18 = vmul.f32 0.5, %v2622_v55  ;;  %v2615_v55 = vmul.f32 %v6832_v28, %v2614_v30 }
 0x43a   : > { %v8978_v40 = vpop.f32.mrf.mxu3  ;;  %v2624_v49 = vsub.f32 1.5, %v2623_v18  ;;  %v2619_v41 = vsel %vm2618_vm15, %v6832_v28, %v2615_v55  ;;  %v2196_v18 = vmul.f32 %v8550_v26, %v2135_v48 }
 0x43c   : > { %v2625_v39 = vmul.f32 %v6830_v54, %v2624_v49 }
 0x43d   : > { %v3021_v19 = vpop.permute.xlu0 %3020 }
 0x43e   : > { %6441 = vmatmul.msk.f32.gmra.mxu3 %vm2072_vm7, %v3021_v19  ;;  %v2195_v19 = vmul.f32 %v8550_v26, %v2132_v13  ;;  %v2629_v56 = vsel %vm2628_vm13, %v6830_v54, %v2625_v39 }
 0x440   : > { %v8988_v35 = vsub.f32 %v8748_v59, %v2195_v19  ;;  %v2886_v59 = vmul.f32 %v2629_v56, %v8720_v12  ;;  %v9014_v12 = vsub.f32 %v8762_v1, %v2196_v18  ;;  %v2029_v19 = vpop.permute.xlu2 %2028 }
 0x442   : > { %v2259_v13 = vmul.f32 %v8988_v35, %v8988_v35  ;;  %v2922_v60 = vmul.f32 %v8815_v14, %v2886_v59  ;;  %v2260_v49 = vmul.f32 %v9014_v12, %v9014_v12 }
 0x444   : > { %v2958_v54 = vadd.f32 %v8826_v62, %v2922_v60  ;;  %v2442_v60 = vsel %vm2072_vm7, %v8952_v22, 0.0 }
 0x445   : > { %v9021_v39 = vpop.permute.xlu0 %2336 }
 0x448   : > { %2143 = vadd.xlane.f32.xlu2 %v2142_v63  ;;  %v8990_v63 = vpop.f32.mrf.mxu3 }
 0x449   : > { %11408 = vst [vmem:[#allocation19_spill] sm:$0xff] %v8990_v63 }
 0x44b   : > { %2440 = vadd.xlane.f32.xlu0 %v2439_v33 }
 0x450   : > { %2146 = vadd.xlane.f32.xlu2 %v2145_v23  ;;  %v2885_v23 = vmul.f32 %v2619_v41, %v8659_v51  ;;  %v8997_v33 = vpop.f32.mrf.mxu3  ;;  %v2503_v41 = vmul.f32 %v8908_v37, %v8550_v26  ;;  %v384_v37 = vld [vmem:[%s11302_s2 + $0x8] sm:$0xff] }
 0x451   : > { %2034 = vrot.lane.b32.xlu1 %v8983_v25, %s7068_s17  ;;  %11409 = vst [vmem:[#allocation20_spill] sm:$0xff] %v8997_v33  ;;  %v2445_v33 = vsel %vm2072_vm7, %v8966_v8, 0.0 }
 0x452   : > { %v2921_v24 = vmul.f32 %v8815_v14, %v2885_v23 }
 0x454   : > { %v2957_v28 = vadd.f32 %v8826_v62, %v2921_v24  ;;  %v2535_v24 = vadd.f32 1e-05, %v2503_v41 }
 0x456   : > { %vm2636_vm9 = vweird.f32 %v2535_v24 }
 0x458   : > { %v9011_v51 = vpop.f32.mrf.mxu3 }
 0x459   : > { %2342 = vrot.lane.b32.xlu1 %v2259_v13, %s7068_s17  ;;  %11410 = vst [vmem:[#allocation21_spill] sm:$0xff] %v9011_v51  ;;  %v2504_v13 = vmul.f32 %v8929_v50, %v8550_v26  ;;  %v385_v50 = vld [vmem:[%s11302_s2 + $0x10] sm:$0x3] }
 0x45a   : > { %6471 = vmatpush.msk.msrb.mxu0 %vm3453_vm3, %v385_v50 }
 0x45b   : > { %v2536_v59 = vadd.f32 1e-05, %v2504_v13 }
 0x45c   : > { %3472 = vmatpush.msrb.mxu0 %v384_v37  ;;  %v2151_v37 = vsel %vm2072_vm7, %v2029_v19, 0.0 }
 0x45d   : > { %6833 = vrsqrt.f32 %v2536_v59  ;;  %vm2646_vm5 = vweird.f32 %v2536_v59 }
 0x45e   : > { %6835 = vrsqrt.f32 %v2535_v24 }
 0x45f   : > { %2036 = vrot.lane.b32.xlu0 %v9000_v6, %s7068_s17 }
 0x460   : > { %v9019_v30 = vpop.f32.mrf.mxu3 }
 0x461   : > { %11411 = vst [vmem:[#allocation22_spill] sm:$0xff] %v9019_v30 }
 0x463   : > { %v6834_v22 = vpop.eup %6833 }
 0x464   : > { %v6836_v13 = vpop.eup %6835  ;;  %vm2647_vm4 = vweird.f32 %v6834_v22 }
 0x465   : > { %v2631_v41 = vmul.f32 %v6836_v13, %v2535_v24  ;;  %vm2648_vm6 = vmor %vm2646_vm5, %vm2647_vm4  ;;  %vm2637_vm8 = vweird.f32 %v6836_v13 }
 0x466   : > { %vm2638_vm10 = vmor %vm2636_vm9, %vm2637_vm8 }
 0x467   : > { %3028 = vrot.lane.b32.xlu0 %v2958_v54, %s7068_s17 }
 0x468   : > { %3026 = vrot.lane.b32.xlu2 %v2957_v28, %s7068_s17  ;;  %v9029_v1 = vpop.f32.mrf.mxu3 }
 0x469   : > { %11412 = vst [vmem:[#allocation23_spill] sm:$0xff] %v9029_v1 }
 0x46f   : > { %2344 = vrot.lane.b32.xlu0 %v2260_v49, %s7068_s17  ;;  %v2641_v49 = vmul.f32 %v6834_v22, %v2536_v59 }
 0x470   : > { %v9027_v56 = vpop.xlane.xlu0 %2434  ;;  %v9044_v54 = vpop.f32.mrf.mxu3 }
 0x471   : > { %11413 = vst [vmem:[#allocation24_spill] sm:$0xff] %v9044_v54  ;;  %v2632_v54 = vmul.f32 %v6836_v13, %v2631_v41 }
 0x472   : > { %v2138_v48 = vpop.xlane.xlu2 %2137 }
 0x473   : > { %v2633_v51 = vmul.f32 0.5, %v2632_v54 }
 0x478   : > { %v9050_v1 = vpop.f32.mrf.mxu3 }
 0x479   : > { %11414 = vst [vmem:[#allocation25_spill] sm:$0xff] %v9050_v1  ;;  %v9059_v1 = vld [vmem:[%s7173_s25 + $0xf8] sm:$0xff] }
 0x47a   : > { %v9023_v55 = vpop.xlane.xlu2 %2140 }
 0x482   : > { %v3023_v23 = vpop.permute.xlu2 %3022 }
 0x483   : > { %2443 = vadd.xlane.f32.xlu1 %v2442_v60  ;;  %6442 = vmatmul.msk.f32.gmra.mxu3 %vm2072_vm7, %v3023_v23  ;;  %v9036_v18 = vpop.permute.xlu0 %2032  ;;  %v2642_v23 = vmul.f32 %v6834_v22, %v2641_v49  ;;  %v2148_v60 = vsel %vm2072_vm7, %v8959_v9, 0.0  ;;  %v9056_v49 = vpop.f32.mrf.mxu3  ;;  %v2634_v9 = vsub.f32 1.5, %v2633_v51 }
 0x484   : > { %11415 = vst [vmem:[#allocation26_spill] sm:$0xff] %v9056_v49 }
 0x485   : > { %v2643_v30 = vmul.f32 0.5, %v2642_v23  ;;  %v2635_v8 = vmul.f32 %v6836_v13, %v2634_v9  ;;  %v2198_v23 = vmul.f32 %v8550_v26, %v9023_v55 }
 0x487   : > { %v2644_v50 = vsub.f32 1.5, %v2643_v30  ;;  %v2639_v54 = vsel %vm2638_vm10, %v6836_v13, %v2635_v8 }
 0x489   : > { %v2645_v63 = vmul.f32 %v6834_v22, %v2644_v50 }
 0x48b   : > { %v3025_v28 = vpop.permute.xlu0 %3024 }
 0x48c   : > { %6443 = vmatmul.msk.f32.gmra.mxu3 %vm2072_vm7, %v3025_v28  ;;  %v2197_v28 = vmul.f32 %v8550_v26, %v2138_v48  ;;  %v9069_v48 = vld [vmem:[%s11301_s1 + $0x6] ss:$0 sm:$0xff] }
 0x48e   : > { %v9064_v19 = vsub.f32 %v8774_v42, %v2197_v28 }
 0x490   : > { %v2261_v51 = vmul.f32 %v9064_v19, %v9064_v19 }
 0x491   : > { %2149 = vadd.xlane.f32.xlu2 %v2148_v60  ;;  %v9085_v60 = vsub.f32 %v8798_v0, %v2198_v23  ;;  %v2432_v0 = vpop.xlane.xlu1 %2431 }
 0x499   : > { %2152 = vadd.xlane.f32.xlu2 %v2151_v37  ;;  %2446 = vadd.xlane.f32.xlu0 %v2445_v33  ;;  %v2649_v33 = vsel %vm2648_vm6, %v6834_v22, %v2645_v63  ;;  %v2887_v22 = vmul.f32 %v2639_v54, %v8717_v45  ;;  %v2262_v45 = vmul.f32 %v9085_v60, %v9085_v60 }
 0x49a   : > { %v2888_v30 = vmul.f32 %v2649_v33, %v8730_v36  ;;  %v2505_v33 = vmul.f32 %v8957_v31, %v8550_v26 }
 0x49b   : > { %v2923_v13 = vmul.f32 %v8815_v14, %v2887_v22 }
 0x49c   : > { %2038 = vrot.lane.b32.xlu1 %v9059_v1, %s7068_s17  ;;  %v2924_v41 = vmul.f32 %v8815_v14, %v2888_v30  ;;  %v9097_v30 = vpop.permute.xlu0 %2340 }
 0x49d   : > { %v2959_v50 = vadd.f32 %v8826_v62, %v2923_v13 }
 0x49e   : > { %v2960_v36 = vadd.f32 %v8826_v62, %v2924_v41 }
 0x4a3   : > { %v3164_v59 = vpop.f32.mrf.mxu3 }
 0x4a4   : > { %v3165_v42 = vadd.f32 %v3164_v59, %v9069_v48  ;;  %2346 = vrot.lane.b32.xlu1 %v2261_v51, %s7068_s17  ;;  %v2506_v51 = vmul.f32 %v2432_v0, %v8550_v26  ;;  %v2157_v0 = vsel %vm2072_vm7, %v9036_v18, 0.0 }
 0x4a6   : > { %vm3260_vm0 = vcmp.gt.f32.partialorder %v3165_v42, 0.0  ;;  %v3292_v63 = vmul.f32 0.01, %v3165_v42  ;;  %v2538_v41 = vadd.f32 1e-05, %v2506_v51 }
 0x4a8   : > { %v3324_v24 = vsel %vm3260_vm0, %v3165_v42, %v3292_v63  ;;  %v2537_v63 = vadd.f32 1e-05, %v2505_v33  ;;  %vm2666_vm5 = vweird.f32 %v2538_v41 }
 0x4a9   : > { %6472 = vmatmul.msk.f32.vlgmr.msrb.gmra.mxu0 %vm3356_vm1, %v3324_v24 }
 0x4aa   : > { %6837 = vrsqrt.f32 %v2537_v63  ;;  %vm2656_vm15 = vweird.f32 %v2537_v63 }
 0x4ab   : > { %6839 = vrsqrt.f32 %v2538_v41 }
 0x4ad   : > { %3032 = vrot.lane.b32.xlu0 %v2960_v36, %s7068_s17  ;;  %v2448_v36 = vsel %vm2072_vm7, %v9021_v39, 0.0 }
 0x4b0   : > { %v6838_v13 = vpop.eup %6837 }
 0x4b1   : > { %3030 = vrot.lane.b32.xlu2 %v2959_v50, %s7068_s17  ;;  %v6840_v50 = vpop.eup %6839  ;;  %vm2657_vm13 = vweird.f32 %v6838_v13 }
 0x4b2   : > { %vm2667_vm14 = vweird.f32 %v6840_v50  ;;  %vm2658_vm4 = vmor %vm2656_vm15, %vm2657_vm13 }
 0x4b3   : > { %vm2668_vm6 = vmor %vm2666_vm5, %vm2667_vm14 }
 0x4b5   : > { %v3167_v37 = vpop.f32.mrf.mxu3  ;;  %2348 = vrot.lane.b32.xlu0 %v2262_v45, %s7068_s17  ;;  %v2651_v45 = vmul.f32 %v6838_v13, %v2537_v63 }
 0x4b6   : > { %v3168_v55 = vadd.f32 %v3167_v37, %v9069_v48  ;;  %v2031_v37 = vpop.permute.xlu1 %2030 }
 0x4b8   : > { %v3293_v28 = vmul.f32 0.01, %v3168_v55  ;;  %vm3261_vm11 = vcmp.gt.f32.partialorder %v3168_v55, 0.0 }
 0x4ba   : > { %v3325_v9 = vsel %vm3261_vm11, %v3168_v55, %v3293_v28  ;;  %v2661_v28 = vmul.f32 %v6840_v50, %v2538_v41 }
 0x4bb   : > { %6473 = vmatmul.msk.f32.gmra.mxu0 %vm3356_vm1, %v3325_v9  ;;  %v2144_v8 = vpop.xlane.xlu2 %2143  ;;  %v2652_v9 = vmul.f32 %v6838_v13, %v2651_v45 }
 0x4bc   : > { %v2662_v33 = vmul.f32 %v6840_v50, %v2661_v28 }
 0x4bd   : > { %v2653_v51 = vmul.f32 0.5, %v2652_v9 }
 0x4be   : > { %v9101_v23 = vpop.xlane.xlu0 %2440  ;;  %v2339_v39 = vpop.permute.xlu1 %2338 }
 0x4c1   : > { %v3170_v59 = vpop.f32.mrf.mxu3 }
 0x4c2   : > { %v3171_v54 = vadd.f32 %v3170_v59, %v9069_v48 }
 0x4c3   : > { %v2147_v42 = vpop.xlane.xlu2 %2146 }
 0x4c4   : > { %v3294_v22 = vmul.f32 0.01, %v3171_v54  ;;  %vm3262_vm12 = vcmp.gt.f32.partialorder %v3171_v54, 0.0 }
 0x4c6   : > { %v3326_v24 = vsel %vm3262_vm12, %v3171_v54, %v3294_v22  ;;  %v2154_v54 = vsel %vm2072_vm7, %v2031_v37, 0.0  ;;  %v2663_v22 = vmul.f32 0.5, %v2662_v33  ;;  %v2199_v37 = vmul.f32 %v8550_v26, %v2144_v8 }
 0x4c7   : > { %6474 = vmatmul.msk.f32.gmra.mxu0 %vm3356_vm1, %v3326_v24  ;;  %v2654_v24 = vsub.f32 1.5, %v2653_v51  ;;  %v2507_v8 = vmul.f32 %v9027_v56, %v8550_v26 }
 0x4c8   : > { %v9117_v33 = vsub.f32 %v8818_v57, %v2199_v37 }
 0x4c9   : > { %v2655_v45 = vmul.f32 %v6838_v13, %v2654_v24 }
 0x4cb   : > { %v3027_v31 = vpop.permute.xlu2 %3026  ;;  %v2659_v18 = vsel %vm2658_vm4, %v6838_v13, %v2655_v45  ;;  %v2539_v13 = vadd.f32 1e-05, %v2507_v8 }
 0x4cc   : > { %6444 = vmatmul.msk.f32.gmra.mxu3 %vm2072_vm7, %v3027_v31  ;;  %v2664_v31 = vsub.f32 1.5, %v2663_v22  ;;  %v2889_v9 = vmul.f32 %v2659_v18, %v8753_v34 }
 0x4cd   : > { %6841 = vrsqrt.f32 %v2539_v13  ;;  %vm2676_vm0 = vweird.f32 %v2539_v13 }
 0x4ce   : > { %2449 = vadd.xlane.f32.xlu1 %v2448_v36  ;;  %v2451_v36 = vsel %vm2072_vm7, %v2339_v39, 0.0  ;;  %v2665_v49 = vmul.f32 %v6840_v50, %v2664_v31  ;;  %v2925_v51 = vmul.f32 %v8815_v14, %v2889_v9 }
 0x4d0   : > { %v2669_v28 = vsel %vm2668_vm6, %v6840_v50, %v2665_v49  ;;  %v2961_v41 = vadd.f32 %v8826_v62, %v2925_v51  ;;  %v2200_v49 = vmul.f32 %v8550_v26, %v2147_v42  ;;  %v2438_v50 = vpop.xlane.xlu1 %2437 }
 0x4d1   : > { %v9106_v55 = vpop.permute.xlu0 %2036  ;;  %v2508_v22 = vmul.f32 %v2438_v50, %v8550_v26  ;;  %v2454_v50 = vsel %vm2072_vm7, %v9097_v30, 0.0 }
 0x4d3   : > { %v6842_v45 = vpop.eup %6841 }
 0x4d4   : > { %vm2677_vm10 = vweird.f32 %v6842_v45 }
 0x4d5   : > { %vm2678_vm11 = vmor %vm2676_vm0, %vm2677_vm10 }
 0x4d6   : > { %2158 = vadd.xlane.f32.xlu1 %v2157_v0  ;;  %v2890_v0 = vmul.f32 %v2669_v28, %v8771_v38  ;;  %v9130_v38 = vsub.f32 %v8839_v61, %v2200_v49  ;;  %v2540_v61 = vadd.f32 1e-05, %v2508_v22  ;;  %v2671_v28 = vmul.f32 %v6842_v45, %v2539_v13 }
 0x4d8   : > { %v2926_v63 = vmul.f32 %v8815_v14, %v2890_v0  ;;  %v2264_v57 = vmul.f32 %v9130_v38, %v9130_v38  ;;  %6843 = vrsqrt.f32 %v2540_v61  ;;  %vm2686_vm13 = vweird.f32 %v2540_v61 }
 0x4d9   : > { %v3029_v59 = vpop.permute.xlu0 %3028 }
 0x4da   : > { %2155 = vadd.xlane.f32.xlu2 %v2154_v54  ;;  %6445 = vmatmul.msk.f32.gmra.mxu3 %vm2072_vm7, %v3029_v59  ;;  %v2263_v59 = vmul.f32 %v9117_v33, %v9117_v33  ;;  %v2962_v34 = vadd.f32 %v8826_v62, %v2926_v63  ;;  %v2672_v63 = vmul.f32 %v6842_v45, %v2671_v28 }
 0x4dc   : > { %v2673_v8 = vmul.f32 0.5, %v2672_v63 }
 0x4de   : > { %v2674_v22 = vsub.f32 1.5, %v2673_v8 }
 0x4df   : > { %2452 = vadd.xlane.f32.xlu0 %v2451_v36 }
 0x4e1   : > { %v9140_v18 = vpop.permute.xlu0 %2344 }
 0x4ef   : > { %2350 = vrot.lane.b32.xlu1 %v2263_v59, %s7068_s17  ;;  %v6844_v59 = vpop.eup %6843 }
 0x4f0   : > { %vm2687_vm12 = vweird.f32 %v6844_v59 }
 0x4f1   : > { %vm2688_vm14 = vmor %vm2686_vm13, %vm2687_vm12 }
 0x4f2   : > { %3034 = vrot.lane.b32.xlu2 %v2961_v41, %s7068_s17  ;;  %v2035_v41 = vpop.permute.xlu1 %2034 }
 0x4f3   : > { %3036 = vrot.lane.b32.xlu0 %v2962_v34, %s7068_s17  ;;  %v2681_v34 = vmul.f32 %v6844_v59, %v2540_v61 }
 0x4fb   : > { %2352 = vrot.lane.b32.xlu0 %v2264_v57, %s7068_s17  ;;  %v2160_v57 = vsel %vm2072_vm7, %v2035_v41, 0.0 }
 0x504   : > { %v2150_v42 = vpop.xlane.xlu2 %2149 }
 0x505   : > { %v2201_v13 = vmul.f32 %v8550_v26, %v2150_v42 }
 0x506   : > { %v3173_v54 = vpop.f32.mrf.mxu3 }
 0x507   : > { %v3174_v39 = vadd.f32 %v3173_v54, %v9069_v48  ;;  %v2682_v54 = vmul.f32 %v6844_v59, %v2681_v34 }
 0x509   : > { %v3295_v24 = vmul.f32 0.01, %v3174_v39  ;;  %vm3263_vm8 = vcmp.gt.f32.partialorder %v3174_v39, 0.0 }
 0x50b   : > { %v3327_v31 = vsel %vm3263_vm8, %v3174_v39, %v3295_v24  ;;  %v2683_v24 = vmul.f32 0.5, %v2682_v54 }
 0x50c   : > { %v2153_v36 = vpop.xlane.xlu2 %2152  ;;  %6475 = vmatmul.msk.f32.gmra.mxu0 %vm3356_vm1, %v3327_v31  ;;  %v9145_v49 = vpop.xlane.xlu0 %2446  ;;  %v2675_v31 = vmul.f32 %v6842_v45, %v2674_v22 }
 0x50d   : > { %v2684_v28 = vsub.f32 1.5, %v2683_v24 }
 0x50e   : > { %v2679_v30 = vsel %vm2678_vm11, %v6842_v45, %v2675_v31 }
 0x50f   : > { %v3176_v56 = vpop.f32.mrf.mxu3 }
 0x510   : > { %v3177_v37 = vadd.f32 %v3176_v56, %v9069_v48  ;;  %v2343_v56 = vpop.permute.xlu1 %2342 }
 0x512   : > { %v3296_v9 = vmul.f32 0.01, %v3177_v37  ;;  %vm3264_vm9 = vcmp.gt.f32.partialorder %v3177_v37, 0.0 }
 0x514   : > { %v3031_v0 = vpop.permute.xlu2 %3030  ;;  %v3328_v51 = vsel %vm3264_vm9, %v3177_v37, %v3296_v9  ;;  %v2163_v37 = vsel %vm2072_vm7, %v9106_v55, 0.0  ;;  %v2457_v9 = vsel %vm2072_vm7, %v2343_v56, 0.0 }
 0x515   : > { %6446 = vmatmul.msk.f32.gmra.mxu3 %vm2072_vm7, %v3031_v0  ;;  %6476 = vmatmul.msk.f32.gmra.mxu0 %vm3356_vm1, %v3328_v51  ;;  %v2891_v0 = vmul.f32 %v2679_v30, %v8784_v44  ;;  %v2685_v51 = vmul.f32 %v6844_v59, %v2684_v28  ;;  %v2202_v44 = vmul.f32 %v8550_v26, %v2153_v36 }
 0x516   : > { %v2509_v36 = vmul.f32 %v9101_v23, %v8550_v26 }
 0x517   : > { %v2689_v63 = vsel %vm2688_vm14, %v6844_v59, %v2685_v51  ;;  %v2927_v41 = vmul.f32 %v8815_v14, %v2891_v0 }
 0x518   : > { %v2892_v34 = vmul.f32 %v2689_v63, %v8803_v7  ;;  %v9170_v7 = vsub.f32 %v8883_v21, %v2202_v44  ;;  %v2541_v8 = vadd.f32 1e-05, %v2509_v36  ;;  %v2511_v63 = vmul.f32 %v9145_v49, %v8550_v26 }
 0x519   : > { %2161 = vadd.xlane.f32.xlu1 %v2160_v57  ;;  %v2963_v55 = vadd.f32 %v8826_v62, %v2927_v41  ;;  %v9162_v57 = vsub.f32 %v8861_v46, %v2201_v13  ;;  %v2444_v46 = vpop.xlane.xlu1 %2443  ;;  %v2460_v41 = vsel %vm2072_vm7, %v9140_v18, 0.0 }
 0x51a   : > { %v2928_v45 = vmul.f32 %v8815_v14, %v2892_v34  ;;  %v2266_v42 = vmul.f32 %v9170_v7, %v9170_v7  ;;  %6845 = vrsqrt.f32 %v2541_v8  ;;  %v2510_v54 = vmul.f32 %v2444_v46, %v8550_v26 }
 0x51b   : > { %2455 = vadd.xlane.f32.xlu2 %v2454_v50  ;;  %v2265_v59 = vmul.f32 %v9162_v57, %v9162_v57  ;;  %vm2696_vm6 = vweird.f32 %v2541_v8 }
 0x51c   : > { %v2964_v61 = vadd.f32 %v8826_v62, %v2928_v45 }
 0x51f   : > { %v3033_v39 = vpop.permute.xlu0 %3032 }
 0x520   : > { %6447 = vmatmul.msk.f32.gmra.mxu3 %vm2072_vm7, %v3033_v39  ;;  %v2542_v39 = vadd.f32 1e-05, %v2510_v54  ;;  %v6846_v31 = vpop.eup %6845 }
 0x521   : > { %v2039_v50 = vpop.permute.xlu1 %2038  ;;  %vm2697_vm5 = vweird.f32 %v6846_v31 }
 0x522   : > { %6847 = vrsqrt.f32 %v2542_v39  ;;  %v2166_v18 = vsel %vm2072_vm7, %v2039_v50, 0.0  ;;  %vm2698_vm8 = vmor %vm2696_vm6, %vm2697_vm5  ;;  %vm2706_vm10 = vweird.f32 %v2542_v39 }
 0x523   : > { %2164 = vadd.xlane.f32.xlu2 %v2163_v37  ;;  %v2691_v37 = vmul.f32 %v6846_v31, %v2541_v8 }
 0x525   : > { %2458 = vadd.xlane.f32.xlu0 %v2457_v9  ;;  %v2692_v0 = vmul.f32 %v6846_v31, %v2691_v37 }
 0x527   : > { %v9180_v30 = vpop.permute.xlu0 %2348  ;;  %v2693_v34 = vmul.f32 0.5, %v2692_v0 }
 0x528   : > { %v6848_v51 = vpop.eup %6847 }
 0x529   : > { %v2347_v28 = vpop.permute.xlu1 %2346  ;;  %vm2707_vm9 = vweird.f32 %v6848_v51 }
 0x52a   : > { %vm2708_vm0 = vmor %vm2706_vm10, %vm2707_vm9 }
 0x532   : > { %3038 = vrot.lane.b32.xlu1 %v2963_v55, %s7068_s17  ;;  %v2701_v55 = vmul.f32 %v6848_v51, %v2542_v39 }
 0x534   : > { %v2702_v46 = vmul.f32 %v6848_v51, %v2701_v55 }
 0x539   : > { %3040 = vrot.lane.b32.xlu0 %v2964_v61, %s7068_s17 }
 0x53b   : > { %2354 = vrot.lane.b32.xlu2 %v2265_v59, %s7068_s17  ;;  %v2543_v59 = vadd.f32 1e-05, %v2511_v63  ;;  %v2463_v63 = vsel %vm2072_vm7, %v2347_v28, 0.0 }
 0x53d   : > { %6849 = vrsqrt.f32 %v2543_v59  ;;  %vm2716_vm12 = vweird.f32 %v2543_v59 }
 0x541   : > { %2356 = vrot.lane.b32.xlu0 %v2266_v42, %s7068_s17  ;;  %v2450_v13 = vpop.xlane.xlu1 %2449  ;;  %v2694_v42 = vsub.f32 1.5, %v2693_v34 }
 0x542   : > { %v2512_v0 = vmul.f32 %v2450_v13, %v8550_v26 }
 0x543   : > { %v2695_v49 = vmul.f32 %v6846_v31, %v2694_v42 }
 0x544   : > { %v2544_v55 = vadd.f32 1e-05, %v2512_v0 }
 0x545   : > { %v2699_v37 = vsel %vm2698_vm8, %v6846_v31, %v2695_v49 }
 0x546   : > { %6851 = vrsqrt.f32 %v2544_v55 }
 0x54d   : > { %v2156_v22 = vpop.xlane.xlu2 %2155 }
 0x54e   : > { %v2203_v42 = vmul.f32 %v8550_v26, %v2156_v22 }
 0x54f   : > { %v3179_v21 = vpop.f32.mrf.mxu3 }
 0x550   : > { %v3180_v24 = vadd.f32 %v3179_v21, %v9069_v48  ;;  %v2703_v21 = vmul.f32 0.5, %v2702_v46  ;;  %v9204_v39 = vsub.f32 %v8898_v27, %v2203_v42 }
 0x552   : > { %v3297_v56 = vmul.f32 0.01, %v3180_v24  ;;  %vm3265_vm15 = vcmp.gt.f32.partialorder %v3180_v24, 0.0  ;;  %v9188_v45 = vpop.xlane.xlu0 %2452  ;;  %v2267_v22 = vmul.f32 %v9204_v39, %v9204_v39 }
 0x554   : > { %v3329_v9 = vsel %vm3265_vm15, %v3180_v24, %v3297_v56  ;;  %v2159_v56 = vpop.xlane.xlu1 %2158  ;;  %vm2726_vm15 = vweird.f32 %v2544_v55 }
 0x555   : > { %v3035_v23 = vpop.permute.xlu2 %3034  ;;  %6477 = vmatmul.msk.f32.gmra.mxu0 %vm3356_vm1, %v3329_v9  ;;  %v2704_v9 = vsub.f32 1.5, %v2703_v21  ;;  %v2204_v49 = vmul.f32 %v8550_v26, %v2159_v56 }
 0x556   : > { %6448 = vmatmul.msk.f32.gmra.mxu3 %vm2072_vm7, %v3035_v23  ;;  %v6850_v23 = vpop.eup %6849 }
 0x557   : > { %v2705_v50 = vmul.f32 %v6848_v51, %v2704_v9  ;;  %v2711_v34 = vmul.f32 %v6850_v23, %v2543_v59  ;;  %vm2717_vm11 = vweird.f32 %v6850_v23 }
 0x558   : > { %vm2718_vm13 = vmor %vm2716_vm12, %vm2717_vm11 }
 0x559   : > { %v2712_v31 = vmul.f32 %v6850_v23, %v2711_v34 }
 0x55b   : > { %v2713_v46 = vmul.f32 0.5, %v2712_v31 }
 0x55c   : > { %2461 = vadd.xlane.f32.xlu1 %v2460_v41  ;;  %v2893_v41 = vmul.f32 %v2699_v37, %v8824_v20 }
 0x55d   : > { %v3182_v44 = vpop.f32.mrf.mxu3 }
 0x55e   : > { %v3183_v61 = vadd.f32 %v3182_v44, %v9069_v48  ;;  %v2929_v44 = vmul.f32 %v8815_v14, %v2893_v41 }
 0x560   : > { %v3298_v36 = vmul.f32 0.01, %v3183_v61  ;;  %vm3266_vm4 = vcmp.gt.f32.partialorder %v3183_v61, 0.0  ;;  %v2965_v20 = vadd.f32 %v8826_v62, %v2929_v44 }
 0x561   : > { %v2351_v8 = vpop.permute.xlu1 %2350 }
 0x562   : > { %v3330_v54 = vsel %vm3266_vm4, %v3183_v61, %v3298_v36  ;;  %v2709_v61 = vsel %vm2708_vm0, %v6848_v51, %v2705_v50  ;;  %v2469_v13 = vsel %vm2072_vm7, %v2351_v8, 0.0  ;;  %v6852_v36 = vpop.eup %6851 }
 0x563   : > { %6478 = vmatmul.msk.f32.gmra.mxu0 %vm3356_vm1, %v3330_v54  ;;  %v2894_v28 = vmul.f32 %v2709_v61, %v8844_v29  ;;  %v2714_v54 = vsub.f32 1.5, %v2713_v46  ;;  %vm2727_vm14 = vweird.f32 %v6852_v36  ;;  %v2513_v61 = vmul.f32 %v9188_v45, %v8550_v26 }
 0x564   : > { %2167 = vadd.xlane.f32.xlu2 %v2166_v18  ;;  %v2721_v18 = vmul.f32 %v6852_v36, %v2544_v55  ;;  %vm2728_vm4 = vmor %vm2726_vm15, %vm2727_vm14 }
 0x565   : > { %v3037_v24 = vpop.permute.xlu0 %3036  ;;  %v2930_v51 = vmul.f32 %v8815_v14, %v2894_v28  ;;  %v2715_v21 = vmul.f32 %v6850_v23, %v2714_v54  ;;  %v2545_v31 = vadd.f32 1e-05, %v2513_v61 }
 0x566   : > { %6449 = vmatmul.msk.f32.gmra.mxu3 %vm2072_vm7, %v3037_v24  ;;  %v2722_v27 = vmul.f32 %v6852_v36, %v2721_v18  ;;  %v9214_v24 = vsub.f32 %v8932_v10, %v2204_v49  ;;  %v2466_v49 = vsel %vm2072_vm7, %v9180_v30, 0.0 }
 0x567   : > { %v2966_v29 = vadd.f32 %v8826_v62, %v2930_v51  ;;  %v2719_v37 = vsel %vm2718_vm13, %v6850_v23, %v2715_v21  ;;  %6853 = vrsqrt.f32 %v2545_v31  ;;  %vm2736_vm9 = vweird.f32 %v2545_v31 }
 0x568   : > { %v2723_v9 = vmul.f32 0.5, %v2722_v27  ;;  %v2895_v0 = vmul.f32 %v2719_v37, %v8853_v4  ;;  %v2268_v56 = vmul.f32 %v9214_v24, %v9214_v24 }
 0x56a   : > { %v2931_v41 = vmul.f32 %v8815_v14, %v2895_v0 }
 0x56b   : > { %2464 = vadd.xlane.f32.xlu0 %v2463_v63  ;;  %v2724_v63 = vsub.f32 1.5, %v2723_v9 }
 0x56c   : > { %v2967_v59 = vadd.f32 %v8826_v62, %v2931_v41 }
 0x56d   : > { %v2725_v50 = vmul.f32 %v6852_v36, %v2724_v63  ;;  %v6854_v45 = vpop.eup %6853 }
 0x56e   : > { %v2731_v51 = vmul.f32 %v6854_v45, %v2545_v31  ;;  %vm2737_vm8 = vweird.f32 %v6854_v45 }
 0x56f   : > { %v2729_v4 = vsel %vm2728_vm4, %v6852_v36, %v2725_v50  ;;  %vm2738_vm10 = vmor %vm2736_vm9, %vm2737_vm8 }
 0x570   : > { %v2896_v8 = vmul.f32 %v2729_v4, %v8874_v58  ;;  %v2732_v27 = vmul.f32 %v6854_v45, %v2731_v51 }
 0x572   : > { %v2932_v55 = vmul.f32 %v8815_v14, %v2896_v8 }
 0x573   : > { %2470 = vadd.xlane.f32.xlu0 %v2469_v13 }
 0x574   : > { %v2968_v28 = vadd.f32 %v8826_v62, %v2932_v55 }
 0x575   : > { %3042 = vrot.lane.b32.xlu1 %v2965_v20, %s7068_s17 }
 0x57c   : > { %2358 = vrot.lane.b32.xlu2 %v2267_v22, %s7068_s17 }
 0x57d   : > { %3044 = vrot.lane.b32.xlu1 %v2966_v29, %s7068_s17 }
 0x585   : > { %2360 = vrot.lane.b32.xlu1 %v2268_v56, %s7068_s17  ;;  %v2733_v56 = vmul.f32 0.5, %v2732_v27 }
 0x587   : > { %v2734_v30 = vsub.f32 1.5, %v2733_v56 }
 0x58c   : > { %v2162_v34 = vpop.xlane.xlu1 %2161 }
 0x58d   : > { %v2205_v10 = vmul.f32 %v8550_v26, %v2162_v34  ;;  %3046 = vrot.lane.b32.xlu1 %v2967_v59, %s7068_s17  ;;  %v2735_v34 = vmul.f32 %v6854_v45, %v2734_v30 }
 0x58e   : > { %v2456_v54 = vpop.xlane.xlu2 %2455 }
 0x58f   : > { %v9225_v23 = vsub.f32 %v8983_v25, %v2205_v10  ;;  %v2353_v25 = vpop.permute.xlu0 %2352  ;;  %v2514_v21 = vmul.f32 %v2456_v54, %v8550_v26 }
 0x590   : > { %v2472_v4 = vsel %vm2072_vm7, %v2353_v25, 0.0 }
 0x591   : > { %v2269_v44 = vmul.f32 %v9225_v23, %v9225_v23  ;;  %v2546_v9 = vadd.f32 1e-05, %v2514_v21 }
 0x593   : > { %2362 = vrot.lane.b32.xlu0 %v2269_v44, %s7068_s17  ;;  %6855 = vrsqrt.f32 %v2546_v9  ;;  %v2739_v44 = vsel %vm2738_vm10, %v6854_v45, %v2735_v34  ;;  %vm2746_vm11 = vweird.f32 %v2546_v9 }
 0x594   : > { %v2897_v55 = vmul.f32 %v2739_v44, %v8917_v43 }
 0x596   : > { %v2165_v41 = vpop.xlane.xlu2 %2164  ;;  %v2933_v31 = vmul.f32 %v8815_v14, %v2897_v55 }
 0x597   : > { %v2206_v50 = vmul.f32 %v8550_v26, %v2165_v41 }
 0x598   : > { %v3185_v42 = vpop.f32.mrf.mxu3  ;;  %v2459_v46 = vpop.xlane.xlu0 %2458 }
 0x599   : > { %v3186_v13 = vadd.f32 %v3185_v42, %v9069_v48  ;;  %v2515_v63 = vmul.f32 %v2459_v46, %v8550_v26  ;;  %v6856_v10 = vpop.eup %6855  ;;  %v9249_v8 = vsub.f32 %v9000_v6, %v2206_v50  ;;  %v2969_v6 = vadd.f32 %v8826_v62, %v2933_v31 }
 0x59a   : > { %v2741_v61 = vmul.f32 %v6856_v10, %v2546_v9  ;;  %vm2747_vm0 = vweird.f32 %v6856_v10 }
 0x59b   : > { %v3299_v20 = vmul.f32 0.01, %v3186_v13  ;;  %3048 = vrot.lane.b32.xlu0 %v2968_v28, %s7068_s17  ;;  %vm3267_vm5 = vcmp.gt.f32.partialorder %v3186_v13, 0.0  ;;  %v2547_v59 = vadd.f32 1e-05, %v2515_v63  ;;  %v2270_v42 = vmul.f32 %v9249_v8, %v9249_v8  ;;  %vm2748_vm12 = vmor %vm2746_vm11, %vm2747_vm0 }
 0x59d   : > { %v3331_v58 = vsel %vm3267_vm5, %v3186_v13, %v3299_v20  ;;  %6857 = vrsqrt.f32 %v2547_v59  ;;  %v2742_v13 = vmul.f32 %v6856_v10, %v2741_v61  ;;  %vm2756_vm14 = vweird.f32 %v2547_v59 }
 0x59e   : > { %6479 = vmatmul.msk.f32.gmra.mxu0 %vm3356_vm1, %v3331_v58  ;;  %v2355_v58 = vpop.permute.xlu2 %2354 }
 0x59f   : > { %v2743_v25 = vmul.f32 0.5, %v2742_v13  ;;  %v2475_v45 = vsel %vm2072_vm7, %v2355_v58, 0.0 }
 0x5a1   : > { %v2744_v46 = vsub.f32 1.5, %v2743_v25 }
 0x5a3   : > { %v3188_v36 = vpop.f32.mrf.mxu3  ;;  %v6858_v28 = vpop.eup %6857  ;;  %v2745_v43 = vmul.f32 %v6856_v10, %v2744_v46 }
 0x5a4   : > { %v3189_v18 = vadd.f32 %v3188_v36, %v9069_v48  ;;  %v3039_v22 = vpop.permute.xlu1 %3038  ;;  %v2751_v20 = vmul.f32 %v6858_v28, %v2547_v59  ;;  %vm2757_vm13 = vweird.f32 %v6858_v28 }
 0x5a5   : > { %2467 = vadd.xlane.f32.xlu2 %v2466_v49  ;;  %6450 = vmatmul.msk.f32.gmra.mxu3 %vm2072_vm7, %v3039_v22  ;;  %v2749_v54 = vsel %vm2748_vm12, %v6856_v10, %v2745_v43  ;;  %vm2758_vm15 = vmor %vm2756_vm14, %vm2757_vm13 }
 0x5a6   : > { %v3300_v29 = vmul.f32 0.01, %v3189_v18  ;;  %vm3268_vm6 = vcmp.gt.f32.partialorder %v3189_v18, 0.0  ;;  %v2752_v36 = vmul.f32 %v6858_v28, %v2751_v20  ;;  %v2898_v22 = vmul.f32 %v2749_v54, %v8945_v15 }
 0x5a8   : > { %v3332_v37 = vsel %vm3268_vm6, %v3189_v18, %v3300_v29  ;;  %v2753_v51 = vmul.f32 0.5, %v2752_v36 }
 0x5a9   : > { %6480 = vmatmul.msk.f32.gmra.mxu0 %vm3356_vm1, %v3332_v37  ;;  %v2934_v37 = vmul.f32 %v8815_v14, %v2898_v22 }
 0x5aa   : > { %v2754_v18 = vsub.f32 1.5, %v2753_v51 }
 0x5ab   : > { %v3041_v0 = vpop.permute.xlu0 %3040  ;;  %v2970_v30 = vadd.f32 %v8826_v62, %v2934_v37 }
 0x5ac   : > { %v2755_v29 = vmul.f32 %v6858_v28, %v2754_v18 }
 0x5ad   : > { %6451 = vmatmul.msk.f32.gmra.mxu3 %vm2072_vm7, %v3041_v0 }
 0x5ae   : > { %v2759_v0 = vsel %vm2758_vm15, %v6858_v28, %v2755_v29 }
 0x5af   : > { %v2899_v9 = vmul.f32 %v2759_v0, %v8988_v35 }
 0x5b3   : > { %v2357_v56 = vpop.permute.xlu0 %2356 }
 0x5b4   : > { %v2478_v29 = vsel %vm2072_vm7, %v2357_v56, 0.0 }
 0x5b7   : > { %2473 = vadd.xlane.f32.xlu1 %v2472_v4  ;;  %v2935_v4 = vmul.f32 %v8815_v14, %v2899_v9 }
 0x5bd   : > { %2364 = vrot.lane.b32.xlu2 %v2270_v42, %s7068_s17 }
 0x5c5   : > { %2476 = vadd.xlane.f32.xlu0 %v2475_v45  ;;  %3050 = vrot.lane.b32.xlu2 %v2969_v6, %s7068_s17 }
 0x5cf   : > { %v2462_v49 = vpop.xlane.xlu1 %2461 }
 0x5d0   : > { %v2516_v21 = vmul.f32 %v2462_v49, %v8550_v26 }
 0x5d2   : > { %v2548_v27 = vadd.f32 1e-05, %v2516_v21 }
 0x5d4   : > { %6859 = vrsqrt.f32 %v2548_v27  ;;  %vm2766_vm6 = vweird.f32 %v2548_v27 }
 0x5d7   : > { %v2168_v63 = vpop.xlane.xlu2 %2167 }
 0x5d8   : > { %v2207_v15 = vmul.f32 %v8550_v26, %v2168_v63 }
 0x5d9   : > { %3052 = vrot.lane.b32.xlu0 %v2970_v30, %s7068_s17  ;;  %v3191_v41 = vpop.f32.mrf.mxu3 }
 0x5da   : > { %v6860_v50 = vpop.eup %6859  ;;  %v9267_v59 = vsub.f32 %v9059_v1, %v2207_v15  ;;  %v3192_v34 = vadd.f32 %v3191_v41, %v9069_v48  ;;  %v2971_v1 = vadd.f32 %v8826_v62, %v2935_v4 }
 0x5db   : > { %v2761_v10 = vmul.f32 %v6860_v50, %v2548_v27  ;;  %vm2767_vm5 = vweird.f32 %v6860_v50 }
 0x5dc   : > { %v2271_v35 = vmul.f32 %v9267_v59, %v9267_v59  ;;  %v3301_v44 = vmul.f32 0.01, %v3192_v34  ;;  %vm3269_vm4 = vcmp.gt.f32.partialorder %v3192_v34, 0.0  ;;  %vm2768_vm8 = vmor %vm2766_vm6, %vm2767_vm5 }
 0x5dd   : > { %v2762_v61 = vmul.f32 %v6860_v50, %v2761_v10 }
 0x5de   : > { %2366 = vrot.lane.b32.xlu1 %v2271_v35, %s7068_s17  ;;  %v2465_v55 = vpop.xlane.xlu0 %2464  ;;  %v3333_v42 = vsel %vm3269_vm4, %v3192_v34, %v3301_v44 }
 0x5df   : > { %v2763_v13 = vmul.f32 0.5, %v2762_v61  ;;  %v2517_v28 = vmul.f32 %v2465_v55, %v8550_v26  ;;  %6481 = vmatmul.msk.f32.gmra.mxu0 %vm3356_vm1, %v3333_v42  ;;  %v2359_v10 = vpop.permute.xlu2 %2358 }
 0x5e1   : > { %v2764_v31 = vsub.f32 1.5, %v2763_v13  ;;  %v2549_v25 = vadd.f32 1e-05, %v2517_v28  ;;  %3054 = vrot.lane.b32.xlu0 %v2971_v1, %s7068_s17 }
 0x5e3   : > { %v2765_v20 = vmul.f32 %v6860_v50, %v2764_v31  ;;  %6861 = vrsqrt.f32 %v2549_v25  ;;  %vm2776_vm0 = vweird.f32 %v2549_v25 }
 0x5e5   : > { %v2769_v58 = vsel %vm2768_vm8, %v6860_v50, %v2765_v20 }
 0x5e6   : > { %v2900_v6 = vmul.f32 %v2769_v58, %v9014_v12  ;;  %v2471_v50 = vpop.xlane.xlu0 %2470 }
 0x5e7   : > { %v3043_v46 = vpop.permute.xlu1 %3042  ;;  %v2519_v44 = vmul.f32 %v2471_v50, %v8550_v26 }
 0x5e8   : > { %6452 = vmatmul.msk.f32.gmra.mxu3 %vm2072_vm7, %v3043_v46  ;;  %v2936_v36 = vmul.f32 %v8815_v14, %v2900_v6 }
 0x5e9   : > { %v6862_v45 = vpop.eup %6861  ;;  %v3194_v43 = vpop.f32.mrf.mxu3  ;;  %v2551_v61 = vadd.f32 1e-05, %v2519_v44 }
 0x5ea   : > { %v2771_v51 = vmul.f32 %v6862_v45, %v2549_v25  ;;  %v3195_v54 = vadd.f32 %v3194_v43, %v9069_v48  ;;  %v2972_v18 = vadd.f32 %v8826_v62, %v2936_v36  ;;  %vm2777_vm10 = vweird.f32 %v6862_v45 }
 0x5eb   : > { %vm2778_vm11 = vmor %vm2776_vm0, %vm2777_vm10  ;;  %6863 = vrsqrt.f32 %v2551_v61  ;;  %vm2796_vm14 = vweird.f32 %v2551_v61 }
 0x5ec   : > { %v2772_v22 = vmul.f32 %v6862_v45, %v2771_v51  ;;  %v3302_v49 = vmul.f32 0.01, %v3195_v54  ;;  %3056 = vrot.lane.b32.xlu0 %v2972_v18, %s7068_s17  ;;  %vm3270_vm9 = vcmp.gt.f32.partialorder %v3195_v54, 0.0 }
 0x5ee   : > { %v2773_v12 = vmul.f32 0.5, %v2772_v22  ;;  %2479 = vadd.xlane.f32.xlu2 %v2478_v29  ;;  %v3334_v21 = vsel %vm3270_vm9, %v3195_v54, %v3302_v49 }
 0x5ef   : > { %v3045_v27 = vpop.permute.xlu1 %3044  ;;  %6482 = vmatmul.msk.f32.gmra.mxu0 %vm3356_vm1, %v3334_v21 }
 0x5f0   : > { %v2774_v37 = vsub.f32 1.5, %v2773_v12  ;;  %6453 = vmatmul.msk.f32.gmra.mxu3 %vm2072_vm7, %v3045_v27 }
 0x5f1   : > { %v6864_v42 = vpop.eup %6863 }
 0x5f2   : > { %v2775_v0 = vmul.f32 %v6862_v45, %v2774_v37  ;;  %v2791_v28 = vmul.f32 %v6864_v42, %v2551_v61  ;;  %vm2797_vm12 = vweird.f32 %v6864_v42 }
 0x5f3   : > { %vm2798_vm4 = vmor %vm2796_vm14, %vm2797_vm12 }
 0x5f4   : > { %v2779_v9 = vsel %vm2778_vm11, %v6862_v45, %v2775_v0  ;;  %v2792_v25 = vmul.f32 %v6864_v42, %v2791_v28 }
 0x5f5   : > { %v2901_v63 = vmul.f32 %v2779_v9, %v9064_v19  ;;  %v2481_v19 = vsel %vm2072_vm7, %v2359_v10, 0.0 }
 0x5f6   : > { %v2793_v58 = vmul.f32 0.5, %v2792_v25 }
 0x5f7   : > { %v2361_v30 = vpop.permute.xlu1 %2360  ;;  %v2937_v15 = vmul.f32 %v8815_v14, %v2901_v63 }
 0x5f8   : > { %v2484_v56 = vsel %vm2072_vm7, %v2361_v30, 0.0  ;;  %v2794_v45 = vsub.f32 1.5, %v2793_v58 }
 0x5f9   : > { %2485 = vadd.xlane.f32.xlu2 %v2484_v56  ;;  %v2973_v41 = vadd.f32 %v8826_v62, %v2937_v15 }
 0x5fa   : > { %v2795_v22 = vmul.f32 %v6864_v42, %v2794_v45 }
 0x5fb   : > { %3058 = vrot.lane.b32.xlu0 %v2973_v41, %s7068_s17 }
 0x5fc   : > { %v2799_v0 = vsel %vm2798_vm4, %v6864_v42, %v2795_v22 }
 0x5fd   : > { %v2903_v56 = vmul.f32 %v2799_v0, %v9117_v33 }
 0x5ff   : > { %v3047_v34 = vpop.permute.xlu1 %3046 }
 0x600   : > { %6454 = vmatmul.msk.f32.gmra.mxu3 %vm2072_vm7, %v3047_v34 }
 0x605   : > { %v2363_v4 = vpop.permute.xlu0 %2362 }
 0x606   : > { %v2487_v35 = vsel %vm2072_vm7, %v2363_v4, 0.0 }
 0x607   : > { %2488 = vadd.xlane.f32.xlu2 %v2487_v35  ;;  %v2939_v35 = vmul.f32 %v8815_v14, %v2903_v56 }
 0x608   : > { %2482 = vadd.xlane.f32.xlu1 %v2481_v19 }
 0x60d   : > { %v3049_v55 = vpop.permute.xlu0 %3048 }
 0x60e   : > { %6455 = vmatmul.msk.f32.gmra.mxu3 %vm2072_vm7, %v3049_v55  ;;  %v2975_v55 = vadd.f32 %v8826_v62, %v2939_v35 }
 0x618   : > { %v2468_v13 = vpop.xlane.xlu2 %2467 }
 0x619   : > { %v2518_v1 = vmul.f32 %v2468_v13, %v8550_v26 }
 0x61b   : > { %v2550_v31 = vadd.f32 1e-05, %v2518_v1 }
 0x61d   : > { %6865 = vrsqrt.f32 %v2550_v31  ;;  %vm2786_vm5 = vweird.f32 %v2550_v31 }
 0x620   : > { %v2365_v20 = vpop.permute.xlu2 %2364 }
 0x621   : > { %v2490_v6 = vsel %vm2072_vm7, %v2365_v20, 0.0 }
 0x622   : > { %2491 = vadd.xlane.f32.xlu2 %v2490_v6 }
 0x623   : > { %v6866_v46 = vpop.eup %6865 }
 0x624   : > { %v2781_v36 = vmul.f32 %v6866_v46, %v2550_v31  ;;  %vm2787_vm13 = vweird.f32 %v6866_v46 }
 0x625   : > { %vm2788_vm6 = vmor %vm2786_vm5, %vm2787_vm13 }
 0x626   : > { %v2782_v43 = vmul.f32 %v6866_v46, %v2781_v36 }
 0x628   : > { %v2783_v51 = vmul.f32 0.5, %v2782_v43  ;;  %v3051_v54 = vpop.permute.xlu2 %3050  ;;  %v3197_v18 = vpop.f32.mrf.mxu3 }
 0x629   : > { %v3198_v49 = vadd.f32 %v3197_v18, %v9069_v48  ;;  %6456 = vmatmul.msk.f32.gmra.mxu3 %vm2072_vm7, %v3051_v54 }
 0x62a   : > { %v2784_v29 = vsub.f32 1.5, %v2783_v51  ;;  %v2474_v12 = vpop.xlane.xlu1 %2473 }
 0x62b   : > { %v3303_v21 = vmul.f32 0.01, %v3198_v49  ;;  %v2520_v27 = vmul.f32 %v2474_v12, %v8550_v26  ;;  %vm3271_vm15 = vcmp.gt.f32.partialorder %v3198_v49, 0.0 }
 0x62c   : > { %v2785_v37 = vmul.f32 %v6866_v46, %v2784_v29 }
 0x62d   : > { %v2552_v9 = vadd.f32 1e-05, %v2520_v27  ;;  %v3335_v63 = vsel %vm3271_vm15, %v3198_v49, %v3303_v21 }
 0x62e   : > { %v2789_v30 = vsel %vm2788_vm6, %v6866_v46, %v2785_v37  ;;  %6483 = vmatmul.msk.f32.gmra.mxu0 %vm3356_vm1, %v3335_v63 }
 0x62f   : > { %v2902_v15 = vmul.f32 %v2789_v30, %v9085_v60  ;;  %6867 = vrsqrt.f32 %v2552_v9  ;;  %vm2806_vm10 = vweird.f32 %v2552_v9 }
 0x630   : > { %v3200_v41 = vpop.f32.mrf.mxu3 }
 0x631   : > { %v3201_v50 = vadd.f32 %v3200_v41, %v9069_v48  ;;  %v2938_v34 = vmul.f32 %v8815_v14, %v2902_v15  ;;  %v9330_v15 = vld [vmem:[%s11301_s1 + $0x6] ss:$0 sm:$0xff] }
 0x633   : > { %v3304_v10 = vmul.f32 0.01, %v3201_v50  ;;  %v2974_v4 = vadd.f32 %v8826_v62, %v2938_v34  ;;  %vm3272_vm8 = vcmp.gt.f32.partialorder %v3201_v50, 0.0 }
 0x635   : > { %v6868_v19 = vpop.eup %6867  ;;  %3060 = vrot.lane.b32.xlu0 %v2974_v4, %s7068_s17  ;;  %v3336_v44 = vsel %vm3272_vm8, %v3201_v50, %v3304_v10 }
 0x636   : > { %v2801_v61 = vmul.f32 %v6868_v19, %v2552_v9  ;;  %6484 = vmatmul.msk.f32.gmra.mxu0 %vm3356_vm1, %v3336_v44  ;;  %vm2807_vm9 = vweird.f32 %v6868_v19 }
 0x637   : > { %vm2808_vm0 = vmor %vm2806_vm10, %vm2807_vm9 }
 0x638   : > { %v2802_v60 = vmul.f32 %v6868_v19, %v2801_v61  ;;  %v2477_v33 = vpop.xlane.xlu0 %2476 }
 0x639   : > { %v2521_v48 = vmul.f32 %v2477_v33, %v8550_v26 }
 0x63a   : > { %v2803_v42 = vmul.f32 0.5, %v2802_v60  ;;  %3062 = vrot.lane.b32.xlu2 %v2975_v55, %s7068_s17 }
 0x63b   : > { %v2553_v28 = vadd.f32 1e-05, %v2521_v48 }
 0x63c   : > { %v2804_v13 = vsub.f32 1.5, %v2803_v42 }
 0x63d   : > { %6869 = vrsqrt.f32 %v2553_v28  ;;  %vm2816_vm12 = vweird.f32 %v2553_v28 }
 0x63e   : > { %v2805_v1 = vmul.f32 %v6868_v19, %v2804_v13 }
 0x640   : > { %v2809_v31 = vsel %vm2808_vm0, %v6868_v19, %v2805_v1 }
 0x641   : > { %v2904_v25 = vmul.f32 %v2809_v31, %v9130_v38 }
 0x643   : > { %v2940_v20 = vmul.f32 %v8815_v14, %v2904_v25  ;;  %v6870_v6 = vpop.eup %6869 }
 0x644   : > { %v2811_v46 = vmul.f32 %v6870_v6, %v2553_v28  ;;  %vm2817_vm11 = vweird.f32 %v6870_v6 }
 0x645   : > { %v2976_v58 = vadd.f32 %v8826_v62, %v2940_v20  ;;  %vm2818_vm13 = vmor %vm2816_vm12, %vm2817_vm11 }
 0x646   : > { %v2812_v45 = vmul.f32 %v6870_v6, %v2811_v46 }
 0x647   : > { %3064 = vrot.lane.b32.xlu0 %v2976_v58, %s7068_s17 }
 0x648   : > { %v2813_v54 = vmul.f32 0.5, %v2812_v45 }
 0x64a   : > { %v2814_v38 = vsub.f32 1.5, %v2813_v54 }
 0x64b   : > { %v3053_v36 = vpop.permute.xlu0 %3052 }
 0x64c   : > { %6457 = vmatmul.msk.f32.gmra.mxu3 %vm2072_vm7, %v3053_v36  ;;  %v2815_v22 = vmul.f32 %v6870_v6, %v2814_v38 }
 0x64e   : > { %v2819_v49 = vsel %vm2818_vm13, %v6870_v6, %v2815_v22 }
 0x64f   : > { %v2905_v12 = vmul.f32 %v2819_v49, %v9162_v57 }
 0x650   : > { %v2367_v43 = vpop.permute.xlu1 %2366 }
 0x651   : > { %v2493_v51 = vsel %vm2072_vm7, %v2367_v43, 0.0  ;;  %v2941_v0 = vmul.f32 %v8815_v14, %v2905_v12 }
 0x652   : > { %2494 = vadd.xlane.f32.xlu1 %v2493_v51 }
 0x653   : > { %v3055_v18 = vpop.permute.xlu0 %3054  ;;  %v2977_v9 = vadd.f32 %v8826_v62, %v2941_v0 }
 0x654   : > { %6458 = vmatmul.msk.f32.gmra.mxu3 %vm2072_vm7, %v3055_v18 }
 0x65e   : > { %v3057_v29 = vpop.permute.xlu0 %3056 }
 0x65f   : > { %6459 = vmatmul.msk.f32.gmra.mxu3 %vm2072_vm7, %v3057_v29 }
 0x661   : > { %v2480_v21 = vpop.xlane.xlu2 %2479 }
 0x662   : > { %v2522_v27 = vmul.f32 %v2480_v21, %v8550_v26 }
 0x664   : > { %v2554_v37 = vadd.f32 1e-05, %v2522_v27 }
 0x666   : > { %6871 = vrsqrt.f32 %v2554_v37  ;;  %vm2826_vm4 = vweird.f32 %v2554_v37 }
 0x66b   : > { %v3203_v63 = vpop.f32.mrf.mxu3  ;;  %3066 = vrot.lane.b32.xlu1 %v2977_v9, %s7068_s17 }
 0x66c   : > { %v6872_v30 = vpop.eup %6871  ;;  %v3204_v57 = vadd.f32 %v9330_v15, %v3203_v63  ;;  %v2486_v56 = vpop.xlane.xlu2 %2485 }
 0x66d   : > { %v2821_v41 = vmul.f32 %v6872_v30, %v2554_v37  ;;  %v2524_v50 = vmul.f32 %v2486_v56, %v8550_v26  ;;  %v3059_v34 = vpop.permute.xlu0 %3058  ;;  %vm2827_vm15 = vweird.f32 %v6872_v30 }
 0x66e   : > { %v3305_v10 = vmul.f32 0.01, %v3204_v57  ;;  %6460 = vmatmul.msk.f32.gmra.mxu3 %vm2072_vm7, %v3059_v34  ;;  %vm3273_vm14 = vcmp.gt.f32.partialorder %v3204_v57, 0.0  ;;  %vm2828_vm5 = vmor %vm2826_vm4, %vm2827_vm15 }
 0x66f   : > { %v2822_v4 = vmul.f32 %v6872_v30, %v2821_v41  ;;  %v2556_v35 = vadd.f32 1e-05, %v2524_v50 }
 0x670   : > { %v3337_v19 = vsel %vm3273_vm14, %v3204_v57, %v3305_v10 }
 0x671   : > { %v2823_v44 = vmul.f32 0.5, %v2822_v4  ;;  %6873 = vrsqrt.f32 %v2556_v35  ;;  %6485 = vmatmul.msk.f32.gmra.mxu0 %vm3356_vm1, %v3337_v19  ;;  %vm2846_vm9 = vweird.f32 %v2556_v35 }
 0x673   : > { %v2824_v61 = vsub.f32 1.5, %v2823_v44  ;;  %v3206_v60 = vpop.f32.mrf.mxu3 }
 0x674   : > { %v3207_v33 = vadd.f32 %v9330_v15, %v3206_v60 }
 0x675   : > { %v2825_v55 = vmul.f32 %v6872_v30, %v2824_v61 }
 0x676   : > { %v3306_v48 = vmul.f32 0.01, %v3207_v33  ;;  %vm3274_vm6 = vcmp.gt.f32.partialorder %v3207_v33, 0.0 }
 0x677   : > { %v6874_v42 = vpop.eup %6873  ;;  %v2829_v13 = vsel %vm2828_vm5, %v6872_v30, %v2825_v55 }
 0x678   : > { %v2906_v28 = vmul.f32 %v2829_v13, %v9170_v7  ;;  %v2841_v1 = vmul.f32 %v6874_v42, %v2556_v35  ;;  %v3338_v31 = vsel %vm3274_vm6, %v3207_v33, %v3306_v48  ;;  %vm2847_vm8 = vweird.f32 %v6874_v42 }
 0x679   : > { %6486 = vmatmul.msk.f32.gmra.mxu0 %vm3356_vm1, %v3338_v31  ;;  %vm2848_vm10 = vmor %vm2846_vm9, %vm2847_vm8 }
 0x67a   : > { %v2842_v25 = vmul.f32 %v6874_v42, %v2841_v1  ;;  %v2489_v20 = vpop.xlane.xlu2 %2488  ;;  %v2942_v58 = vmul.f32 %v8815_v14, %v2906_v28 }
 0x67b   : > { %v2525_v6 = vmul.f32 %v2489_v20, %v8550_v26  ;;  %v2483_v46 = vpop.xlane.xlu1 %2482 }
 0x67c   : > { %v2843_v36 = vmul.f32 0.5, %v2842_v25  ;;  %v2523_v45 = vmul.f32 %v2483_v46, %v8550_v26  ;;  %v2978_v43 = vadd.f32 %v8826_v62, %v2942_v58 }
 0x67d   : > { %v2557_v51 = vadd.f32 1e-05, %v2525_v6 }
 0x67e   : > { %v2844_v54 = vsub.f32 1.5, %v2843_v36  ;;  %v2555_v7 = vadd.f32 1e-05, %v2523_v45  ;;  %3068 = vrot.lane.b32.xlu0 %v2978_v43, %s7068_s17 }
 0x67f   : > { %6875 = vrsqrt.f32 %v2557_v51  ;;  %vm2856_vm15 = vweird.f32 %v2557_v51 }
 0x680   : > { %v2845_v18 = vmul.f32 %v6874_v42, %v2844_v54  ;;  %6877 = vrsqrt.f32 %v2555_v7  ;;  %vm2836_vm13 = vweird.f32 %v2555_v7 }
 0x682   : > { %v2849_v38 = vsel %vm2848_vm10, %v6874_v42, %v2845_v18 }
 0x683   : > { %v2908_v22 = vmul.f32 %v2849_v38, %v9214_v24  ;;  %v3209_v49 = vpop.f32.mrf.mxu3 }
 0x684   : > { %v3210_v29 = vadd.f32 %v9330_v15, %v3209_v49 }
 0x685   : > { %v6876_v12 = vpop.eup %6875  ;;  %v2944_v21 = vmul.f32 %v8815_v14, %v2908_v22 }
 0x686   : > { %v6878_v27 = vpop.eup %6877  ;;  %v2851_v37 = vmul.f32 %v6876_v12, %v2557_v51  ;;  %v3307_v0 = vmul.f32 0.01, %v3210_v29  ;;  %vm3275_vm0 = vcmp.gt.f32.partialorder %v3210_v29, 0.0  ;;  %vm2857_vm12 = vweird.f32 %v6876_v12 }
 0x687   : > { %v2831_v9 = vmul.f32 %v6878_v27, %v2555_v7  ;;  %v2980_v63 = vadd.f32 %v8826_v62, %v2944_v21  ;;  %vm2837_vm11 = vweird.f32 %v6878_v27  ;;  %vm2858_vm4 = vmor %vm2856_vm15, %vm2857_vm12 }
 0x688   : > { %v2852_v30 = vmul.f32 %v6876_v12, %v2851_v37  ;;  %v3339_v57 = vsel %vm3275_vm0, %v3210_v29, %v3307_v0  ;;  %vm2838_vm14 = vmor %vm2836_vm13, %vm2837_vm11  ;;  %vm3570_vm0 = vcmask 408576   ;;  %vm3667_vm11 = vcmask 162816  }
 0x689   : > { %v2832_v56 = vmul.f32 %v6878_v27, %v2831_v9  ;;  %6487 = vmatmul.msk.f32.gmra.mxu0 %vm3356_vm1, %v3339_v57  ;;  %3072 = vrot.lane.b32.xlu2 %v2980_v63, %s7068_s17 }
 0x68a   : > { %v2853_v24 = vmul.f32 0.5, %v2852_v30 }
 0x68b   : > { %v2833_v41 = vmul.f32 0.5, %v2832_v56 }
 0x68c   : > { %v2854_v50 = vsub.f32 1.5, %v2853_v24  ;;  %v9388_v24 = vld [vmem:[%s11301_s1 + $0x7] ss:$0 sm:$0xff] }
 0x68d   : > { %v2834_v34 = vsub.f32 1.5, %v2833_v41 }
 0x68e   : > { %v2855_v10 = vmul.f32 %v6876_v12, %v2854_v50 }
 0x68f   : > { %v2835_v4 = vmul.f32 %v6878_v27, %v2834_v34 }
 0x690   : > { %v2859_v60 = vsel %vm2858_vm4, %v6876_v12, %v2855_v10  ;;  %v3474_v12 = vpop.f32.mrf.mxu0 }
 0x691   : > { %v2839_v35 = vsel %vm2838_vm14, %v6878_v27, %v2835_v4  ;;  %v3212_v19 = vpop.f32.mrf.mxu3  ;;  %v2909_v42 = vmul.f32 %v2859_v60, %v9225_v23  ;;  %v9373_v27 = vld [vmem:[%s11301_s1 + $0x5] ss:$0 sm:$0xff] }
 0x692   : > { %v2907_v44 = vmul.f32 %v2839_v35, %v9204_v39  ;;  %v3213_v61 = vadd.f32 %v9330_v15, %v3212_v19  ;;  %v1736_v37 = vadd.f32 %v9373_v27, %v8577_v2 }
 0x693   : > { %v2945_v39 = vmul.f32 %v8815_v14, %v2909_v42  ;;  %v3580_v42 = vsel %vm3570_vm0, %v8605_v16, 0.0 }
 0x694   : > { %v3308_v33 = vmul.f32 0.01, %v3213_v61  ;;  %vm3276_vm5 = vcmp.gt.f32.partialorder %v3213_v61, 0.0  ;;  %v2943_v55 = vmul.f32 %v8815_v14, %v2907_v44  ;;  %v9378_v0 = vadd.f32 %v8579_v52, %v1736_v37 }
 0x695   : > { %v2492_v48 = vpop.xlane.xlu2 %2491  ;;  %v2981_v25 = vadd.f32 %v8826_v62, %v2945_v39 }
 0x696   : > { %v2526_v13 = vmul.f32 %v2492_v48, %v8550_v26  ;;  %v3340_v28 = vsel %vm3276_vm5, %v3213_v61, %v3308_v33  ;;  %v2979_v1 = vadd.f32 %v8826_v62, %v2943_v55  ;;  %v3571_v56 = vsel %vm3570_vm0, %v9378_v0, 0.0 }
 0x697   : > { %6488 = vmatmul.msk.f32.gmra.mxu0 %vm3356_vm1, %v3340_v28  ;;  %v9398_v61 = vadd.f32 %v3474_v12, %v9388_v24 }
 0x698   : > { %v2558_v31 = vadd.f32 1e-05, %v2526_v13  ;;  %3070 = vrot.lane.b32.xlu0 %v2979_v1, %s7068_s17 }
 0x69a   : > { %6879 = vrsqrt.f32 %v2558_v31  ;;  %vm2866_vm8 = vweird.f32 %v2558_v31 }
 0x69d   : > { %v3063_v38 = vpop.permute.xlu2 %3062 }
 0x6a0   : > { %v6880_v20 = vpop.eup %6879  ;;  %3074 = vrot.lane.b32.xlu0 %v2981_v25, %s7068_s17 }
 0x6a1   : > { %v2861_v58 = vmul.f32 %v6880_v20, %v2558_v31  ;;  %vm2867_vm6 = vweird.f32 %v6880_v20  ;;  %v3668_v31 = vsel %vm3667_vm11, %v9398_v61, 0.0 }
 0x6a2   : > { %vm2868_vm9 = vmor %vm2866_vm8, %vm2867_vm6 }
 0x6a3   : > { %v2862_v23 = vmul.f32 %v6880_v20, %v2861_v58 }
 0x6a5   : > { %v2863_v6 = vmul.f32 0.5, %v2862_v23 }
 0x6a7   : > { %v2864_v46 = vsub.f32 1.5, %v2863_v6  ;;  %v3061_v36 = vpop.permute.xlu0 %3060 }
 0x6a8   : > { %6461 = vmatmul.msk.f32.gmra.mxu3 %vm2072_vm7, %v3061_v36 }
 0x6a9   : > { %v2865_v45 = vmul.f32 %v6880_v20, %v2864_v46 }
 0x6ab   : > { %v2869_v43 = vsel %vm2868_vm9, %v6880_v20, %v2865_v45  ;;  %v3577_v45 = vsel %vm3570_vm0, %v8599_v3, 0.0 }
 0x6ac   : > { %v2910_v51 = vmul.f32 %v2869_v43, %v9249_v8  ;;  %v3215_v54 = vpop.f32.mrf.mxu3  ;;  %v3477_v8 = vpop.f32.mrf.mxu0 }
 0x6ad   : > { %v3216_v7 = vadd.f32 %v9330_v15, %v3215_v54  ;;  %v9391_v2 = vadd.f32 %v3477_v8, %v9388_v24 }
 0x6ae   : > { %v2946_v18 = vmul.f32 %v8815_v14, %v2910_v51 }
 0x6af   : > { %v3309_v22 = vmul.f32 0.01, %v3216_v7  ;;  %vm3277_vm10 = vcmp.gt.f32.partialorder %v3216_v7, 0.0  ;;  %v3671_v10 = vsel %vm3667_vm11, %v9391_v2, 0.0 }
 0x6b0   : > { %6462 = vmatmul.msk.f32.gmra.mxu3 %vm2072_vm7, %v3063_v38  ;;  %v2982_v49 = vadd.f32 %v8826_v62, %v2946_v18 }
 0x6b1   : > { %v3341_v29 = vsel %vm3277_vm10, %v3216_v7, %v3309_v22 }
 0x6b2   : > { %6489 = vmatmul.msk.f32.gmra.mxu0 %vm3356_vm1, %v3341_v29  ;;  %3076 = vrot.lane.b32.xlu1 %v2982_v49, %s7068_s17  ;;  %v3586_v49 = vsel %vm3570_vm0, %v8619_v11, 0.0 }
 0x6b4   : > { %v9381_v30 = vpop.f32.mrf.mxu0 }
 0x6b9   : > { %v3065_v21 = vpop.permute.xlu0 %3064 }
 0x6ba   : > { %6463 = vmatmul.msk.f32.gmra.mxu3 %vm2072_vm7, %v3065_v21 }
 0x6c5   : > { %v2495_v9 = vpop.xlane.xlu1 %2494 }
 0x6c6   : > { %v2527_v63 = vmul.f32 %v2495_v9, %v8550_v26  ;;  %v3483_v26 = vpop.f32.mrf.mxu0  ;;  %v3592_v9 = vsel %vm3570_vm0, %v8650_v17, 0.0 }
 0x6c7   : > { %v9420_v51 = vadd.f32 %v3483_v26, %v9388_v24 }
 0x6c8   : > { %v2559_v57 = vadd.f32 1e-05, %v2527_v63 }
 0x6c9   : > { %v3677_v54 = vsel %vm3667_vm11, %v9420_v51, 0.0 }
 0x6ca   : > { %6881 = vrsqrt.f32 %v2559_v57  ;;  %3572 = vadd.xlane.f32.xlu0 %v3571_v56  ;;  %vm2876_vm14 = vweird.f32 %v2559_v57  ;;  %v9444_v56 = vadd.f32 %v9381_v30, %v9388_v24 }
 0x6ce   : > { %v3486_v13 = vpop.f32.mrf.mxu0 }
 0x6cf   : > { %v3218_v52 = vpop.f32.mrf.mxu3  ;;  %v9407_v20 = vadd.f32 %v3486_v13, %v9388_v24 }
 0x6d0   : > { %v6882_v41 = vpop.eup %6881  ;;  %v3219_v50 = vadd.f32 %v9330_v15, %v3218_v52 }
 0x6d1   : > { %v2871_v34 = vmul.f32 %v6882_v41, %v2559_v57  ;;  %vm2877_vm13 = vweird.f32 %v6882_v41  ;;  %v3680_v46 = vsel %vm3667_vm11, %v9407_v20, 0.0  ;;  %v3574_v57 = vsel %vm3570_vm0, %v8592_v53, 0.0 }
 0x6d2   : > { %v3310_v4 = vmul.f32 0.01, %v3219_v50  ;;  %3672 = vadd.xlane.f32.xlu0 %v3671_v10  ;;  %vm3278_vm12 = vcmp.gt.f32.partialorder %v3219_v50, 0.0  ;;  %vm2878_vm15 = vmor %vm2876_vm14, %vm2877_vm13 }
 0x6d3   : > { %v2872_v35 = vmul.f32 %v6882_v41, %v2871_v34 }
 0x6d4   : > { %v3342_v19 = vsel %vm3278_vm12, %v3219_v50, %v3310_v4  ;;  %v3583_v50 = vsel %vm3570_vm0, %v8612_v5, 0.0 }
 0x6d5   : > { %v2873_v44 = vmul.f32 0.5, %v2872_v35  ;;  %6490 = vmatmul.msk.f32.gmra.mxu0 %vm3356_vm1, %v3342_v19 }
 0x6d6   : > { %v3489_v7 = vpop.f32.mrf.mxu0 }
 0x6d7   : > { %v2874_v60 = vsub.f32 1.5, %v2873_v44  ;;  %v3221_v33 = vpop.f32.mrf.mxu3  ;;  %v9453_v34 = vadd.f32 %v3489_v7, %v9388_v24 }
 0x6d8   : > { %v3222_v55 = vadd.f32 %v9330_v15, %v3221_v33 }
 0x6d9   : > { %v2875_v48 = vmul.f32 %v6882_v41, %v2874_v60  ;;  %v3683_v30 = vsel %vm3667_vm11, %v9453_v34, 0.0 }
 0x6da   : > { %v3311_v28 = vmul.f32 0.01, %v3222_v55  ;;  %3581 = vadd.xlane.f32.xlu0 %v3580_v42  ;;  %vm3279_vm4 = vcmp.gt.f32.partialorder %v3222_v55, 0.0 }
 0x6db   : > { %v2879_v1 = vsel %vm2878_vm15, %v6882_v41, %v2875_v48  ;;  %v3674_v41 = vsel %vm3667_vm11, %v9444_v56, 0.0 }
 0x6dc   : > { %v2911_v39 = vmul.f32 %v2879_v1, %v9267_v59  ;;  %3669 = vadd.xlane.f32.xlu1 %v3668_v31  ;;  %v3343_v25 = vsel %vm3279_vm4, %v3222_v55, %v3311_v28 }
 0x6dd   : > { %v3067_v58 = vpop.permute.xlu1 %3066  ;;  %6491 = vmatmul.msk.f32.gmra.mxu0 %vm3356_vm1, %v3343_v25 }
 0x6de   : > { %6464 = vmatmul.msk.f32.gmra.mxu3 %vm2072_vm7, %v3067_v58  ;;  %v2947_v23 = vmul.f32 %v8815_v14, %v2911_v39  ;;  %v3492_v29 = vpop.f32.mrf.mxu0 }
 0x6df   : > { %v9432_v8 = vadd.f32 %v3492_v29, %v9388_v24 }
 0x6e0   : > { %v2983_v6 = vadd.f32 %v8826_v62, %v2947_v23  ;;  %v3589_v62 = vsel %vm3570_vm0, %v8632_v47, 0.0 }
 0x6e1   : > { %v3686_v37 = vsel %vm3667_vm11, %v9432_v8, 0.0 }
 0x6e2   : > { %3078 = vrot.lane.b32.xlu2 %v2983_v6, %s7068_s17  ;;  %3681 = vadd.xlane.f32.xlu0 %v3680_v46  ;;  %v3224_v59 = vpop.f32.mrf.mxu3  ;;  %s324_s17 = sand.u32 1, %s7057_s10  }
 0x6e3   : > { %v3225_v36 = vadd.f32 %v9330_v15, %v3224_v59  ;;  %v3073_v52 = vpop.permute.xlu2 %3072  ;;  %s6336_s26 = sshll.u32 %s324_s17, 2  ;;  %s6257_s22 = scalar_lea.sflag [#allocation3], %s324_s17 }
 0x6e4   : > { %3578 = vadd.xlane.f32.xlu1 %v3577_v45  ;;  %s326_s25 = scalar_lea.vmem [#allocation2], %s6336_s26 }
 0x6e5   : > { %v3312_v43 = vmul.f32 0.01, %v3225_v36  ;;  %vm3280_vm5 = vcmp.gt.f32.partialorder %v3225_v36, 0.0  ;;  %s6270_s16 = sshll.u32 %s326_s25, 4  ;;  %s6271_s16 = int_to_ptr.vmem [resolvable:$true] %s6270_s16 }
 0x6e7   : > { %v3344_v14 = vsel %vm3280_vm5, %v3225_v36, %v3312_v43 }
 0x6e8   : > { %6492 = vmatmul.msk.f32.gmra.mxu0 %vm3356_vm1, %v3344_v14  ;;  %v3495_v14 = vpop.f32.mrf.mxu0 }
 0x6ea   : > { %3590 = vadd.xlane.f32.xlu0 %v3589_v62  ;;  %v9478_v62 = vadd.f32 %v3495_v14, %v9388_v24 }
 0x6ec   : > { %3678 = vadd.xlane.f32.xlu1 %v3677_v54  ;;  %v3689_v54 = vsel %vm3667_vm11, %v9478_v62, 0.0 }
 0x6f0   : > { %v3069_v18 = vpop.permute.xlu0 %3068 }
 0x6f1   : > { %v3227_v38 = vpop.f32.mrf.mxu3  ;;  %6465 = vmatmul.msk.f32.gmra.mxu3 %vm2072_vm7, %v3069_v18 }
 0x6f2   : > { %v3228_v22 = vadd.f32 %v9330_v15, %v3227_v38 }
 0x6f4   : > { %v3313_v12 = vmul.f32 0.01, %v3228_v22  ;;  %3587 = vadd.xlane.f32.xlu1 %v3586_v49  ;;  %vm3281_vm6 = vcmp.gt.f32.partialorder %v3228_v22, 0.0 }
 0x6f6   : > { %v3345_v21 = vsel %vm3281_vm6, %v3228_v22, %v3313_v12 }
 0x6f7   : > { %6493 = vmatmul.msk.f32.gmra.mxu0 %vm3356_vm1, %v3345_v21 }
 0x6fc   : > { %3687 = vadd.xlane.f32.xlu1 %v3686_v37 }
 0x704   : > { %3593 = vadd.xlane.f32.xlu1 %v3592_v9 }
 0x70a   : > { %v3071_v63 = vpop.permute.xlu0 %3070 }
 0x70b   : > { %3575 = vadd.xlane.f32.xlu2 %v3574_v57  ;;  %6466 = vmatmul.msk.f32.gmra.mxu3 %vm2072_vm7, %v3071_v63 }
 0x712   : > { %v3075_v26 = vpop.permute.xlu0 %3074 }
 0x713   : > { %3675 = vadd.xlane.f32.xlu2 %v3674_v41  ;;  %6467 = vmatmul.msk.f32.gmra.mxu3 %vm2072_vm7, %v3073_v52 }
 0x71b   : > { %3584 = vadd.xlane.f32.xlu2 %v3583_v50  ;;  %6468 = vmatmul.msk.f32.gmra.mxu3 %vm2072_vm7, %v3075_v26 }
 0x723   : > { %3684 = vadd.xlane.f32.xlu2 %v3683_v30 }
 0x724   : > { %v3077_v10 = vpop.permute.xlu1 %3076 }
 0x725   : > { %6469 = vmatmul.msk.f32.gmra.mxu3 %vm2072_vm7, %v3077_v10 }
 0x72b   : > { %v3230_v4 = vpop.f32.mrf.mxu3 }
 0x72c   : > { %v3231_v35 = vadd.f32 %v9330_v15, %v3230_v4 }
 0x72e   : > { %v3314_v19 = vmul.f32 0.01, %v3231_v35  ;;  %vm3282_vm8 = vcmp.gt.f32.partialorder %v3231_v35, 0.0 }
 0x730   : > { %v3346_v44 = vsel %vm3282_vm8, %v3231_v35, %v3314_v19 }
 0x731   : > { %6494 = vmatmul.msk.f32.gmra.mxu0 %vm3356_vm1, %v3346_v44 }
 0x733   : > { %v3233_v60 = vpop.f32.mrf.mxu3 }
 0x734   : > { %v3234_v33 = vadd.f32 %v9330_v15, %v3233_v60 }
 0x736   : > { %v3315_v55 = vmul.f32 0.01, %v3234_v33  ;;  %vm3283_vm9 = vcmp.gt.f32.partialorder %v3234_v33, 0.0 }
 0x738   : > { %v3347_v48 = vsel %vm3283_vm9, %v3234_v33, %v3315_v55 }
 0x739   : > { %6495 = vmatmul.msk.f32.gmra.mxu0 %vm3356_vm1, %v3347_v48  ;;  %v3498_v48 = vpop.f32.mrf.mxu0 }
 0x73c   : > { %v3079_v42 = vpop.permute.xlu2 %3078 }
 0x73d   : > { %v3236_v13 = vpop.f32.mrf.mxu3  ;;  %6470 = vmatmul.msk.f32.gmra.mxu3 %vm2072_vm7, %v3079_v42  ;;  %v3573_v39 = vpop.xlane.xlu0 %3572 }
 0x73e   : > { %v3237_v28 = vadd.f32 %v9330_v15, %v3236_v13 }
 0x740   : > { %v3316_v1 = vmul.f32 0.01, %v3237_v28  ;;  %vm3284_vm10 = vcmp.gt.f32.partialorder %v3237_v28, 0.0 }
 0x742   : > { %v3348_v31 = vsel %vm3284_vm10, %v3237_v28, %v3316_v1  ;;  %v9511_v1 = vadd.f32 %v3498_v48, %v9388_v24 }
 0x743   : > { %6496 = vmatmul.msk.f32.gmra.mxu0 %vm3356_vm1, %v3348_v31 }
 0x74f   : > { %v3670_v25 = vpop.xlane.xlu1 %3669 }
 0x750   : > { %v3764_v58 = vadd.f32 %v3670_v25, %v3573_v39 }
 0x752   : > { %v3796_v23 = vmul.f32 0.014285714, %v3764_v58 }
 0x754   : > { %v9466_v6 = vsub.f32 %v9378_v0, %v3796_v23  ;;  %v9469_v46 = vsub.f32 %v9398_v61, %v3796_v23  ;;  %v1759_v0 = vpop.f32.mrf.mxu2 }
 0x755   : > { %v1760_v61 = vadd.f32 %v9373_v27, %v1759_v0 }
 0x756   : > { %v4020_v59 = vmul.f32 %v9469_v46, %v9469_v46  ;;  %v3892_v36 = vmul.f32 %v9466_v6, %v9466_v6 }
 0x757   : > { %v9485_v38 = vadd.f32 %v8835_v32, %v1760_v61  ;;  %v3579_v63 = vpop.xlane.xlu1 %3578  ;;  %v3673_v32 = vpop.xlane.xlu0 %3672 }
 0x758   : > { %v4052_v45 = vsel %vm3667_vm11, %v4020_v59, 0.0  ;;  %v3924_v43 = vsel %vm3570_vm0, %v3892_v36, 0.0  ;;  %v3501_v36 = vpop.f32.mrf.mxu0 }
 0x759   : > { %4053 = vadd.xlane.f32.xlu0 %v4052_v45  ;;  %3925 = vadd.xlane.f32.xlu2 %v3924_v43  ;;  %v3595_v29 = vsel %vm3570_vm0, %v9485_v38, 0.0  ;;  %v3692_v45 = vsel %vm3667_vm11, %v9511_v1, 0.0  ;;  %v9527_v0 = vadd.f32 %v3501_v36, %v9388_v24 }
 0x75c   : > { %v1762_v44 = vpop.f32.mrf.mxu2 }
 0x75d   : > { %v1763_v59 = vadd.f32 %v9373_v27, %v1762_v44 }
 0x75f   : > { %v3679_v30 = vpop.xlane.xlu1 %3678  ;;  %v3582_v35 = vpop.xlane.xlu0 %3581 }
 0x760   : > { %v3767_v60 = vadd.f32 %v3679_v30, %v3582_v35  ;;  %v11417_v30 = vld [vmem:[#allocation7_spill] sm:$0xff] }
 0x761   : > { %v3239_v7 = vpop.f32.mrf.mxu3  ;;  %3690 = vadd.xlane.f32.xlu2 %v3689_v54 }
 0x762   : > { %v3240_v18 = vadd.f32 %v9330_v15, %v3239_v7  ;;  %v3799_v42 = vmul.f32 0.014285714, %v3767_v60  ;;  %v11416_v7 = vld [vmem:[#allocation6_spill] sm:$0xff] }
 0x764   : > { %v3317_v22 = vmul.f32 0.01, %v3240_v18  ;;  %vm3285_vm7 = vcmp.gt.f32.partialorder %v3240_v18, 0.0  ;;  %v9518_v58 = vsub.f32 %v8605_v16, %v3799_v42  ;;  %v1765_v43 = vpop.f32.mrf.mxu2 }
 0x766   : > { %v3349_v49 = vsel %vm3285_vm7, %v3240_v18, %v3317_v22  ;;  %v3895_v54 = vmul.f32 %v9518_v58, %v9518_v58  ;;  %v9532_v18 = vadd.f32 %v11416_v7, %v1763_v59  ;;  %v1766_v22 = vadd.f32 %v9373_v27, %v1765_v43 }
 0x767   : > { %6497 = vmatmul.msk.f32.gmra.mxu0 %vm3356_vm1, %v3349_v49  ;;  %v3682_v49 = vpop.xlane.xlu0 %3681 }
 0x769   : > { %3596 = vadd.xlane.f32.xlu2 %v3595_v29 }
 0x76f   : > { %v3591_v43 = vpop.xlane.xlu0 %3590 }
 0x774   : > { %v3242_v12 = vpop.f32.mrf.mxu3 }
 0x775   : > { %v3243_v21 = vadd.f32 %v9330_v15, %v3242_v12 }
 0x777   : > { %v3318_v37 = vmul.f32 0.01, %v3243_v21  ;;  %vm3286_vm12 = vcmp.gt.f32.partialorder %v3243_v21, 0.0 }
 0x779   : > { %v3350_v9 = vsel %vm3286_vm12, %v3243_v21, %v3318_v37  ;;  %v3695_v37 = vsel %vm3667_vm11, %v9527_v0, 0.0 }
 0x77a   : > { %6498 = vmatmul.msk.f32.gmra.mxu0 %vm3356_vm1, %v3350_v9  ;;  %v3933_v9 = vsel %vm3570_vm0, %v3895_v54, 0.0 }
 0x77e   : > { %v3576_v57 = vpop.xlane.xlu2 %3575 }
 0x77f   : > { %v3765_v52 = vadd.f32 %v3673_v32, %v3576_v57  ;;  %v9541_v32 = vsub.f32 %v9420_v51, %v3799_v42  ;;  %v3598_v57 = vsel %vm3570_vm0, %v9532_v18, 0.0 }
 0x781   : > { %v3797_v41 = vmul.f32 0.014285714, %v3765_v52  ;;  %v3588_v52 = vpop.xlane.xlu1 %3587  ;;  %v4023_v60 = vmul.f32 %v9541_v32, %v9541_v32 }
 0x783   : > { %v9493_v26 = vsub.f32 %v8592_v53, %v3797_v41  ;;  %v9496_v50 = vsub.f32 %v9391_v2, %v3797_v41 }
 0x785   : > { %v4021_v10 = vmul.f32 %v9496_v50, %v9496_v50  ;;  %v3893_v4 = vmul.f32 %v9493_v26, %v9493_v26 }
 0x786   : > { %v3676_v19 = vpop.xlane.xlu2 %3675 }
 0x787   : > { %v3766_v33 = vadd.f32 %v3676_v19, %v3579_v63  ;;  %v4055_v55 = vsel %vm3667_vm11, %v4021_v10, 0.0  ;;  %v3927_v53 = vsel %vm3570_vm0, %v3893_v4, 0.0  ;;  %v3504_v63 = vpop.f32.mrf.mxu0  ;;  %v9546_v10 = vadd.f32 %v11417_v30, %v1766_v22  ;;  %v1768_v4 = vpop.f32.mrf.mxu2 }
 0x788   : > { %4056 = vadd.xlane.f32.xlu1 %v4055_v55  ;;  %3928 = vadd.xlane.f32.xlu0 %v3927_v53  ;;  %v9549_v35 = vadd.f32 %v3504_v63, %v9388_v24 }
 0x789   : > { %v3798_v2 = vmul.f32 0.014285714, %v3766_v33  ;;  %v1769_v33 = vadd.f32 %v9373_v27, %v1768_v4  ;;  %v3601_v53 = vsel %vm3570_vm0, %v9546_v10, 0.0 }
 0x78b   : > { %v9505_v13 = vsub.f32 %v8599_v3, %v3798_v2  ;;  %v9508_v28 = vsub.f32 %v9444_v56, %v3798_v2 }
 0x78d   : > { %v4022_v31 = vmul.f32 %v9508_v28, %v9508_v28  ;;  %v3894_v39 = vmul.f32 %v9505_v13, %v9505_v13 }
 0x78e   : > { %v3245_v25 = vpop.f32.mrf.mxu3  ;;  %v3585_v16 = vpop.xlane.xlu2 %3584 }
 0x78f   : > { %v3246_v23 = vadd.f32 %v9330_v15, %v3245_v25  ;;  %v4058_v3 = vsel %vm3667_vm11, %v4022_v31, 0.0  ;;  %v3930_v56 = vsel %vm3570_vm0, %v3894_v39, 0.0  ;;  %v3768_v12 = vadd.f32 %v3682_v49, %v3585_v16  ;;  %v3507_v16 = vpop.f32.mrf.mxu0 }
 0x790   : > { %4059 = vadd.xlane.f32.xlu2 %v4058_v3  ;;  %3931 = vadd.xlane.f32.xlu1 %v3930_v56  ;;  %v3698_v31 = vsel %vm3667_vm11, %v9549_v35, 0.0  ;;  %v4061_v25 = vsel %vm3667_vm11, %v4023_v60, 0.0  ;;  %v11418_v3 = vld [vmem:[#allocation5_spill] sm:$0xff]  ;;  %v9591_v63 = vadd.f32 %v3507_v16, %v9388_v24 }
 0x791   : > { %v3319_v14 = vmul.f32 0.01, %v3246_v23  ;;  %3693 = vadd.xlane.f32.xlu0 %v3692_v45  ;;  %vm3287_vm13 = vcmp.gt.f32.partialorder %v3246_v23, 0.0  ;;  %v3800_v19 = vmul.f32 0.014285714, %v3768_v12  ;;  %v9568_v56 = vadd.f32 %v11418_v3, %v1769_v33  ;;  %v11419_v33 = vld [vmem:[#allocation8_spill] sm:$0xff] }
 0x793   : > { %v3351_v61 = vsel %vm3287_vm13, %v3246_v23, %v3319_v14  ;;  %v9558_v48 = vsub.f32 %v9407_v20, %v3800_v19  ;;  %v9564_v39 = vsub.f32 %v8612_v5, %v3800_v19  ;;  %v3688_v20 = vpop.xlane.xlu1 %3687  ;;  %v1771_v14 = vpop.f32.mrf.mxu2  ;;  %v3604_v22 = vsel %vm3570_vm0, %v9568_v56, 0.0 }
 0x794   : > { %6499 = vmatmul.msk.f32.gmra.mxu0 %vm3356_vm1, %v3351_v61  ;;  %v3770_v61 = vadd.f32 %v3688_v20, %v3591_v43  ;;  %v1772_v4 = vadd.f32 %v9373_v27, %v1771_v14  ;;  %v11420_v20 = vld [vmem:[#allocation9_spill] sm:$0xff] }
 0x795   : > { %v4024_v45 = vmul.f32 %v9558_v48, %v9558_v48  ;;  %v3896_v5 = vmul.f32 %v9564_v39, %v9564_v39 }
 0x796   : > { %v3248_v29 = vpop.f32.mrf.mxu3  ;;  %v3685_v51 = vpop.xlane.xlu2 %3684 }
 0x797   : > { %v3249_v21 = vadd.f32 %v9330_v15, %v3248_v29  ;;  %v3769_v2 = vadd.f32 %v3685_v51, %v3588_v52  ;;  %v4064_v49 = vsel %vm3667_vm11, %v4024_v45, 0.0  ;;  %v3936_v12 = vsel %vm3570_vm0, %v3896_v5, 0.0 }
 0x798   : > { %3696 = vadd.xlane.f32.xlu1 %v3695_v37  ;;  %3934 = vadd.xlane.f32.xlu2 %v3933_v9  ;;  %v3802_v37 = vmul.f32 0.014285714, %v3770_v61  ;;  %v3701_v51 = vsel %vm3667_vm11, %v9591_v63, 0.0 }
 0x799   : > { %v3320_v41 = vmul.f32 0.01, %v3249_v21  ;;  %3599 = vadd.xlane.f32.xlu0 %v3598_v57  ;;  %vm3288_vm14 = vcmp.gt.f32.partialorder %v3249_v21, 0.0  ;;  %v3801_v59 = vmul.f32 0.014285714, %v3769_v2 }
 0x79a   : > { %v9595_v52 = vsub.f32 %v8632_v47, %v3802_v37 }
 0x79b   : > { %v3352_v44 = vsel %vm3288_vm14, %v3249_v21, %v3320_v41  ;;  %v9576_v54 = vsub.f32 %v8619_v11, %v3801_v59  ;;  %v9579_v7 = vsub.f32 %v9453_v34, %v3801_v59  ;;  %v1774_v19 = vpop.f32.mrf.mxu2 }
 0x79c   : > { %6500 = vmatmul.msk.f32.gmra.mxu0 %vm3356_vm1, %v3352_v44  ;;  %v3510_v44 = vpop.f32.mrf.mxu0  ;;  %v3898_v47 = vmul.f32 %v9595_v52, %v9595_v52 }
 0x79d   : > { %v4025_v11 = vmul.f32 %v9579_v7, %v9579_v7  ;;  %v3897_v34 = vmul.f32 %v9576_v54, %v9576_v54  ;;  %v9603_v60 = vadd.f32 %v3510_v44, %v9388_v24 }
 0x79e   : > { %v3251_v55 = vpop.f32.mrf.mxu3 }
 0x79f   : > { %v3252_v42 = vadd.f32 %v9330_v15, %v3251_v55  ;;  %v4067_v41 = vsel %vm3667_vm11, %v4025_v11, 0.0  ;;  %v3939_v30 = vsel %vm3570_vm0, %v3897_v34, 0.0  ;;  %v9608_v55 = vadd.f32 %v11419_v33, %v1772_v4  ;;  %v4765_v11 = vld [vmem:[%s11306_s6 + $0x10] sm:$0xf]  ;;  %v4760_v34 = vld [vmem:[%s11305_s5 + $0x20] sm:$0xff] }
 0x7a0   : > { %3602 = vadd.xlane.f32.xlu1 %v3601_v53  ;;  %3699 = vadd.xlane.f32.xlu2 %v3698_v31  ;;  %v1775_v53 = vadd.f32 %v9373_v27, %v1774_v19  ;;  %v3704_v2 = vsel %vm3667_vm11, %v9603_v60, 0.0 }
 0x7a1   : > { %v3321_v23 = vmul.f32 0.01, %v3252_v42  ;;  %4062 = vadd.xlane.f32.xlu0 %v4061_v25  ;;  %vm3289_vm15 = vcmp.gt.f32.partialorder %v3252_v42, 0.0  ;;  %v9615_v25 = vsub.f32 %v9432_v8, %v3802_v37  ;;  %6504 = vmatpush.msk.msrb.mxu1 %vm1299_vm2, %v4765_v11 }
 0x7a2   : > { %v9620_v59 = vadd.f32 %v11420_v20, %v1775_v53  ;;  %v4757_v53 = vld [vmem:[%s11305_s5 + $0x8] sm:$0xff] }
 0x7a3   : > { %v3353_v36 = vsel %vm3289_vm15, %v3252_v42, %v3321_v23  ;;  %v3942_v42 = vsel %vm3570_vm0, %v3898_v47, 0.0  ;;  %v3607_v23 = vsel %vm3570_vm0, %v9608_v55, 0.0  ;;  %v1777_v3 = vpop.f32.mrf.mxu2  ;;  %v4026_v45 = vmul.f32 %v9615_v25, %v9615_v25 }
 0x7a4   : > { %6501 = vmatmul.msk.f32.gmra.mxu0 %vm3356_vm1, %v3353_v36  ;;  %v3513_v31 = vpop.f32.mrf.mxu0  ;;  %v1778_v5 = vadd.f32 %v9373_v27, %v1777_v3  ;;  %v3610_v8 = vsel %vm3570_vm0, %v9620_v59, 0.0 }
 0x7a5   : > { %v9623_v36 = vadd.f32 %v3513_v31, %v9388_v24  ;;  %v4070_v16 = vsel %vm3667_vm11, %v4026_v45, 0.0  ;;  %v3594_v31 = vpop.xlane.xlu1 %3593 }
 0x7a7   : > { %v3707_v43 = vsel %vm3667_vm11, %v9623_v36, 0.0 }
 0x7a8   : > { %v3254_v29 = vpop.f32.mrf.mxu3  ;;  %3605 = vadd.xlane.f32.xlu2 %v3604_v22  ;;  %4065 = vadd.xlane.f32.xlu1 %v4064_v49  ;;  %v11421_v22 = vld [vmem:[#allocation10_spill] sm:$0xff] }
 0x7a9   : > { %v3255_v21 = vadd.f32 %v9330_v15, %v3254_v29  ;;  %3937 = vadd.xlane.f32.xlu0 %v3936_v12  ;;  %v9635_v49 = vadd.f32 %v11421_v22, %v1778_v5 }
 0x7ab   : > { %v3322_v9 = vmul.f32 0.01, %v3255_v21  ;;  %vm3290_vm4 = vcmp.gt.f32.partialorder %v3255_v21, 0.0  ;;  %v1780_v12 = vpop.f32.mrf.mxu2  ;;  %v3613_v37 = vsel %vm3570_vm0, %v9635_v49, 0.0 }
 0x7ad   : > { %v3354_v57 = vsel %vm3290_vm4, %v3255_v21, %v3322_v9  ;;  %v4762_v9 = vld [vmem:[%s11305_s5 + $0x30] sm:$0x3] }
 0x7ae   : > { %6502 = vmatmul.msk.f32.gmra.mxu0 %vm3356_vm1, %v3354_v57  ;;  %6537 = vmatpush.msk.msrb.mxu2 %vm3453_vm3, %v4762_v9  ;;  %v4764_v57 = vld [vmem:[%s11306_s6 + $0x8] sm:$0xff] }
 0x7af   : > { %4879 = vmatpush.msrb.mxu1 %v4764_v57  ;;  %v9701_v57 = vld [vmem:[%s11301_s1 + $0x11] ss:$0 sm:$0xff] }
 0x7b0   : > { %4068 = vadd.xlane.f32.xlu2 %v4067_v41  ;;  %3940 = vadd.xlane.f32.xlu1 %v3939_v30  ;;  %v4763_v41 = vld [vmem:[%s11306_s6] sm:$0xff]  ;;  %v4759_v30 = vld [vmem:[%s11305_s5 + $0x18] sm:$0xff] }
 0x7b1   : > { %3702 = vadd.xlane.f32.xlu0 %v3701_v51  ;;  %v4758_v51 = vld [vmem:[%s11305_s5 + $0x10] sm:$0xff]  ;;  %4880 = vmatpush.msrb.mxu1 %v4763_v41 }
 0x7b3   : > { %v9666_v47 = vpop.f32.mrf.mxu2 }
 0x7b8   : > { %3705 = vadd.xlane.f32.xlu1 %v3704_v2  ;;  %3943 = vadd.xlane.f32.xlu2 %v3942_v42  ;;  %v4756_v42 = vld [vmem:[%s11305_s5] sm:$0xff] }
 0x7b9   : > { %3608 = vadd.xlane.f32.xlu0 %v3607_v23 }
 0x7bb   : > { %v9674_v45 = vpop.f32.mrf.mxu2 }
 0x7c0   : > { %v3257_v14 = vpop.f32.mrf.mxu3  ;;  %3611 = vadd.xlane.f32.xlu1 %v3610_v8  ;;  %3708 = vadd.xlane.f32.xlu2 %v3707_v43 }
 0x7c1   : > { %v3258_v61 = vadd.f32 %v9330_v15, %v3257_v14  ;;  %4071 = vadd.xlane.f32.xlu0 %v4070_v16  ;;  %v4761_v15 = vld [vmem:[%s11305_s5 + $0x28] sm:$0xff] }
 0x7c2   : > { %5087 = vmatpush.msrb.mxu2 %v4761_v15 }
 0x7c3   : > { %v3323_v29 = vmul.f32 0.01, %v3258_v61  ;;  %vm3291_vm5 = vcmp.gt.f32.partialorder %v3258_v61, 0.0  ;;  %v9691_v15 = vpop.f32.mrf.mxu2 }
 0x7c4   : > { %5088 = vmatpush.msrb.mxu2 %v4760_v34  ;;  %v9696_v34 = vld [vmem:[%s11301_s1 + $0x10] ss:$0 sm:$0xff] }
 0x7c5   : > { %v3355_v21 = vsel %vm3291_vm5, %v3258_v61, %v3323_v29 }
 0x7c6   : > { %6503 = vmatmul.msk.f32.gmra.mxu0 %vm3356_vm1, %v3355_v21  ;;  %5089 = vmatpush.msrb.mxu2 %v4759_v30  ;;  %v1781_v30 = vadd.f32 %v9373_v27, %v1780_v12 }
 0x7c8   : > { %3614 = vadd.xlane.f32.xlu2 %v3613_v37  ;;  %5090 = vmatpush.msrb.mxu2 %v4758_v51  ;;  %v3516_v37 = vpop.f32.mrf.mxu0  ;;  %v9711_v51 = vld [vmem:[%s11301_s1 + $0x13] ss:$0 sm:$0xff] }
 0x7ca   : > { %5091 = vmatpush.msrb.mxu2 %v4757_v53  ;;  %v11422_v53 = vld [vmem:[#allocation11_spill] sm:$0xff] }
 0x7cc   : > { %v3926_v4 = vpop.xlane.xlu2 %3925  ;;  %v4054_v19 = vpop.xlane.xlu0 %4053  ;;  %5092 = vmatpush.msrb.mxu2 %v4756_v42 }
 0x7cd   : > { %v4148_v44 = vadd.f32 %v4054_v19, %v3926_v4 }
 0x7cf   : > { %v4180_v33 = vmul.f32 0.014285714, %v4148_v44 }
 0x7d1   : > { %v4212_v2 = vadd.f32 1e-05, %v4180_v33  ;;  %v9716_v33 = vld [vmem:[%s11301_s1 + $0x12] ss:$0 sm:$0xff] }
 0x7d3   : > { %6883 = vrsqrt.f32 %v4212_v2  ;;  %vm4250_vm6 = vweird.f32 %v4212_v2 }
 0x7d4   : > { %v3691_v23 = vpop.xlane.xlu2 %3690 }
 0x7d5   : > { %v3771_v3 = vadd.f32 %v3691_v23, %v3594_v31  ;;  %v9733_v31 = vpop.f32.mrf.mxu2 }
 0x7d7   : > { %v3803_v20 = vmul.f32 0.014285714, %v3771_v3 }
 0x7d9   : > { %v6884_v5 = vpop.eup %6883  ;;  %v9677_v8 = vsub.f32 %v8650_v17, %v3803_v20  ;;  %v9680_v43 = vsub.f32 %v9478_v62, %v3803_v20  ;;  %v9689_v62 = vadd.f32 %v3516_v37, %v9388_v24 }
 0x7da   : > { %v4245_v14 = vmul.f32 %v6884_v5, %v4212_v2  ;;  %vm4251_vm1 = vweird.f32 %v6884_v5 }
 0x7db   : > { %v4027_v16 = vmul.f32 %v9680_v43, %v9680_v43  ;;  %v3899_v61 = vmul.f32 %v9677_v8, %v9677_v8  ;;  %vm4252_vm8 = vmor %vm4250_vm6, %vm4251_vm1  ;;  %v3710_v44 = vsel %vm3667_vm11, %v9689_v62, 0.0 }
 0x7dc   : > { %v4246_v22 = vmul.f32 %v6884_v5, %v4245_v14  ;;  %v3597_v20 = vpop.xlane.xlu2 %3596 }
 0x7dd   : > { %v4073_v29 = vsel %vm3667_vm11, %v4027_v16, 0.0  ;;  %v3945_v21 = vsel %vm3570_vm0, %v3899_v61, 0.0  ;;  %v9737_v3 = vpop.f32.mrf.mxu2 }
 0x7de   : > { %v4247_v9 = vmul.f32 0.5, %v4246_v22  ;;  %4074 = vadd.xlane.f32.xlu1 %v4073_v29  ;;  %3946 = vadd.xlane.f32.xlu0 %v3945_v21 }
 0x7e0   : > { %v4248_v17 = vsub.f32 1.5, %v4247_v9 }
 0x7e2   : > { %v4249_v11 = vmul.f32 %v6884_v5, %v4248_v17 }
 0x7e4   : > { %v4253_v41 = vsel %vm4252_vm8, %v6884_v5, %v4249_v11 }
 0x7e5   : > { %v4564_v4 = vmul.f32 %v4253_v41, %v9466_v6  ;;  %v4660_v19 = vmul.f32 %v4253_v41, %v9469_v46  ;;  %v9721_v46 = vadd.f32 %v11422_v53, %v1781_v30  ;;  %v9739_v22 = vpop.f32.mrf.mxu2 }
 0x7e6   : > { %3711 = vadd.xlane.f32.xlu0 %v3710_v44 }
 0x7e7   : > { %v4596_v12 = vmul.f32 %v4564_v4, %v9696_v34  ;;  %v4692_v6 = vmul.f32 %v4660_v19, %v9701_v57  ;;  %v3616_v23 = vsel %vm3570_vm0, %v9721_v46, 0.0 }
 0x7e9   : > { %v9724_v2 = vadd.f32 %v4692_v6, %v9711_v51  ;;  %v9727_v42 = vadd.f32 %v4596_v12, %v9716_v33 }
 0x7eb   : > { %11423 = vst [vmem:[#allocation6_spill] sm:$0xff] %v9724_v2  ;;  %6505 = vmatmul.msk.f32.vlgmr.msrb.gmra.mxu1 %vm3667_vm11, %v9724_v2  ;;  %6538 = vmatmul.msk.f32.vlgmr.msrb.gmra.mxu2 %vm3570_vm0, %v9727_v42 }
 0x7ec   : > { %11424 = vst [vmem:[#allocation7_spill] sm:$0xff] %v9727_v42 }
 0x7ed   : > { %v9749_v53 = vpop.f32.mrf.mxu2 }
 0x7ee   : > { %3617 = vadd.xlane.f32.xlu0 %v3616_v23 }
 0x7fb   : > { %v4057_v5 = vpop.xlane.xlu1 %4056  ;;  %v3929_v14 = vpop.xlane.xlu0 %3928 }
 0x7fc   : > { %v4149_v16 = vadd.f32 %v4057_v5, %v3929_v14 }
 0x7fe   : > { %v4181_v61 = vmul.f32 0.014285714, %v4149_v16 }
 0x800   : > { %v4213_v29 = vadd.f32 1e-05, %v4181_v61 }
 0x802   : > { %6885 = vrsqrt.f32 %v4213_v29  ;;  %vm4260_vm10 = vweird.f32 %v4213_v29 }
 0x803   : > { %v4060_v21 = vpop.xlane.xlu2 %4059  ;;  %v3932_v37 = vpop.xlane.xlu1 %3931 }
 0x804   : > { %v4150_v9 = vadd.f32 %v4060_v21, %v3932_v37  ;;  %v3694_v17 = vpop.xlane.xlu0 %3693  ;;  %v3519_v21 = vpop.f32.mrf.mxu0 }
 0x805   : > { %v3772_v11 = vadd.f32 %v3694_v17, %v3597_v20 }
 0x806   : > { %v4182_v41 = vmul.f32 0.014285714, %v4150_v9 }
 0x807   : > { %v3804_v30 = vmul.f32 0.014285714, %v3772_v11 }
 0x808   : > { %v6886_v4 = vpop.eup %6885  ;;  %v9741_v19 = vadd.f32 1e-05, %v4182_v41 }
 0x809   : > { %v4255_v44 = vmul.f32 %v6886_v4, %v4213_v29  ;;  %v9744_v12 = vsub.f32 %v9485_v38, %v3804_v30  ;;  %v9747_v6 = vsub.f32 %v9511_v1, %v3804_v30  ;;  %vm4261_vm9 = vweird.f32 %v6886_v4 }
 0x80a   : > { %6887 = vrsqrt.f32 %v9741_v19  ;;  %v9759_v30 = vadd.f32 %v3519_v21, %v9388_v24  ;;  %vm4262_vm7 = vmor %vm4260_vm10, %vm4261_vm9  ;;  %vm4270_vm13 = vweird.f32 %v9741_v19 }
 0x80b   : > { %v4256_v23 = vmul.f32 %v6886_v4, %v4255_v44  ;;  %v3697_v5 = vpop.xlane.xlu1 %3696  ;;  %v3935_v14 = vpop.xlane.xlu2 %3934  ;;  %v4028_v20 = vmul.f32 %v9747_v6, %v9747_v6  ;;  %v3900_v16 = vmul.f32 %v9744_v12, %v9744_v12 }
 0x80c   : > { %v3600_v61 = vpop.xlane.xlu0 %3599 }
 0x80d   : > { %v4257_v38 = vmul.f32 0.5, %v4256_v23  ;;  %v3773_v37 = vadd.f32 %v3697_v5, %v3600_v61  ;;  %v4076_v1 = vsel %vm3667_vm11, %v4028_v20, 0.0  ;;  %v3948_v9 = vsel %vm3570_vm0, %v3900_v16, 0.0 }
 0x80e   : > { %4077 = vadd.xlane.f32.xlu2 %v4076_v1  ;;  %3949 = vadd.xlane.f32.xlu1 %v3948_v9  ;;  %v1784_v20 = vadd.f32 %v9373_v27, %v9666_v47 }
 0x80f   : > { %v4258_v17 = vsub.f32 1.5, %v4257_v38  ;;  %v3805_v11 = vmul.f32 0.014285714, %v3773_v37 }
 0x810   : > { %v6888_v41 = vpop.eup %6887 }
 0x811   : > { %v4259_v44 = vmul.f32 %v6886_v4, %v4258_v17  ;;  %v4265_v42 = vmul.f32 %v6888_v41, %v9741_v19  ;;  %v9763_v23 = vsub.f32 %v9532_v18, %v3805_v11  ;;  %v9766_v5 = vsub.f32 %v9527_v0, %v3805_v11  ;;  %v9776_v17 = vpop.f32.mrf.mxu2 }
 0x812   : > { %vm4271_vm12 = vweird.f32 %v6888_v41  ;;  %v1787_v19 = vadd.f32 %v9373_v27, %v9674_v45 }
 0x813   : > { %v4263_v16 = vsel %vm4262_vm7, %v6886_v4, %v4259_v44  ;;  %v4266_v61 = vmul.f32 %v6888_v41, %v4265_v42  ;;  %v3603_v38 = vpop.xlane.xlu1 %3602  ;;  %v3700_v37 = vpop.xlane.xlu2 %3699  ;;  %v3901_v21 = vmul.f32 %v9763_v23, %v9763_v23  ;;  %v4029_v0 = vmul.f32 %v9766_v5, %v9766_v5  ;;  %vm4272_vm14 = vmor %vm4270_vm13, %vm4271_vm12 }
 0x814   : > { %v4565_v29 = vmul.f32 %v4263_v16, %v9493_v26  ;;  %v4661_v1 = vmul.f32 %v4263_v16, %v9496_v50  ;;  %v3774_v18 = vadd.f32 %v3700_v37, %v3603_v38  ;;  %v4063_v9 = vpop.xlane.xlu0 %4062  ;;  %v3713_v42 = vsel %vm3667_vm11, %v9759_v30, 0.0  ;;  %v3522_v44 = vpop.f32.mrf.mxu0 }
 0x815   : > { %v4267_v11 = vmul.f32 0.5, %v4266_v61  ;;  %v4151_v47 = vadd.f32 %v4063_v9, %v3935_v14  ;;  %v3951_v4 = vsel %vm3570_vm0, %v3901_v21, 0.0  ;;  %v4079_v26 = vsel %vm3667_vm11, %v4029_v0, 0.0  ;;  %v11425_v14 = vld [vmem:[#allocation12_spill] sm:$0xff] }
 0x816   : > { %v3806_v2 = vmul.f32 0.014285714, %v3774_v18  ;;  %3714 = vadd.xlane.f32.xlu1 %v3713_v42  ;;  %3952 = vadd.xlane.f32.xlu2 %v3951_v4  ;;  %v4693_v50 = vmul.f32 %v4661_v1, %v9701_v57  ;;  %v4597_v16 = vmul.f32 %v4565_v29, %v9696_v34  ;;  %v9785_v61 = vadd.f32 %v11425_v14, %v1784_v20 }
 0x817   : > { %v4268_v38 = vsub.f32 1.5, %v4267_v11  ;;  %v4183_v37 = vmul.f32 0.014285714, %v4151_v47  ;;  %4080 = vadd.xlane.f32.xlu0 %v4079_v26  ;;  %v9797_v1 = vadd.f32 %v3522_v44, %v9388_v24  ;;  %vm5360_vm13 = vcmask 1045504  }
 0x818   : > { %v9788_v9 = vsub.f32 %v9546_v10, %v3806_v2  ;;  %v9791_v21 = vadd.f32 %v4693_v50, %v9711_v51  ;;  %v9794_v18 = vadd.f32 %v4597_v16, %v9716_v33  ;;  %v9815_v50 = vsub.f32 %v9549_v35, %v3806_v2 }
 0x819   : > { %v4269_v29 = vmul.f32 %v6888_v41, %v4268_v38  ;;  %v9800_v0 = vadd.f32 1e-05, %v4183_v37  ;;  %v3716_v38 = vsel %vm3667_vm11, %v9797_v1, 0.0 }
 0x81a   : > { %11426 = vst [vmem:[#allocation5_spill] sm:$0xff] %v9791_v21  ;;  %6506 = vmatmul.msk.f32.gmra.mxu1 %vm3667_vm11, %v9791_v21  ;;  %6539 = vmatmul.msk.f32.gmra.mxu2 %vm3570_vm0, %v9794_v18  ;;  %v3902_v10 = vmul.f32 %v9788_v9, %v9788_v9 }
 0x81b   : > { %11427 = vst [vmem:[#allocation8_spill] sm:$0xff] %v9794_v18  ;;  %v4273_v20 = vsel %vm4272_vm14, %v6888_v41, %v4269_v29  ;;  %6889 = vrsqrt.f32 %v9800_v0  ;;  %v3606_v11 = vpop.xlane.xlu2 %3605  ;;  %v4066_v47 = vpop.xlane.xlu1 %4065  ;;  %v3619_v41 = vsel %vm3570_vm0, %v9785_v61, 0.0  ;;  %vm4280_vm4 = vweird.f32 %v9800_v0 }
 0x81c   : > { %v4566_v42 = vmul.f32 %v4273_v20, %v9505_v13  ;;  %v4662_v4 = vmul.f32 %v4273_v20, %v9508_v28  ;;  %v3938_v44 = vpop.xlane.xlu0 %3937  ;;  %v3954_v26 = vsel %vm3570_vm0, %v3902_v10, 0.0  ;;  %v9823_v28 = vpop.f32.mrf.mxu2  ;;  %v11430_v10 = vld [vmem:[#allocation13_spill] sm:$0xff] }
 0x81d   : > { %v4152_v16 = vadd.f32 %v4066_v47, %v3938_v44  ;;  %v3525_v37 = vpop.f32.mrf.mxu0  ;;  %v9832_v20 = vadd.f32 %v11430_v10, %v1787_v19 }
 0x81e   : > { %3620 = vadd.xlane.f32.xlu1 %v3619_v41  ;;  %3717 = vadd.xlane.f32.xlu2 %v3716_v38  ;;  %v4694_v45 = vmul.f32 %v4662_v4, %v9701_v57  ;;  %v4598_v13 = vmul.f32 %v4566_v42, %v9696_v34  ;;  %v4030_v42 = vmul.f32 %v9815_v50, %v9815_v50 }
 0x81f   : > { %v4184_v14 = vmul.f32 0.014285714, %v4152_v16  ;;  %3955 = vadd.xlane.f32.xlu0 %v3954_v26  ;;  %v9839_v4 = vadd.f32 %v3525_v37, %v9388_v24  ;;  %v3622_v37 = vsel %vm3570_vm0, %v9832_v20, 0.0 }
 0x820   : > { %v9826_v35 = vadd.f32 %v4694_v45, %v9711_v51  ;;  %v9829_v2 = vadd.f32 %v4598_v13, %v9716_v33  ;;  %v1790_v45 = vadd.f32 %v9373_v27, %v9691_v15  ;;  %v4082_v13 = vsel %vm3667_vm11, %v4030_v42, 0.0  ;;  %v11431_v15 = vld [vmem:[#allocation14_spill] sm:$0xff] }
 0x821   : > { %v6890_v29 = vpop.eup %6889  ;;  %v9834_v47 = vadd.f32 1e-05, %v4184_v14 }
 0x822   : > { %11428 = vst [vmem:[#allocation9_spill] sm:$0xff] %v9826_v35  ;;  %v4275_v44 = vmul.f32 %v6890_v29, %v9800_v0  ;;  %6507 = vmatmul.msk.f32.gmra.mxu1 %vm3667_vm11, %v9826_v35  ;;  %6540 = vmatmul.msk.f32.gmra.mxu2 %vm3570_vm0, %v9829_v2  ;;  %vm4281_vm15 = vweird.f32 %v6890_v29 }
 0x823   : > { %11429 = vst [vmem:[#allocation10_spill] sm:$0xff] %v9829_v2  ;;  %6891 = vrsqrt.f32 %v9834_v47  ;;  %v4069_v19 = vpop.xlane.xlu2 %4068  ;;  %v3941_v26 = vpop.xlane.xlu1 %3940  ;;  %v3719_v2 = vsel %vm3667_vm11, %v9839_v4, 0.0  ;;  %vm4282_vm5 = vmor %vm4280_vm4, %vm4281_vm15  ;;  %vm4290_vm6 = vweird.f32 %v9834_v47 }
 0x824   : > { %v4276_v16 = vmul.f32 %v6890_v29, %v4275_v44  ;;  %v4153_v41 = vadd.f32 %v4069_v19, %v3941_v26  ;;  %v3703_v38 = vpop.xlane.xlu0 %3702  ;;  %v9859_v42 = vpop.f32.mrf.mxu2 }
 0x825   : > { %v3775_v24 = vadd.f32 %v3703_v38, %v3606_v11  ;;  %v9857_v11 = vadd.f32 %v11431_v15, %v1790_v45 }
 0x826   : > { %v4277_v14 = vmul.f32 0.5, %v4276_v16  ;;  %v4185_v10 = vmul.f32 0.014285714, %v4153_v41  ;;  %4083 = vadd.xlane.f32.xlu1 %v4082_v13  ;;  %3623 = vadd.xlane.f32.xlu2 %v3622_v37 }
 0x827   : > { %v3807_v35 = vmul.f32 0.014285714, %v3775_v24  ;;  %3720 = vadd.xlane.f32.xlu0 %v3719_v2  ;;  %v3625_v18 = vsel %vm3570_vm0, %v9857_v11, 0.0 }
 0x828   : > { %v4278_v44 = vsub.f32 1.5, %v4277_v14  ;;  %v9854_v19 = vadd.f32 1e-05, %v4185_v10 }
 0x829   : > { %v6892_v27 = vpop.eup %6891  ;;  %v9862_v26 = vsub.f32 %v9568_v56, %v3807_v35  ;;  %v9865_v16 = vsub.f32 %v9591_v63, %v3807_v35  ;;  %v3528_v35 = vpop.f32.mrf.mxu0 }
 0x82a   : > { %v4279_v41 = vmul.f32 %v6890_v29, %v4278_v44  ;;  %v4285_v2 = vmul.f32 %v6892_v27, %v9834_v47  ;;  %6893 = vrsqrt.f32 %v9854_v19  ;;  %vm4291_vm1 = vweird.f32 %v6892_v27  ;;  %v9913_v47 = vld [vmem:[%s11301_s1 + $0x5] ss:$0 sm:$0xff] }
 0x82b   : > { %11432 = vst [vmem:[#allocation11_spill] sm:$0xff] %v9862_v26  ;;  %v3706_v38 = vpop.xlane.xlu1 %3705  ;;  %v4031_v45 = vmul.f32 %v9865_v16, %v9865_v16  ;;  %v3903_v24 = vmul.f32 %v9862_v26, %v9862_v26  ;;  %v3944_v37 = vpop.xlane.xlu2 %3943  ;;  %vm4292_vm8 = vmor %vm4290_vm6, %vm4291_vm1  ;;  %vm4300_vm10 = vweird.f32 %v9854_v19  ;;  %vm5263_vm6 = vcmask 572416  }
 0x82c   : > { %11433 = vst [vmem:[#allocation12_spill] sm:$0xff] %v9865_v16  ;;  %v4283_v56 = vsel %vm4282_vm5, %v6890_v29, %v4279_v41  ;;  %v4286_v13 = vmul.f32 %v6892_v27, %v4285_v2  ;;  %v3609_v63 = vpop.xlane.xlu0 %3608 }
 0x82d   : > { %v4567_v14 = vmul.f32 %v4283_v56, %v9518_v58  ;;  %v4663_v0 = vmul.f32 %v4283_v56, %v9541_v32  ;;  %v3776_v10 = vadd.f32 %v3706_v38, %v3609_v63  ;;  %v4085_v44 = vsel %vm3667_vm11, %v4031_v45, 0.0  ;;  %v9885_v32 = vld [vmem:[%s11301_s1 + $0x7] ss:$0 sm:$0xff]  ;;  %v9904_v63 = vpop.f32.mrf.mxu2 }
 0x82e   : > { %v4287_v15 = vmul.f32 0.5, %v4286_v13  ;;  %4086 = vadd.xlane.f32.xlu2 %v4085_v44  ;;  %v3957_v21 = vsel %vm3570_vm0, %v3903_v24, 0.0  ;;  %v9888_v2 = vadd.f32 %v9885_v32, %v3528_v35 }
 0x82f   : > { %v3808_v16 = vmul.f32 0.014285714, %v3776_v10  ;;  %3626 = vadd.xlane.f32.xlu0 %v3625_v18  ;;  %3958 = vadd.xlane.f32.xlu1 %v3957_v21  ;;  %v4695_v29 = vmul.f32 %v4663_v0, %v9701_v57  ;;  %v4599_v41 = vmul.f32 %v4567_v14, %v9696_v34 }
 0x830   : > { %v6894_v58 = vpop.eup %6893  ;;  %v4288_v38 = vsub.f32 1.5, %v4287_v15  ;;  %v3722_v15 = vsel %vm3667_vm11, %v9888_v2, 0.0 }
 0x831   : > { %v4295_v45 = vmul.f32 %v6894_v58, %v9854_v19  ;;  %v9892_v18 = vsub.f32 %v9608_v55, %v3808_v16  ;;  %v9895_v21 = vsub.f32 %v9603_v60, %v3808_v16  ;;  %v9899_v56 = vadd.f32 %v4695_v29, %v9711_v51 }
 0x832   : > { %v4289_v24 = vmul.f32 %v6892_v27, %v4288_v38  ;;  %v9902_v13 = vadd.f32 %v4599_v41, %v9716_v33  ;;  %v1793_v16 = vadd.f32 %v9913_v47, %v9733_v31  ;;  %vm4301_vm9 = vweird.f32 %v6894_v58 }
 0x833   : > { %11434 = vst [vmem:[#allocation13_spill] sm:$0xff] %v9892_v18  ;;  %v4296_v35 = vmul.f32 %v6894_v58, %v4295_v45  ;;  %v3612_v14 = vpop.xlane.xlu1 %3611  ;;  %v4032_v55 = vmul.f32 %v9895_v21, %v9895_v21  ;;  %v3904_v60 = vmul.f32 %v9892_v18, %v9892_v18  ;;  %6508 = vmatmul.msk.f32.gmra.mxu1 %vm3667_vm11, %v9899_v56  ;;  %v3709_v10 = vpop.xlane.xlu2 %3708  ;;  %vm4302_vm7 = vmor %vm4300_vm10, %vm4301_vm9 }
 0x834   : > { %11435 = vst [vmem:[#allocation14_spill] sm:$0xff] %v9895_v21  ;;  %v4293_v0 = vsel %vm4292_vm8, %v6892_v27, %v4289_v24  ;;  %6541 = vmatmul.msk.f32.gmra.mxu2 %vm3570_vm0, %v9902_v13  ;;  %v4072_v44 = vpop.xlane.xlu0 %4071  ;;  %v3777_v45 = vadd.f32 %v3709_v10, %v3612_v14  ;;  %v11439_v14 = vld [vmem:[#allocation15_spill] sm:$0xff] }
 0x835   : > { %11436 = vst [vmem:[#allocation27_spill] sm:$0xff] %v9899_v56  ;;  %v4568_v29 = vmul.f32 %v4293_v0, %v9564_v39  ;;  %v4664_v41 = vmul.f32 %v4293_v0, %v9558_v48  ;;  %v4297_v38 = vmul.f32 0.5, %v4296_v35  ;;  %v4154_v31 = vadd.f32 %v4072_v44, %v3944_v37  ;;  %v3531_v56 = vpop.f32.mrf.mxu0 }
 0x836   : > { %11437 = vst [vmem:[#allocation28_spill] sm:$0xff] %v9902_v13  ;;  %v4088_v27 = vsel %vm3667_vm11, %v4032_v55, 0.0  ;;  %v3960_v24 = vsel %vm3570_vm0, %v3904_v60, 0.0  ;;  %v3809_v13 = vmul.f32 0.014285714, %v3777_v45  ;;  %v9937_v55 = vadd.f32 %v11439_v14, %v1793_v16  ;;  %v9955_v16 = vpop.f32.mrf.mxu2  ;;  %v11443_v45 = vld [vmem:[#allocation16_spill] sm:$0xff] }
 0x837   : > { %v4298_v21 = vsub.f32 1.5, %v4297_v38  ;;  %3723 = vadd.xlane.f32.xlu1 %v3722_v15  ;;  %4089 = vadd.xlane.f32.xlu0 %v4088_v27  ;;  %v4696_v18 = vmul.f32 %v4664_v41, %v9701_v57  ;;  %v4600_v26 = vmul.f32 %v4568_v29, %v9696_v34  ;;  %v4186_v39 = vmul.f32 0.014285714, %v4154_v31 }
 0x838   : > { %3961 = vadd.xlane.f32.xlu2 %v3960_v24  ;;  %v9931_v37 = vsub.f32 %v9620_v59, %v3809_v13  ;;  %v9944_v10 = vadd.f32 %v9885_v32, %v3531_v56  ;;  %v3628_v56 = vsel %vm3570_vm0, %v9937_v55, 0.0  ;;  %v1796_v44 = vadd.f32 %v9913_v47, %v9737_v3 }
 0x839   : > { %v4299_v48 = vmul.f32 %v6894_v58, %v4298_v21  ;;  %v9934_v35 = vadd.f32 %v4696_v18, %v9711_v51  ;;  %v4218_v60 = vadd.f32 1e-05, %v4186_v39  ;;  %v9941_v0 = vadd.f32 %v4600_v26, %v9716_v33 }
 0x83a   : > { %v3905_v59 = vmul.f32 %v9931_v37, %v9931_v37  ;;  %v3725_v29 = vsel %vm3667_vm11, %v9944_v10, 0.0  ;;  %v9980_v31 = vadd.f32 %v11443_v45, %v1796_v44  ;;  %v1799_v39 = vadd.f32 %v9913_v47, %v9739_v22  ;;  %v5262_v22 = vld [vmem:[%s11307_s7 + $0x40] sm:$0x3f]  ;;  %v5547_v45 = vld [vmem:[%s11308_s8 + $0x30] sm:$0xff] }
 0x83b   : > { %11438 = vst [vmem:[#allocation29_spill] sm:$0xff] %v9934_v35  ;;  %v4303_v21 = vsel %vm4302_vm7, %v6894_v58, %v4299_v48  ;;  %6895 = vrsqrt.f32 %v4218_v60  ;;  %6509 = vmatmul.msk.f32.gmra.mxu1 %vm3667_vm11, %v9934_v35  ;;  %v9958_v58 = vsub.f32 %v9623_v36, %v3809_v13  ;;  %vm4310_vm14 = vweird.f32 %v4218_v60  ;;  %6570 = vmatpush.msk.msra.mxu3 %vm5360_vm13, %v5262_v22 }
 0x83c   : > { %11440 = vst [vmem:[#allocation15_spill] sm:$0xff] %v9941_v0  ;;  %v4569_v19 = vmul.f32 %v4303_v21, %v9576_v54  ;;  %v4665_v18 = vmul.f32 %v4303_v21, %v9579_v7  ;;  %6542 = vmatmul.msk.f32.gmra.mxu2 %vm3570_vm0, %v9941_v0  ;;  %v3963_v26 = vsel %vm3570_vm0, %v3905_v59, 0.0  ;;  %v3631_v59 = vsel %vm3570_vm0, %v9980_v31, 0.0 }
 0x83d   : > { %v3534_v15 = vpop.f32.mrf.mxu0  ;;  %v4033_v3 = vmul.f32 %v9958_v58, %v9958_v58 }
 0x83e   : > { %v4697_v54 = vmul.f32 %v4665_v18, %v9701_v57  ;;  %v4601_v7 = vmul.f32 %v4569_v19, %v9696_v34  ;;  %v9975_v38 = vadd.f32 %v9885_v32, %v3534_v15  ;;  %v9993_v19 = vpop.f32.mrf.mxu2  ;;  %v5548_v15 = vld [vmem:[%s11308_s8 + $0x38] sm:$0xff] }
 0x83f   : > { %3629 = vadd.xlane.f32.xlu1 %v3628_v56  ;;  %3964 = vadd.xlane.f32.xlu0 %v3963_v26  ;;  %v4091_v48 = vsel %vm3667_vm11, %v4033_v3, 0.0  ;;  %v11444_v26 = vld [vmem:[#allocation17_spill] sm:$0xff] }
 0x840   : > { %3726 = vadd.xlane.f32.xlu2 %v3725_v29  ;;  %v9969_v36 = vadd.f32 %v4697_v54, %v9711_v51  ;;  %v9972_v13 = vadd.f32 %v4601_v7, %v9716_v33  ;;  %v3728_v14 = vsel %vm3667_vm11, %v9975_v38, 0.0  ;;  %v9996_v56 = vadd.f32 %v11444_v26, %v1799_v39  ;;  %v5549_v54 = vld [vmem:[%s11308_s8 + $0x40] sm:$0x3f]  ;;  %v5261_v7 = vld [vmem:[%s11307_s7 + $0x38] sm:$0xff]  ;;  %v5260_v29 = vld [vmem:[%s11307_s7 + $0x30] sm:$0xff] }
 0x841   : > { %v6896_v41 = vpop.eup %6895  ;;  %6603 = vmatpush.msk.msra.mxu0 %vm5360_vm13, %v5549_v54  ;;  %5372 = vmatpush.msra.mxu3 %v5261_v7  ;;  %v5259_v39 = vld [vmem:[%s11307_s7 + $0x28] sm:$0xff]  ;;  %v5545_v54 = vld [vmem:[%s11308_s8 + $0x20] sm:$0xff]  ;;  %v5257_v7 = vld [vmem:[%s11307_s7 + $0x18] sm:$0xff] }
 0x842   : > { %11441 = vst [vmem:[#allocation30_spill] sm:$0xff] %v9969_v36  ;;  %v4305_v27 = vmul.f32 %v6896_v41, %v4218_v60  ;;  %vm4311_vm12 = vweird.f32 %v6896_v41 }
 0x843   : > { %11442 = vst [vmem:[#allocation31_spill] sm:$0xff] %v9972_v13  ;;  %6510 = vmatmul.msk.f32.gmra.mxu1 %vm3667_vm11, %v9969_v36  ;;  %vm4312_vm15 = vmor %vm4310_vm14, %vm4311_vm12  ;;  %5561 = vmatpush.msra.mxu0 %v5548_v15  ;;  %v5544_v15 = vld [vmem:[%s11308_s8 + $0x18] sm:$0xff] }
 0x844   : > { %6543 = vmatmul.msk.f32.gmra.mxu2 %vm3570_vm0, %v9972_v13  ;;  %v4306_v24 = vmul.f32 %v6896_v41, %v4305_v27  ;;  %5373 = vmatpush.msra.mxu3 %v5260_v29  ;;  %v5256_v29 = vld [vmem:[%s11307_s7 + $0x10] sm:$0xff] }
 0x845   : > { %5562 = vmatpush.msra.mxu0 %v5547_v45  ;;  %v5543_v45 = vld [vmem:[%s11308_s8 + $0x10] sm:$0xff] }
 0x846   : > { %v4307_v21 = vmul.f32 0.5, %v4306_v24  ;;  %v3634_v24 = vsel %vm3570_vm0, %v9996_v56, 0.0  ;;  %5374 = vmatpush.msra.mxu3 %v5259_v39  ;;  %v3615_v39 = vpop.xlane.xlu2 %3614 }
 0x847   : > { %4092 = vadd.xlane.f32.xlu1 %v4091_v48  ;;  %3729 = vadd.xlane.f32.xlu0 %v3728_v14 }
 0x848   : > { %3632 = vadd.xlane.f32.xlu2 %v3631_v59  ;;  %v4308_v18 = vsub.f32 1.5, %v4307_v21  ;;  %v10031_v59 = vpop.f32.mrf.mxu2 }
 0x84a   : > { %v4309_v44 = vmul.f32 %v6896_v41, %v4308_v18 }
 0x84c   : > { %v4313_v3 = vsel %vm4312_vm15, %v6896_v41, %v4309_v44  ;;  %v5546_v41 = vld [vmem:[%s11308_s8 + $0x28] sm:$0xff] }
 0x84d   : > { %v4570_v60 = vmul.f32 %v4313_v3, %v9595_v52  ;;  %v4666_v27 = vmul.f32 %v4313_v3, %v9615_v25  ;;  %v5258_v52 = vld [vmem:[%s11307_s7 + $0x20] sm:$0xff]  ;;  %5563 = vmatpush.msra.mxu0 %v5546_v41 }
 0x84e   : > { %5375 = vmatpush.msra.mxu3 %v5258_v52 }
 0x84f   : > { %3635 = vadd.xlane.f32.xlu0 %v3634_v24  ;;  %v4698_v48 = vmul.f32 %v4666_v27, %v9701_v57  ;;  %v4602_v14 = vmul.f32 %v4570_v60, %v9696_v34  ;;  %5564 = vmatpush.msra.mxu0 %v5545_v54  ;;  %v5255_v60 = vld [vmem:[%s11307_s7 + $0x8] sm:$0xff]  ;;  %v5254_v24 = vld [vmem:[%s11307_s7] sm:$0xff] }
 0x850   : > { %5376 = vmatpush.msra.mxu3 %v5257_v7  ;;  %v5542_v27 = vld [vmem:[%s11308_s8 + $0x8] sm:$0xff]  ;;  %v10070_v52 = vpop.f32.mrf.mxu2 }
 0x851   : > { %v4075_v25 = vpop.xlane.xlu1 %4074  ;;  %v3947_v21 = vpop.xlane.xlu0 %3946  ;;  %v10034_v26 = vadd.f32 %v4698_v48, %v9711_v51  ;;  %v10037_v22 = vadd.f32 %v4602_v14, %v9716_v33  ;;  %5565 = vmatpush.msra.mxu0 %v5544_v15  ;;  %v5541_v14 = vld [vmem:[%s11308_s8] sm:$0xff] }
 0x852   : > { %v4155_v18 = vadd.f32 %v4075_v25, %v3947_v21  ;;  %5377 = vmatpush.msra.mxu3 %v5256_v29 }
 0x853   : > { %11445 = vst [vmem:[#allocation16_spill] sm:$0xff] %v10034_v26  ;;  %6511 = vmatmul.msk.f32.gmra.mxu1 %vm3667_vm11, %v10034_v26  ;;  %6544 = vmatmul.msk.f32.gmra.mxu2 %vm3570_vm0, %v10037_v22 }
 0x854   : > { %11446 = vst [vmem:[#allocation17_spill] sm:$0xff] %v10037_v22  ;;  %v4187_v44 = vmul.f32 0.014285714, %v4155_v18  ;;  %5566 = vmatpush.msra.mxu0 %v5543_v45  ;;  %5378 = vmatpush.msra.mxu3 %v5255_v60 }
 0x856   : > { %v4219_v3 = vadd.f32 1e-05, %v4187_v44  ;;  %5567 = vmatpush.msra.mxu0 %v5542_v27  ;;  %5379 = vmatpush.msra.mxu3 %v5254_v24  ;;  %v3537_v27 = vpop.f32.mrf.mxu0 }
 0x858   : > { %6897 = vrsqrt.f32 %v4219_v3  ;;  %5568 = vmatpush.msra.mxu0 %v5541_v14  ;;  %vm4320_vm5 = vweird.f32 %v4219_v3  ;;  %v1802_v14 = vadd.f32 %v9913_v47, %v9749_v53  ;;  %v10103_v53 = vld [vmem:[%s11301_s1 + $0x14] ss:$0 sm:$0xff] }
 0x859   : > { %v3712_v41 = vpop.xlane.xlu0 %3711 }
 0x85a   : > { %v3778_v48 = vadd.f32 %v3712_v41, %v3615_v39  ;;  %v10087_v39 = vadd.f32 %v9885_v32, %v3537_v27 }
 0x85c   : > { %v3810_v25 = vmul.f32 0.014285714, %v3778_v48 }
 0x85e   : > { %v6898_v21 = vpop.eup %6897  ;;  %v10073_v18 = vsub.f32 %v9635_v49, %v3810_v25  ;;  %v10076_v54 = vsub.f32 %v9689_v62, %v3810_v25  ;;  %v10084_v62 = vpop.f32.mrf.mxu2 }
 0x85f   : > { %v4315_v7 = vmul.f32 %v6898_v21, %v4219_v3  ;;  %vm4321_vm4 = vweird.f32 %v6898_v21 }
 0x860   : > { %v4034_v44 = vmul.f32 %v10076_v54, %v10076_v54  ;;  %v3906_v15 = vmul.f32 %v10073_v18, %v10073_v18  ;;  %vm4322_vm1 = vmor %vm4320_vm5, %vm4321_vm4 }
 0x861   : > { %v4316_v29 = vmul.f32 %v6898_v21, %v4315_v7 }
 0x862   : > { %v4094_v45 = vsel %vm3667_vm11, %v4034_v44, 0.0  ;;  %v3966_v60 = vsel %vm3570_vm0, %v3906_v15, 0.0  ;;  %v3731_v44 = vsel %vm3667_vm11, %v10087_v39, 0.0 }
 0x863   : > { %v4317_v24 = vmul.f32 0.5, %v4316_v29  ;;  %4095 = vadd.xlane.f32.xlu2 %v4094_v45  ;;  %3967 = vadd.xlane.f32.xlu1 %v3966_v60  ;;  %v11447_v45 = vld [vmem:[#allocation18_spill] sm:$0xff] }
 0x864   : > { %v10098_v60 = vadd.f32 %v11447_v45, %v1802_v14 }
 0x865   : > { %v4318_v49 = vsub.f32 1.5, %v4317_v24 }
 0x867   : > { %v4319_v41 = vmul.f32 %v6898_v21, %v4318_v49  ;;  %v3637_v49 = vsel %vm3570_vm0, %v10098_v60, 0.0 }
 0x868   : > { %v4882_v3 = vpop.f32.mrf.mxu1 }
 0x869   : > { %v4323_v48 = vsel %vm4322_vm1, %v6898_v21, %v4319_v41 }
 0x86a   : > { %v4571_v25 = vmul.f32 %v4323_v48, %v9677_v8  ;;  %v4667_v7 = vmul.f32 %v4323_v48, %v9680_v43 }
 0x86b   : > { %3732 = vadd.xlane.f32.xlu1 %v3731_v44 }
 0x86c   : > { %v4699_v15 = vmul.f32 %v4667_v7, %v9701_v57  ;;  %v4603_v29 = vmul.f32 %v4571_v25, %v9696_v34  ;;  %v3618_v25 = vpop.xlane.xlu0 %3617 }
 0x86e   : > { %v5094_v8 = vpop.f32.mrf.mxu2  ;;  %v10106_v43 = vadd.f32 %v4699_v15, %v9711_v51  ;;  %v10109_v21 = vadd.f32 %v4603_v29, %v9716_v33 }
 0x86f   : > { %v5095_v27 = vadd.f32 %v5094_v8, %v4882_v3 }
 0x870   : > { %11448 = vst [vmem:[#allocation18_spill] sm:$0xff] %v10106_v43  ;;  %6512 = vmatmul.msk.f32.gmra.mxu1 %vm3667_vm11, %v10106_v43  ;;  %6545 = vmatmul.msk.f32.gmra.mxu2 %vm3570_vm0, %v10109_v21 }
 0x871   : > { %11449 = vst [vmem:[#allocation32_spill] sm:$0xff] %v10109_v21  ;;  %v5190_v24 = vadd.f32 %v5095_v27, %v10103_v53 }
 0x873   : > { %v5222_v41 = vmax.f32 %v5190_v24, 0.0  ;;  %3638 = vadd.xlane.f32.xlu1 %v3637_v49 }
 0x875   : > { %6571 = vmatmul.msk.f32.vlgmr.msra.gmra.mxu3 %vm5263_vm6, %v5222_v41  ;;  %6604 = vmatmul.msk.f32.vlgmr.msra.gmra.mxu0 %vm5263_vm6, %v5222_v41 }
 0x881   : > { %v4078_v48 = vpop.xlane.xlu2 %4077  ;;  %v3950_v14 = vpop.xlane.xlu1 %3949 }
 0x882   : > { %v4156_v7 = vadd.f32 %v4078_v48, %v3950_v14  ;;  %v3540_v48 = vpop.f32.mrf.mxu0 }
 0x884   : > { %v4188_v44 = vmul.f32 0.014285714, %v4156_v7 }
 0x886   : > { %v4220_v15 = vadd.f32 1e-05, %v4188_v44 }
 0x888   : > { %6899 = vrsqrt.f32 %v4220_v15  ;;  %vm4330_vm9 = vweird.f32 %v4220_v15 }
 0x889   : > { %v3715_v29 = vpop.xlane.xlu1 %3714  ;;  %v3953_v45 = vpop.xlane.xlu2 %3952 }
 0x88a   : > { %v3779_v3 = vadd.f32 %v3715_v29, %v3618_v25  ;;  %v4081_v8 = vpop.xlane.xlu0 %4080 }
 0x88b   : > { %v4157_v27 = vadd.f32 %v4081_v8, %v3953_v45  ;;  %v10136_v8 = vadd.f32 %v9885_v32, %v3540_v48 }
 0x88c   : > { %v3811_v21 = vmul.f32 0.014285714, %v3779_v3 }
 0x88d   : > { %v4189_v43 = vmul.f32 0.014285714, %v4157_v27 }
 0x88e   : > { %v6900_v24 = vpop.eup %6899  ;;  %v10121_v49 = vsub.f32 %v9721_v46, %v3811_v21  ;;  %v10124_v41 = vsub.f32 %v9759_v30, %v3811_v21 }
 0x88f   : > { %v4325_v22 = vmul.f32 %v6900_v24, %v4220_v15  ;;  %v10126_v26 = vadd.f32 1e-05, %v4189_v43  ;;  %vm4331_vm8 = vweird.f32 %v6900_v24 }
 0x890   : > { %v4035_v14 = vmul.f32 %v10124_v41, %v10124_v41  ;;  %v3907_v25 = vmul.f32 %v10121_v49, %v10121_v49  ;;  %vm4332_vm10 = vmor %vm4330_vm9, %vm4331_vm8 }
 0x891   : > { %v4326_v7 = vmul.f32 %v6900_v24, %v4325_v22  ;;  %6901 = vrsqrt.f32 %v10126_v26  ;;  %v3621_v44 = vpop.xlane.xlu1 %3620  ;;  %v3718_v29 = vpop.xlane.xlu2 %3717  ;;  %vm4340_vm12 = vweird.f32 %v10126_v26 }
 0x892   : > { %v3780_v46 = vadd.f32 %v3718_v29, %v3621_v44  ;;  %v3956_v45 = vpop.xlane.xlu0 %3955  ;;  %v4097_v30 = vsel %vm3667_vm11, %v4035_v14, 0.0  ;;  %v3969_v21 = vsel %vm3570_vm0, %v3907_v25, 0.0 }
 0x893   : > { %v4327_v43 = vmul.f32 0.5, %v4326_v7  ;;  %4098 = vadd.xlane.f32.xlu0 %v4097_v30  ;;  %3970 = vadd.xlane.f32.xlu2 %v3969_v21  ;;  %v1805_v7 = vadd.f32 %v9913_v47, %v9776_v17  ;;  %v3543_v21 = vpop.f32.mrf.mxu0 }
 0x894   : > { %v3812_v3 = vmul.f32 0.014285714, %v3780_v46 }
 0x895   : > { %v4328_v27 = vsub.f32 1.5, %v4327_v43 }
 0x896   : > { %v10139_v22 = vsub.f32 %v9785_v61, %v3812_v3  ;;  %v10142_v13 = vsub.f32 %v9797_v1, %v3812_v3  ;;  %v3734_v1 = vsel %vm3667_vm11, %v10136_v8, 0.0 }
 0x897   : > { %v6902_v44 = vpop.eup %6901  ;;  %v4329_v29 = vmul.f32 %v6900_v24, %v4328_v27  ;;  %v4885_v0 = vpop.f32.mrf.mxu1 }
 0x898   : > { %11450 = vst [vmem:[#allocation33_spill] sm:$0xff] %v10139_v22  ;;  %v4335_v14 = vmul.f32 %v6902_v44, %v10126_v26  ;;  %v4036_v25 = vmul.f32 %v10142_v13, %v10142_v13  ;;  %v3908_v48 = vmul.f32 %v10139_v22, %v10139_v22  ;;  %vm4341_vm7 = vweird.f32 %v6902_v44 }
 0x899   : > { %11451 = vst [vmem:[#allocation34_spill] sm:$0xff] %v10142_v13  ;;  %v4333_v61 = vsel %vm4332_vm10, %v6900_v24, %v4329_v29  ;;  %v4084_v46 = vpop.xlane.xlu1 %4083  ;;  %v3624_v30 = vpop.xlane.xlu2 %3623  ;;  %vm4342_vm13 = vmor %vm4340_vm12, %vm4341_vm7 }
 0x89a   : > { %v4572_v15 = vmul.f32 %v4333_v61, %v9744_v12  ;;  %v4668_v43 = vmul.f32 %v4333_v61, %v9747_v6  ;;  %v4336_v3 = vmul.f32 %v6902_v44, %v4335_v14  ;;  %v4158_v27 = vadd.f32 %v4084_v46, %v3956_v45  ;;  %v3721_v36 = vpop.xlane.xlu0 %3720 }
 0x89b   : > { %v3781_v35 = vadd.f32 %v3721_v36, %v3624_v30  ;;  %v4100_v13 = vsel %vm3667_vm11, %v4036_v25, 0.0  ;;  %v3972_v17 = vsel %vm3570_vm0, %v3908_v48, 0.0  ;;  %3735 = vadd.xlane.f32.xlu2 %v3734_v1  ;;  %v10160_v6 = vadd.f32 %v8978_v40, %v1805_v7 }
 0x89c   : > { %v4337_v24 = vmul.f32 0.5, %v4336_v3  ;;  %v4190_v29 = vmul.f32 0.014285714, %v4158_v27  ;;  %4101 = vadd.xlane.f32.xlu1 %v4100_v13  ;;  %3973 = vadd.xlane.f32.xlu0 %v3972_v17  ;;  %v4700_v22 = vmul.f32 %v4668_v43, %v9701_v57  ;;  %v4604_v12 = vmul.f32 %v4572_v15, %v9696_v34 }
 0x89d   : > { %v10163_v45 = vadd.f32 %v9885_v32, %v3543_v21  ;;  %v3813_v36 = vmul.f32 0.014285714, %v3781_v35  ;;  %v5097_v14 = vpop.f32.mrf.mxu2 }
 0x89e   : > { %v4338_v25 = vsub.f32 1.5, %v4337_v24  ;;  %v10165_v48 = vadd.f32 1e-05, %v4190_v29  ;;  %v5098_v61 = vadd.f32 %v5097_v14, %v4885_v0  ;;  %v10168_v13 = vadd.f32 %v4700_v22, %v9711_v51  ;;  %v3546_v29 = vpop.f32.mrf.mxu0 }
 0x89f   : > { %v10171_v46 = vsub.f32 %v9832_v20, %v3813_v36  ;;  %v10174_v30 = vadd.f32 %v4604_v12, %v9716_v33  ;;  %v1808_v0 = vadd.f32 %v9913_v47, %v9823_v28  ;;  %v3640_v22 = vsel %vm3570_vm0, %v10160_v6, 0.0 }
 0x8a0   : > { %11452 = vst [vmem:[#allocation35_spill] sm:$0xff] %v10168_v13  ;;  %v4339_v40 = vmul.f32 %v6902_v44, %v4338_v25  ;;  %6903 = vrsqrt.f32 %v10165_v48  ;;  %v5191_v35 = vadd.f32 %v5098_v61, %v10103_v53  ;;  %6513 = vmatmul.msk.f32.gmra.mxu1 %vm3667_vm11, %v10168_v13  ;;  %v10191_v1 = vsub.f32 %v9839_v4, %v3813_v36 }
 0x8a1   : > { %11453 = vst [vmem:[#allocation36_spill] sm:$0xff] %v10174_v30  ;;  %6546 = vmatmul.msk.f32.gmra.mxu2 %vm3570_vm0, %v10174_v30  ;;  %v4087_v20 = vpop.xlane.xlu2 %4086  ;;  %v3909_v26 = vmul.f32 %v10171_v46, %v10171_v46  ;;  %v3737_v28 = vsel %vm3667_vm11, %v10163_v45, 0.0  ;;  %vm4350_vm15 = vweird.f32 %v10165_v48 }
 0x8a2   : > { %v4343_v7 = vsel %vm4342_vm13, %v6902_v44, %v4339_v40  ;;  %v5223_v21 = vmax.f32 %v5191_v35, 0.0  ;;  %v3959_v15 = vpop.xlane.xlu1 %3958  ;;  %v3627_v43 = vpop.xlane.xlu0 %3626  ;;  %v4037_v40 = vmul.f32 %v10191_v1, %v10191_v1  ;;  %v10208_v35 = vadd.f32 %v9885_v32, %v3546_v29 }
 0x8a3   : > { %v4573_v3 = vmul.f32 %v4343_v7, %v9763_v23  ;;  %v4669_v27 = vmul.f32 %v4343_v7, %v9766_v5  ;;  %v4159_v17 = vadd.f32 %v4087_v20, %v3959_v15  ;;  %3641 = vadd.xlane.f32.xlu2 %v3640_v22  ;;  %v3975_v24 = vsel %vm3570_vm0, %v3909_v26, 0.0  ;;  %v4888_v44 = vpop.f32.mrf.mxu1  ;;  %v11454_v5 = vld [vmem:[#allocation19_spill] sm:$0xff] }
 0x8a4   : > { %3738 = vadd.xlane.f32.xlu0 %v3737_v28  ;;  %3976 = vadd.xlane.f32.xlu1 %v3975_v24  ;;  %v10203_v25 = vadd.f32 %v11454_v5, %v1808_v0  ;;  %v1811_v7 = vadd.f32 %v9913_v47, %v9859_v42  ;;  %v4103_v28 = vsel %vm3667_vm11, %v4037_v40, 0.0  ;;  %v3740_v24 = vsel %vm3667_vm11, %v10208_v35, 0.0 }
 0x8a5   : > { %v4191_v4 = vmul.f32 0.014285714, %v4159_v17  ;;  %6572 = vmatmul.msk.f32.gmra.mxu3 %vm5263_vm6, %v5223_v21  ;;  %6605 = vmatmul.msk.f32.gmra.mxu0 %vm5263_vm6, %v5223_v21  ;;  %v5100_v12 = vpop.f32.mrf.mxu2  ;;  %v4701_v36 = vmul.f32 %v4669_v27, %v9701_v57  ;;  %v4605_v23 = vmul.f32 %v4573_v3, %v9696_v34 }
 0x8a6   : > { %v6904_v14 = vpop.eup %6903  ;;  %v5101_v61 = vadd.f32 %v5100_v12, %v4888_v44  ;;  %v3643_v17 = vsel %vm3570_vm0, %v10203_v25, 0.0 }
 0x8a7   : > { %v4345_v20 = vmul.f32 %v6904_v14, %v10165_v48  ;;  %v10211_v22 = vadd.f32 1e-05, %v4191_v4  ;;  %v10214_v26 = vadd.f32 %v4701_v36, %v9711_v51  ;;  %v10218_v57 = vadd.f32 %v4605_v23, %v9716_v33  ;;  %v11457_v4 = vld [vmem:[#allocation20_spill] sm:$0xff] }
 0x8a8   : > { %v5192_v34 = vadd.f32 %v5101_v61, %v10103_v53  ;;  %vm4351_vm14 = vweird.f32 %v6904_v14 }
 0x8a9   : > { %11455 = vst [vmem:[#allocation19_spill] sm:$0xff] %v10214_v26  ;;  %v4346_v0 = vmul.f32 %v6904_v14, %v4345_v20  ;;  %6905 = vrsqrt.f32 %v10211_v22  ;;  %6514 = vmatmul.msk.f32.gmra.mxu1 %vm3667_vm11, %v10214_v26  ;;  %6547 = vmatmul.msk.f32.gmra.mxu2 %vm3570_vm0, %v10218_v57  ;;  %vm4352_vm4 = vmor %vm4350_vm15, %vm4351_vm14  ;;  %vm4360_vm1 = vweird.f32 %v10211_v22 }
 0x8aa   : > { %11456 = vst [vmem:[#allocation37_spill] sm:$0xff] %v10218_v57  ;;  %v5224_v21 = vmax.f32 %v5192_v34, 0.0  ;;  %v3724_v51 = vpop.xlane.xlu1 %3723  ;;  %v4090_v15 = vpop.xlane.xlu0 %4089 }
 0x8ab   : > { %v4347_v3 = vmul.f32 0.5, %v4346_v0  ;;  %v3782_v33 = vadd.f32 %v3724_v51, %v3627_v43  ;;  %v3962_v27 = vpop.xlane.xlu2 %3961  ;;  %4104 = vadd.xlane.f32.xlu2 %v4103_v28  ;;  %v10235_v43 = vadd.f32 %v11457_v4, %v1811_v7  ;;  %v3549_v34 = vpop.f32.mrf.mxu0 }
 0x8ac   : > { %v4160_v29 = vadd.f32 %v4090_v15, %v3962_v27  ;;  %3644 = vadd.xlane.f32.xlu0 %v3643_v17  ;;  %3741 = vadd.xlane.f32.xlu1 %v3740_v24 }
 0x8ad   : > { %v4348_v42 = vsub.f32 1.5, %v4347_v3  ;;  %v3814_v44 = vmul.f32 0.014285714, %v3782_v33  ;;  %6573 = vmatmul.msk.f32.gmra.mxu3 %vm5263_vm6, %v5224_v21  ;;  %6606 = vmatmul.msk.f32.gmra.mxu0 %vm5263_vm6, %v5224_v21 }
 0x8ae   : > { %v4192_v12 = vmul.f32 0.014285714, %v4160_v29  ;;  %v10267_v29 = vld [vmem:[%s11301_s1 + $0x10] ss:$0 sm:$0xff] }
 0x8af   : > { %v6906_v36 = vpop.eup %6905  ;;  %v4349_v23 = vmul.f32 %v6904_v14, %v4348_v42  ;;  %v10239_v5 = vsub.f32 %v9857_v11, %v3814_v44  ;;  %v10242_v61 = vsub.f32 %v9888_v2, %v3814_v44  ;;  %v10271_v44 = vadd.f32 %v9885_v32, %v3549_v34 }
 0x8b0   : > { %v4355_v40 = vmul.f32 %v6906_v36, %v10211_v22  ;;  %v10245_v20 = vadd.f32 1e-05, %v4192_v12  ;;  %v4891_v28 = vpop.f32.mrf.mxu1  ;;  %vm4361_vm5 = vweird.f32 %v6906_v36 }
 0x8b1   : > { %v4353_v0 = vsel %vm4352_vm4, %v6904_v14, %v4349_v23  ;;  %v4038_v7 = vmul.f32 %v10242_v61, %v10242_v61  ;;  %v3910_v21 = vmul.f32 %v10239_v5, %v10239_v5  ;;  %v3646_v14 = vsel %vm3570_vm0, %v10235_v43, 0.0  ;;  %v10276_v23 = vld [vmem:[%s11301_s1 + $0x13] ss:$0 sm:$0xff]  ;;  %vm4362_vm8 = vmor %vm4360_vm1, %vm4361_vm5 }
 0x8b2   : > { %v4574_v48 = vmul.f32 %v4353_v0, %v9788_v9  ;;  %v4670_v11 = vmul.f32 %v4353_v0, %v9815_v50  ;;  %v4356_v51 = vmul.f32 %v6906_v36, %v4355_v40  ;;  %6907 = vrsqrt.f32 %v10245_v20  ;;  %v3630_v2 = vpop.xlane.xlu1 %3629  ;;  %v3965_v15 = vpop.xlane.xlu0 %3964  ;;  %v10261_v9 = vld [vmem:[%s11301_s1 + $0x11] ss:$0 sm:$0xff]  ;;  %v10284_v0 = vld [vmem:[%s11301_s1 + $0x12] ss:$0 sm:$0xff] }
 0x8b3   : > { %v3727_v3 = vpop.xlane.xlu2 %3726  ;;  %v4106_v33 = vsel %vm3667_vm11, %v4038_v7, 0.0  ;;  %v3978_v27 = vsel %vm3570_vm0, %v3910_v21, 0.0  ;;  %vm4370_vm10 = vweird.f32 %v10245_v20 }
 0x8b4   : > { %v4357_v17 = vmul.f32 0.5, %v4356_v51  ;;  %v3783_v24 = vadd.f32 %v3727_v3, %v3630_v2  ;;  %3647 = vadd.xlane.f32.xlu1 %v3646_v14  ;;  %4107 = vadd.xlane.f32.xlu0 %v4106_v33  ;;  %v4702_v50 = vmul.f32 %v10261_v9, %v4670_v11  ;;  %v4606_v42 = vmul.f32 %v10267_v29, %v4574_v48 }
 0x8b5   : > { %3979 = vadd.xlane.f32.xlu2 %v3978_v27  ;;  %v1814_v3 = vadd.f32 %v9913_v47, %v9904_v63 }
 0x8b6   : > { %v4358_v4 = vsub.f32 1.5, %v4357_v17  ;;  %v3815_v12 = vmul.f32 0.014285714, %v3783_v24  ;;  %v10279_v40 = vadd.f32 %v10276_v23, %v4702_v50  ;;  %v10287_v34 = vadd.f32 %v10284_v0, %v4606_v42  ;;  %v3552_v17 = vpop.f32.mrf.mxu0  ;;  %v11460_v24 = vld [vmem:[#allocation11_spill] sm:$0xff]  ;;  %v11461_v42 = vld [vmem:[#allocation12_spill] sm:$0xff] }
 0x8b7   : > { %v5103_v7 = vpop.f32.mrf.mxu2 }
 0x8b8   : > { %11458 = vst [vmem:[#allocation20_spill] sm:$0xff] %v10279_v40  ;;  %v6908_v21 = vpop.eup %6907  ;;  %v4359_v48 = vmul.f32 %v6906_v36, %v4358_v4  ;;  %v10291_v11 = vsub.f32 %v9937_v55, %v3815_v12  ;;  %v10294_v51 = vsub.f32 %v9944_v10, %v3815_v12  ;;  %v5104_v2 = vadd.f32 %v5103_v7, %v4891_v28  ;;  %v4894_v26 = vpop.f32.mrf.mxu1 }
 0x8b9   : > { %11459 = vst [vmem:[#allocation38_spill] sm:$0xff] %v10287_v34  ;;  %6515 = vmatmul.msk.f32.gmra.mxu1 %vm3667_vm11, %v10279_v40  ;;  %v4365_v22 = vmul.f32 %v6908_v21, %v10245_v20  ;;  %6548 = vmatmul.msk.f32.gmra.mxu2 %vm3570_vm0, %v10287_v34  ;;  %v3743_v55 = vsel %vm3667_vm11, %v10271_v44, 0.0  ;;  %vm4371_vm9 = vweird.f32 %v6908_v21  ;;  %v11463_v20 = vld [vmem:[#allocation13_spill] sm:$0xff] }
 0x8ba   : > { %v4363_v14 = vsel %vm4362_vm8, %v6906_v36, %v4359_v48  ;;  %v5193_v10 = vadd.f32 %v5104_v2, %v10103_v53  ;;  %v4093_v28 = vpop.xlane.xlu1 %4092  ;;  %v3730_v33 = vpop.xlane.xlu0 %3729  ;;  %v4039_v27 = vmul.f32 %v10294_v51, %v10294_v51  ;;  %v3911_v63 = vmul.f32 %v10291_v11, %v10291_v11  ;;  %vm4372_vm7 = vmor %vm4370_vm10, %vm4371_vm9 }
 0x8bb   : > { %v4575_v50 = vmul.f32 %v4363_v14, %v11460_v24  ;;  %v4671_v4 = vmul.f32 %v4363_v14, %v11461_v42  ;;  %v4366_v12 = vmul.f32 %v6908_v21, %v4365_v22  ;;  %v4161_v7 = vadd.f32 %v4093_v28, %v3965_v15  ;;  %v3633_v34 = vpop.xlane.xlu2 %3632 }
 0x8bc   : > { %v5225_v40 = vmax.f32 %v5193_v10, 0.0  ;;  %v3784_v36 = vadd.f32 %v3730_v33, %v3633_v34  ;;  %v4109_v48 = vsel %vm3667_vm11, %v4039_v27, 0.0  ;;  %v3981_v2 = vsel %vm3570_vm0, %v3911_v63, 0.0 }
 0x8bd   : > { %v4367_v57 = vmul.f32 0.5, %v4366_v12  ;;  %v4193_v30 = vmul.f32 0.014285714, %v4161_v7  ;;  %4110 = vadd.xlane.f32.xlu1 %v4109_v48  ;;  %3982 = vadd.xlane.f32.xlu0 %v3981_v2  ;;  %v4703_v13 = vmul.f32 %v10261_v9, %v4671_v4  ;;  %v4607_v24 = vmul.f32 %v10267_v29, %v4575_v50 }
 0x8be   : > { %v10318_v14 = vadd.f32 %v9885_v32, %v3552_v17  ;;  %v3816_v15 = vmul.f32 0.014285714, %v3784_v36  ;;  %3744 = vadd.xlane.f32.xlu2 %v3743_v55  ;;  %6574 = vmatmul.msk.f32.gmra.mxu3 %vm5263_vm6, %v5225_v40  ;;  %v11462_v17 = vld [vmem:[#allocation21_spill] sm:$0xff]  ;;  %v3555_v7 = vpop.f32.mrf.mxu0 }
 0x8bf   : > { %v4368_v34 = vsub.f32 1.5, %v4367_v57  ;;  %v10321_v22 = vadd.f32 1e-05, %v4193_v30  ;;  %6607 = vmatmul.msk.f32.gmra.mxu0 %vm5263_vm6, %v5225_v40  ;;  %v5106_v10 = vpop.f32.mrf.mxu2  ;;  %v10325_v28 = vadd.f32 %v10276_v23, %v4703_v13  ;;  %v10328_v33 = vadd.f32 %v10284_v0, %v4607_v24  ;;  %v11465_v24 = vld [vmem:[#allocation22_spill] sm:$0xff] }
 0x8c0   : > { %v10331_v27 = vsub.f32 %v9980_v31, %v3816_v15  ;;  %v5107_v63 = vadd.f32 %v5106_v10, %v4894_v26  ;;  %v10334_v55 = vadd.f32 %v11462_v17, %v1814_v3  ;;  %v1817_v30 = vadd.f32 %v9913_v47, %v9955_v16  ;;  %v11464_v3 = vld [vmem:[#allocation14_spill] sm:$0xff]  ;;  %v4897_v10 = vpop.f32.mrf.mxu1 }
 0x8c1   : > { %v4369_v50 = vmul.f32 %v6908_v21, %v4368_v34  ;;  %6909 = vrsqrt.f32 %v10321_v22  ;;  %6516 = vmatmul.msk.f32.gmra.mxu1 %vm3667_vm11, %v10325_v28  ;;  %6549 = vmatmul.msk.f32.gmra.mxu2 %vm3570_vm0, %v10328_v33  ;;  %v3746_v57 = vsel %vm3667_vm11, %v10318_v14, 0.0  ;;  %v10354_v36 = vsub.f32 %v9975_v38, %v3816_v15 }
 0x8c2   : > { %v5194_v31 = vadd.f32 %v5107_v63, %v10103_v53  ;;  %v3912_v13 = vmul.f32 %v10331_v27, %v10331_v27  ;;  %v3649_v48 = vsel %vm3570_vm0, %v10334_v55, 0.0  ;;  %v10362_v34 = vadd.f32 %v11465_v24, %v1817_v30 }
 0x8c3   : > { %v4373_v26 = vsel %vm4372_vm7, %v6908_v21, %v4369_v50  ;;  %v10366_v15 = vadd.f32 %v9885_v32, %v3555_v7  ;;  %v1820_v32 = vadd.f32 %v9913_v47, %v9993_v19  ;;  %v11466_v47 = vld [vmem:[#allocation23_spill] sm:$0xff]  ;;  %vm4380_vm13 = vweird.f32 %v10321_v22 }
 0x8c4   : > { %v4576_v40 = vmul.f32 %v4373_v26, %v11463_v20  ;;  %v4672_v42 = vmul.f32 %v4373_v26, %v11464_v3  ;;  %v5226_v4 = vmax.f32 %v5194_v31, 0.0  ;;  %v3984_v12 = vsel %vm3570_vm0, %v3912_v13, 0.0 }
 0x8c5   : > { %3747 = vadd.xlane.f32.xlu0 %v3746_v57  ;;  %3985 = vadd.xlane.f32.xlu1 %v3984_v12  ;;  %v4040_v13 = vmul.f32 %v10354_v36, %v10354_v36  ;;  %v3749_v3 = vsel %vm3667_vm11, %v10366_v15, 0.0  ;;  %v10392_v19 = vadd.f32 %v11466_v47, %v1820_v32 }
 0x8c6   : > { %3650 = vadd.xlane.f32.xlu2 %v3649_v48  ;;  %6575 = vmatmul.msk.f32.gmra.mxu3 %vm5263_vm6, %v5226_v4  ;;  %v4704_v16 = vmul.f32 %v10261_v9, %v4672_v42  ;;  %v4608_v21 = vmul.f32 %v10267_v29, %v4576_v40  ;;  %v3652_v40 = vsel %vm3570_vm0, %v10362_v34, 0.0 }
 0x8c7   : > { %v6910_v2 = vpop.eup %6909  ;;  %6608 = vmatmul.msk.f32.gmra.mxu0 %vm5263_vm6, %v5226_v4  ;;  %v5109_v38 = vpop.f32.mrf.mxu2  ;;  %v4112_v42 = vsel %vm3667_vm11, %v4040_v13, 0.0 }
 0x8c8   : > { %v4375_v63 = vmul.f32 %v6910_v2, %v10321_v22  ;;  %v5110_v17 = vadd.f32 %v5109_v38, %v4897_v10  ;;  %v10370_v50 = vadd.f32 %v10276_v23, %v4704_v16  ;;  %v10373_v31 = vadd.f32 %v10284_v0, %v4608_v21 }
 0x8c9   : > { %vm4381_vm12 = vweird.f32 %v6910_v2  ;;  %v3655_v21 = vsel %vm3570_vm0, %v10392_v19, 0.0 }
 0x8ca   : > { %v4376_v30 = vmul.f32 %v6910_v2, %v4375_v63  ;;  %v5195_v26 = vadd.f32 %v5110_v17, %v10103_v53  ;;  %6517 = vmatmul.msk.f32.gmra.mxu1 %vm3667_vm11, %v10370_v50  ;;  %6550 = vmatmul.msk.f32.gmra.mxu2 %vm3570_vm0, %v10373_v31  ;;  %vm4382_vm14 = vmor %vm4380_vm13, %vm4381_vm12 }
 0x8cc   : > { %v4377_v57 = vmul.f32 0.5, %v4376_v30  ;;  %v5227_v20 = vmax.f32 %v5195_v26, 0.0 }
 0x8cd   : > { %3653 = vadd.xlane.f32.xlu0 %v3652_v40  ;;  %3750 = vadd.xlane.f32.xlu1 %v3749_v3 }
 0x8ce   : > { %v4378_v4 = vsub.f32 1.5, %v4377_v57  ;;  %4113 = vadd.xlane.f32.xlu2 %v4112_v42  ;;  %6576 = vmatmul.msk.f32.gmra.mxu3 %vm5263_vm6, %v5227_v20 }
 0x8cf   : > { %6609 = vmatmul.msk.f32.gmra.mxu0 %vm5263_vm6, %v5227_v20  ;;  %v3636_v20 = vpop.xlane.xlu0 %3635 }
 0x8d0   : > { %v4379_v12 = vmul.f32 %v6910_v2, %v4378_v4  ;;  %v4900_v17 = vpop.f32.mrf.mxu1 }
 0x8d2   : > { %v4383_v7 = vsel %vm4382_vm14, %v6910_v2, %v4379_v12 }
 0x8d3   : > { %v4577_v48 = vmul.f32 %v4383_v7, %v9931_v37  ;;  %v4673_v16 = vmul.f32 %v4383_v7, %v9958_v58 }
 0x8d5   : > { %3656 = vadd.xlane.f32.xlu1 %v3655_v21  ;;  %v4705_v24 = vmul.f32 %v10261_v9, %v4673_v16  ;;  %v4609_v10 = vmul.f32 %v10267_v29, %v4577_v48 }
 0x8d6   : > { %v4096_v38 = vpop.xlane.xlu2 %4095  ;;  %v3968_v63 = vpop.xlane.xlu1 %3967 }
 0x8d7   : > { %v5112_v13 = vpop.f32.mrf.mxu2  ;;  %v4162_v30 = vadd.f32 %v4096_v38, %v3968_v63  ;;  %v10402_v22 = vadd.f32 %v10276_v23, %v4705_v24  ;;  %v10405_v37 = vadd.f32 %v10284_v0, %v4609_v10  ;;  %v3558_v38 = vpop.f32.mrf.mxu0 }
 0x8d8   : > { %v5113_v58 = vadd.f32 %v5112_v13, %v4900_v17 }
 0x8d9   : > { %11467 = vst [vmem:[#allocation11_spill] sm:$0xff] %v10402_v22  ;;  %v4194_v2 = vmul.f32 0.014285714, %v4162_v30  ;;  %6518 = vmatmul.msk.f32.gmra.mxu1 %vm3667_vm11, %v10402_v22  ;;  %6551 = vmatmul.msk.f32.gmra.mxu2 %vm3570_vm0, %v10405_v37  ;;  %v11472_v22 = vld [vmem:[#allocation25_spill] sm:$0xff] }
 0x8da   : > { %11468 = vst [vmem:[#allocation12_spill] sm:$0xff] %v10405_v37  ;;  %v5196_v26 = vadd.f32 %v5113_v58, %v10103_v53  ;;  %v10437_v58 = vld [vmem:[%s11301_s1 + $0x5] ss:$0 sm:$0xff] }
 0x8db   : > { %v4226_v32 = vadd.f32 1e-05, %v4194_v2  ;;  %v1823_v2 = vadd.f32 %v10437_v58, %v10031_v59 }
 0x8dc   : > { %v5228_v57 = vmax.f32 %v5196_v26, 0.0 }
 0x8dd   : > { %6911 = vrsqrt.f32 %v4226_v32  ;;  %vm4390_vm4 = vweird.f32 %v4226_v32 }
 0x8de   : > { %6577 = vmatmul.msk.f32.gmra.mxu3 %vm5263_vm6, %v5228_v57  ;;  %6610 = vmatmul.msk.f32.gmra.mxu0 %vm5263_vm6, %v5228_v57  ;;  %v3733_v40 = vpop.xlane.xlu1 %3732 }
 0x8df   : > { %v3785_v3 = vadd.f32 %v3733_v40, %v3636_v20 }
 0x8e1   : > { %v3817_v42 = vmul.f32 0.014285714, %v3785_v3  ;;  %v11469_v3 = vld [vmem:[#allocation24_spill] sm:$0xff] }
 0x8e3   : > { %v6912_v4 = vpop.eup %6911  ;;  %v10415_v47 = vsub.f32 %v9996_v56, %v3817_v42  ;;  %v10418_v12 = vsub.f32 %v10087_v39, %v3817_v42  ;;  %v10429_v39 = vld [vmem:[%s11301_s1 + $0x7] ss:$0 sm:$0xff]  ;;  %v10448_v42 = vadd.f32 %v11469_v3, %v1823_v2 }
 0x8e4   : > { %v4385_v7 = vmul.f32 %v6912_v4, %v4226_v32  ;;  %vm4391_vm15 = vweird.f32 %v6912_v4  ;;  %v10432_v17 = vadd.f32 %v10429_v39, %v3558_v38 }
 0x8e5   : > { %v4041_v48 = vmul.f32 %v10418_v12, %v10418_v12  ;;  %v3913_v16 = vmul.f32 %v10415_v47, %v10415_v47  ;;  %vm4392_vm5 = vmor %vm4390_vm4, %vm4391_vm15 }
 0x8e6   : > { %v4386_v21 = vmul.f32 %v6912_v4, %v4385_v7  ;;  %v3752_v20 = vsel %vm3667_vm11, %v10432_v17, 0.0  ;;  %v3639_v38 = vpop.xlane.xlu1 %3638 }
 0x8e7   : > { %v4115_v24 = vsel %vm3667_vm11, %v4041_v48, 0.0  ;;  %v3987_v10 = vsel %vm3570_vm0, %v3913_v16, 0.0  ;;  %v3658_v16 = vsel %vm3570_vm0, %v10448_v42, 0.0 }
 0x8e8   : > { %v4387_v63 = vmul.f32 0.5, %v4386_v21  ;;  %4116 = vadd.xlane.f32.xlu0 %v4115_v24  ;;  %3988 = vadd.xlane.f32.xlu2 %v3987_v10 }
 0x8ea   : > { %v4388_v56 = vsub.f32 1.5, %v4387_v63 }
 0x8ec   : > { %v4389_v13 = vmul.f32 %v6912_v4, %v4388_v56 }
 0x8ee   : > { %v4393_v30 = vsel %vm4392_vm5, %v6912_v4, %v4389_v13  ;;  %v4903_v4 = vpop.f32.mrf.mxu1 }
 0x8ef   : > { %v4578_v26 = vmul.f32 %v4393_v30, %v10073_v18  ;;  %v4674_v57 = vmul.f32 %v4393_v30, %v10076_v54 }
 0x8f0   : > { %3753 = vadd.xlane.f32.xlu2 %v3752_v20 }
 0x8f1   : > { %v4706_v32 = vmul.f32 %v10261_v9, %v4674_v57  ;;  %v4610_v40 = vmul.f32 %v10267_v29, %v4578_v26 }
 0x8f3   : > { %v5115_v7 = vpop.f32.mrf.mxu2  ;;  %v10451_v48 = vadd.f32 %v10276_v23, %v4706_v32  ;;  %v10454_v59 = vadd.f32 %v10284_v0, %v4610_v40 }
 0x8f4   : > { %v5116_v18 = vadd.f32 %v5115_v7, %v4903_v4 }
 0x8f5   : > { %11470 = vst [vmem:[#allocation21_spill] sm:$0xff] %v10451_v48  ;;  %6519 = vmatmul.msk.f32.gmra.mxu1 %vm3667_vm11, %v10451_v48  ;;  %6552 = vmatmul.msk.f32.gmra.mxu2 %vm3570_vm0, %v10454_v59 }
 0x8f6   : > { %11471 = vst [vmem:[#allocation13_spill] sm:$0xff] %v10454_v59  ;;  %v5197_v54 = vadd.f32 %v5116_v18, %v10103_v53 }
 0x8f8   : > { %v5229_v21 = vmax.f32 %v5197_v54, 0.0  ;;  %3659 = vadd.xlane.f32.xlu2 %v3658_v16 }
 0x8fa   : > { %6578 = vmatmul.msk.f32.gmra.mxu3 %vm5263_vm6, %v5229_v21  ;;  %6611 = vmatmul.msk.f32.gmra.mxu0 %vm5263_vm6, %v5229_v21 }
 0x906   : > { %v3971_v24 = vpop.xlane.xlu2 %3970  ;;  %v4099_v10 = vpop.xlane.xlu0 %4098 }
 0x907   : > { %v4163_v63 = vadd.f32 %v4099_v10, %v3971_v24  ;;  %v3561_v24 = vpop.f32.mrf.mxu0 }
 0x909   : > { %v4195_v56 = vmul.f32 0.014285714, %v4163_v63 }
 0x90b   : > { %v4227_v13 = vadd.f32 1e-05, %v4195_v56 }
 0x90d   : > { %6913 = vrsqrt.f32 %v4227_v13  ;;  %vm4400_vm8 = vweird.f32 %v4227_v13 }
 0x90e   : > { %v3736_v30 = vpop.xlane.xlu2 %3735 }
 0x90f   : > { %v4102_v2 = vpop.xlane.xlu1 %4101  ;;  %v3786_v26 = vadd.f32 %v3736_v30, %v3639_v38  ;;  %v3974_v57 = vpop.xlane.xlu0 %3973 }
 0x910   : > { %v4164_v20 = vadd.f32 %v4102_v2, %v3974_v57 }
 0x911   : > { %v3818_v32 = vmul.f32 0.014285714, %v3786_v26  ;;  %v10481_v26 = vadd.f32 %v10429_v39, %v3561_v24  ;;  %v3564_v24 = vpop.f32.mrf.mxu0 }
 0x912   : > { %v4196_v40 = vmul.f32 0.014285714, %v4164_v20 }
 0x913   : > { %v6914_v3 = vpop.eup %6913  ;;  %v10466_v4 = vsub.f32 %v10098_v60, %v3818_v32  ;;  %v10469_v7 = vsub.f32 %v10136_v8, %v3818_v32 }
 0x914   : > { %v4395_v18 = vmul.f32 %v6914_v3, %v4227_v13  ;;  %v10471_v54 = vadd.f32 1e-05, %v4196_v40  ;;  %vm4401_vm1 = vweird.f32 %v6914_v3 }
 0x915   : > { %v4042_v16 = vmul.f32 %v10469_v7, %v10469_v7  ;;  %v3914_v21 = vmul.f32 %v10466_v4, %v10466_v4  ;;  %vm4402_vm9 = vmor %vm4400_vm8, %vm4401_vm1 }
 0x916   : > { %v4396_v10 = vmul.f32 %v6914_v3, %v4395_v18  ;;  %6915 = vrsqrt.f32 %v10471_v54  ;;  %v3642_v38 = vpop.xlane.xlu2 %3641  ;;  %vm4410_vm7 = vweird.f32 %v10471_v54 }
 0x917   : > { %v3977_v63 = vpop.xlane.xlu1 %3976  ;;  %v3739_v60 = vpop.xlane.xlu0 %3738  ;;  %v4118_v56 = vsel %vm3667_vm11, %v4042_v16, 0.0  ;;  %v3990_v8 = vsel %vm3570_vm0, %v3914_v21, 0.0  ;;  %v1826_v21 = vadd.f32 %v10437_v58, %v10070_v52 }
 0x918   : > { %v4397_v30 = vmul.f32 0.5, %v4396_v10  ;;  %v3787_v2 = vadd.f32 %v3739_v60, %v3642_v38  ;;  %4119 = vadd.xlane.f32.xlu1 %v4118_v56  ;;  %3991 = vadd.xlane.f32.xlu0 %v3990_v8  ;;  %v3755_v56 = vsel %vm3667_vm11, %v10481_v26, 0.0 }
 0x91a   : > { %v4398_v57 = vsub.f32 1.5, %v4397_v30  ;;  %v3819_v20 = vmul.f32 0.014285714, %v3787_v2 }
 0x91c   : > { %v6916_v32 = vpop.eup %6915  ;;  %v4399_v40 = vmul.f32 %v6914_v3, %v4398_v57  ;;  %v10484_v18 = vsub.f32 %v10160_v6, %v3819_v20  ;;  %v10487_v16 = vsub.f32 %v10163_v45, %v3819_v20 }
 0x91d   : > { %v4405_v10 = vmul.f32 %v6916_v32, %v10471_v54  ;;  %vm4411_vm10 = vweird.f32 %v6916_v32 }
 0x91e   : > { %v4403_v38 = vsel %vm4402_vm9, %v6914_v3, %v4399_v40  ;;  %v4105_v60 = vpop.xlane.xlu2 %4104  ;;  %v4043_v13 = vmul.f32 %v10487_v16, %v10487_v16  ;;  %v3915_v6 = vmul.f32 %v10484_v18, %v10484_v18  ;;  %vm4412_vm12 = vmor %vm4410_vm7, %vm4411_vm10 }
 0x91f   : > { %v4579_v45 = vmul.f32 %v4403_v38, %v10121_v49  ;;  %v4675_v8 = vmul.f32 %v4403_v38, %v10124_v41  ;;  %v4406_v52 = vmul.f32 %v6916_v32, %v4405_v10  ;;  %v4165_v30 = vadd.f32 %v4105_v60, %v3977_v63  ;;  %v3742_v2 = vpop.xlane.xlu1 %3741  ;;  %v3645_v57 = vpop.xlane.xlu0 %3644 }
 0x920   : > { %v3788_v20 = vadd.f32 %v3742_v2, %v3645_v57  ;;  %3756 = vadd.xlane.f32.xlu0 %v3755_v56  ;;  %v4121_v3 = vsel %vm3667_vm11, %v4043_v13, 0.0  ;;  %v3993_v40 = vsel %vm3570_vm0, %v3915_v6, 0.0  ;;  %v10505_v41 = vadd.f32 %v11472_v22, %v1826_v21  ;;  %v4906_v60 = vpop.f32.mrf.mxu1  ;;  %v11474_v57 = vld [vmem:[#allocation34_spill] sm:$0xff] }
 0x921   : > { %v4407_v59 = vmul.f32 0.5, %v4406_v52  ;;  %v4197_v48 = vmul.f32 0.014285714, %v4165_v30  ;;  %4122 = vadd.xlane.f32.xlu2 %v4121_v3  ;;  %3994 = vadd.xlane.f32.xlu1 %v3993_v40  ;;  %v4707_v37 = vmul.f32 %v10261_v9, %v4675_v8  ;;  %v4611_v49 = vmul.f32 %v10267_v29, %v4579_v45  ;;  %v11473_v30 = vld [vmem:[#allocation33_spill] sm:$0xff] }
 0x922   : > { %v10508_v63 = vadd.f32 %v10429_v39, %v3564_v24  ;;  %v3820_v10 = vmul.f32 0.014285714, %v3788_v20  ;;  %v3661_v52 = vsel %vm3570_vm0, %v10505_v41, 0.0 }
 0x923   : > { %v4408_v38 = vsub.f32 1.5, %v4407_v59  ;;  %v10510_v56 = vadd.f32 1e-05, %v4197_v48  ;;  %v10513_v13 = vadd.f32 %v10276_v23, %v4707_v37  ;;  %v10519_v45 = vadd.f32 %v10284_v0, %v4611_v49 }
 0x924   : > { %v10516_v6 = vsub.f32 %v10203_v25, %v3820_v10  ;;  %v5118_v8 = vpop.f32.mrf.mxu2  ;;  %v1829_v48 = vadd.f32 %v10437_v58, %v10084_v62  ;;  %v10532_v21 = vsub.f32 %v10208_v35, %v3820_v10  ;;  %v3758_v62 = vsel %vm3667_vm11, %v10508_v63, 0.0  ;;  %v3567_v58 = vpop.f32.mrf.mxu0 }
 0x925   : > { %v4409_v22 = vmul.f32 %v6916_v32, %v4408_v38  ;;  %6917 = vrsqrt.f32 %v10510_v56  ;;  %6520 = vmatmul.msk.f32.gmra.mxu1 %vm3667_vm11, %v10513_v13  ;;  %v5119_v37 = vadd.f32 %v5118_v8, %v4906_v60  ;;  %6553 = vmatmul.msk.f32.gmra.mxu2 %vm3570_vm0, %v10519_v45  ;;  %v11475_v8 = vld [vmem:[#allocation26_spill] sm:$0xff]  ;;  %vm4420_vm14 = vweird.f32 %v10510_v56 }
 0x926   : > { %v3916_v25 = vmul.f32 %v10516_v6, %v10516_v6 }
 0x927   : > { %v4413_v59 = vsel %vm4412_vm12, %v6916_v32, %v4409_v22  ;;  %v3648_v54 = vpop.xlane.xlu1 %3647  ;;  %v4108_v24 = vpop.xlane.xlu0 %4107  ;;  %v5198_v3 = vadd.f32 %v5119_v37, %v10103_v53  ;;  %v10545_v22 = vadd.f32 %v11475_v8, %v1829_v48 }
 0x928   : > { %v4580_v2 = vmul.f32 %v4413_v59, %v11473_v30  ;;  %v4676_v20 = vmul.f32 %v4413_v59, %v11474_v57  ;;  %v3980_v40 = vpop.xlane.xlu2 %3979  ;;  %3662 = vadd.xlane.f32.xlu0 %v3661_v52  ;;  %v3996_v35 = vsel %vm3570_vm0, %v3916_v25, 0.0  ;;  %v10548_v59 = vadd.f32 %v10429_v39, %v3567_v58  ;;  %v4909_v48 = vpop.f32.mrf.mxu1 }
 0x929   : > { %v4166_v32 = vadd.f32 %v4108_v24, %v3980_v40  ;;  %3759 = vadd.xlane.f32.xlu1 %v3758_v62  ;;  %3997 = vadd.xlane.f32.xlu2 %v3996_v35  ;;  %v5230_v49 = vmax.f32 %v5198_v3, 0.0  ;;  %v4044_v52 = vmul.f32 %v10532_v21, %v10532_v21 }
 0x92a   : > { %v4708_v10 = vmul.f32 %v10261_v9, %v4676_v20  ;;  %v4612_v38 = vmul.f32 %v10267_v29, %v4580_v2 }
 0x92b   : > { %v6918_v60 = vpop.eup %6917  ;;  %v4198_v37 = vmul.f32 0.014285714, %v4166_v32  ;;  %6579 = vmatmul.msk.f32.gmra.mxu3 %vm5263_vm6, %v5230_v49  ;;  %6612 = vmatmul.msk.f32.gmra.mxu0 %vm5263_vm6, %v5230_v49  ;;  %v4124_v57 = vsel %vm3667_vm11, %v4044_v52, 0.0  ;;  %v3664_v32 = vsel %vm3570_vm0, %v10545_v22, 0.0  ;;  %v3761_v49 = vsel %vm3667_vm11, %v10548_v59, 0.0 }
 0x92c   : > { %v4415_v25 = vmul.f32 %v6918_v60, %v10510_v56  ;;  %v10556_v24 = vadd.f32 %v10276_v23, %v4708_v10  ;;  %v10559_v62 = vadd.f32 %v10284_v0, %v4612_v38  ;;  %v5121_v39 = vpop.f32.mrf.mxu2  ;;  %vm4421_vm13 = vweird.f32 %v6918_v60 }
 0x92d   : > { %v10561_v30 = vadd.f32 1e-05, %v4198_v37  ;;  %v5122_v2 = vadd.f32 %v5121_v39, %v4909_v48  ;;  %vm4422_vm15 = vmor %vm4420_vm14, %vm4421_vm13 }
 0x92e   : > { %v4416_v58 = vmul.f32 %v6918_v60, %v4415_v25  ;;  %6521 = vmatmul.msk.f32.gmra.mxu1 %vm3667_vm11, %v10556_v24  ;;  %6554 = vmatmul.msk.f32.gmra.mxu2 %vm3570_vm0, %v10559_v62 }
 0x92f   : > { %6919 = vrsqrt.f32 %v10561_v30  ;;  %v5199_v3 = vadd.f32 %v5122_v2, %v10103_v53  ;;  %vm4430_vm5 = vweird.f32 %v10561_v30 }
 0x930   : > { %v4417_v20 = vmul.f32 0.5, %v4416_v58  ;;  %v4111_v40 = vpop.xlane.xlu1 %4110  ;;  %v3983_v35 = vpop.xlane.xlu0 %3982  ;;  %4125 = vadd.xlane.f32.xlu0 %v4124_v57 }
 0x931   : > { %v3745_v10 = vpop.xlane.xlu2 %3744  ;;  %v4167_v38 = vadd.f32 %v4111_v40, %v3983_v35  ;;  %3665 = vadd.xlane.f32.xlu1 %v3664_v32  ;;  %3762 = vadd.xlane.f32.xlu2 %v3761_v49  ;;  %v5231_v37 = vmax.f32 %v5199_v3, 0.0 }
 0x932   : > { %v4418_v8 = vsub.f32 1.5, %v4417_v20  ;;  %v3789_v52 = vadd.f32 %v3745_v10, %v3648_v54 }
 0x933   : > { %v4199_v25 = vmul.f32 0.014285714, %v4167_v38  ;;  %6580 = vmatmul.msk.f32.gmra.mxu3 %vm5263_vm6, %v5231_v37  ;;  %6613 = vmatmul.msk.f32.gmra.mxu0 %vm5263_vm6, %v5231_v37 }
 0x934   : > { %v4419_v48 = vmul.f32 %v6918_v60, %v4418_v8  ;;  %v3821_v53 = vmul.f32 0.014285714, %v3789_v52 }
 0x935   : > { %v6920_v39 = vpop.eup %6919  ;;  %v10577_v58 = vadd.f32 1e-05, %v4199_v25 }
 0x936   : > { %v4423_v2 = vsel %vm4422_vm15, %v6918_v60, %v4419_v48  ;;  %v4425_v57 = vmul.f32 %v6920_v39, %v10561_v30  ;;  %v10581_v20 = vsub.f32 %v10235_v43, %v3821_v53  ;;  %v10586_v56 = vsub.f32 %v10271_v44, %v3821_v53  ;;  %v4912_v38 = vpop.f32.mrf.mxu1 }
 0x937   : > { %v4581_v54 = vmul.f32 %v4423_v2, %v10171_v46  ;;  %v4677_v3 = vmul.f32 %v4423_v2, %v10191_v1  ;;  %6921 = vrsqrt.f32 %v10577_v58  ;;  %vm4431_vm4 = vweird.f32 %v6920_v39 }
 0x938   : > { %v4426_v40 = vmul.f32 %v6920_v39, %v4425_v57  ;;  %v3986_v35 = vpop.xlane.xlu1 %3985  ;;  %v3748_v32 = vpop.xlane.xlu0 %3747  ;;  %v3917_v60 = vmul.f32 %v10581_v20, %v10581_v20  ;;  %v4045_v43 = vmul.f32 %v10586_v56, %v10586_v56  ;;  %vm4432_vm1 = vmor %vm4430_vm5, %vm4431_vm4  ;;  %vm4440_vm9 = vweird.f32 %v10577_v58 }
 0x939   : > { %v3651_v49 = vpop.xlane.xlu2 %3650  ;;  %v4709_v10 = vmul.f32 %v10261_v9, %v4677_v3  ;;  %v4613_v46 = vmul.f32 %v10267_v29, %v4581_v54 }
 0x93a   : > { %v4427_v1 = vmul.f32 0.5, %v4426_v40  ;;  %v3790_v44 = vadd.f32 %v3748_v32, %v3651_v49  ;;  %v3999_v8 = vsel %vm3570_vm0, %v3917_v60, 0.0  ;;  %v4127_v37 = vsel %vm3667_vm11, %v4045_v43, 0.0  ;;  %v10618_v49 = vld [vmem:[%s11301_s1 + $0x14] ss:$0 sm:$0xff] }
 0x93b   : > { %4000 = vadd.xlane.f32.xlu0 %v3999_v8  ;;  %v10598_v52 = vadd.f32 %v10276_v23, %v4709_v10  ;;  %v10601_v25 = vadd.f32 %v10284_v0, %v4613_v46  ;;  %4128 = vadd.xlane.f32.xlu1 %v4127_v37  ;;  %v392_v37 = vld [vmem:[%s11302_s2 + $0x48] sm:$0x3] }
 0x93c   : > { %v4428_v48 = vsub.f32 1.5, %v4427_v1  ;;  %v3822_v53 = vmul.f32 0.014285714, %v3790_v44  ;;  %v5124_v2 = vpop.f32.mrf.mxu2  ;;  %6669 = vmatpush.msk.msra.mxu2 %vm3453_vm3, %v392_v37 }
 0x93d   : > { %v6922_v57 = vpop.eup %6921  ;;  %v5125_v54 = vadd.f32 %v5124_v2, %v4912_v38  ;;  %6522 = vmatmul.msk.f32.gmra.mxu1 %vm3667_vm11, %v10598_v52  ;;  %6555 = vmatmul.msk.f32.gmra.mxu2 %vm3570_vm0, %v10601_v25 }
 0x93e   : > { %v4429_v3 = vmul.f32 %v6920_v39, %v4428_v48  ;;  %v4435_v40 = vmul.f32 %v6922_v57, %v10577_v58  ;;  %v10610_v32 = vsub.f32 %v10334_v55, %v3822_v53  ;;  %v10613_v60 = vsub.f32 %v10318_v14, %v3822_v53 }
 0x93f   : > { %v5200_v43 = vadd.f32 %v10618_v49, %v5125_v54  ;;  %vm4441_vm8 = vweird.f32 %v6922_v57 }
 0x940   : > { %v4433_v10 = vsel %vm4432_vm1, %v6920_v39, %v4429_v3  ;;  %v4436_v46 = vmul.f32 %v6922_v57, %v4435_v40  ;;  %v3751_v1 = vpop.xlane.xlu1 %3750  ;;  %v3654_v30 = vpop.xlane.xlu0 %3653  ;;  %v3918_v38 = vmul.f32 %v10610_v32, %v10610_v32  ;;  %v4046_v39 = vmul.f32 %v10613_v60, %v10613_v60  ;;  %vm4442_vm10 = vmor %vm4440_vm9, %vm4441_vm8 }
 0x941   : > { %v4582_v55 = vmul.f32 %v4433_v10, %v10239_v5  ;;  %v4678_v44 = vmul.f32 %v4433_v10, %v10242_v61  ;;  %v5232_v14 = vmax.f32 %v5200_v43, 0.0  ;;  %v4114_v8 = vpop.xlane.xlu2 %4113  ;;  %v3791_v2 = vadd.f32 %v3751_v1, %v3654_v30  ;;  %v4915_v40 = vpop.f32.mrf.mxu1 }
 0x942   : > { %v4437_v48 = vmul.f32 0.5, %v4436_v46  ;;  %v4168_v53 = vadd.f32 %v4114_v8, %v3986_v35  ;;  %v4002_v54 = vsel %vm3570_vm0, %v3918_v38, 0.0  ;;  %v4130_v46 = vsel %vm3667_vm11, %v4046_v39, 0.0 }
 0x943   : > { %6581 = vmatmul.msk.f32.gmra.mxu3 %vm5263_vm6, %v5232_v14  ;;  %6614 = vmatmul.msk.f32.gmra.mxu0 %vm5263_vm6, %v5232_v14  ;;  %v4710_v5 = vmul.f32 %v10261_v9, %v4678_v44  ;;  %v4614_v61 = vmul.f32 %v10267_v29, %v4582_v55  ;;  %v3823_v43 = vmul.f32 0.014285714, %v3791_v2 }
 0x944   : > { %v4438_v3 = vsub.f32 1.5, %v4437_v48  ;;  %v4200_v35 = vmul.f32 0.014285714, %v4168_v53  ;;  %4003 = vadd.xlane.f32.xlu2 %v4002_v54  ;;  %v5127_v10 = vpop.f32.mrf.mxu2  ;;  %4131 = vadd.xlane.f32.xlu0 %v4130_v46 }
 0x945   : > { %v5128_v1 = vadd.f32 %v5127_v10, %v4915_v40  ;;  %v10639_v30 = vadd.f32 %v10276_v23, %v4710_v5  ;;  %v10642_v44 = vsub.f32 %v10362_v34, %v3823_v43  ;;  %v10645_v55 = vsub.f32 %v10366_v15, %v3823_v43 }
 0x946   : > { %v4439_v38 = vmul.f32 %v6922_v57, %v4438_v3  ;;  %v4232_v14 = vadd.f32 1e-05, %v4200_v35  ;;  %v10652_v58 = vadd.f32 %v10284_v0, %v4614_v61 }
 0x947   : > { %v5201_v8 = vadd.f32 %v10618_v49, %v5128_v1  ;;  %6523 = vmatmul.msk.f32.gmra.mxu1 %vm3667_vm11, %v10639_v30  ;;  %v4047_v34 = vmul.f32 %v10645_v55, %v10645_v55  ;;  %v3919_v39 = vmul.f32 %v10642_v44, %v10642_v44 }
 0x948   : > { %v4443_v37 = vsel %vm4442_vm10, %v6922_v57, %v4439_v38  ;;  %6923 = vrsqrt.f32 %v4232_v14  ;;  %6556 = vmatmul.msk.f32.gmra.mxu2 %vm3570_vm0, %v10652_v58  ;;  %vm4450_vm12 = vweird.f32 %v4232_v14 }
 0x949   : > { %v4583_v48 = vmul.f32 %v4443_v37, %v10291_v11  ;;  %v4679_v15 = vmul.f32 %v4443_v37, %v10294_v51  ;;  %v5233_v53 = vmax.f32 %v5201_v8, 0.0  ;;  %v4133_v2 = vsel %vm3667_vm11, %v4047_v34, 0.0  ;;  %v4918_v3 = vpop.f32.mrf.mxu1  ;;  %v395_v37 = vld [vmem:[%s11302_s2 + $0x60] sm:$0xf] }
 0x94a   : > { %v4005_v11 = vsel %vm3570_vm0, %v3919_v39, 0.0  ;;  %6636 = vmatpush.msk.msra.mxu1 %vm1299_vm2, %v395_v37 }
 0x94b   : > { %6582 = vmatmul.msk.f32.gmra.mxu3 %vm5263_vm6, %v5233_v53  ;;  %6615 = vmatmul.msk.f32.gmra.mxu0 %vm5263_vm6, %v5233_v53  ;;  %v4711_v57 = vmul.f32 %v10261_v9, %v4679_v15  ;;  %v4615_v54 = vmul.f32 %v10267_v29, %v4583_v48 }
 0x94c   : > { %4134 = vadd.xlane.f32.xlu2 %v4133_v2  ;;  %4006 = vadd.xlane.f32.xlu1 %v4005_v11 }
 0x94d   : > { %v10669_v51 = vadd.f32 %v10276_v23, %v4711_v57  ;;  %v10672_v5 = vadd.f32 %v10284_v0, %v4615_v54  ;;  %v5130_v40 = vpop.f32.mrf.mxu2 }
 0x94e   : > { %v6924_v61 = vpop.eup %6923  ;;  %v5131_v43 = vadd.f32 %v5130_v40, %v4918_v3 }
 0x94f   : > { %v4445_v35 = vmul.f32 %v6924_v61, %v4232_v14  ;;  %6524 = vmatmul.msk.f32.gmra.mxu1 %vm3667_vm11, %v10669_v51  ;;  %vm4451_vm7 = vweird.f32 %v6924_v61 }
 0x950   : > { %v5202_v46 = vadd.f32 %v10618_v49, %v5131_v43  ;;  %6557 = vmatmul.msk.f32.gmra.mxu2 %vm3570_vm0, %v10672_v5  ;;  %vm4452_vm13 = vmor %vm4450_vm12, %vm4451_vm7 }
 0x951   : > { %v4446_v10 = vmul.f32 %v6924_v61, %v4445_v35 }
 0x952   : > { %v5234_v38 = vmax.f32 %v5202_v46, 0.0  ;;  %v391_v46 = vld [vmem:[%s11302_s2 + $0x40] sm:$0xff] }
 0x953   : > { %v4447_v1 = vmul.f32 0.5, %v4446_v10  ;;  %6051 = vmatpush.msra.mxu2 %v391_v46 }
 0x954   : > { %6583 = vmatmul.msk.f32.gmra.mxu3 %vm5263_vm6, %v5234_v38  ;;  %6616 = vmatmul.msk.f32.gmra.mxu0 %vm5263_vm6, %v5234_v38 }
 0x955   : > { %v4448_v8 = vsub.f32 1.5, %v4447_v1  ;;  %v3657_v1 = vpop.xlane.xlu1 %3656 }
 0x956   : > { %v4921_v2 = vpop.f32.mrf.mxu1 }
 0x957   : > { %v4449_v34 = vmul.f32 %v6924_v61, %v4448_v8 }
 0x959   : > { %v4453_v48 = vsel %vm4452_vm13, %v6924_v61, %v4449_v34 }
 0x95a   : > { %v4584_v15 = vmul.f32 %v4453_v48, %v10331_v27  ;;  %v4680_v53 = vmul.f32 %v4453_v48, %v10354_v36 }
 0x95b   : > { %v3989_v39 = vpop.xlane.xlu2 %3988  ;;  %v4117_v54 = vpop.xlane.xlu0 %4116 }
 0x95c   : > { %v5133_v57 = vpop.f32.mrf.mxu2  ;;  %v4712_v11 = vmul.f32 %v10261_v9, %v4680_v53  ;;  %v4616_v3 = vmul.f32 %v10267_v29, %v4584_v15  ;;  %v4169_v35 = vadd.f32 %v4117_v54, %v3989_v39 }
 0x95d   : > { %v5134_v40 = vadd.f32 %v5133_v57, %v4921_v2 }
 0x95e   : > { %v10690_v43 = vadd.f32 %v10276_v23, %v4712_v11  ;;  %v10693_v14 = vadd.f32 %v10284_v0, %v4616_v3  ;;  %v4201_v61 = vmul.f32 0.014285714, %v4169_v35 }
 0x95f   : > { %v5203_v27 = vadd.f32 %v10618_v49, %v5134_v40 }
 0x960   : > { %6525 = vmatmul.msk.f32.gmra.mxu1 %vm3667_vm11, %v10690_v43  ;;  %6558 = vmatmul.msk.f32.gmra.mxu2 %vm3570_vm0, %v10693_v14  ;;  %v4233_v10 = vadd.f32 1e-05, %v4201_v61 }
 0x961   : > { %v5235_v36 = vmax.f32 %v5203_v27, 0.0 }
 0x962   : > { %6925 = vrsqrt.f32 %v4233_v10  ;;  %vm4460_vm14 = vweird.f32 %v4233_v10 }
 0x963   : > { %6584 = vmatmul.msk.f32.gmra.mxu3 %vm5263_vm6, %v5235_v36  ;;  %6617 = vmatmul.msk.f32.gmra.mxu0 %vm5263_vm6, %v5235_v36  ;;  %v3754_v38 = vpop.xlane.xlu2 %3753 }
 0x964   : > { %v3792_v8 = vadd.f32 %v3754_v38, %v3657_v1 }
 0x966   : > { %v3824_v37 = vmul.f32 0.014285714, %v3792_v8 }
 0x968   : > { %v10706_v34 = vsub.f32 %v10392_v19, %v3824_v37  ;;  %v10709_v48 = vsub.f32 %v10432_v17, %v3824_v37  ;;  %v6926_v15 = vpop.eup %6925 }
 0x969   : > { %v4455_v53 = vmul.f32 %v6926_v15, %v4233_v10  ;;  %vm4461_vm2 = vweird.f32 %v6926_v15 }
 0x96a   : > { %v3920_v2 = vmul.f32 %v10706_v34, %v10706_v34  ;;  %v4048_v39 = vmul.f32 %v10709_v48, %v10709_v48  ;;  %vm4462_vm15 = vmor %vm4460_vm14, %vm4461_vm2 }
 0x96b   : > { %v4456_v57 = vmul.f32 %v6926_v15, %v4455_v53 }
 0x96c   : > { %v4008_v54 = vsel %vm3570_vm0, %v3920_v2, 0.0  ;;  %v4136_v11 = vsel %vm3667_vm11, %v4048_v39, 0.0 }
 0x96d   : > { %4009 = vadd.xlane.f32.xlu0 %v4008_v54  ;;  %4137 = vadd.xlane.f32.xlu1 %v4136_v11  ;;  %v4457_v19 = vmul.f32 0.5, %v4456_v57 }
 0x96f   : > { %v4458_v3 = vsub.f32 1.5, %v4457_v19 }
 0x971   : > { %v4459_v17 = vmul.f32 %v6926_v15, %v4458_v3 }
 0x972   : > { %v4924_v46 = vpop.f32.mrf.mxu1 }
 0x973   : > { %v4463_v40 = vsel %vm4462_vm15, %v6926_v15, %v4459_v17 }
 0x974   : > { %v4585_v35 = vmul.f32 %v4463_v40, %v10415_v47  ;;  %v4681_v27 = vmul.f32 %v4463_v40, %v10418_v12 }
 0x976   : > { %v4713_v61 = vmul.f32 %v10261_v9, %v4681_v27  ;;  %v4617_v36 = vmul.f32 %v10267_v29, %v4585_v35 }
 0x978   : > { %v5136_v1 = vpop.f32.mrf.mxu2  ;;  %v10722_v8 = vadd.f32 %v10276_v23, %v4713_v61  ;;  %v10725_v37 = vadd.f32 %v10284_v0, %v4617_v36  ;;  %v3660_v23 = vpop.xlane.xlu2 %3659 }
 0x979   : > { %v5137_v38 = vadd.f32 %v5136_v1, %v4924_v46 }
 0x97a   : > { %6526 = vmatmul.msk.f32.gmra.mxu1 %vm3667_vm11, %v10722_v8  ;;  %6559 = vmatmul.msk.f32.gmra.mxu2 %vm3570_vm0, %v10725_v37 }
 0x97b   : > { %v5204_v10 = vadd.f32 %v10618_v49, %v5137_v38 }
 0x97d   : > { %v5236_v9 = vmax.f32 %v5204_v10, 0.0 }
 0x97f   : > { %6585 = vmatmul.msk.f32.gmra.mxu3 %vm5263_vm6, %v5236_v9  ;;  %6618 = vmatmul.msk.f32.gmra.mxu0 %vm5263_vm6, %v5236_v9  ;;  %v390_v9 = vld [vmem:[%s11302_s2 + $0x38] sm:$0xff] }
 0x980   : > { %6052 = vmatpush.msra.mxu2 %v390_v9  ;;  %v10770_v9 = vld [vmem:[%s11301_s1 + $0x11] ss:$0 sm:$0xff] }
 0x98b   : > { %v4120_v29 = vpop.xlane.xlu1 %4119  ;;  %v3992_v47 = vpop.xlane.xlu0 %3991 }
 0x98c   : > { %v4170_v12 = vadd.f32 %v4120_v29, %v3992_v47 }
 0x98e   : > { %v4202_v15 = vmul.f32 0.014285714, %v4170_v12 }
 0x990   : > { %v4234_v0 = vadd.f32 1e-05, %v4202_v15 }
 0x992   : > { %6927 = vrsqrt.f32 %v4234_v0  ;;  %vm4470_vm5 = vweird.f32 %v4234_v0 }
 0x993   : > { %v3757_v53 = vpop.xlane.xlu0 %3756 }
 0x994   : > { %v4123_v2 = vpop.xlane.xlu2 %4122  ;;  %v3995_v39 = vpop.xlane.xlu1 %3994  ;;  %v3793_v57 = vadd.f32 %v3757_v53, %v3660_v23 }
 0x995   : > { %v4171_v54 = vadd.f32 %v4123_v2, %v3995_v39 }
 0x996   : > { %v3825_v11 = vmul.f32 0.014285714, %v3793_v57 }
 0x997   : > { %v4203_v19 = vmul.f32 0.014285714, %v4171_v54 }
 0x998   : > { %v6928_v3 = vpop.eup %6927  ;;  %v10735_v17 = vsub.f32 %v10448_v42, %v3825_v11  ;;  %v10738_v40 = vsub.f32 %v10481_v26, %v3825_v11 }
 0x999   : > { %v4465_v35 = vmul.f32 %v6928_v3, %v4234_v0  ;;  %v10740_v27 = vadd.f32 1e-05, %v4203_v19  ;;  %vm4471_vm4 = vweird.f32 %v6928_v3 }
 0x99a   : > { %v4049_v61 = vmul.f32 %v10738_v40, %v10738_v40  ;;  %v3921_v36 = vmul.f32 %v10735_v17, %v10735_v17  ;;  %vm4472_vm1 = vmor %vm4470_vm5, %vm4471_vm4 }
 0x99b   : > { %v4466_v46 = vmul.f32 %v6928_v3, %v4465_v35  ;;  %6929 = vrsqrt.f32 %v10740_v27  ;;  %v3663_v1 = vpop.xlane.xlu0 %3662  ;;  %vm4480_vm9 = vweird.f32 %v10740_v27 }
 0x99c   : > { %v3760_v38 = vpop.xlane.xlu1 %3759  ;;  %v3998_v10 = vpop.xlane.xlu2 %3997  ;;  %v4139_v42 = vsel %vm3667_vm11, %v4049_v61, 0.0  ;;  %v4011_v26 = vsel %vm3570_vm0, %v3921_v36, 0.0 }
 0x99d   : > { %v4467_v29 = vmul.f32 0.5, %v4466_v46  ;;  %v3794_v47 = vadd.f32 %v3760_v38, %v3663_v1  ;;  %4140 = vadd.xlane.f32.xlu0 %v4139_v42  ;;  %4012 = vadd.xlane.f32.xlu2 %v4011_v26 }
 0x99f   : > { %v4468_v23 = vsub.f32 1.5, %v4467_v29  ;;  %v3826_v12 = vmul.f32 0.014285714, %v3794_v47 }
 0x9a1   : > { %v6930_v15 = vpop.eup %6929  ;;  %v4469_v53 = vmul.f32 %v6928_v3, %v4468_v23  ;;  %v10753_v2 = vsub.f32 %v10505_v41, %v3826_v12  ;;  %v10756_v39 = vsub.f32 %v10508_v63, %v3826_v12 }
 0x9a2   : > { %v4475_v57 = vmul.f32 %v6930_v15, %v10740_v27  ;;  %vm4481_vm8 = vweird.f32 %v6930_v15  ;;  %v4927_v29 = vpop.f32.mrf.mxu1 }
 0x9a3   : > { %v4473_v54 = vsel %vm4472_vm1, %v6928_v3, %v4469_v53  ;;  %v4126_v11 = vpop.xlane.xlu0 %4125  ;;  %v4050_v19 = vmul.f32 %v10756_v39, %v10756_v39  ;;  %v3922_v35 = vmul.f32 %v10753_v2, %v10753_v2  ;;  %v10782_v53 = vld [vmem:[%s11301_s1 + $0x13] ss:$0 sm:$0xff]  ;;  %vm4482_vm10 = vmor %vm4480_vm9, %vm4481_vm8 }
 0x9a4   : > { %v4586_v61 = vmul.f32 %v4473_v54, %v10466_v4  ;;  %v4682_v0 = vmul.f32 %v4473_v54, %v10469_v7  ;;  %v4476_v41 = vmul.f32 %v6930_v15, %v4475_v57  ;;  %v3666_v36 = vpop.xlane.xlu1 %3665  ;;  %v3763_v46 = vpop.xlane.xlu2 %3762  ;;  %v4172_v63 = vadd.f32 %v4126_v11, %v3998_v10  ;;  %v10776_v7 = vld [vmem:[%s11301_s1 + $0x10] ss:$0 sm:$0xff]  ;;  %v10790_v54 = vld [vmem:[%s11301_s1 + $0x12] ss:$0 sm:$0xff] }
 0x9a5   : > { %v3795_v1 = vadd.f32 %v3763_v46, %v3666_v36  ;;  %v4142_v38 = vsel %vm3667_vm11, %v4050_v19, 0.0  ;;  %v4014_v3 = vsel %vm3570_vm0, %v3922_v35, 0.0 }
 0x9a6   : > { %v4477_v42 = vmul.f32 0.5, %v4476_v41  ;;  %v4204_v26 = vmul.f32 0.014285714, %v4172_v63  ;;  %4143 = vadd.xlane.f32.xlu2 %v4142_v38  ;;  %4015 = vadd.xlane.f32.xlu1 %v4014_v3  ;;  %v4714_v4 = vmul.f32 %v10770_v9, %v4682_v0  ;;  %v4618_v10 = vmul.f32 %v10776_v7, %v4586_v61 }
 0x9a7   : > { %v3827_v47 = vmul.f32 0.014285714, %v3795_v1 }
 0x9a8   : > { %v4478_v23 = vsub.f32 1.5, %v4477_v42  ;;  %v4236_v12 = vadd.f32 1e-05, %v4204_v26  ;;  %v10785_v57 = vadd.f32 %v10782_v53, %v4714_v4  ;;  %v10793_v11 = vadd.f32 %v10790_v54, %v4618_v10  ;;  %v5139_v61 = vpop.f32.mrf.mxu2 }
 0x9a9   : > { %v10796_v19 = vsub.f32 %v10545_v22, %v3827_v47  ;;  %v10799_v35 = vsub.f32 %v10548_v59, %v3827_v47  ;;  %v5140_v41 = vadd.f32 %v5139_v61, %v4927_v29 }
 0x9aa   : > { %v4479_v0 = vmul.f32 %v6930_v15, %v4478_v23  ;;  %6931 = vrsqrt.f32 %v4236_v12  ;;  %6527 = vmatmul.msk.f32.gmra.mxu1 %vm3667_vm11, %v10785_v57  ;;  %6560 = vmatmul.msk.f32.gmra.mxu2 %vm3570_vm0, %v10793_v11  ;;  %vm4490_vm12 = vweird.f32 %v4236_v12 }
 0x9ab   : > { %v3923_v22 = vmul.f32 %v10796_v19, %v10796_v19  ;;  %v4051_v59 = vmul.f32 %v10799_v35, %v10799_v35  ;;  %v5205_v63 = vadd.f32 %v10618_v49, %v5140_v41  ;;  %v4930_v47 = vpop.f32.mrf.mxu1 }
 0x9ac   : > { %v4483_v36 = vsel %vm4482_vm10, %v6930_v15, %v4479_v0 }
 0x9ad   : > { %v4587_v46 = vmul.f32 %v4483_v36, %v10484_v18  ;;  %v4683_v27 = vmul.f32 %v4483_v36, %v10487_v16  ;;  %v4017_v1 = vsel %vm3570_vm0, %v3923_v22, 0.0  ;;  %v4145_v3 = vsel %vm3667_vm11, %v4051_v59, 0.0  ;;  %v394_v22 = vld [vmem:[%s11302_s2 + $0x58] sm:$0xff] }
 0x9ae   : > { %v4001_v38 = vpop.xlane.xlu0 %4000  ;;  %4018 = vadd.xlane.f32.xlu0 %v4017_v1  ;;  %v5237_v42 = vmax.f32 %v5205_v63, 0.0  ;;  %v4129_v26 = vpop.xlane.xlu1 %4128  ;;  %4146 = vadd.xlane.f32.xlu1 %v4145_v3 }
 0x9af   : > { %v4715_v4 = vmul.f32 %v10770_v9, %v4683_v27  ;;  %v4619_v10 = vmul.f32 %v10776_v7, %v4587_v46  ;;  %v4173_v29 = vadd.f32 %v4129_v26, %v4001_v38  ;;  %5843 = vmatpush.msra.mxu1 %v394_v22  ;;  %v389_v26 = vld [vmem:[%s11302_s2 + $0x30] sm:$0xff] }
 0x9b0   : > { %v6932_v15 = vpop.eup %6931  ;;  %6586 = vmatmul.msk.f32.gmra.mxu3 %vm5263_vm6, %v5237_v42  ;;  %6619 = vmatmul.msk.f32.gmra.mxu0 %vm5263_vm6, %v5237_v42 }
 0x9b1   : > { %v4485_v18 = vmul.f32 %v6932_v15, %v4236_v12  ;;  %v5142_v16 = vpop.f32.mrf.mxu2  ;;  %v10821_v23 = vadd.f32 %v10782_v53, %v4715_v4  ;;  %v10824_v61 = vadd.f32 %v10790_v54, %v4619_v10  ;;  %v4205_v0 = vmul.f32 0.014285714, %v4173_v29  ;;  %6053 = vmatpush.msra.mxu2 %v389_v26 }
 0x9b2   : > { %v5143_v41 = vadd.f32 %v5142_v16, %v4930_v47  ;;  %vm4491_vm7 = vweird.f32 %v6932_v15 }
 0x9b3   : > { %v4486_v59 = vmul.f32 %v6932_v15, %v4485_v18  ;;  %6528 = vmatmul.msk.f32.gmra.mxu1 %vm3667_vm11, %v10821_v23  ;;  %6561 = vmatmul.msk.f32.gmra.mxu2 %vm3570_vm0, %v10824_v61  ;;  %v4237_v36 = vadd.f32 1e-05, %v4205_v0  ;;  %vm4492_vm13 = vmor %vm4490_vm12, %vm4491_vm7 }
 0x9b4   : > { %v5206_v46 = vadd.f32 %v10618_v49, %v5143_v41 }
 0x9b5   : > { %v4487_v27 = vmul.f32 0.5, %v4486_v59  ;;  %6933 = vrsqrt.f32 %v4237_v36  ;;  %vm4500_vm14 = vweird.f32 %v4237_v36 }
 0x9b6   : > { %v5238_v63 = vmax.f32 %v5206_v46, 0.0 }
 0x9b7   : > { %v4488_v1 = vsub.f32 1.5, %v4487_v27  ;;  %v4004_v38 = vpop.xlane.xlu2 %4003  ;;  %v4132_v42 = vpop.xlane.xlu0 %4131 }
 0x9b8   : > { %6587 = vmatmul.msk.f32.gmra.mxu3 %vm5263_vm6, %v5238_v63  ;;  %6620 = vmatmul.msk.f32.gmra.mxu0 %vm5263_vm6, %v5238_v63  ;;  %v4174_v4 = vadd.f32 %v4132_v42, %v4004_v38 }
 0x9b9   : > { %v4489_v3 = vmul.f32 %v6932_v15, %v4488_v1 }
 0x9ba   : > { %v4206_v16 = vmul.f32 0.014285714, %v4174_v4  ;;  %v4933_v27 = vpop.f32.mrf.mxu1 }
 0x9bb   : > { %v4493_v10 = vsel %vm4492_vm13, %v6932_v15, %v4489_v3  ;;  %v6934_v29 = vpop.eup %6933 }
 0x9bc   : > { %v4588_v18 = vmul.f32 %v4493_v10, %v10516_v6  ;;  %v4684_v47 = vmul.f32 %v4493_v10, %v10532_v21  ;;  %v4495_v12 = vmul.f32 %v6934_v29, %v4237_v36  ;;  %v4238_v0 = vadd.f32 1e-05, %v4206_v16 }
 0x9bd   : > { %vm4501_vm2 = vweird.f32 %v6934_v29 }
 0x9be   : > { %v4716_v41 = vmul.f32 %v10770_v9, %v4684_v47  ;;  %v4620_v22 = vmul.f32 %v10776_v7, %v4588_v18  ;;  %v4496_v59 = vmul.f32 %v6934_v29, %v4495_v12  ;;  %6935 = vrsqrt.f32 %v4238_v0  ;;  %vm4502_vm15 = vmor %vm4500_vm14, %vm4501_vm2 }
 0x9bf   : > { %v4135_v46 = vpop.xlane.xlu2 %4134  ;;  %v4007_v63 = vpop.xlane.xlu1 %4006  ;;  %vm4510_vm5 = vweird.f32 %v4238_v0 }
 0x9c0   : > { %v10844_v1 = vadd.f32 %v10782_v53, %v4716_v41  ;;  %v10847_v15 = vadd.f32 %v10790_v54, %v4620_v22  ;;  %v4497_v6 = vmul.f32 0.5, %v4496_v59  ;;  %v4175_v21 = vadd.f32 %v4135_v46, %v4007_v63  ;;  %v5145_v38 = vpop.f32.mrf.mxu2 }
 0x9c1   : > { %v5146_v3 = vadd.f32 %v5145_v38, %v4933_v27 }
 0x9c2   : > { %6529 = vmatmul.msk.f32.gmra.mxu1 %vm3667_vm11, %v10844_v1  ;;  %6562 = vmatmul.msk.f32.gmra.mxu2 %vm3570_vm0, %v10847_v15  ;;  %v4498_v42 = vsub.f32 1.5, %v4497_v6  ;;  %v4207_v26 = vmul.f32 0.014285714, %v4175_v21 }
 0x9c3   : > { %v5207_v4 = vadd.f32 %v10618_v49, %v5146_v3 }
 0x9c4   : > { %v4499_v10 = vmul.f32 %v6934_v29, %v4498_v42  ;;  %v4239_v18 = vadd.f32 1e-05, %v4207_v26  ;;  %v6936_v47 = vpop.eup %6935  ;;  %v4936_v27 = vpop.f32.mrf.mxu1 }
 0x9c5   : > { %v5239_v16 = vmax.f32 %v5207_v4, 0.0  ;;  %v4505_v41 = vmul.f32 %v6936_v47, %v4238_v0  ;;  %vm4511_vm4 = vweird.f32 %v6936_v47 }
 0x9c6   : > { %v4503_v12 = vsel %vm4502_vm15, %v6934_v29, %v4499_v10  ;;  %6937 = vrsqrt.f32 %v4239_v18  ;;  %vm4512_vm1 = vmor %vm4510_vm5, %vm4511_vm4  ;;  %vm4520_vm9 = vweird.f32 %v4239_v18 }
 0x9c7   : > { %v4589_v22 = vmul.f32 %v4503_v12, %v10581_v20  ;;  %v4685_v59 = vmul.f32 %v4503_v12, %v10586_v56  ;;  %6588 = vmatmul.msk.f32.gmra.mxu3 %vm5263_vm6, %v5239_v16  ;;  %6621 = vmatmul.msk.f32.gmra.mxu0 %vm5263_vm6, %v5239_v16  ;;  %v4506_v46 = vmul.f32 %v6936_v47, %v4505_v41 }
 0x9c9   : > { %v4717_v63 = vmul.f32 %v10770_v9, %v4685_v59  ;;  %v4621_v36 = vmul.f32 %v10776_v7, %v4589_v22  ;;  %v4507_v6 = vmul.f32 0.5, %v4506_v46 }
 0x9cb   : > { %v5148_v21 = vpop.f32.mrf.mxu2  ;;  %v10861_v29 = vadd.f32 %v10782_v53, %v4717_v63  ;;  %v10864_v38 = vadd.f32 %v10790_v54, %v4621_v36  ;;  %v4508_v56 = vsub.f32 1.5, %v4507_v6 }
 0x9cc   : > { %v6938_v20 = vpop.eup %6937  ;;  %v5149_v3 = vadd.f32 %v5148_v21, %v4936_v27  ;;  %v4939_v27 = vpop.f32.mrf.mxu1 }
 0x9cd   : > { %v4515_v42 = vmul.f32 %v6938_v20, %v4239_v18  ;;  %6530 = vmatmul.msk.f32.gmra.mxu1 %vm3667_vm11, %v10861_v29  ;;  %6563 = vmatmul.msk.f32.gmra.mxu2 %vm3570_vm0, %v10864_v38  ;;  %v4509_v26 = vmul.f32 %v6936_v47, %v4508_v56  ;;  %vm4521_vm8 = vweird.f32 %v6938_v20 }
 0x9ce   : > { %v5208_v4 = vadd.f32 %v10618_v49, %v5149_v3  ;;  %vm4522_vm10 = vmor %vm4520_vm9, %vm4521_vm8 }
 0x9cf   : > { %v4516_v10 = vmul.f32 %v6938_v20, %v4515_v42  ;;  %v4513_v16 = vsel %vm4512_vm1, %v6936_v47, %v4509_v26  ;;  %v388_v26 = vld [vmem:[%s11302_s2 + $0x28] sm:$0xff] }
 0x9d0   : > { %v5240_v12 = vmax.f32 %v5208_v4, 0.0  ;;  %v4590_v41 = vmul.f32 %v4513_v16, %v10610_v32  ;;  %v4686_v22 = vmul.f32 %v4513_v16, %v10613_v60  ;;  %6054 = vmatpush.msra.mxu2 %v388_v26 }
 0x9d1   : > { %v4517_v59 = vmul.f32 0.5, %v4516_v10 }
 0x9d2   : > { %6589 = vmatmul.msk.f32.gmra.mxu3 %vm5263_vm6, %v5240_v12  ;;  %6622 = vmatmul.msk.f32.gmra.mxu0 %vm5263_vm6, %v5240_v12  ;;  %v4718_v0 = vmul.f32 %v10770_v9, %v4686_v22  ;;  %v4622_v36 = vmul.f32 %v10776_v7, %v4590_v41 }
 0x9d3   : > { %v4518_v46 = vsub.f32 1.5, %v4517_v59  ;;  %v5151_v63 = vpop.f32.mrf.mxu2 }
 0x9d4   : > { %v5152_v6 = vadd.f32 %v5151_v63, %v4939_v27  ;;  %v10878_v32 = vadd.f32 %v10782_v53, %v4718_v0  ;;  %v10881_v60 = vadd.f32 %v10790_v54, %v4622_v36  ;;  %v393_v0 = vld [vmem:[%s11302_s2 + $0x50] sm:$0xff] }
 0x9d5   : > { %v4519_v47 = vmul.f32 %v6938_v20, %v4518_v46  ;;  %5844 = vmatpush.msra.mxu1 %v393_v0 }
 0x9d6   : > { %v5209_v21 = vadd.f32 %v10618_v49, %v5152_v6  ;;  %6531 = vmatmul.msk.f32.gmra.mxu1 %vm3667_vm11, %v10878_v32  ;;  %6564 = vmatmul.msk.f32.gmra.mxu2 %vm3570_vm0, %v10881_v60 }
 0x9d7   : > { %v4523_v56 = vsel %vm4522_vm10, %v6938_v20, %v4519_v47 }
 0x9d8   : > { %v4591_v3 = vmul.f32 %v4523_v56, %v10642_v44  ;;  %v4687_v18 = vmul.f32 %v4523_v56, %v10645_v55  ;;  %v5241_v42 = vmax.f32 %v5209_v21, 0.0 }
 0x9da   : > { %6590 = vmatmul.msk.f32.gmra.mxu3 %vm5263_vm6, %v5241_v42  ;;  %6623 = vmatmul.msk.f32.gmra.mxu0 %vm5263_vm6, %v5241_v42  ;;  %v4719_v20 = vmul.f32 %v10770_v9, %v4687_v18  ;;  %v4623_v4 = vmul.f32 %v10776_v7, %v4591_v3 }
 0x9dc   : > { %v10898_v10 = vadd.f32 %v10782_v53, %v4719_v20  ;;  %v10901_v44 = vadd.f32 %v10790_v54, %v4623_v4 }
 0x9dd   : > { %v4942_v41 = vpop.f32.mrf.mxu1 }
 0x9de   : > { %6532 = vmatmul.msk.f32.gmra.mxu1 %vm3667_vm11, %v10898_v10  ;;  %6565 = vmatmul.msk.f32.gmra.mxu2 %vm3570_vm0, %v10901_v44 }
 0x9e0   : > { %v4138_v55 = vpop.xlane.xlu1 %4137  ;;  %v4010_v16 = vpop.xlane.xlu0 %4009 }
 0x9e1   : > { %v4176_v12 = vadd.f32 %v4138_v55, %v4010_v16 }
 0x9e3   : > { %v5154_v22 = vpop.f32.mrf.mxu2  ;;  %v4208_v46 = vmul.f32 0.014285714, %v4176_v12 }
 0x9e4   : > { %v5155_v59 = vadd.f32 %v5154_v22, %v4942_v41 }
 0x9e5   : > { %v4240_v63 = vadd.f32 1e-05, %v4208_v46  ;;  %v387_v46 = vld [vmem:[%s11302_s2 + $0x20] sm:$0xff] }
 0x9e6   : > { %v5210_v27 = vadd.f32 %v10618_v49, %v5155_v59  ;;  %6055 = vmatpush.msra.mxu2 %v387_v46 }
 0x9e7   : > { %6939 = vrsqrt.f32 %v4240_v63  ;;  %vm4530_vm12 = vweird.f32 %v4240_v63 }
 0x9e8   : > { %v5242_v36 = vmax.f32 %v5210_v27, 0.0 }
 0x9ea   : > { %6591 = vmatmul.msk.f32.gmra.mxu3 %vm5263_vm6, %v5242_v36  ;;  %6624 = vmatmul.msk.f32.gmra.mxu0 %vm5263_vm6, %v5242_v36 }
 0x9ed   : > { %v6940_v6 = vpop.eup %6939 }
 0x9ee   : > { %v4525_v47 = vmul.f32 %v6940_v6, %v4240_v63  ;;  %vm4531_vm7 = vweird.f32 %v6940_v6 }
 0x9ef   : > { %vm4532_vm13 = vmor %vm4530_vm12, %vm4531_vm7 }
 0x9f0   : > { %v4526_v21 = vmul.f32 %v6940_v6, %v4525_v47 }
 0x9f2   : > { %v4527_v56 = vmul.f32 0.5, %v4526_v21 }
 0x9f4   : > { %v4528_v3 = vsub.f32 1.5, %v4527_v56 }
 0x9f6   : > { %v4529_v18 = vmul.f32 %v6940_v6, %v4528_v3  ;;  %v386_v3 = vld [vmem:[%s11302_s2 + $0x18] sm:$0xff] }
 0x9f7   : > { %v4945_v16 = vpop.f32.mrf.mxu1  ;;  %6056 = vmatpush.msra.mxu2 %v386_v3 }
 0x9f8   : > { %v4533_v42 = vsel %vm4532_vm13, %v6940_v6, %v4529_v18 }
 0x9f9   : > { %v4592_v26 = vmul.f32 %v4533_v42, %v10706_v34  ;;  %v4688_v20 = vmul.f32 %v4533_v42, %v10709_v48 }
 0x9fb   : > { %v4720_v4 = vmul.f32 %v10770_v9, %v4688_v20  ;;  %v4624_v55 = vmul.f32 %v10776_v7, %v4592_v26 }
 0x9fd   : > { %v5157_v12 = vpop.f32.mrf.mxu2  ;;  %v10918_v41 = vadd.f32 %v10782_v53, %v4720_v4  ;;  %v10921_v22 = vadd.f32 %v10790_v54, %v4624_v55  ;;  %v10936_v4 = vpop.f32.mrf.mxu0 }
 0x9fe   : > { %v5158_v59 = vadd.f32 %v5157_v12, %v4945_v16  ;;  %v10938_v12 = vpop.f32.mrf.mxu3 }
 0x9ff   : > { %6533 = vmatmul.msk.f32.gmra.mxu1 %vm3667_vm11, %v10918_v41  ;;  %6566 = vmatmul.msk.f32.gmra.mxu2 %vm3570_vm0, %v10921_v22 }
 0xa00   : > { %v5211_v34 = vadd.f32 %v10618_v49, %v5158_v59 }
 0xa02   : > { %v5243_v48 = vmax.f32 %v5211_v34, 0.0 }
 0xa04   : > { %6592 = vmatmul.msk.f32.gmra.mxu3 %vm5263_vm6, %v5243_v48  ;;  %6625 = vmatmul.msk.f32.gmra.mxu0 %vm5263_vm6, %v5243_v48 }
 0xa10   : > { %v4013_v27 = vpop.xlane.xlu2 %4012  ;;  %v4141_v63 = vpop.xlane.xlu0 %4140 }
 0xa11   : > { %v4177_v0 = vadd.f32 %v4141_v63, %v4013_v27 }
 0xa13   : > { %v4209_v36 = vmul.f32 0.014285714, %v4177_v0 }
 0xa15   : > { %v4241_v6 = vadd.f32 1e-05, %v4209_v36 }
 0xa17   : > { %6941 = vrsqrt.f32 %v4241_v6  ;;  %vm4540_vm14 = vweird.f32 %v4241_v6 }
 0xa19   : > { %v4144_v47 = vpop.xlane.xlu2 %4143  ;;  %v4016_v21 = vpop.xlane.xlu1 %4015 }
 0xa1a   : > { %v4178_v56 = vadd.f32 %v4144_v47, %v4016_v21  ;;  %v10940_v21 = vpop.f32.mrf.mxu0 }
 0xa1c   : > { %v4210_v18 = vmul.f32 0.014285714, %v4178_v56 }
 0xa1d   : > { %v6942_v42 = vpop.eup %6941 }
 0xa1e   : > { %v4535_v26 = vmul.f32 %v6942_v42, %v4241_v6  ;;  %v4242_v20 = vadd.f32 1e-05, %v4210_v18  ;;  %vm4541_vm2 = vweird.f32 %v6942_v42 }
 0xa1f   : > { %vm4542_vm15 = vmor %vm4540_vm14, %vm4541_vm2 }
 0xa20   : > { %v4536_v55 = vmul.f32 %v6942_v42, %v4535_v26  ;;  %6943 = vrsqrt.f32 %v4242_v20  ;;  %vm4550_vm5 = vweird.f32 %v4242_v20 }
 0xa21   : > { %v4019_v16 = vpop.xlane.xlu0 %4018  ;;  %v4147_v34 = vpop.xlane.xlu1 %4146 }
 0xa22   : > { %v4537_v59 = vmul.f32 0.5, %v4536_v55  ;;  %v4179_v48 = vadd.f32 %v4147_v34, %v4019_v16  ;;  %v10944_v55 = vpop.f32.mrf.mxu3 }
 0xa24   : > { %v4538_v46 = vsub.f32 1.5, %v4537_v59  ;;  %v4211_v27 = vmul.f32 0.014285714, %v4179_v48 }
 0xa26   : > { %v6944_v63 = vpop.eup %6943  ;;  %v4539_v0 = vmul.f32 %v6942_v42, %v4538_v46  ;;  %v4243_v47 = vadd.f32 1e-05, %v4211_v27 }
 0xa27   : > { %v4545_v36 = vmul.f32 %v6944_v63, %v4242_v20  ;;  %v4948_v6 = vpop.f32.mrf.mxu1  ;;  %vm4551_vm4 = vweird.f32 %v6944_v63 }
 0xa28   : > { %v4543_v56 = vsel %vm4542_vm15, %v6942_v42, %v4539_v0  ;;  %6945 = vrsqrt.f32 %v4243_v47  ;;  %vm4552_vm1 = vmor %vm4550_vm5, %vm4551_vm4  ;;  %vm4560_vm9 = vweird.f32 %v4243_v47 }
 0xa29   : > { %v4593_v3 = vmul.f32 %v4543_v56, %v10735_v17  ;;  %v4689_v18 = vmul.f32 %v4543_v56, %v10738_v40  ;;  %v4546_v26 = vmul.f32 %v6944_v63, %v4545_v36 }
 0xa2a   : > { %v5387_v20 = vpop.f32.mrf.mxu3 }
 0xa2b   : > { %v4547_v16 = vmul.f32 0.5, %v4546_v26  ;;  %v4721_v59 = vmul.f32 %v10770_v9, %v4689_v18  ;;  %v4625_v34 = vmul.f32 %v10776_v7, %v4593_v3  ;;  %v10959_v18 = vpop.f32.mrf.mxu0 }
 0xa2d   : > { %v4548_v48 = vsub.f32 1.5, %v4547_v16  ;;  %v5160_v46 = vpop.f32.mrf.mxu2  ;;  %v10949_v27 = vadd.f32 %v10782_v53, %v4721_v59  ;;  %v10952_v17 = vadd.f32 %v10790_v54, %v4625_v34 }
 0xa2e   : > { %v5161_v40 = vadd.f32 %v5160_v46, %v4948_v6  ;;  %v6946_v42 = vpop.eup %6945 }
 0xa2f   : > { %v4549_v0 = vmul.f32 %v6944_v63, %v4548_v48  ;;  %6534 = vmatmul.msk.f32.gmra.mxu1 %vm3667_vm11, %v10949_v27  ;;  %6567 = vmatmul.msk.f32.gmra.mxu2 %vm3570_vm0, %v10952_v17  ;;  %v4555_v36 = vmul.f32 %v6946_v42, %v4243_v47  ;;  %vm4561_vm8 = vweird.f32 %v6946_v42  ;;  %v10983_v47 = vld [vmem:[%s11301_s1 + $0x16] ss:$0 sm:$0xff] }
 0xa30   : > { %v5212_v56 = vadd.f32 %v10618_v49, %v5161_v40  ;;  %vm4562_vm10 = vmor %vm4560_vm9, %vm4561_vm8 }
 0xa31   : > { %v4553_v3 = vsel %vm4552_vm1, %v6944_v63, %v4549_v0  ;;  %v4556_v59 = vmul.f32 %v6946_v42, %v4555_v36  ;;  %v4951_v63 = vpop.f32.mrf.mxu1 }
 0xa32   : > { %v4594_v26 = vmul.f32 %v4553_v3, %v10753_v2  ;;  %v4690_v16 = vmul.f32 %v4553_v3, %v10756_v39  ;;  %v5244_v34 = vmax.f32 %v5212_v56, 0.0 }
 0xa33   : > { %v4557_v6 = vmul.f32 0.5, %v4556_v59 }
 0xa34   : > { %6593 = vmatmul.msk.f32.gmra.mxu3 %vm5263_vm6, %v5244_v34  ;;  %6626 = vmatmul.msk.f32.gmra.mxu0 %vm5263_vm6, %v5244_v34  ;;  %v4722_v48 = vmul.f32 %v10770_v9, %v4690_v16  ;;  %v4626_v46 = vmul.f32 %v10776_v7, %v4594_v26  ;;  %v5579_v26 = vpop.f32.mrf.mxu0 }
 0xa35   : > { %v4558_v40 = vsub.f32 1.5, %v4557_v6 }
 0xa36   : > { %v5163_v0 = vpop.f32.mrf.mxu2  ;;  %v10968_v2 = vadd.f32 %v10782_v53, %v4722_v48  ;;  %v10971_v39 = vadd.f32 %v10790_v54, %v4626_v46  ;;  %v10988_v48 = vld [vmem:[%s11301_s1 + $0x15] ss:$0 sm:$0xff]  ;;  %v5390_v46 = vpop.f32.mrf.mxu3 }
 0xa37   : > { %v5164_v36 = vadd.f32 %v5163_v0, %v4951_v63  ;;  %v4559_v56 = vmul.f32 %v6946_v42, %v4558_v40  ;;  %v11479_v0 = vld [vmem:[#allocation7_spill] sm:$0xff] }
 0xa38   : > { %6535 = vmatmul.msk.f32.gmra.mxu1 %vm3667_vm11, %v10968_v2  ;;  %6568 = vmatmul.msk.f32.gmra.mxu2 %vm3570_vm0, %v10971_v39 }
 0xa39   : > { %v5213_v3 = vadd.f32 %v10618_v49, %v5164_v36  ;;  %v4563_v16 = vsel %vm4562_vm10, %v6946_v42, %v4559_v56  ;;  %v5382_v42 = vadd.f32 %v10938_v12, %v10988_v48 }
 0xa3a   : > { %v4595_v59 = vmul.f32 %v4563_v16, %v10796_v19  ;;  %v4691_v34 = vmul.f32 %v4563_v16, %v10799_v35  ;;  %v5571_v35 = vadd.f32 %v10936_v4, %v10983_v47 }
 0xa3b   : > { %v5245_v6 = vmax.f32 %v5213_v3, 0.0  ;;  %v5477_v36 = vadd.f32 %v5382_v42, %v11479_v0 }
 0xa3c   : > { %v4723_v49 = vmul.f32 %v10770_v9, %v4691_v34  ;;  %v4627_v19 = vmul.f32 %v10776_v7, %v4595_v59  ;;  %v11478_v9 = vld [vmem:[#allocation6_spill] sm:$0xff]  ;;  %v5582_v4 = vpop.f32.mrf.mxu0  ;;  %v5385_v34 = vadd.f32 %v10944_v55, %v10988_v48 }
 0xa3d   : > { %6594 = vmatmul.msk.f32.gmra.mxu3 %vm5263_vm6, %v5245_v6  ;;  %6627 = vmatmul.msk.f32.gmra.mxu0 %vm5263_vm6, %v5245_v6  ;;  %v5666_v7 = vadd.f32 %v5571_v35, %v11478_v9  ;;  %v5509_v59 = vmax.f32 %v5477_v36, 0.0  ;;  %v11017_v6 = vld [vmem:[%s11301_s1 + $0x14] ss:$0 sm:$0xff]  ;;  %v11480_v35 = vld [vmem:[#allocation5_spill] sm:$0xff]  ;;  %v11481_v9 = vld [vmem:[#allocation8_spill] sm:$0xff]  ;;  %v5577_v36 = vadd.f32 %v10959_v18, %v10983_v47 }
 0xa3e   : > { %v10999_v40 = vadd.f32 %v10782_v53, %v4723_v49  ;;  %v11002_v63 = vadd.f32 %v10790_v54, %v4627_v19  ;;  %v5393_v12 = vpop.f32.mrf.mxu3  ;;  %v5574_v54 = vadd.f32 %v10940_v21, %v10983_v47 }
 0xa3f   : > { %v4954_v56 = vpop.f32.mrf.mxu1  ;;  %v5698_v53 = vmax.f32 %v5666_v7, 0.0  ;;  %v5478_v7 = vadd.f32 %v5385_v34, %v11481_v9 }
 0xa40   : > { %11476 = vst [vmem:[#allocation14_spill] sm:$0xff] %v10999_v40  ;;  %6536 = vmatmul.msk.f32.gmra.mxu1 %vm3667_vm11, %v10999_v40  ;;  %6569 = vmatmul.msk.f32.gmra.mxu2 %vm3570_vm0, %v11002_v63  ;;  %v5667_v42 = vadd.f32 %v5574_v54, %v11480_v35  ;;  %v11482_v54 = vld [vmem:[#allocation9_spill] sm:$0xff] }
 0xa41   : > { %11477 = vst [vmem:[#allocation22_spill] sm:$0xff] %v11002_v63  ;;  %v5510_v0 = vmax.f32 %v5478_v7, 0.0  ;;  %v5668_v34 = vadd.f32 %v5577_v36, %v11482_v54  ;;  %v5391_v63 = vadd.f32 %v5390_v46, %v10988_v48 }
 0xa42   : > { %v5699_v55 = vmax.f32 %v5667_v42, 0.0 }
 0xa43   : > { %v5700_v7 = vmax.f32 %v5668_v34, 0.0 }
 0xa44   : > { %v5585_v21 = vpop.f32.mrf.mxu0 }
 0xa45   : > { %v5166_v3 = vpop.f32.mrf.mxu2 }
 0xa46   : > { %v5167_v16 = vadd.f32 %v5166_v3, %v4954_v56  ;;  %v5388_v56 = vadd.f32 %v5387_v20, %v10988_v48  ;;  %v5580_v20 = vadd.f32 %v5579_v26, %v10983_v47 }
 0xa48   : > { %v5214_v49 = vadd.f32 %v11017_v6, %v5167_v16  ;;  %6637 = vmatmul.msk.f32.vlgmr.msra.gmra.mxu1 %vm3667_vm11, %v5698_v53  ;;  %6670 = vmatmul.msk.f32.vlgmr.msra.gmra.mxu2 %vm3570_vm0, %v5509_v59  ;;  %v5396_v16 = vpop.f32.mrf.mxu3 }
 0xa4a   : > { %v5246_v19 = vmax.f32 %v5214_v49, 0.0  ;;  %v4957_v3 = vpop.f32.mrf.mxu1  ;;  %v11483_v49 = vld [vmem:[#allocation10_spill] sm:$0xff] }
 0xa4c   : > { %6595 = vmatmul.msk.f32.gmra.mxu3 %vm5263_vm6, %v5246_v19  ;;  %6628 = vmatmul.msk.f32.gmra.mxu0 %vm5263_vm6, %v5246_v19  ;;  %v5479_v19 = vadd.f32 %v5388_v56, %v11483_v49  ;;  %v5588_v42 = vpop.f32.mrf.mxu0  ;;  %v11485_v56 = vld [vmem:[#allocation28_spill] sm:$0xff]  ;;  %v5583_v49 = vadd.f32 %v5582_v4, %v10983_v47 }
 0xa4e   : > { %v5511_v18 = vmax.f32 %v5479_v19, 0.0  ;;  %v5394_v19 = vadd.f32 %v5393_v12, %v10988_v48 }
 0xa50   : > { %v5169_v53 = vpop.f32.mrf.mxu2  ;;  %6638 = vmatmul.msk.f32.gmra.mxu1 %vm3667_vm11, %v5699_v55  ;;  %6671 = vmatmul.msk.f32.gmra.mxu2 %vm3570_vm0, %v5510_v0  ;;  %v5399_v40 = vpop.f32.mrf.mxu3  ;;  %v11484_v0 = vld [vmem:[#allocation27_spill] sm:$0xff] }
 0xa51   : > { %v5170_v59 = vadd.f32 %v5169_v53, %v4957_v3  ;;  %v5669_v36 = vadd.f32 %v5580_v20, %v11484_v0  ;;  %v5480_v3 = vadd.f32 %v5391_v63, %v11485_v56  ;;  %v11486_v63 = vld [vmem:[#allocation29_spill] sm:$0xff] }
 0xa53   : > { %v5215_v35 = vadd.f32 %v11017_v6, %v5170_v59  ;;  %v4960_v55 = vpop.f32.mrf.mxu1  ;;  %v5701_v46 = vmax.f32 %v5669_v36, 0.0  ;;  %v5512_v34 = vmax.f32 %v5480_v3, 0.0 }
 0xa54   : > { %v5591_v54 = vpop.f32.mrf.mxu0 }
 0xa55   : > { %v5247_v9 = vmax.f32 %v5215_v35, 0.0 }
 0xa57   : > { %6596 = vmatmul.msk.f32.gmra.mxu3 %vm5263_vm6, %v5247_v9  ;;  %6629 = vmatmul.msk.f32.gmra.mxu0 %vm5263_vm6, %v5247_v9 }
 0xa58   : > { %6639 = vmatmul.msk.f32.gmra.mxu1 %vm3667_vm11, %v5700_v7  ;;  %6672 = vmatmul.msk.f32.gmra.mxu2 %vm3570_vm0, %v5511_v18  ;;  %v5402_v35 = vpop.f32.mrf.mxu3  ;;  %v5670_v7 = vadd.f32 %v5583_v49, %v11486_v63  ;;  %v11487_v18 = vld [vmem:[#allocation15_spill] sm:$0xff] }
 0xa59   : > { %v5172_v53 = vpop.f32.mrf.mxu2  ;;  %v5481_v20 = vadd.f32 %v5394_v19, %v11487_v18  ;;  %v11489_v19 = vld [vmem:[#allocation31_spill] sm:$0xff] }
 0xa5a   : > { %v5173_v59 = vadd.f32 %v5172_v53, %v4960_v55  ;;  %v5702_v56 = vmax.f32 %v5670_v7, 0.0  ;;  %v5586_v53 = vadd.f32 %v5585_v21, %v10983_v47  ;;  %v5589_v21 = vadd.f32 %v5588_v42, %v10983_v47  ;;  %v11492_v42 = vld [vmem:[#allocation18_spill] sm:$0xff] }
 0xa5b   : > { %v4963_v55 = vpop.f32.mrf.mxu1  ;;  %v5513_v3 = vmax.f32 %v5481_v20, 0.0 }
 0xa5c   : > { %v5216_v26 = vadd.f32 %v11017_v6, %v5173_v59  ;;  %v5594_v4 = vpop.f32.mrf.mxu0  ;;  %v5397_v59 = vadd.f32 %v5396_v16, %v10988_v48  ;;  %v5400_v16 = vadd.f32 %v5399_v40, %v10988_v48 }
 0xa5e   : > { %v5248_v9 = vmax.f32 %v5216_v26, 0.0 }
 0xa60   : > { %6640 = vmatmul.msk.f32.gmra.mxu1 %vm3667_vm11, %v5701_v46  ;;  %6673 = vmatmul.msk.f32.gmra.mxu2 %vm3570_vm0, %v5512_v34  ;;  %v5405_v26 = vpop.f32.mrf.mxu3  ;;  %v11488_v34 = vld [vmem:[#allocation30_spill] sm:$0xff] }
 0xa61   : > { %6597 = vmatmul.msk.f32.gmra.mxu3 %vm5263_vm6, %v5248_v9  ;;  %6630 = vmatmul.msk.f32.gmra.mxu0 %vm5263_vm6, %v5248_v9  ;;  %v5175_v0 = vpop.f32.mrf.mxu2  ;;  %v5671_v49 = vadd.f32 %v5586_v53, %v11488_v34  ;;  %v5482_v9 = vadd.f32 %v5397_v59, %v11489_v19  ;;  %v5592_v53 = vadd.f32 %v5591_v54, %v10983_v47 }
 0xa62   : > { %v5176_v36 = vadd.f32 %v5175_v0, %v4963_v55  ;;  %v11490_v55 = vld [vmem:[#allocation16_spill] sm:$0xff]  ;;  %v5403_v59 = vadd.f32 %v5402_v35, %v10988_v48  ;;  %v11494_v35 = vld [vmem:[#allocation35_spill] sm:$0xff] }
 0xa63   : > { %v5703_v63 = vmax.f32 %v5671_v49, 0.0  ;;  %v5514_v7 = vmax.f32 %v5482_v9, 0.0  ;;  %v5672_v0 = vadd.f32 %v5589_v21, %v11490_v55  ;;  %v5673_v34 = vadd.f32 %v5592_v53, %v11492_v42  ;;  %v11493_v49 = vld [vmem:[#allocation32_spill] sm:$0xff] }
 0xa64   : > { %v5217_v12 = vadd.f32 %v11017_v6, %v5176_v36  ;;  %v5597_v18 = vpop.f32.mrf.mxu0  ;;  %v11491_v36 = vld [vmem:[#allocation17_spill] sm:$0xff]  ;;  %v5484_v19 = vadd.f32 %v5403_v59, %v11493_v49  ;;  %v5406_v21 = vadd.f32 %v5405_v26, %v10988_v48  ;;  %v11495_v55 = vld [vmem:[#allocation36_spill] sm:$0xff]  ;;  %v11496_v49 = vld [vmem:[#allocation19_spill] sm:$0xff] }
 0xa65   : > { %v5705_v9 = vmax.f32 %v5673_v34, 0.0 }
 0xa66   : > { %v5249_v46 = vmax.f32 %v5217_v12, 0.0  ;;  %v5483_v12 = vadd.f32 %v5400_v16, %v11491_v36 }
 0xa68   : > { %6641 = vmatmul.msk.f32.gmra.mxu1 %vm3667_vm11, %v5702_v56  ;;  %6674 = vmatmul.msk.f32.gmra.mxu2 %vm3570_vm0, %v5513_v3  ;;  %v5408_v20 = vpop.f32.mrf.mxu3  ;;  %v5704_v56 = vmax.f32 %v5672_v0, 0.0  ;;  %v5515_v3 = vmax.f32 %v5483_v12, 0.0  ;;  %v5485_v0 = vadd.f32 %v5406_v21, %v11495_v55  ;;  %v11498_v55 = vld [vmem:[#allocation20_spill] sm:$0xff] }
 0xa69   : > { %6598 = vmatmul.msk.f32.gmra.mxu3 %vm5263_vm6, %v5249_v46  ;;  %6631 = vmatmul.msk.f32.gmra.mxu0 %vm5263_vm6, %v5249_v46  ;;  %v5409_v26 = vadd.f32 %v5408_v20, %v10988_v48 }
 0xa6a   : > { %v5517_v42 = vmax.f32 %v5485_v0, 0.0 }
 0xa6c   : > { %v5600_v46 = vpop.f32.mrf.mxu0 }
 0xa70   : > { %6642 = vmatmul.msk.f32.gmra.mxu1 %vm3667_vm11, %v5703_v63  ;;  %6675 = vmatmul.msk.f32.gmra.mxu2 %vm3570_vm0, %v5514_v7  ;;  %v5411_v40 = vpop.f32.mrf.mxu3  ;;  %v5516_v63 = vmax.f32 %v5484_v19, 0.0  ;;  %v5595_v7 = vadd.f32 %v5594_v4, %v10983_v47  ;;  %v5598_v4 = vadd.f32 %v5597_v18, %v10983_v47  ;;  %v5601_v18 = vadd.f32 %v5600_v46, %v10983_v47 }
 0xa71   : > { %v5412_v20 = vadd.f32 %v5411_v40, %v10988_v48 }
 0xa72   : > { %v5674_v16 = vadd.f32 %v5595_v7, %v11494_v35  ;;  %v5675_v19 = vadd.f32 %v5598_v4, %v11496_v49  ;;  %v5676_v0 = vadd.f32 %v5601_v18, %v11498_v55 }
 0xa74   : > { %v5603_v54 = vpop.f32.mrf.mxu0  ;;  %v5706_v59 = vmax.f32 %v5674_v16, 0.0  ;;  %v5707_v35 = vmax.f32 %v5675_v19, 0.0 }
 0xa75   : > { %v5604_v4 = vadd.f32 %v5603_v54, %v10983_v47 }
 0xa77   : > { %v5677_v46 = vadd.f32 %v5604_v4, %v10325_v28 }
 0xa78   : > { %6643 = vmatmul.msk.f32.gmra.mxu1 %vm3667_vm11, %v5704_v56  ;;  %6676 = vmatmul.msk.f32.gmra.mxu2 %vm3570_vm0, %v5515_v3  ;;  %v5414_v56 = vpop.f32.mrf.mxu3 }
 0xa79   : > { %v5709_v19 = vmax.f32 %v5677_v46, 0.0 }
 0xa7c   : > { %v4966_v36 = vpop.f32.mrf.mxu1  ;;  %v5606_v7 = vpop.f32.mrf.mxu0 }
 0xa80   : > { %6644 = vmatmul.msk.f32.gmra.mxu1 %vm3667_vm11, %v5705_v9  ;;  %6677 = vmatmul.msk.f32.gmra.mxu2 %vm3570_vm0, %v5516_v63  ;;  %v11497_v9 = vld [vmem:[#allocation37_spill] sm:$0xff]  ;;  %v5417_v21 = vpop.f32.mrf.mxu3 }
 0xa81   : > { %v5486_v63 = vadd.f32 %v5409_v26, %v11497_v9  ;;  %v5415_v26 = vadd.f32 %v5414_v56, %v10988_v48 }
 0xa82   : > { %v5178_v12 = vpop.f32.mrf.mxu2 }
 0xa83   : > { %v5179_v3 = vadd.f32 %v5178_v12, %v4966_v36  ;;  %v5518_v16 = vmax.f32 %v5486_v63, 0.0  ;;  %v11499_v36 = vld [vmem:[#allocation38_spill] sm:$0xff]  ;;  %v5488_v40 = vadd.f32 %v5415_v26, %v10328_v33  ;;  %v5607_v63 = vadd.f32 %v5606_v7, %v10983_v47  ;;  %v11500_v7 = vld [vmem:[#allocation11_spill] sm:$0xff] }
 0xa84   : > { %v5487_v12 = vadd.f32 %v5412_v20, %v11499_v36 }
 0xa85   : > { %v5218_v53 = vadd.f32 %v11017_v6, %v5179_v3  ;;  %v5609_v3 = vpop.f32.mrf.mxu0  ;;  %v5520_v9 = vmax.f32 %v5488_v40, 0.0  ;;  %v5678_v54 = vadd.f32 %v5607_v63, %v10370_v50  ;;  %v11503_v40 = vld [vmem:[#allocation13_spill] sm:$0xff] }
 0xa86   : > { %v5610_v20 = vadd.f32 %v5609_v3, %v10983_v47  ;;  %v11502_v3 = vld [vmem:[#allocation21_spill] sm:$0xff] }
 0xa87   : > { %v5250_v34 = vmax.f32 %v5218_v53, 0.0  ;;  %v5710_v18 = vmax.f32 %v5678_v54, 0.0 }
 0xa88   : > { %6645 = vmatmul.msk.f32.gmra.mxu1 %vm3667_vm11, %v5706_v59  ;;  %6678 = vmatmul.msk.f32.gmra.mxu2 %vm3570_vm0, %v5517_v42  ;;  %v5420_v53 = vpop.f32.mrf.mxu3  ;;  %v5708_v59 = vmax.f32 %v5676_v0, 0.0  ;;  %v5519_v42 = vmax.f32 %v5487_v12, 0.0  ;;  %v11501_v0 = vld [vmem:[#allocation12_spill] sm:$0xff] }
 0xa89   : > { %6599 = vmatmul.msk.f32.gmra.mxu3 %vm5263_vm6, %v5250_v34  ;;  %6632 = vmatmul.msk.f32.gmra.mxu0 %vm5263_vm6, %v5250_v34  ;;  %v5421_v55 = vadd.f32 %v5420_v53, %v10988_v48 }
 0xa8b   : > { %v5490_v36 = vadd.f32 %v5421_v55, %v11501_v0 }
 0xa8d   : > { %v5612_v34 = vpop.f32.mrf.mxu0 }
 0xa8e   : > { %v5613_v50 = vadd.f32 %v5612_v34, %v10983_v47 }
 0xa90   : > { %6646 = vmatmul.msk.f32.gmra.mxu1 %vm3667_vm11, %v5707_v35  ;;  %6679 = vmatmul.msk.f32.gmra.mxu2 %vm3570_vm0, %v5518_v16  ;;  %v5423_v49 = vpop.f32.mrf.mxu3  ;;  %v5418_v35 = vadd.f32 %v5417_v21, %v10988_v48  ;;  %v5679_v21 = vadd.f32 %v5610_v20, %v11500_v7  ;;  %v5680_v53 = vadd.f32 %v5613_v50, %v11502_v3 }
 0xa92   : > { %v5489_v56 = vadd.f32 %v5418_v35, %v10373_v31  ;;  %v5711_v31 = vmax.f32 %v5679_v21, 0.0  ;;  %v5712_v34 = vmax.f32 %v5680_v53, 0.0 }
 0xa94   : > { %v5521_v33 = vmax.f32 %v5489_v56, 0.0 }
 0xa95   : > { %v5615_v16 = vpop.f32.mrf.mxu0 }
 0xa96   : > { %v5616_v56 = vadd.f32 %v5615_v16, %v10983_v47 }
 0xa98   : > { %6647 = vmatmul.msk.f32.gmra.mxu1 %vm3667_vm11, %v5708_v59  ;;  %6680 = vmatmul.msk.f32.gmra.mxu2 %vm3570_vm0, %v5519_v42  ;;  %v5426_v28 = vpop.f32.mrf.mxu3  ;;  %v5522_v59 = vmax.f32 %v5490_v36, 0.0  ;;  %v5424_v42 = vadd.f32 %v5423_v49, %v10988_v48  ;;  %v5681_v55 = vadd.f32 %v5616_v56, %v10513_v13  ;;  %v11147_v56 = vld [vmem:[%s11301_s1 + $0x17] ss:$0 sm:$0xff] }
 0xa99   : > { %v5427_v49 = vadd.f32 %v5426_v28, %v10988_v48 }
 0xa9a   : > { %v5713_v36 = vmax.f32 %v5681_v55, 0.0 }
 0xa9b   : > { %v5492_v7 = vadd.f32 %v5427_v49, %v10519_v45 }
 0xa9d   : > { %v5618_v4 = vpop.f32.mrf.mxu0 }
 0xa9e   : > { %v5619_v50 = vadd.f32 %v5618_v4, %v10983_v47 }
 0xaa0   : > { %6648 = vmatmul.msk.f32.gmra.mxu1 %vm3667_vm11, %v5709_v19  ;;  %6681 = vmatmul.msk.f32.gmra.mxu2 %vm3570_vm0, %v5520_v9  ;;  %v5429_v26 = vpop.f32.mrf.mxu3  ;;  %v5491_v19 = vadd.f32 %v5424_v42, %v11503_v40  ;;  %v5682_v45 = vadd.f32 %v5619_v50, %v10556_v24 }
 0xaa2   : > { %v5523_v54 = vmax.f32 %v5491_v19, 0.0  ;;  %v5714_v40 = vmax.f32 %v5682_v45, 0.0 }
 0xaa8   : > { %6649 = vmatmul.msk.f32.gmra.mxu1 %vm3667_vm11, %v5710_v18  ;;  %6682 = vmatmul.msk.f32.gmra.mxu2 %vm3570_vm0, %v5521_v33  ;;  %v5621_v18 = vpop.f32.mrf.mxu0  ;;  %v5432_v20 = vpop.f32.mrf.mxu3 }
 0xaa9   : > { %v5622_v4 = vadd.f32 %v5621_v18, %v10983_v47 }
 0xaab   : > { %v5683_v24 = vadd.f32 %v5622_v4, %v10598_v52 }
 0xaac   : > { %v4969_v12 = vpop.f32.mrf.mxu1 }
 0xaad   : > { %v5715_v18 = vmax.f32 %v5683_v24, 0.0 }
 0xab0   : > { %6650 = vmatmul.msk.f32.gmra.mxu1 %vm3667_vm11, %v5711_v31  ;;  %6683 = vmatmul.msk.f32.gmra.mxu2 %vm3570_vm0, %v5522_v59  ;;  %v5430_v31 = vadd.f32 %v5429_v26, %v10988_v48  ;;  %v5624_v42 = vpop.f32.mrf.mxu0  ;;  %v5435_v13 = vpop.f32.mrf.mxu3 }
 0xab1   : > { %v5625_v52 = vadd.f32 %v5624_v42, %v10983_v47 }
 0xab2   : > { %v5181_v46 = vpop.f32.mrf.mxu2  ;;  %v5493_v3 = vadd.f32 %v5430_v31, %v10559_v62 }
 0xab3   : > { %v5182_v9 = vadd.f32 %v5181_v46, %v4969_v12  ;;  %v5524_v12 = vmax.f32 %v5492_v7, 0.0  ;;  %v5684_v7 = vadd.f32 %v5625_v52, %v10639_v30 }
 0xab4   : > { %v5525_v19 = vmax.f32 %v5493_v3, 0.0 }
 0xab5   : > { %v5219_v63 = vadd.f32 %v11017_v6, %v5182_v9  ;;  %v4972_v35 = vpop.f32.mrf.mxu1  ;;  %v5433_v9 = vadd.f32 %v5432_v20, %v10988_v48  ;;  %v5716_v31 = vmax.f32 %v5684_v7, 0.0 }
 0xab7   : > { %v5251_v33 = vmax.f32 %v5219_v63, 0.0  ;;  %v5494_v62 = vadd.f32 %v5433_v9, %v10601_v25  ;;  %v5436_v25 = vadd.f32 %v5435_v13, %v10988_v48 }
 0xab8   : > { %6651 = vmatmul.msk.f32.gmra.mxu1 %vm3667_vm11, %v5712_v34  ;;  %6684 = vmatmul.msk.f32.gmra.mxu2 %vm3570_vm0, %v5523_v54  ;;  %v5627_v34 = vpop.f32.mrf.mxu0  ;;  %v5438_v54 = vpop.f32.mrf.mxu3 }
 0xab9   : > { %6600 = vmatmul.msk.f32.gmra.mxu3 %vm5263_vm6, %v5251_v33  ;;  %6633 = vmatmul.msk.f32.gmra.mxu0 %vm5263_vm6, %v5251_v33  ;;  %v5526_v20 = vmax.f32 %v5494_v62, 0.0  ;;  %v5439_v42 = vadd.f32 %v5438_v54, %v10988_v48 }
 0xabb   : > { %v5184_v21 = vpop.f32.mrf.mxu2 }
 0xabc   : > { %v5185_v0 = vadd.f32 %v5184_v21, %v4972_v35  ;;  %v5495_v21 = vadd.f32 %v5436_v25, %v10652_v58  ;;  %v5496_v58 = vadd.f32 %v5439_v42, %v10672_v5 }
 0xabd   : > { %v4975_v28 = vpop.f32.mrf.mxu1 }
 0xabe   : > { %v5220_v16 = vadd.f32 %v11017_v6, %v5185_v0 }
 0xac0   : > { %v5252_v59 = vmax.f32 %v5220_v16, 0.0  ;;  %6652 = vmatmul.msk.f32.gmra.mxu1 %vm3667_vm11, %v5713_v36  ;;  %6685 = vmatmul.msk.f32.gmra.mxu2 %vm3570_vm0, %v5524_v12  ;;  %v5630_v0 = vpop.f32.mrf.mxu0  ;;  %v5441_v16 = vpop.f32.mrf.mxu3  ;;  %v5628_v12 = vadd.f32 %v5627_v34, %v10983_v47 }
 0xac1   : > { %v5442_v9 = vadd.f32 %v5441_v16, %v10988_v48 }
 0xac2   : > { %6601 = vmatmul.msk.f32.gmra.mxu3 %vm5263_vm6, %v5252_v59  ;;  %6634 = vmatmul.msk.f32.gmra.mxu0 %vm5263_vm6, %v5252_v59  ;;  %v5527_v59 = vmax.f32 %v5495_v21, 0.0  ;;  %v5685_v30 = vadd.f32 %v5628_v12, %v10669_v51 }
 0xac3   : > { %v5187_v53 = vpop.f32.mrf.mxu2  ;;  %v5497_v5 = vadd.f32 %v5442_v9, %v10693_v14 }
 0xac4   : > { %v5188_v46 = vadd.f32 %v5187_v53, %v4975_v28  ;;  %v5717_v4 = vmax.f32 %v5685_v30, 0.0 }
 0xac5   : > { %v5846_v26 = vpop.f32.mrf.mxu1 }
 0xac6   : > { %v5221_v63 = vadd.f32 %v11017_v6, %v5188_v46 }
 0xac8   : > { %v5253_v35 = vmax.f32 %v5221_v63, 0.0  ;;  %6653 = vmatmul.msk.f32.gmra.mxu1 %vm3667_vm11, %v5714_v40  ;;  %6686 = vmatmul.msk.f32.gmra.mxu2 %vm3570_vm0, %v5525_v19  ;;  %v5633_v45 = vpop.f32.mrf.mxu0  ;;  %v5444_v3 = vpop.f32.mrf.mxu3  ;;  %v5528_v40 = vmax.f32 %v5496_v58, 0.0  ;;  %v5631_v19 = vadd.f32 %v5630_v0, %v10983_v47 }
 0xac9   : > { %v5634_v54 = vadd.f32 %v5633_v45, %v10983_v47 }
 0xaca   : > { %6602 = vmatmul.msk.f32.gmra.mxu3 %vm5263_vm6, %v5253_v35  ;;  %6635 = vmatmul.msk.f32.gmra.mxu0 %vm5263_vm6, %v5253_v35  ;;  %v5686_v51 = vadd.f32 %v5631_v19, %v10690_v43 }
 0xacb   : > { %v6058_v6 = vpop.f32.mrf.mxu2  ;;  %v5687_v43 = vadd.f32 %v5634_v54, %v10722_v8 }
 0xacc   : > { %v6059_v49 = vadd.f32 %v6058_v6, %v5846_v26 }
 0xacd   : > { %v5849_v33 = vpop.f32.mrf.mxu1  ;;  %v5719_v7 = vmax.f32 %v5687_v43, 0.0 }
 0xace   : > { %v6154_v55 = vadd.f32 %v6059_v49, %v11147_v56  ;;  %v5718_v49 = vmax.f32 %v5686_v51, 0.0 }
 0xad0   : > { %6654 = vmatmul.msk.f32.gmra.mxu1 %vm3667_vm11, %v5715_v18  ;;  %6687 = vmatmul.msk.f32.gmra.mxu2 %vm3570_vm0, %v5526_v20  ;;  %v5636_v35 = vpop.f32.mrf.mxu0  ;;  %v5447_v24 = vpop.f32.mrf.mxu3  ;;  %v5529_v18 = vmax.f32 %v5497_v5, 0.0 }
 0xad1   : > { %6186 = vxpose.xlu0.b32.start [1/16] (narrow) %v6154_v55, 8 }
 0xad3   : > { %v6061_v28 = vpop.f32.mrf.mxu2 }
 0xad4   : > { %v6062_v36 = vadd.f32 %v6061_v28, %v5849_v33  ;;  %v5445_v33 = vadd.f32 %v5444_v3, %v10988_v48  ;;  %v5637_v28 = vadd.f32 %v5636_v35, %v10983_v47 }
 0xad5   : > { %v5852_v50 = vpop.f32.mrf.mxu1 }
 0xad6   : > { %v6155_v13 = vadd.f32 %v6062_v36, %v11147_v56  ;;  %v5498_v14 = vadd.f32 %v5445_v33, %v10725_v37  ;;  %v5448_v36 = vadd.f32 %v5447_v24, %v10988_v48  ;;  %v5688_v8 = vadd.f32 %v5637_v28, %v10785_v57 }
 0xad8   : > { %6655 = vmatmul.msk.f32.gmra.mxu1 %vm3667_vm11, %v5716_v31  ;;  %6688 = vmatmul.msk.f32.gmra.mxu2 %vm3570_vm0, %v5527_v59  ;;  %v5639_v25 = vpop.f32.mrf.mxu0  ;;  %v5450_v21 = vpop.f32.mrf.mxu3  ;;  %v5530_v16 = vmax.f32 %v5498_v14, 0.0  ;;  %v5499_v37 = vadd.f32 %v5448_v36, %v10793_v11  ;;  %v5720_v58 = vmax.f32 %v5688_v8, 0.0 }
 0xad9   : > { %6187 = vxpose.xlu0.b32.cont [2/16] (narrow) %v6155_v13, 8  ;;  %v5640_v42 = vadd.f32 %v5639_v25, %v10983_v47  ;;  %v5451_v3 = vadd.f32 %v5450_v21, %v10988_v48 }
 0xada   : > { %v5531_v45 = vmax.f32 %v5499_v37, 0.0 }
 0xadb   : > { %v6064_v53 = vpop.f32.mrf.mxu2  ;;  %v5689_v57 = vadd.f32 %v5640_v42, %v10821_v23  ;;  %v5500_v11 = vadd.f32 %v5451_v3, %v10824_v61 }
 0xadc   : > { %v6065_v46 = vadd.f32 %v6064_v53, %v5852_v50 }
 0xadd   : > { %v5855_v26 = vpop.f32.mrf.mxu1  ;;  %v5532_v19 = vmax.f32 %v5500_v11, 0.0 }
 0xade   : > { %v6156_v63 = vadd.f32 %v6065_v46, %v11147_v56 }
 0xae0   : > { %6656 = vmatmul.msk.f32.gmra.mxu1 %vm3667_vm11, %v5717_v4  ;;  %6689 = vmatmul.msk.f32.gmra.mxu2 %vm3570_vm0, %v5528_v40  ;;  %v5642_v31 = vpop.f32.mrf.mxu0  ;;  %v5453_v13 = vpop.f32.mrf.mxu3 }
 0xae1   : > { %6188 = vxpose.xlu0.b32.cont [3/16] (narrow) %v6156_v63, 8  ;;  %v5643_v9 = vadd.f32 %v5642_v31, %v10983_v47  ;;  %v5454_v63 = vadd.f32 %v5453_v13, %v10988_v48 }
 0xae3   : > { %v6067_v62 = vpop.f32.mrf.mxu2  ;;  %v5690_v23 = vadd.f32 %v5643_v9, %v10844_v1  ;;  %v5501_v61 = vadd.f32 %v5454_v63, %v10847_v15 }
 0xae4   : > { %v6068_v34 = vadd.f32 %v6067_v62, %v5855_v26  ;;  %v5721_v26 = vmax.f32 %v5689_v57, 0.0 }
 0xae5   : > { %v5858_v6 = vpop.f32.mrf.mxu1 }
 0xae6   : > { %v6157_v20 = vadd.f32 %v6068_v34, %v11147_v56 }
 0xae8   : > { %6657 = vmatmul.msk.f32.gmra.mxu1 %vm3667_vm11, %v5718_v49  ;;  %6690 = vmatmul.msk.f32.gmra.mxu2 %vm3570_vm0, %v5529_v18  ;;  %v5645_v51 = vpop.f32.mrf.mxu0  ;;  %v5456_v35 = vpop.f32.mrf.mxu3  ;;  %v5533_v49 = vmax.f32 %v5501_v61, 0.0 }
 0xae9   : > { %6189 = vxpose.xlu0.b32.cont [4/16] (narrow) %v6157_v20, 8  ;;  %v5646_v34 = vadd.f32 %v5645_v51, %v10983_v47  ;;  %v5457_v18 = vadd.f32 %v5456_v35, %v10988_v48 }
 0xaeb   : > { %v6070_v52 = vpop.f32.mrf.mxu2  ;;  %v5691_v1 = vadd.f32 %v5646_v34, %v10861_v29  ;;  %v5502_v15 = vadd.f32 %v5457_v18, %v10864_v38 }
 0xaec   : > { %v6071_v55 = vadd.f32 %v6070_v52, %v5858_v6  ;;  %v5722_v6 = vmax.f32 %v5690_v23, 0.0 }
 0xaed   : > { %v5861_v0 = vpop.f32.mrf.mxu1  ;;  %v5723_v25 = vmax.f32 %v5691_v1, 0.0 }
 0xaee   : > { %v6158_v12 = vadd.f32 %v6071_v55, %v11147_v56 }
 0xaf0   : > { %6658 = vmatmul.msk.f32.gmra.mxu1 %vm3667_vm11, %v5719_v7  ;;  %6691 = vmatmul.msk.f32.gmra.mxu2 %vm3570_vm0, %v5530_v16  ;;  %v5648_v20 = vpop.f32.mrf.mxu0  ;;  %v5459_v43 = vpop.f32.mrf.mxu3  ;;  %v5534_v7 = vmax.f32 %v5502_v15, 0.0 }
 0xaf1   : > { %6190 = vxpose.xlu0.b32.cont [5/16] (narrow) %v6158_v12, 8  ;;  %v5649_v21 = vadd.f32 %v5648_v20, %v10983_v47 }
 0xaf3   : > { %v6073_v50 = vpop.f32.mrf.mxu2  ;;  %v5692_v29 = vadd.f32 %v5649_v21, %v10878_v32 }
 0xaf4   : > { %v6074_v59 = vadd.f32 %v6073_v50, %v5861_v0  ;;  %v5460_v0 = vadd.f32 %v5459_v43, %v10988_v48 }
 0xaf5   : > { %v5864_v30 = vpop.f32.mrf.mxu1  ;;  %v5724_v31 = vmax.f32 %v5692_v29, 0.0 }
 0xaf6   : > { %v6159_v53 = vadd.f32 %v6074_v59, %v11147_v56  ;;  %v5503_v38 = vadd.f32 %v5460_v0, %v10881_v60 }
 0xaf8   : > { %6659 = vmatmul.msk.f32.gmra.mxu1 %vm3667_vm11, %v5720_v58  ;;  %6692 = vmatmul.msk.f32.gmra.mxu2 %vm3570_vm0, %v5531_v45  ;;  %v5651_v28 = vpop.f32.mrf.mxu0  ;;  %v5462_v36 = vpop.f32.mrf.mxu3  ;;  %v5535_v59 = vmax.f32 %v5503_v38, 0.0 }
 0xaf9   : > { %6191 = vxpose.xlu0.b32.cont [6/16] (narrow) %v6159_v53, 8  ;;  %v5652_v37 = vadd.f32 %v5651_v28, %v10983_v47  ;;  %v5463_v42 = vadd.f32 %v5462_v36, %v10988_v48 }
 0xafb   : > { %v6076_v46 = vpop.f32.mrf.mxu2  ;;  %v5693_v32 = vadd.f32 %v5652_v37, %v10898_v10  ;;  %v5504_v60 = vadd.f32 %v5463_v42, %v10901_v44  ;;  %v11504_v37 = vld [vmem:[#allocation14_spill] sm:$0xff] }
 0xafc   : > { %v6077_v4 = vadd.f32 %v6076_v46, %v5864_v30 }
 0xafd   : > { %v5867_v40 = vpop.f32.mrf.mxu1  ;;  %v5725_v53 = vmax.f32 %v5693_v32, 0.0  ;;  %v5536_v11 = vmax.f32 %v5504_v60, 0.0 }
 0xafe   : > { %v6160_v5 = vadd.f32 %v6077_v4, %v11147_v56 }
 0xb00   : > { %6660 = vmatmul.msk.f32.gmra.mxu1 %vm3667_vm11, %v5721_v26  ;;  %6693 = vmatmul.msk.f32.gmra.mxu2 %vm3570_vm0, %v5532_v19 }
 0xb01   : > { %6192 = vxpose.xlu0.b32.cont [7/16] (narrow) %v6160_v5, 8 }
 0xb03   : > { %v6079_v24 = vpop.f32.mrf.mxu2 }
 0xb04   : > { %v6080_v62 = vadd.f32 %v6079_v24, %v5867_v40 }
 0xb05   : > { %v5870_v54 = vpop.f32.mrf.mxu1 }
 0xb06   : > { %v6161_v33 = vadd.f32 %v6080_v62, %v11147_v56  ;;  %v5654_v30 = vpop.f32.mrf.mxu0 }
 0xb07   : > { %v5655_v46 = vadd.f32 %v5654_v30, %v10983_v47 }
 0xb08   : > { %6661 = vmatmul.msk.f32.gmra.mxu1 %vm3667_vm11, %v5722_v6  ;;  %6694 = vmatmul.msk.f32.gmra.mxu2 %vm3570_vm0, %v5533_v49 }
 0xb09   : > { %6193 = vxpose.xlu0.b32.cont [8/16] (narrow) %v6161_v33, 8  ;;  %v5694_v10 = vadd.f32 %v5655_v46, %v10918_v41 }
 0xb0b   : > { %v6082_v14 = vpop.f32.mrf.mxu2  ;;  %v5726_v63 = vmax.f32 %v5694_v10, 0.0 }
 0xb0c   : > { %v6083_v52 = vadd.f32 %v6082_v14, %v5870_v54  ;;  %v5465_v58 = vpop.f32.mrf.mxu3 }
 0xb0d   : > { %v5873_v55 = vpop.f32.mrf.mxu1  ;;  %v5466_v4 = vadd.f32 %v5465_v58, %v10988_v48 }
 0xb0e   : > { %v6162_v16 = vadd.f32 %v6083_v52, %v11147_v56 }
 0xb0f   : > { %v5505_v44 = vadd.f32 %v5466_v4, %v10921_v22 }
 0xb10   : > { %6662 = vmatmul.msk.f32.gmra.mxu1 %vm3667_vm11, %v5723_v25  ;;  %6695 = vmatmul.msk.f32.gmra.mxu2 %vm3570_vm0, %v5534_v7 }
 0xb11   : > { %6194 = vxpose.xlu0.b32.cont [9/16] (narrow) %v6162_v16, 8  ;;  %v5537_v51 = vmax.f32 %v5505_v44, 0.0 }
 0xb13   : > { %v6085_v12 = vpop.f32.mrf.mxu2 }
 0xb14   : > { %v6086_v8 = vadd.f32 %v6085_v12, %v5873_v55 }
 0xb15   : > { %v5876_v50 = vpop.f32.mrf.mxu1 }
 0xb16   : > { %v6163_v13 = vadd.f32 %v6086_v8, %v11147_v56 }
 0xb18   : > { %6663 = vmatmul.msk.f32.gmra.mxu1 %vm3667_vm11, %v5724_v31  ;;  %6696 = vmatmul.msk.f32.gmra.mxu2 %vm3570_vm0, %v5535_v59 }
 0xb19   : > { %6195 = vxpose.xlu0.b32.cont [10/16] (narrow) %v6163_v13, 8 }
 0xb1b   : > { %v6088_v45 = vpop.f32.mrf.mxu2 }
 0xb1c   : > { %v6089_v3 = vadd.f32 %v6088_v45, %v5876_v50 }
 0xb1d   : > { %v5879_v57 = vpop.f32.mrf.mxu1 }
 0xb1e   : > { %v6164_v26 = vadd.f32 %v6089_v3, %v11147_v56 }
 0xb20   : > { %6664 = vmatmul.msk.f32.gmra.mxu1 %vm3667_vm11, %v5725_v53  ;;  %6697 = vmatmul.msk.f32.gmra.mxu2 %vm3570_vm0, %v5536_v11 }
 0xb21   : > { %6196 = vxpose.xlu0.b32.cont [11/16] (narrow) %v6164_v26, 8 }
 0xb23   : > { %v6091_v40 = vpop.f32.mrf.mxu2 }
 0xb24   : > { %v6092_v19 = vadd.f32 %v6091_v40, %v5879_v57 }
 0xb25   : > { %v5882_v9 = vpop.f32.mrf.mxu1 }
 0xb26   : > { %v6165_v5 = vadd.f32 %v6092_v19, %v11147_v56 }
 0xb28   : > { %6665 = vmatmul.msk.f32.gmra.mxu1 %vm3667_vm11, %v5726_v63  ;;  %6698 = vmatmul.msk.f32.gmra.mxu2 %vm3570_vm0, %v5537_v51 }
 0xb29   : > { %6197 = vxpose.xlu0.b32.cont [12/16] (narrow) %v6165_v5, 8 }
 0xb2b   : > { %v6094_v35 = vpop.f32.mrf.mxu2 }
 0xb2c   : > { %v6095_v23 = vadd.f32 %v6094_v35, %v5882_v9 }
 0xb2d   : > { %v5885_v61 = vpop.f32.mrf.mxu1 }
 0xb2e   : > { %v6166_v24 = vadd.f32 %v6095_v23, %v11147_v56 }
 0xb31   : > { %6198 = vxpose.xlu0.b32.cont [13/16] (narrow) %v6166_v24, 8 }
 0xb33   : > { %v6097_v41 = vpop.f32.mrf.mxu2 }
 0xb34   : > { %v6098_v22 = vadd.f32 %v6097_v41, %v5885_v61 }
 0xb35   : > { %v5888_v62 = vpop.f32.mrf.mxu1 }
 0xb36   : > { %v6167_v34 = vadd.f32 %v6098_v22, %v11147_v56  ;;  %v5657_v54 = vpop.f32.mrf.mxu0 }
 0xb37   : > { %v5658_v6 = vadd.f32 %v5657_v54, %v10983_v47 }
 0xb39   : > { %v5695_v49 = vadd.f32 %v5658_v6, %v10949_v27  ;;  %6199 = vxpose.xlu0.b32.cont [14/16] (narrow) %v6167_v34, 8 }
 0xb3b   : > { %v5727_v18 = vmax.f32 %v5695_v49, 0.0  ;;  %v6100_v33 = vpop.f32.mrf.mxu2 }
 0xb3c   : > { %v6101_v20 = vadd.f32 %v6100_v33, %v5888_v62  ;;  %v5468_v1 = vpop.f32.mrf.mxu3 }
 0xb3d   : > { %v5469_v43 = vadd.f32 %v5468_v1, %v10988_v48  ;;  %v5891_v15 = vpop.f32.mrf.mxu1  ;;  %6666 = vmatmul.msk.f32.gmra.mxu1 %vm3667_vm11, %v5727_v18 }
 0xb3e   : > { %v6168_v14 = vadd.f32 %v6101_v20, %v11147_v56 }
 0xb3f   : > { %v5660_v52 = vpop.f32.mrf.mxu0  ;;  %v5506_v25 = vadd.f32 %v5469_v43, %v10952_v17 }
 0xb40   : > { %v5661_v55 = vadd.f32 %v5660_v52, %v10983_v47 }
 0xb41   : > { %v5538_v7 = vmax.f32 %v5506_v25, 0.0  ;;  %6200 = vxpose.xlu0.b32.cont [15/16] (narrow) %v6168_v14, 8 }
 0xb42   : > { %v5696_v27 = vadd.f32 %v5661_v55, %v10968_v2 }
 0xb43   : > { %v6103_v0 = vpop.f32.mrf.mxu2  ;;  %6699 = vmatmul.msk.f32.gmra.mxu2 %vm3570_vm0, %v5538_v7 }
 0xb44   : > { %v5728_v21 = vmax.f32 %v5696_v27, 0.0  ;;  %v6104_v16 = vadd.f32 %v6103_v0, %v5891_v15 }
 0xb45   : > { %v5471_v29 = vpop.f32.mrf.mxu3  ;;  %v5894_v28 = vpop.f32.mrf.mxu1 }
 0xb46   : > { %v5472_v38 = vadd.f32 %v5471_v29, %v10988_v48  ;;  %6667 = vmatmul.msk.f32.gmra.mxu1 %vm3667_vm11, %v5728_v21  ;;  %v6169_v36 = vadd.f32 %v6104_v16, %v11147_v56 }
 0xb47   : > { %v5663_v12 = vpop.f32.mrf.mxu0 }
 0xb48   : > { %v5507_v17 = vadd.f32 %v5472_v38, %v10971_v39  ;;  %v5664_v8 = vadd.f32 %v5663_v12, %v10983_v47  ;;  %v11505_v39 = vld [vmem:[#allocation22_spill] sm:$0xff] }
 0xb49   : > { %6201 = vxpose.xlu0.b32.end [16/16] (narrow) %v6169_v36, 8 }
 0xb4a   : > { %v5539_v2 = vmax.f32 %v5507_v17, 0.0  ;;  %v5697_v50 = vadd.f32 %v5664_v8, %v11504_v37 }
 0xb4b   : > { %v6106_v31 = vpop.f32.mrf.mxu2 }
 0xb4c   : > { %6700 = vmatmul.msk.f32.gmra.mxu2 %vm3570_vm0, %v5539_v2  ;;  %v5729_v59 = vmax.f32 %v5697_v50, 0.0  ;;  %v6107_v42 = vadd.f32 %v6106_v31, %v5894_v28 }
 0xb4d   : > { %v5474_v13 = vpop.f32.mrf.mxu3  ;;  %v5897_v32 = vpop.f32.mrf.mxu1 }
 0xb4e   : > { %v6170_v60 = vadd.f32 %v6107_v42, %v11147_v56  ;;  %v5475_v30 = vadd.f32 %v5474_v13, %v10988_v48  ;;  %6668 = vmatmul.msk.f32.gmra.mxu1 %vm3667_vm11, %v5729_v59 }
 0xb50   : > { %v5508_v58 = vadd.f32 %v5475_v30, %v11505_v39  ;;  %6218 = vxpose.xlu2.b32.start [1/16] (narrow) %v6170_v60, 8 }
 0xb52   : > { %v5540_v47 = vmax.f32 %v5508_v58, 0.0 }
 0xb53   : > { %v6109_v45 = vpop.f32.mrf.mxu2 }
 0xb54   : > { %v6110_v3 = vadd.f32 %v6109_v45, %v5897_v32  ;;  %6701 = vmatmul.msk.f32.gmra.mxu2 %vm3570_vm0, %v5540_v47 }
 0xb55   : > { %v5900_v53 = vpop.f32.mrf.mxu1 }
 0xb56   : > { %v6171_v57 = vadd.f32 %v6110_v3, %v11147_v56 }
 0xb58   : > { %6219 = vxpose.xlu2.b32.cont [2/16] (narrow) %v6171_v57, 8 }
 0xb5b   : > { %v6112_v11 = vpop.f32.mrf.mxu2 }
 0xb5c   : > { %v6113_v46 = vadd.f32 %v6112_v11, %v5900_v53 }
 0xb5d   : > { %v5903_v4 = vpop.f32.mrf.mxu1 }
 0xb5e   : > { %v6172_v26 = vadd.f32 %v6113_v46, %v11147_v56 }
 0xb60   : > { %6220 = vxpose.xlu2.b32.cont [3/16] (narrow) %v6172_v26, 8 }
 0xb63   : > { %v6115_v48 = vpop.f32.mrf.mxu2 }
 0xb64   : > { %v6116_v10 = vadd.f32 %v6115_v48, %v5903_v4 }
 0xb65   : > { %v5906_v44 = vpop.f32.mrf.mxu1 }
 0xb66   : > { %v6173_v40 = vadd.f32 %v6116_v10, %v11147_v56 }
 0xb68   : > { %6221 = vxpose.xlu2.b32.cont [4/16] (narrow) %v6173_v40, 8 }
 0xb6b   : > { %v6118_v19 = vpop.f32.mrf.mxu2 }
 0xb6c   : > { %v6119_v9 = vadd.f32 %v6118_v19, %v5906_v44 }
 0xb6d   : > { %v5909_v63 = vpop.f32.mrf.mxu1 }
 0xb6e   : > { %v6174_v51 = vadd.f32 %v6119_v9, %v11147_v56 }
 0xb70   : > { %6222 = vxpose.xlu2.b32.cont [5/16] (narrow) %v6174_v51, 8 }
 0xb73   : > { %v6121_v5 = vpop.f32.mrf.mxu2 }
 0xb74   : > { %v6122_v35 = vadd.f32 %v6121_v5, %v5909_v63 }
 0xb75   : > { %v5912_v23 = vpop.f32.mrf.mxu1  ;;  %v6202_v39 = vpop.trf.xlu0 }
 0xb76   : > { %v6175_v61 = vadd.f32 %v6122_v35, %v11147_v56 }
 0xb78   : > { %6223 = vxpose.xlu2.b32.cont [6/16] (narrow) %v6175_v61, 8 }
 0xb7b   : > { %v6124_v24 = vpop.f32.mrf.mxu2 }
 0xb7c   : > { %v6125_v41 = vadd.f32 %v6124_v24, %v5912_v23 }
 0xb7d   : > { %v5915_v22 = vpop.f32.mrf.mxu1 }
 0xb7e   : > { %v6176_v62 = vadd.f32 %v6125_v41, %v11147_v56 }
 0xb80   : > { %6224 = vxpose.xlu2.b32.cont [7/16] (narrow) %v6176_v62, 8 }
 0xb83   : > { %v6127_v34 = vpop.f32.mrf.mxu2 }
 0xb84   : > { %v6128_v54 = vadd.f32 %v6127_v34, %v5915_v22 }
 0xb85   : > { %v5918_v6 = vpop.f32.mrf.mxu1 }
 0xb86   : > { %v6177_v49 = vadd.f32 %v6128_v54, %v11147_v56 }
 0xb88   : > { %6225 = vxpose.xlu2.b32.cont [8/16] (narrow) %v6177_v49, 8 }
 0xb8b   : > { %v6130_v18 = vpop.f32.mrf.mxu2 }
 0xb8c   : > { %v6131_v33 = vadd.f32 %v6130_v18, %v5918_v6 }
 0xb8d   : > { %v5921_v20 = vpop.f32.mrf.mxu1 }
 0xb8e   : > { %v6178_v1 = vadd.f32 %v6131_v33, %v11147_v56 }
 0xb90   : > { %6226 = vxpose.xlu2.b32.cont [9/16] (narrow) %v6178_v1, 8 }
 0xb93   : > { %v6133_v43 = vpop.f32.mrf.mxu2 }
 0xb94   : > { %v6134_v15 = vadd.f32 %v6133_v43, %v5921_v20 }
 0xb95   : > { %v5924_v52 = vpop.f32.mrf.mxu1 }
 0xb96   : > { %v6179_v14 = vadd.f32 %v6134_v15, %v11147_v56 }
 0xb98   : > { %6227 = vxpose.xlu2.b32.cont [10/16] (narrow) %v6179_v14, 8 }
 0xb9b   : > { %v6136_v25 = vpop.f32.mrf.mxu2 }
 0xb9c   : > { %v6137_v55 = vadd.f32 %v6136_v25, %v5924_v52 }
 0xb9d   : > { %v5927_v27 = vpop.f32.mrf.mxu1 }
 0xb9e   : > { %v6180_v7 = vadd.f32 %v6137_v55, %v11147_v56 }
 0xba0   : > { %6228 = vxpose.xlu2.b32.cont [11/16] (narrow) %v6180_v7, 8 }
 0xba3   : > { %v6139_v21 = vpop.f32.mrf.mxu2 }
 0xba4   : > { %v6140_v0 = vadd.f32 %v6139_v21, %v5927_v27 }
 0xba5   : > { %v5930_v29 = vpop.f32.mrf.mxu1 }
 0xba6   : > { %v6181_v16 = vadd.f32 %v6140_v0, %v11147_v56 }
 0xba8   : > { %6229 = vxpose.xlu2.b32.cont [12/16] (narrow) %v6181_v16, 8 }
 0xbab   : > { %v6142_v38 = vpop.f32.mrf.mxu2 }
 0xbac   : > { %v6143_v28 = vadd.f32 %v6142_v38, %v5930_v29 }
 0xbae   : > { %v6182_v36 = vadd.f32 %v6143_v28, %v11147_v56 }
 0xbb0   : > { %6230 = vxpose.xlu2.b32.cont [13/16] (narrow) %v6182_v36, 8 }
 0xbba   : > { %v5933_v17 = vpop.f32.mrf.mxu1 }
 0xbc3   : > { %v5936_v37 = vpop.f32.mrf.mxu1 }
 0xbc6   : > { %v6145_v12 = vpop.f32.mrf.mxu2 }
 0xbc7   : > { %v6146_v8 = vadd.f32 %v6145_v12, %v5933_v17 }
 0xbc9   : > { %v6183_v2 = vadd.f32 %v6146_v8, %v11147_v56 }
 0xbcb   : > { %6231 = vxpose.xlu2.b32.cont [14/16] (narrow) %v6183_v2, 8  ;;  %v5939_v42 = vpop.f32.mrf.mxu1 }
 0xbcf   : > { %v6148_v50 = vpop.f32.mrf.mxu2 }
 0xbd0   : > { %v6149_v31 = vadd.f32 %v6148_v50, %v5936_v37 }
 0xbd2   : > { %v6184_v59 = vadd.f32 %v6149_v31, %v11147_v56 }
 0xbd4   : > { %6232 = vxpose.xlu2.b32.cont [15/16] (narrow) %v6184_v59, 8 }
 0xbd7   : > { %v6151_v13 = vpop.f32.mrf.mxu2 }
 0xbd8   : > { %v6152_v32 = vadd.f32 %v6151_v13, %v5939_v42 }
 0xbda   : > { %v6185_v60 = vadd.f32 %v6152_v32, %v11147_v56 }
 0xbdc   : > { %6233 = vxpose.xlu2.b32.end [16/16] (narrow) %v6185_v60, 8 }
 0xbfd   : > { %v6234_v30 = vpop.trf.xlu2 }
 0xbfe   : > { %v6252_v58 = vrot.slane %v6234_v30, 6 }
 0xc00   : > { %v6253_v47 = vsel %vm3453_vm3, %v6202_v39, %v6252_v58 }
 0xc01   : > { %6255 = vst [vmem:[%s326_s25] sm:$0xf] %v6253_v47 }
 0xc02   : > { %7030 = shalt.err (!%p7027_p3)
}
 0xc03   : > { %6708 = dma.vmem_to_hbm [thread:$0]  (%p7159_p5), %s6271_s16, 64, %s6273_s21, %s6257_s22  }
 0xc04 PF: > { %p6714_p4 = scmp.ge.s32.totalorder %s7065_s12, 2  ;;  %s6284_s17 = sand.u32 1, %s7053_s30  }
 0xc05   : > { %s6285_s14 = scalar_lea.sflag [#allocation3], %s6284_s17 }
 0xc06   : > { %p6711_p7 = pnand %p6714_p4, %p7163_p6 }
 0xc08   : > { %p6712_p8 = pneg %p6711_p7 }
 0xc0a   : > { %7048 = dma.done.wait (%p6712_p8), %s6285_s14, 64  }
 0xc0b   : > { %7050 = vsyncadd (%p6712_p8), %s6285_s14, 4294967232  ;;  %p19_p9 = scmp.ge.s32.totalorder %s7146_s15, 4   ;;  %s11506_s30 = smov %s7057_s10 }
 0xc0c   : > { %s11507_s10 = smov %s7061_s11  ;;  %s11508_s11 = smov %s7157_s18 }
 0xc0d   : > { %s11509_s12 = smov %s7146_s15  ;;  %21 = sbr.rel (!%p19_p9) target bundleno = 3 (0x3), region = 92 }
 0xc12   :  { %6291 = vsyncpa [#allocation3], 1 }
 0xc13   :  { %6293 = vsyncpa [#allocation3 + $0x1], 1 }

</bundles_post_ra>
